<compile_context>
chip_gen: v7x
topology: tpu7x:2x2x1
jax: 0.10.0
libtpu: 0.0.40
codegen_flags: <defaults>
</compile_context>

<pallas_src>
import numpy as np

import jax
import jax.numpy as jnp
from jax.experimental import pallas as pl
from jax.experimental.pallas import tpu as pltpu


# ----------------------------------------------------------------------------
# Problem sizes (synthetic YOLOv4-style backbone; PyTorch input is NCHW)
# ----------------------------------------------------------------------------
BATCH = 2
C_IN = 4
H_IN = W_IN = 16              # input spatial size
C0 = 8                        # conv0 output channels
C1 = 16                       # channels at the 8x8 level
BG = 10                       # 10x10: block grid of the 16x16 level AND the
                              #        zero-padded layout of the 8x8 level
R = BATCH * BG * BG           # 200 flat rows (both levels, by construction)
GUARD = 16                    # guard rows so every shifted tap slice is in-bounds
N_CLASSES = 10
HIDDEN = 1024

CONV_CFG = {                  # synthetic stand-in for `module_list`
    "conv0": dict(k=3, s=1, cin=C_IN, cout=C0),   # 0: -> 16x16x8
    "conv1": dict(k=3, s=2, cin=C0,   cout=C1),   # 1: -> 8x8x16
    "conv2": dict(k=1, s=1, cin=C1,   cout=C1),   # 2
    "conv3": dict(k=3, s=1, cin=C1,   cout=C1),   # 3
    # module 4: WeightedFeatureFusion(layers=[1])  (shortcut add)
    # module 5: FeatureConcat(layers=[4, 2])       (channel concat -> 32)
    "conv6": dict(k=1, s=1, cin=2 * C1, cout=C1),  # 6: -> 8x8x16
}

# weight-slab row offsets (bf16 slab, 32 lanes wide, all offsets %16 == 0)
W0_R, W3_R, W1_R, W2_R, W6_R, WSLAB_ROWS = 0, 144, 288, 416, 432, 464
# bias-slab row assignments (f32 slab, (8, HIDDEN))
BF1_ROW, B0_ROW, B1_ROW, B2_ROW, B3_ROW, B6_ROW, BF2_ROW = 0, 1, 2, 3, 4, 5, 6

assert GUARD >= BG + 1  # shifted tap slices reach +/- (BG + 1) rows


# ----------------------------------------------------------------------------
# The single fused Pallas kernel
# ----------------------------------------------------------------------------
def _backbone_kernel(x_ref,        # (GUARD + R + GUARD, 16)  bf16  s2d input
                     wslab_ref,    # (464, 32)                bf16  packed conv weights
                     bias_ref,     # (8, 1024)                f32   packed biases
                     wf1_ref,      # (16, 1024)               bf16
                     wf2_ref,      # (1024, 10)               bf16
                     out_ref,      # (BATCH, N_CLASSES)       f32
                     y0_buf,       # (GUARD + R, 32)          bf16 scratch (s2d 16x16 level)
                     y2_buf,       # (GUARD + R + GUARD, 16)  bf16 scratch (8x8 level)
                     y1_buf):      # (R, 16)                  f32  scratch (shortcut source)
    f32 = jnp.float32
    bf16 = jnp.bfloat16
    G = GUARD

    def leaky(a):
        return jnp.where(a > 0.0, a, 0.1 * a)

    # ---- in-kernel masks: iota + compares only (no div/mod, no HBM masks) --
    r_idx = jax.lax.broadcasted_iota(jnp.int32, (R, 1), 0)
    q = jnp.where(r_idx >= 100, r_idx - 100, r_idx)          # index within image, 0..99
    m = q
    for thr in (80, 40, 20, 10):                              # m = q mod 10 (block column)
        m = jnp.where(m >= thr, m - thr, m)
    mask10 = (q >= 10) & (q <= 89) & (m >= 1) & (m <= 8)      # interior of the 10x10 grid
    bi0 = q < 10                                              # block row 0
    bj0 = m == 0                                              # block col 0
    cc = jax.lax.broadcasted_iota(jnp.int32, (1, 32), 1)      # s2d channel index
    pi0 = cc < 16                                             # sub-pixel row 0
    pj0 = (cc < 8) | ((cc >= 16) & (cc < 24))                 # sub-pixel col 0
    # zero exactly the padded-pixel-row-0 / col-0 positions of y0 (what conv1
    # must see as zero padding)
    mask_y0 = jnp.logical_not((bi0 & pi0) | (bj0 & pj0))      # (R, 32)

    # ---- zero only the guard rows of the tap-read scratch buffers ----------
    y0_buf[0:G, :] = jnp.zeros((G, 32), bf16)
    y2_buf[0:G, :] = jnp.zeros((G, C1), bf16)
    y2_buf[G + R:G + R + G, :] = jnp.zeros((G, C1), bf16)

    offs9 = [di * BG + dj for di in (-1, 0, 1) for dj in (-1, 0, 1)]
    offs4 = [-BG - 1, -BG, -1, 0]

    # ---- module 0: Conv3x3 s1 (4->8) + BN(folded) + LeakyReLU --------------
    # 3x3 conv == 3x3 block-conv on the s2d layout: one K=144 matmul.
    a0 = jnp.concatenate([x_ref[pl.ds(G + o, R), :] for o in offs9], axis=-1)
    w0 = wslab_ref[W0_R:W0_R + 144, 0:32]
    b0 = bias_ref[B0_ROW:B0_ROW + 1, 0:32]
    y0 = jnp.where(mask_y0,
                   leaky(jnp.dot(a0, w0, preferred_element_type=f32) + b0), 0.0)
    y0_buf[pl.ds(G, R), :] = y0.astype(bf16)

    # ---- module 1: Conv3x3 s2 (8->16), 16x16 -> 8x8 -------------------------
    # Stride-2 conv == 2x2 block-conv on the s2d layout: one K=128 matmul whose
    # output rows ARE the padded-8x8 flat layout (no projection / gather).
    a1 = jnp.concatenate([y0_buf[pl.ds(G + o, R), :] for o in offs4], axis=-1)
    w1 = wslab_ref[W1_R:W1_R + 128, 0:16]
    b1 = bias_ref[B1_ROW:B1_ROW + 1, 0:16]
    y1 = leaky(jnp.dot(a1, w1, preferred_element_type=f32) + b1)   # (R, 16) f32
    y1_buf[...] = y1

    # ---- module 2: Conv1x1 (16->16) -----------------------------------------
    w2 = wslab_ref[W2_R:W2_R + 16, 0:16]
    b2 = bias_ref[B2_ROW:B2_ROW + 1, 0:16]
    y2 = jnp.where(mask10,
                   leaky(jnp.dot(y1.astype(bf16), w2, preferred_element_type=f32) + b2),
                   0.0)
    y2_buf[pl.ds(G, R), :] = y2.astype(bf16)

    # ---- module 3: Conv3x3 s1 (16->16) on the 8x8 map -----------------------
    a3 = jnp.concatenate([y2_buf[pl.ds(G + o, R), :] for o in offs9], axis=-1)
    w3 = wslab_ref[W3_R:W3_R + 144, 0:16]
    b3 = bias_ref[B3_ROW:B3_ROW + 1, 0:16]
    y3 = leaky(jnp.dot(a3, w3, preferred_element_type=f32) + b3)

    # ---- module 4: WeightedFeatureFusion(layers=[1]) (shortcut add, f32) ----
    y4 = y3 + y1_buf[...]

    # ---- modules 5+6: FeatureConcat([4, 2]) -> Conv1x1 (32->16) -------------
    a6 = jnp.concatenate([y4.astype(bf16), y2_buf[pl.ds(G, R), :]], axis=-1)
    w6 = wslab_ref[W6_R:W6_R + 32, 0:16]
    b6 = bias_ref[B6_ROW:B6_ROW + 1, 0:16]
    y6 = jnp.where(mask10,
                   leaky(jnp.dot(a6, w6, preferred_element_type=f32) + b6), 0.0)

    # ---- head: AvgPool(1)+Flatten -> Linear+Hardswish -> [Dropout=id] -> Linear
    # Per-image row-sum selector built from iota (y6 padding rows are already 0).
    col = jax.lax.broadcasted_iota(jnp.int32, (BATCH, R), 1)
    row = jax.lax.broadcasted_iota(jnp.int32, (BATCH, R), 0)
    pm = ((col >= row * 100) & (col < (row + 1) * 100)).astype(f32)
    pooled = jnp.dot(pm, y6, preferred_element_type=f32) * (1.0 / 64.0)   # (B, 16)

    bf1 = bias_ref[BF1_ROW:BF1_ROW + 1, :]
    bf2 = bias_ref[BF2_ROW:BF2_ROW + 1, 0:N_CLASSES]
    h = jnp.dot(pooled.astype(bf16), wf1_ref[...], preferred_element_type=f32) + bf1
    h = h * jnp.clip(h + 3.0, 0.0, 6.0) * (1.0 / 6.0)                      # hardswish
    out_ref[...] = (jnp.dot(h.astype(bf16), wf2_ref[...],
                            preferred_element_type=f32) + bf2)


# ----------------------------------------------------------------------------
# Host-side constant construction (weight packing / layout plumbing)
# ----------------------------------------------------------------------------
def _build_w0_s2d(w0):
    """(3,3,C_IN,C0) conv weight -> (144, 32) 3x3 block-conv weight (s2d in & out)."""
    cin, cout = w0.shape[2], w0.shape[3]
    W = np.zeros((9 * 4 * cin, 4 * cout), np.float32)
    for pi_o in range(2):
        for pj_o in range(2):
            for di in range(3):
                for dj in range(3):
                    dbi, pi_in = divmod(pi_o + di - 1, 2)
                    dbj, pj_in = divmod(pj_o + dj - 1, 2)
                    t = (dbi + 1) * 3 + (dbj + 1)           # matches offs9 order
                    r0 = (t * 4 + 2 * pi_in + pj_in) * cin
                    c0 = (2 * pi_o + pj_o) * cout
                    W[r0:r0 + cin, c0:c0 + cout] = w0[di, dj]
    return W


def _build_w1_s2d(w1):
    """(3,3,C0,C1) stride-2 conv weight -> (128, 16) 2x2 block-conv weight."""
    c0, c1 = w1.shape[2], w1.shape[3]
    W = np.zeros((4 * 4 * c0, c1), np.float32)
    for di in range(3):
        for dj in range(3):
            dbi, pi = divmod(di, 2)
            dbj, pj = divmod(dj, 2)
            t = dbi * 2 + dbj                                # matches offs4 order
            r0 = (t * 4 + 2 * pi + pj) * c0
            W[r0:r0 + c0, :] = w1[di, dj]
    return W


def make_conv_params(key, k, cin, cout):
    kw, kg, kbt, kmu, kvr = jax.random.split(key, 5)
    w = jax.random.normal(kw, (k, k, cin, cout), jnp.float32)
    w = w * (1.0 / jnp.sqrt(float(k * k * cin)))
    gamma = 1.0 + 0.1 * jax.random.normal(kg, (cout,), jnp.float32)
    beta = 0.1 * jax.random.normal(kbt, (cout,), jnp.float32)
    mean = 0.1 * jax.random.normal(kmu, (cout,), jnp.float32)
    var = 1.0 + 0.1 * jax.random.uniform(kvr, (cout,), jnp.float32)
    scale = gamma / jnp.sqrt(var + 1e-5)          # fold BN (inference) in f32
    return w * scale, beta - mean * scale


def make_params(key):
    keys = jax.random.split(key, len(CONV_CFG) + 4)
    params = {}
    for i, (name, cfg) in enumerate(CONV_CFG.items()):
        params[name] = make_conv_params(keys[i], cfg["k"], cfg["cin"], cfg["cout"])
    c_final = CONV_CFG["conv6"]["cout"]
    params["fc1_w"] = jax.random.normal(keys[-4], (c_final, HIDDEN), jnp.float32) * 0.25
    params["fc1_b"] = 0.02 * jax.random.normal(keys[-3], (HIDDEN,), jnp.float32)
    params["fc2_w"] = jax.random.normal(keys[-2], (HIDDEN, N_CLASSES), jnp.float32) * 0.05
    params["fc2_b"] = 0.02 * jax.random.normal(keys[-1], (N_CLASSES,), jnp.float32)
    return params


def prepare_kernel_inputs(params):
    """Pack all constants into one bf16 weight slab + one f32 bias slab + FC weights."""
    w0, b0 = params["conv0"]
    w1, b1 = params["conv1"]
    w2, b2 = params["conv2"]
    w3, b3 = params["conv3"]
    w6, b6 = params["conv6"]

    wslab = np.zeros((WSLAB_ROWS, 32), np.float32)
    wslab[W0_R:W0_R + 144, 0:32] = _build_w0_s2d(np.asarray(w0))
    wslab[W3_R:W3_R + 144, 0:16] = np.asarray(w3).reshape(144, 16)
    wslab[W1_R:W1_R + 128, 0:16] = _build_w1_s2d(np.asarray(w1))
    wslab[W2_R:W2_R + 16, 0:16] = np.asarray(w2).reshape(16, 16)
    wslab[W6_R:W6_R + 32, 0:16] = np.asarray(w6).reshape(32, 16)

    bias = np.zeros((8, HIDDEN), np.float32)
    bias[BF1_ROW, :HIDDEN] = np.asarray(params["fc1_b"])
    bias[B0_ROW, 0:32] = np.tile(np.asarray(b0), 4)        # bias replicated per sub-pixel
    bias[B1_ROW, 0:16] = np.asarray(b1)
    bias[B2_ROW, 0:16] = np.asarray(b2)
    bias[B3_ROW, 0:16] = np.asarray(b3)
    bias[B6_ROW, 0:16] = np.asarray(b6)
    bias[BF2_ROW, 0:N_CLASSES] = np.asarray(params["fc2_b"])

    return dict(
        wslab=jnp.asarray(wslab, dtype=jnp.bfloat16),
        bias=jnp.asarray(bias, dtype=jnp.float32),
        wf1=params["fc1_w"].astype(jnp.bfloat16),
        wf2=params["fc2_w"].astype(jnp.bfloat16),
    )


def _pack_input_s2d(x_nchw):
    """NCHW input -> space-to-depth(2x2) padded-flat (GUARD + R + GUARD, 16) bf16."""
    x = jnp.transpose(x_nchw, (0, 2, 3, 1))                        # NHWC
    xp = jnp.pad(x, ((0, 0), (1, 3), (1, 3), (0, 0)))              # (B, 20, 20, C)
    xb = xp.reshape(BATCH, BG, 2, BG, 2, C_IN)                     # (n, bi, pi, bj, pj, c)
    xs = jnp.transpose(xb, (0, 1, 3, 2, 4, 5)).reshape(R, 4 * C_IN)
    xs = jnp.pad(xs, ((GUARD, GUARD), (0, 0)))
    return xs.astype(jnp.bfloat16)


@jax.jit
def yolov4_backbone_forward(x_nchw, consts):
    """Full Yolov4Backbone forward (inference) in one fused Pallas kernel."""
    xs = _pack_input_s2d(x_nchw)
    vmem = pl.BlockSpec(memory_space=pltpu.MemorySpace.VMEM)
    return pl.pallas_call(
        _backbone_kernel,
        out_shape=jax.ShapeDtypeStruct((BATCH, N_CLASSES), jnp.float32),
        in_specs=[vmem] * 5,
        out_specs=vmem,
        scratch_shapes=[
            pltpu.VMEM((GUARD + R, 32), jnp.bfloat16),           # y0 (s2d 16x16 level)
            pltpu.VMEM((GUARD + R + GUARD, C1), jnp.bfloat16),   # y2 (8x8 level)
            pltpu.VMEM((R, C1), jnp.float32),                    # y1 (shortcut source)
        ],
    )(xs, consts["wslab"], consts["bias"], consts["wf1"], consts["wf2"])


# ----------------------------------------------------------------------------
# Pure-JAX reference (no Pallas) for a correctness cross-check
# ----------------------------------------------------------------------------
def _reference_forward(x_nchw, params):
    x = jnp.transpose(x_nchw, (0, 2, 3, 1))

    def conv_bn_leaky(x, w, b, stride):
        N, H, W, _ = x.shape
        KH, KW, Cin, Cout = w.shape
        pad = KH // 2
        xp = jnp.pad(x, ((0, 0), (pad, pad), (pad, pad), (0, 0)))
        Hout = (H + 2 * pad - KH) // stride + 1
        Wout = (W + 2 * pad - KW) // stride + 1
        cols = []
        for di in range(KH):
            for dj in range(KW):
                cols.append(xp[:, di:di + stride * Hout:stride,
                               dj:dj + stride * Wout:stride, :])
        a = jnp.concatenate(cols, axis=-1).reshape(N * Hout * Wout, KH * KW * Cin)
        y = a @ w.reshape(KH * KW * Cin, Cout) + b
        y = jnp.where(y > 0.0, y, 0.1 * y)
        return y.reshape(N, Hout, Wout, Cout)

    y0 = conv_bn_leaky(x, *params["conv0"], 1)
    y1 = conv_bn_leaky(y0, *params["conv1"], 2)
    y2 = conv_bn_leaky(y1, *params["conv2"], 1)
    y3 = conv_bn_leaky(y2, *params["conv3"], 1)
    y4 = y3 + y1                                   # WeightedFeatureFusion([1])
    y5 = jnp.concatenate([y4, y2], axis=-1)        # FeatureConcat([4, 2])
    y6 = conv_bn_leaky(y5, *params["conv6"], 1)
    pooled = jnp.mean(y6, axis=(1, 2))             # AdaptiveAvgPool2d(1) + Flatten
    h = pooled @ params["fc1_w"] + params["fc1_b"]
    h = h * jnp.clip(h + 3.0, 0.0, 6.0) / 6.0      # Hardswish
    return h @ params["fc2_w"] + params["fc2_b"]   # Dropout(0.2) = identity (eval)


if __name__ == "__main__":
    key = jax.random.PRNGKey(0)
    kx, kp = jax.random.split(key)
    x = jax.random.normal(kx, (BATCH, C_IN, H_IN, W_IN), jnp.float32)  # PyTorch NCHW
    params = make_params(kp)
    consts = prepare_kernel_inputs(params)

    y = yolov4_backbone_forward(x, consts)
    y = jax.block_until_ready(y)

    assert y.shape == (BATCH, N_CLASSES), y.shape
    assert bool(jnp.all(jnp.isfinite(y)))
    y_ref = _reference_forward(x, params)
    err = float(jnp.max(jnp.abs(y - y_ref)))
    assert bool(jnp.allclose(y, y_ref, rtol=0.1, atol=0.02)), err
    print("KERNEL_OK")
</pallas_src>

<mosaic_0001>
module attributes {stable_mosaic.version = 11 : i64} {
  func.func @_backbone_kernel(%arg0: memref<232x16xbf16, #tpu.memory_space<vmem>>, %arg1: memref<464x32xbf16, #tpu.memory_space<vmem>>, %arg2: memref<8x1024xf32, #tpu.memory_space<vmem>>, %arg3: memref<16x1024xbf16, #tpu.memory_space<vmem>>, %arg4: memref<1024x10xbf16, #tpu.memory_space<vmem>>, %arg5: memref<2x10xf32, #tpu.memory_space<vmem>>, %arg6: memref<216x32xbf16, #tpu.memory_space<vmem>>, %arg7: memref<232x16xbf16, #tpu.memory_space<vmem>>, %arg8: memref<200x16xf32, #tpu.memory_space<vmem>>) attributes {dimension_semantics = [], scalar_prefetch = 0 : i64, scratch_operands = 3 : i64, tpu.core_type = #tpu.core_type<tc>} {
    %0 = tpu.iota {dimensions = array<i32: 0>} : vector<200x1xi32>
    %c100_i32 = arith.constant 100 : i32
    %1 = vector.broadcast %c100_i32 : i32 to vector<200x1xi32>
    %2 = arith.cmpi sge, %0, %1 : vector<200x1xi32>
    %c100_i32_0 = arith.constant 100 : i32
    %3 = vector.broadcast %c100_i32_0 : i32 to vector<200x1xi32>
    %4 = arith.subi %0, %3 : vector<200x1xi32>
    %5 = arith.select %2, %4, %0 : vector<200x1xi1>, vector<200x1xi32>
    %c80_i32 = arith.constant 80 : i32
    %6 = vector.broadcast %c80_i32 : i32 to vector<200x1xi32>
    %7 = arith.cmpi sge, %5, %6 : vector<200x1xi32>
    %c80_i32_1 = arith.constant 80 : i32
    %8 = vector.broadcast %c80_i32_1 : i32 to vector<200x1xi32>
    %9 = arith.subi %5, %8 : vector<200x1xi32>
    %10 = arith.select %7, %9, %5 : vector<200x1xi1>, vector<200x1xi32>
    %c40_i32 = arith.constant 40 : i32
    %11 = vector.broadcast %c40_i32 : i32 to vector<200x1xi32>
    %12 = arith.cmpi sge, %10, %11 : vector<200x1xi32>
    %c40_i32_2 = arith.constant 40 : i32
    %13 = vector.broadcast %c40_i32_2 : i32 to vector<200x1xi32>
    %14 = arith.subi %10, %13 : vector<200x1xi32>
    %15 = arith.select %12, %14, %10 : vector<200x1xi1>, vector<200x1xi32>
    %c20_i32 = arith.constant 20 : i32
    %16 = vector.broadcast %c20_i32 : i32 to vector<200x1xi32>
    %17 = arith.cmpi sge, %15, %16 : vector<200x1xi32>
    %c20_i32_3 = arith.constant 20 : i32
    %18 = vector.broadcast %c20_i32_3 : i32 to vector<200x1xi32>
    %19 = arith.subi %15, %18 : vector<200x1xi32>
    %20 = arith.select %17, %19, %15 : vector<200x1xi1>, vector<200x1xi32>
    %c10_i32 = arith.constant 10 : i32
    %21 = vector.broadcast %c10_i32 : i32 to vector<200x1xi32>
    %22 = arith.cmpi sge, %20, %21 : vector<200x1xi32>
    %c10_i32_4 = arith.constant 10 : i32
    %23 = vector.broadcast %c10_i32_4 : i32 to vector<200x1xi32>
    %24 = arith.subi %20, %23 : vector<200x1xi32>
    %25 = arith.select %22, %24, %20 : vector<200x1xi1>, vector<200x1xi32>
    %c10_i32_5 = arith.constant 10 : i32
    %26 = vector.broadcast %c10_i32_5 : i32 to vector<200x1xi32>
    %27 = arith.cmpi sge, %5, %26 : vector<200x1xi32>
    %c89_i32 = arith.constant 89 : i32
    %28 = vector.broadcast %c89_i32 : i32 to vector<200x1xi32>
    %29 = arith.cmpi sle, %5, %28 : vector<200x1xi32>
    %30 = arith.andi %27, %29 : vector<200x1xi1>
    %c1_i32 = arith.constant 1 : i32
    %31 = vector.broadcast %c1_i32 : i32 to vector<200x1xi32>
    %32 = arith.cmpi sge, %25, %31 : vector<200x1xi32>
    %33 = arith.andi %30, %32 : vector<200x1xi1>
    %c8_i32 = arith.constant 8 : i32
    %34 = vector.broadcast %c8_i32 : i32 to vector<200x1xi32>
    %35 = arith.cmpi sle, %25, %34 : vector<200x1xi32>
    %36 = arith.andi %33, %35 : vector<200x1xi1>
    %c10_i32_6 = arith.constant 10 : i32
    %37 = vector.broadcast %c10_i32_6 : i32 to vector<200x1xi32>
    %38 = arith.cmpi slt, %5, %37 : vector<200x1xi32>
    %c0_i32 = arith.constant 0 : i32
    %39 = vector.broadcast %c0_i32 : i32 to vector<200x1xi32>
    %40 = arith.cmpi eq, %25, %39 : vector<200x1xi32>
    %41 = tpu.iota {dimensions = array<i32: 1>} : vector<1x32xi32>
    %c16_i32 = arith.constant 16 : i32
    %42 = vector.broadcast %c16_i32 : i32 to vector<1x32xi32>
    %43 = arith.cmpi slt, %41, %42 : vector<1x32xi32>
    %c8_i32_7 = arith.constant 8 : i32
    %44 = vector.broadcast %c8_i32_7 : i32 to vector<1x32xi32>
    %45 = arith.cmpi slt, %41, %44 : vector<1x32xi32>
    %c16_i32_8 = arith.constant 16 : i32
    %46 = vector.broadcast %c16_i32_8 : i32 to vector<1x32xi32>
    %47 = arith.cmpi sge, %41, %46 : vector<1x32xi32>
    %c24_i32 = arith.constant 24 : i32
    %48 = vector.broadcast %c24_i32 : i32 to vector<1x32xi32>
    %49 = arith.cmpi slt, %41, %48 : vector<1x32xi32>
    %50 = arith.andi %47, %49 : vector<1x32xi1>
    %51 = arith.ori %45, %50 : vector<1x32xi1>
    %52 = vector.broadcast %38 : vector<200x1xi1> to vector<200x32xi1>
    %53 = vector.broadcast %43 : vector<1x32xi1> to vector<200x32xi1>
    %54 = arith.andi %52, %53 : vector<200x32xi1>
    %55 = vector.broadcast %40 : vector<200x1xi1> to vector<200x32xi1>
    %56 = vector.broadcast %51 : vector<1x32xi1> to vector<200x32xi1>
    %57 = arith.andi %55, %56 : vector<200x32xi1>
    %58 = arith.ori %54, %57 : vector<200x32xi1>
    %cst = arith.constant dense<true> : vector<200x32xi1>
    %59 = arith.xori %58, %cst : vector<200x32xi1>
    %cst_9 = arith.constant 0.000000e+00 : bf16
    %60 = vector.broadcast %cst_9 : bf16 to vector<16x32xbf16>
    %c0 = arith.constant 0 : index
    %c0_10 = arith.constant 0 : index
    %61 = vector.load %arg6[%c0, %c0_10] : memref<216x32xbf16, #tpu.memory_space<vmem>>, vector<16x32xbf16>
    tpu.vector_store %arg6[%c0, %c0_10], %60 {strides = array<i32>} : memref<216x32xbf16, #tpu.memory_space<vmem>>, vector<16x32xbf16>,
    %cst_11 = arith.constant 0.000000e+00 : bf16
    %62 = vector.broadcast %cst_11 : bf16 to vector<16x16xbf16>
    %c0_12 = arith.constant 0 : index
    %c0_13 = arith.constant 0 : index
    %63 = vector.load %arg7[%c0_12, %c0_13] : memref<232x16xbf16, #tpu.memory_space<vmem>>, vector<16x16xbf16>
    tpu.vector_store %arg7[%c0_12, %c0_13], %62 {strides = array<i32>} : memref<232x16xbf16, #tpu.memory_space<vmem>>, vector<16x16xbf16>,
    %cst_14 = arith.constant 0.000000e+00 : bf16
    %64 = vector.broadcast %cst_14 : bf16 to vector<16x16xbf16>
    %c216 = arith.constant 216 : index
    %c0_15 = arith.constant 0 : index
    %65 = vector.load %arg7[%c216, %c0_15] : memref<232x16xbf16, #tpu.memory_space<vmem>>, vector<16x16xbf16>
    tpu.vector_store %arg7[%c216, %c0_15], %64 {strides = array<i32>} : memref<232x16xbf16, #tpu.memory_space<vmem>>, vector<16x16xbf16>,
    %c5 = arith.constant 5 : index
    %c0_16 = arith.constant 0 : index
    %66 = vector.load %arg0[%c5, %c0_16] : memref<232x16xbf16, #tpu.memory_space<vmem>>, vector<200x16xbf16>
    %c6 = arith.constant 6 : index
    %c0_17 = arith.constant 0 : index
    %67 = vector.load %arg0[%c6, %c0_17] : memref<232x16xbf16, #tpu.memory_space<vmem>>, vector<200x16xbf16>
    %c7 = arith.constant 7 : index
    %c0_18 = arith.constant 0 : index
    %68 = vector.load %arg0[%c7, %c0_18] : memref<232x16xbf16, #tpu.memory_space<vmem>>, vector<200x16xbf16>
    %c15 = arith.constant 15 : index
    %c0_19 = arith.constant 0 : index
    %69 = vector.load %arg0[%c15, %c0_19] : memref<232x16xbf16, #tpu.memory_space<vmem>>, vector<200x16xbf16>
    %c16 = arith.constant 16 : index
    %c0_20 = arith.constant 0 : index
    %70 = vector.load %arg0[%c16, %c0_20] : memref<232x16xbf16, #tpu.memory_space<vmem>>, vector<200x16xbf16>
    %c17 = arith.constant 17 : index
    %c0_21 = arith.constant 0 : index
    %71 = vector.load %arg0[%c17, %c0_21] : memref<232x16xbf16, #tpu.memory_space<vmem>>, vector<200x16xbf16>
    %c25 = arith.constant 25 : index
    %c0_22 = arith.constant 0 : index
    %72 = vector.load %arg0[%c25, %c0_22] : memref<232x16xbf16, #tpu.memory_space<vmem>>, vector<200x16xbf16>
    %c26 = arith.constant 26 : index
    %c0_23 = arith.constant 0 : index
    %73 = vector.load %arg0[%c26, %c0_23] : memref<232x16xbf16, #tpu.memory_space<vmem>>, vector<200x16xbf16>
    %c27 = arith.constant 27 : index
    %c0_24 = arith.constant 0 : index
    %74 = vector.load %arg0[%c27, %c0_24] : memref<232x16xbf16, #tpu.memory_space<vmem>>, vector<200x16xbf16>
    %75 = tpu.concatenate %66, %67, %68, %69, %70, %71, %72, %73, %74 in 1 : vector<200x16xbf16>, vector<200x16xbf16>, vector<200x16xbf16>, vector<200x16xbf16>, vector<200x16xbf16>, vector<200x16xbf16>, vector<200x16xbf16>, vector<200x16xbf16>, vector<200x16xbf16> -> vector<200x144xbf16>
    %c0_25 = arith.constant 0 : index
    %c0_26 = arith.constant 0 : index
    %76 = vector.load %arg1[%c0_25, %c0_26] : memref<464x32xbf16, #tpu.memory_space<vmem>>, vector<144x32xbf16>
    %c1 = arith.constant 1 : index
    %c0_27 = arith.constant 0 : index
    %77 = vector.load %arg2[%c1, %c0_27] : memref<8x1024xf32, #tpu.memory_space<vmem>>, vector<1x32xf32>
    %cst_28 = arith.constant dense<0.000000e+00> : vector<200x32xf32>
    %78 = tpu.matmul %75, %76, %cst_28 {dimension_numbers = #tpu.dot_dimension_numbers<[1], [0], [0], [1], [0, 0, 1, 1], [], []>} : vector<200x144xbf16>, vector<144x32xbf16>, vector<200x32xf32> -> vector<200x32xf32>
    %79 = vector.broadcast %77 : vector<1x32xf32> to vector<200x32xf32>
    %80 = arith.addf %78, %79 : vector<200x32xf32>
    %cst_29 = arith.constant 0.000000e+00 : f32
    %81 = vector.broadcast %cst_29 : f32 to vector<200x32xf32>
    %82 = arith.cmpf ogt, %80, %81 : vector<200x32xf32>
    %cst_30 = arith.constant 1.000000e-01 : f32
    %83 = vector.broadcast %cst_30 : f32 to vector<200x32xf32>
    %84 = arith.mulf %83, %80 : vector<200x32xf32>
    %85 = arith.select %82, %80, %84 : vector<200x32xi1>, vector<200x32xf32>
    %cst_31 = arith.constant 0.000000e+00 : f32
    %86 = vector.broadcast %cst_31 : f32 to vector<200x32xf32>
    %87 = arith.select %59, %85, %86 : vector<200x32xi1>, vector<200x32xf32>
    %88 = arith.truncf %87 : vector<200x32xf32> to vector<200x32xbf16>
    %c16_32 = arith.constant 16 : index
    %c0_33 = arith.constant 0 : index
    %89 = vector.load %arg6[%c16_32, %c0_33] : memref<216x32xbf16, #tpu.memory_space<vmem>>, vector<200x32xbf16>
    tpu.vector_store %arg6[%c16_32, %c0_33], %88 {strides = array<i32>} : memref<216x32xbf16, #tpu.memory_space<vmem>>, vector<200x32xbf16>,
    %c5_34 = arith.constant 5 : index
    %c0_35 = arith.constant 0 : index
    %90 = vector.load %arg6[%c5_34, %c0_35] : memref<216x32xbf16, #tpu.memory_space<vmem>>, vector<200x32xbf16>
    %c6_36 = arith.constant 6 : index
    %c0_37 = arith.constant 0 : index
    %91 = vector.load %arg6[%c6_36, %c0_37] : memref<216x32xbf16, #tpu.memory_space<vmem>>, vector<200x32xbf16>
    %c15_38 = arith.constant 15 : index
    %c0_39 = arith.constant 0 : index
    %92 = vector.load %arg6[%c15_38, %c0_39] : memref<216x32xbf16, #tpu.memory_space<vmem>>, vector<200x32xbf16>
    %c16_40 = arith.constant 16 : index
    %c0_41 = arith.constant 0 : index
    %93 = vector.load %arg6[%c16_40, %c0_41] : memref<216x32xbf16, #tpu.memory_space<vmem>>, vector<200x32xbf16>
    %94 = tpu.concatenate %90, %91, %92, %93 in 1 : vector<200x32xbf16>, vector<200x32xbf16>, vector<200x32xbf16>, vector<200x32xbf16> -> vector<200x128xbf16>
    %c288 = arith.constant 288 : index
    %c0_42 = arith.constant 0 : index
    %95 = vector.load %arg1[%c288, %c0_42] : memref<464x32xbf16, #tpu.memory_space<vmem>>, vector<128x16xbf16>
    %c2 = arith.constant 2 : index
    %c0_43 = arith.constant 0 : index
    %96 = vector.load %arg2[%c2, %c0_43] : memref<8x1024xf32, #tpu.memory_space<vmem>>, vector<1x16xf32>
    %cst_44 = arith.constant dense<0.000000e+00> : vector<200x16xf32>
    %97 = tpu.matmul %94, %95, %cst_44 {dimension_numbers = #tpu.dot_dimension_numbers<[1], [0], [0], [1], [0, 0, 1, 1], [], []>} : vector<200x128xbf16>, vector<128x16xbf16>, vector<200x16xf32> -> vector<200x16xf32>
    %98 = vector.broadcast %96 : vector<1x16xf32> to vector<200x16xf32>
    %99 = arith.addf %97, %98 : vector<200x16xf32>
    %cst_45 = arith.constant 0.000000e+00 : f32
    %100 = vector.broadcast %cst_45 : f32 to vector<200x16xf32>
    %101 = arith.cmpf ogt, %99, %100 : vector<200x16xf32>
    %cst_46 = arith.constant 1.000000e-01 : f32
    %102 = vector.broadcast %cst_46 : f32 to vector<200x16xf32>
    %103 = arith.mulf %102, %99 : vector<200x16xf32>
    %104 = arith.select %101, %99, %103 : vector<200x16xi1>, vector<200x16xf32>
    %c0_47 = arith.constant 0 : index
    %c0_48 = arith.constant 0 : index
    %105 = vector.load %arg8[%c0_47, %c0_48] : memref<200x16xf32, #tpu.memory_space<vmem>>, vector<200x16xf32>
    tpu.vector_store %arg8[%c0_47, %c0_48], %104 {strides = array<i32>} : memref<200x16xf32, #tpu.memory_space<vmem>>, vector<200x16xf32>,
    %c416 = arith.constant 416 : index
    %c0_49 = arith.constant 0 : index
    %106 = vector.load %arg1[%c416, %c0_49] : memref<464x32xbf16, #tpu.memory_space<vmem>>, vector<16x16xbf16>
    %c3 = arith.constant 3 : index
    %c0_50 = arith.constant 0 : index
    %107 = vector.load %arg2[%c3, %c0_50] : memref<8x1024xf32, #tpu.memory_space<vmem>>, vector<1x16xf32>
    %108 = arith.truncf %104 : vector<200x16xf32> to vector<200x16xbf16>
    %cst_51 = arith.constant dense<0.000000e+00> : vector<200x16xf32>
    %109 = tpu.matmul %108, %106, %cst_51 {dimension_numbers = #tpu.dot_dimension_numbers<[1], [0], [0], [1], [0, 0, 1, 1], [], []>} : vector<200x16xbf16>, vector<16x16xbf16>, vector<200x16xf32> -> vector<200x16xf32>
    %110 = vector.broadcast %107 : vector<1x16xf32> to vector<200x16xf32>
    %111 = arith.addf %109, %110 : vector<200x16xf32>
    %cst_52 = arith.constant 0.000000e+00 : f32
    %112 = vector.broadcast %cst_52 : f32 to vector<200x16xf32>
    %113 = arith.cmpf ogt, %111, %112 : vector<200x16xf32>
    %cst_53 = arith.constant 1.000000e-01 : f32
    %114 = vector.broadcast %cst_53 : f32 to vector<200x16xf32>
    %115 = arith.mulf %114, %111 : vector<200x16xf32>
    %116 = arith.select %113, %111, %115 : vector<200x16xi1>, vector<200x16xf32>
    %cst_54 = arith.constant 0.000000e+00 : f32
    %117 = vector.shape_cast %36 : vector<200x1xi1> to vector<200x1xi1>
    %118 = vector.broadcast %117 : vector<200x1xi1> to vector<200x16xi1>
    %119 = vector.broadcast %cst_54 : f32 to vector<200x16xf32>
    %120 = arith.select %118, %116, %119 : vector<200x16xi1>, vector<200x16xf32>
    %121 = arith.truncf %120 : vector<200x16xf32> to vector<200x16xbf16>
    %c16_55 = arith.constant 16 : index
    %c0_56 = arith.constant 0 : index
    %122 = vector.load %arg7[%c16_55, %c0_56] : memref<232x16xbf16, #tpu.memory_space<vmem>>, vector<200x16xbf16>
    tpu.vector_store %arg7[%c16_55, %c0_56], %121 {strides = array<i32>} : memref<232x16xbf16, #tpu.memory_space<vmem>>, vector<200x16xbf16>,
    %c5_57 = arith.constant 5 : index
    %c0_58 = arith.constant 0 : index
    %123 = vector.load %arg7[%c5_57, %c0_58] : memref<232x16xbf16, #tpu.memory_space<vmem>>, vector<200x16xbf16>
    %c6_59 = arith.constant 6 : index
    %c0_60 = arith.constant 0 : index
    %124 = vector.load %arg7[%c6_59, %c0_60] : memref<232x16xbf16, #tpu.memory_space<vmem>>, vector<200x16xbf16>
    %c7_61 = arith.constant 7 : index
    %c0_62 = arith.constant 0 : index
    %125 = vector.load %arg7[%c7_61, %c0_62] : memref<232x16xbf16, #tpu.memory_space<vmem>>, vector<200x16xbf16>
    %c15_63 = arith.constant 15 : index
    %c0_64 = arith.constant 0 : index
    %126 = vector.load %arg7[%c15_63, %c0_64] : memref<232x16xbf16, #tpu.memory_space<vmem>>, vector<200x16xbf16>
    %c16_65 = arith.constant 16 : index
    %c0_66 = arith.constant 0 : index
    %127 = vector.load %arg7[%c16_65, %c0_66] : memref<232x16xbf16, #tpu.memory_space<vmem>>, vector<200x16xbf16>
    %c17_67 = arith.constant 17 : index
    %c0_68 = arith.constant 0 : index
    %128 = vector.load %arg7[%c17_67, %c0_68] : memref<232x16xbf16, #tpu.memory_space<vmem>>, vector<200x16xbf16>
    %c25_69 = arith.constant 25 : index
    %c0_70 = arith.constant 0 : index
    %129 = vector.load %arg7[%c25_69, %c0_70] : memref<232x16xbf16, #tpu.memory_space<vmem>>, vector<200x16xbf16>
    %c26_71 = arith.constant 26 : index
    %c0_72 = arith.constant 0 : index
    %130 = vector.load %arg7[%c26_71, %c0_72] : memref<232x16xbf16, #tpu.memory_space<vmem>>, vector<200x16xbf16>
    %c27_73 = arith.constant 27 : index
    %c0_74 = arith.constant 0 : index
    %131 = vector.load %arg7[%c27_73, %c0_74] : memref<232x16xbf16, #tpu.memory_space<vmem>>, vector<200x16xbf16>
    %132 = tpu.concatenate %123, %124, %125, %126, %127, %128, %129, %130, %131 in 1 : vector<200x16xbf16>, vector<200x16xbf16>, vector<200x16xbf16>, vector<200x16xbf16>, vector<200x16xbf16>, vector<200x16xbf16>, vector<200x16xbf16>, vector<200x16xbf16>, vector<200x16xbf16> -> vector<200x144xbf16>
    %c144 = arith.constant 144 : index
    %c0_75 = arith.constant 0 : index
    %133 = vector.load %arg1[%c144, %c0_75] : memref<464x32xbf16, #tpu.memory_space<vmem>>, vector<144x16xbf16>
    %c4 = arith.constant 4 : index
    %c0_76 = arith.constant 0 : index
    %134 = vector.load %arg2[%c4, %c0_76] : memref<8x1024xf32, #tpu.memory_space<vmem>>, vector<1x16xf32>
    %cst_77 = arith.constant dense<0.000000e+00> : vector<200x16xf32>
    %135 = tpu.matmul %132, %133, %cst_77 {dimension_numbers = #tpu.dot_dimension_numbers<[1], [0], [0], [1], [0, 0, 1, 1], [], []>} : vector<200x144xbf16>, vector<144x16xbf16>, vector<200x16xf32> -> vector<200x16xf32>
    %136 = vector.broadcast %134 : vector<1x16xf32> to vector<200x16xf32>
    %137 = arith.addf %135, %136 : vector<200x16xf32>
    %cst_78 = arith.constant 0.000000e+00 : f32
    %138 = vector.broadcast %cst_78 : f32 to vector<200x16xf32>
    %139 = arith.cmpf ogt, %137, %138 : vector<200x16xf32>
    %cst_79 = arith.constant 1.000000e-01 : f32
    %140 = vector.broadcast %cst_79 : f32 to vector<200x16xf32>
    %141 = arith.mulf %140, %137 : vector<200x16xf32>
    %142 = arith.select %139, %137, %141 : vector<200x16xi1>, vector<200x16xf32>
    %c0_80 = arith.constant 0 : index
    %c0_81 = arith.constant 0 : index
    %143 = vector.load %arg8[%c0_80, %c0_81] : memref<200x16xf32, #tpu.memory_space<vmem>>, vector<200x16xf32>
    %144 = arith.addf %142, %143 : vector<200x16xf32>
    %145 = arith.truncf %144 : vector<200x16xf32> to vector<200x16xbf16>
    %c16_82 = arith.constant 16 : index
    %c0_83 = arith.constant 0 : index
    %146 = vector.load %arg7[%c16_82, %c0_83] : memref<232x16xbf16, #tpu.memory_space<vmem>>, vector<200x16xbf16>
    %147 = tpu.concatenate %145, %146 in 1 : vector<200x16xbf16>, vector<200x16xbf16> -> vector<200x32xbf16>
    %c432 = arith.constant 432 : index
    %c0_84 = arith.constant 0 : index
    %148 = vector.load %arg1[%c432, %c0_84] : memref<464x32xbf16, #tpu.memory_space<vmem>>, vector<32x16xbf16>
    %c5_85 = arith.constant 5 : index
    %c0_86 = arith.constant 0 : index
    %149 = vector.load %arg2[%c5_85, %c0_86] : memref<8x1024xf32, #tpu.memory_space<vmem>>, vector<1x16xf32>
    %cst_87 = arith.constant dense<0.000000e+00> : vector<200x16xf32>
    %150 = tpu.matmul %147, %148, %cst_87 {dimension_numbers = #tpu.dot_dimension_numbers<[1], [0], [0], [1], [0, 0, 1, 1], [], []>} : vector<200x32xbf16>, vector<32x16xbf16>, vector<200x16xf32> -> vector<200x16xf32>
    %151 = vector.broadcast %149 : vector<1x16xf32> to vector<200x16xf32>
    %152 = arith.addf %150, %151 : vector<200x16xf32>
    %cst_88 = arith.constant 0.000000e+00 : f32
    %153 = vector.broadcast %cst_88 : f32 to vector<200x16xf32>
    %154 = arith.cmpf ogt, %152, %153 : vector<200x16xf32>
    %cst_89 = arith.constant 1.000000e-01 : f32
    %155 = vector.broadcast %cst_89 : f32 to vector<200x16xf32>
    %156 = arith.mulf %155, %152 : vector<200x16xf32>
    %157 = arith.select %154, %152, %156 : vector<200x16xi1>, vector<200x16xf32>
    %cst_90 = arith.constant 0.000000e+00 : f32
    %158 = vector.shape_cast %36 : vector<200x1xi1> to vector<200x1xi1>
    %159 = vector.broadcast %158 : vector<200x1xi1> to vector<200x16xi1>
    %160 = vector.broadcast %cst_90 : f32 to vector<200x16xf32>
    %161 = arith.select %159, %157, %160 : vector<200x16xi1>, vector<200x16xf32>
    %162 = tpu.iota {dimensions = array<i32: 1>} : vector<2x200xi32>
    %163 = tpu.iota {dimensions = array<i32: 0>} : vector<2x200xi32>
    %c100_i32_91 = arith.constant 100 : i32
    %164 = vector.broadcast %c100_i32_91 : i32 to vector<2x200xi32>
    %165 = arith.muli %163, %164 : vector<2x200xi32>
    %166 = arith.cmpi sge, %162, %165 : vector<2x200xi32>
    %c1_i32_92 = arith.constant 1 : i32
    %167 = vector.broadcast %c1_i32_92 : i32 to vector<2x200xi32>
    %168 = arith.addi %163, %167 : vector<2x200xi32>
    %c100_i32_93 = arith.constant 100 : i32
    %169 = vector.broadcast %c100_i32_93 : i32 to vector<2x200xi32>
    %170 = arith.muli %168, %169 : vector<2x200xi32>
    %171 = arith.cmpi slt, %162, %170 : vector<2x200xi32>
    %172 = arith.andi %166, %171 : vector<2x200xi1>
    %173 = arith.extui %172 : vector<2x200xi1> to vector<2x200xi32>
    %174 = arith.sitofp %173 : vector<2x200xi32> to vector<2x200xf32>
    %cst_94 = arith.constant dense<0.000000e+00> : vector<2x16xf32>
    %175 = tpu.matmul %174, %161, %cst_94 {dimension_numbers = #tpu.dot_dimension_numbers<[1], [0], [0], [1], [0, 0, 1, 1], [], []>} : vector<2x200xf32>, vector<200x16xf32>, vector<2x16xf32> -> vector<2x16xf32>
    %cst_95 = arith.constant 1.562500e-02 : f32
    %176 = vector.broadcast %cst_95 : f32 to vector<2x16xf32>
    %177 = arith.mulf %175, %176 : vector<2x16xf32>
    %c0_96 = arith.constant 0 : index
    %c0_97 = arith.constant 0 : index
    %178 = vector.load %arg2[%c0_96, %c0_97] : memref<8x1024xf32, #tpu.memory_space<vmem>>, vector<1x1024xf32>
    %c6_98 = arith.constant 6 : index
    %c0_99 = arith.constant 0 : index
    %179 = vector.load %arg2[%c6_98, %c0_99] : memref<8x1024xf32, #tpu.memory_space<vmem>>, vector<1x10xf32>
    %180 = arith.truncf %177 : vector<2x16xf32> to vector<2x16xbf16>
    %c0_100 = arith.constant 0 : index
    %c0_101 = arith.constant 0 : index
    %181 = vector.load %arg3[%c0_100, %c0_101] : memref<16x1024xbf16, #tpu.memory_space<vmem>>, vector<16x1024xbf16>
    %cst_102 = arith.constant dense<0.000000e+00> : vector<2x1024xf32>
    %182 = tpu.matmul %180, %181, %cst_102 {dimension_numbers = #tpu.dot_dimension_numbers<[1], [0], [0], [1], [0, 0, 1, 1], [], []>} : vector<2x16xbf16>, vector<16x1024xbf16>, vector<2x1024xf32> -> vector<2x1024xf32>
    %183 = vector.broadcast %178 : vector<1x1024xf32> to vector<2x1024xf32>
    %184 = arith.addf %182, %183 : vector<2x1024xf32>
    %cst_103 = arith.constant 3.000000e+00 : f32
    %185 = vector.broadcast %cst_103 : f32 to vector<2x1024xf32>
    %186 = arith.addf %184, %185 : vector<2x1024xf32>
    %cst_104 = arith.constant 0.000000e+00 : f32
    %cst_105 = arith.constant 6.000000e+00 : f32
    %187 = vector.broadcast %cst_104 : f32 to vector<2x1024xf32>
    %188 = arith.maximumf %187, %186 : vector<2x1024xf32>
    %189 = vector.broadcast %cst_105 : f32 to vector<2x1024xf32>
    %190 = arith.minimumf %189, %188 : vector<2x1024xf32>
    %191 = arith.mulf %184, %190 : vector<2x1024xf32>
    %cst_106 = arith.constant 0.166666672 : f32
    %192 = vector.broadcast %cst_106 : f32 to vector<2x1024xf32>
    %193 = arith.mulf %191, %192 : vector<2x1024xf32>
    %194 = arith.truncf %193 : vector<2x1024xf32> to vector<2x1024xbf16>
    %c0_107 = arith.constant 0 : index
    %c0_108 = arith.constant 0 : index
    %195 = vector.load %arg4[%c0_107, %c0_108] : memref<1024x10xbf16, #tpu.memory_space<vmem>>, vector<1024x10xbf16>
    %cst_109 = arith.constant dense<0.000000e+00> : vector<2x10xf32>
    %196 = tpu.matmul %194, %195, %cst_109 {dimension_numbers = #tpu.dot_dimension_numbers<[1], [0], [0], [1], [0, 0, 1, 1], [], []>} : vector<2x1024xbf16>, vector<1024x10xbf16>, vector<2x10xf32> -> vector<2x10xf32>
    %197 = vector.broadcast %179 : vector<1x10xf32> to vector<2x10xf32>
    %198 = arith.addf %196, %197 : vector<2x10xf32>
    %c0_110 = arith.constant 0 : index
    %c0_111 = arith.constant 0 : index
    %199 = vector.load %arg5[%c0_110, %c0_111] : memref<2x10xf32, #tpu.memory_space<vmem>>, vector<2x10xf32>
    tpu.vector_store %arg5[%c0_110, %c0_111], %198 {strides = array<i32>} : memref<2x10xf32, #tpu.memory_space<vmem>>, vector<2x10xf32>,
    return
  }
}

</mosaic_0001>

<bundles_post_ra>
// kernel: yolov4_backbone_forward.1
= control target key start
LH: loop header
LB: loop body
LE: loop exit
PB: predicated region body
PF: predicated region fallthrough
CT: control target
= control target key end

     0   :  { %vm11597_vm0 = vcmask 1046528   ;;  %s7897_s9 = smov 48   ;;  %vm11598_vm1 = vsmask.f32 7424  ;;  %s7898_s10 = smov 32   ;;  %vm11575_vm3 = vcmask 1041408   ;;  %s11564_s0 = inlined_call_operand.vmem [shape: bf16[232,16], index: 0, kind: input, shape index: {}]   ;;  %s11565_s1 = inlined_call_operand.vmem [shape: bf16[464,32], index: 1, kind: input, shape index: {}]   ;;  %s11566_s2 = inlined_call_operand.vmem [shape: f32[8,1024], index: 2, kind: input, shape index: {}]   ;;  %s11567_s3 = inlined_call_operand.vmem [shape: bf16[16,1024], index: 3, kind: input, shape index: {}]   ;;  %s11568_s4 = inlined_call_operand.vmem [shape: bf16[1024,10], index: 4, kind: input, shape index: {}]   ;;  %s11569_s5 = inlined_call_operand.hbm [shape: f32[2,10], index: 5, kind: output, shape index: {}]  }
   0x1   :  { %v870_v0 = vld [vmem:[%s11564_s0 + $0x8] sm:$0xf]  ;;  %v871_v1 = vld [vmem:[%s11564_s0 + $0xc] sm:$0xf]  ;;  %v872_v2 = vld [vmem:[%s11564_s0 + $0x10] sm:$0xf] }
   0x2   :  { %v873_v3 = vld [vmem:[%s11564_s0 + $0x14] sm:$0xf]  ;;  %v7953_v4 = vcombine.low %v871_v1, %v872_v2  ;;  %v7955_v5 = vcombine.low %v870_v0, %v871_v1  ;;  %v896_v6 = vld [vmem:[%s11564_s0 + $0x4] sm:$0x8]  ;;  %v7965_v8 = vld [vmem:[%s11564_s0 + $0x18] sm:$0xf] }
   0x3   :  { %v7960_v7 = vcombine.low %v872_v2, %v873_v3  ;;  %v6947_v9 = vcombine.low %v896_v6, %v870_v0  ;;  %v869_v10 = vld [vmem:[%s11564_s0 + $0x4] sm:$0xf]  ;;  %v894_v12 = vld [vmem:[%s11564_s0] sm:$0x8]  ;;  %v7978_v18 = vcombine.low %v873_v3, %v7965_v8  ;;  %v901_v34 = vld [vmem:[%s11564_s0 + $0xc] sm:$0xe] }
   0x4   :  { %v1174_v11 = vrot.slane %v7953_v4, 1  ;;  %v1106_v13 = vrot.slane %v7955_v5, 1  ;;  %v6945_v15 = vcombine.low %v894_v12, %v869_v10  ;;  %v980_v17 = vshll.u32 %v7955_v5, 16  ;;  %s7899_s13 = smov 16   ;;  %v875_v52 = vld [vmem:[%s11564_s0 + $0x1c] sm:$0xf] }
   0x5   :  { %v1173_v14 = vrot.slane %v6947_v9, 1  ;;  %v1108_v16 = vrot.slane %v7960_v7, 1  ;;  %v984_v19 = vshrl.u32 %v7955_v5, 16  ;;  %v988_v20 = vshll.u32 %v7960_v7, 16  ;;  %s7900_s16 = smov 64   ;;  %s7901_s19 = smov 80  }
   0x6   :  { %v1105_v22 = vrot.slane %v6945_v15, 1  ;;  %v973_v23 = vshrl.u32 %v6945_v15, 16  ;;  %v975_v24 = vshll.u32 %v6945_v15, 16  ;;  %v982_v25 = vrot.slane %v980_v17, 1  ;;  %v876_v61 = vld [vmem:[%s11564_s0 + $0x20] sm:$0xf] }
   0x7   :  { %v1175_v21 = vsel %vm11597_vm0, %v1173_v14, %v1174_v11  ;;  %v992_v26 = vshrl.u32 %v7960_v7, 16  ;;  %v1109_v28 = vsel %vm11597_vm0, %v1106_v13, %v1108_v16  ;;  %v1176_v30 = vrot.slane %v7978_v18, 1  ;;  %v877_v3 = vld [vmem:[%s11564_s0 + $0x24] sm:$0xf]  ;;  %s7902_s22 = smov 96   ;;  %s7903_s25 = smov 112  }
   0x8   :  { %1198 = vrot.lane.b32.xlu0 %v1175_v21, %s7897_s9  ;;  %v1107_v27 = vsel %vm11597_vm0, %v1105_v22, %v1106_v13  ;;  %v977_v29 = vrot.slane %v975_v24, 1  ;;  %v986_v31 = vor.u32 %v984_v19, %v982_v25  ;;  %v990_v32 = vrot.slane %v988_v20, 1  ;;  %v7726_v13 = vld [vmem:[%s11565_s1] sm:$0xff]   ;;  %v7728_v24 = vld [vmem:[%s11565_s1 + $0x8] sm:$0xff]  }
   0x9   :  { %1130 = vrot.lane.b32.xlu1 %v1107_v27, %s7898_s10  ;;  %v1226_v33 = vrot.slane %v984_v19, 5  ;;  %v1227_v36 = vrot.slane %v980_v17, 6  ;;  %v1229_v37 = vrot.slane %v992_v26, 5  ;;  %v1230_v38 = vrot.slane %v988_v20, 6 }
   0xa   :  { %v978_v35 = vor.u32 %v977_v29, %v973_v23  ;;  %v7997_v40 = vcombine.low %v901_v34, %v872_v2  ;;  %v1177_v41 = vsel %vm11597_vm0, %v1174_v11, %v1176_v30  ;;  %v991_v42 = vsel %vm11598_vm1, %v986_v31, %v990_v32 }
   0xb   :  { %v1228_v43 = vor.u32 %v1227_v36, %v1226_v33  ;;  %v8005_v44 = vor.u32 %v1230_v38, %v1229_v37  ;;  %vm11603_vm2 = vsmask.f32 2304  ;;  %v1317_v45 = vrot.slane %v7955_v5, 6  ;;  %v7730_v33 = vld [vmem:[%s11565_s1 + $0x10] sm:$0xff]  }
   0xc   :  { %v983_v39 = vsel %vm11598_vm1, %v978_v35, %v982_v25  ;;  %v1429_v46 = vshrl.u32 %v7997_v40, 16  ;;  %v1432_v47 = vshll.u32 %v7997_v40, 16  ;;  %v1318_v49 = vrot.slane %v7960_v7, 6  ;;  %v878_v25 = vld [vmem:[%s11564_s0 + $0x28] sm:$0xf] }
   0xd   :  { %1132 = vrot.lane.b32.xlu1 %v1109_v28, %s7898_s10  ;;  %1075 = vrot.lane.b32.xlu0 %v983_v39, %s7899_s13  ;;  %v1232_v48 = vsel %vm11603_vm2, %v1228_v43, %v8005_v44  ;;  %v1437_v50 = vshrl.u32 %v7978_v18, 16  ;;  %v1440_v51 = vshll.u32 %v7978_v18, 16  ;;  %v1373_v53 = vrot.slane %v7953_v4, 6 }
   0xe   :  { %v1374_v54 = vrot.slane %v7978_v18, 6  ;;  %v1431_v55 = vrot.slane %v1429_v46, 6  ;;  %v1434_v56 = vrot.slane %v1432_v47, 7  ;;  %v8025_v57 = vcombine.low %v7965_v8, %v875_v52 }
   0xf   :  { %v1319_v58 = vsel %vm11575_vm3, %v1317_v45, %v1318_v49  ;;  %v1439_v59 = vrot.slane %v1437_v50, 6  ;;  %v1442_v60 = vrot.slane %v1440_v51, 7  ;;  %vm11573_vm4 = vsmask.f32 1280  ;;  %v7733_v51 = vld [vmem:[%s11565_s1 + $0x20] sm:$0xff]  }
  0x10   :  { %v1375_v62 = vsel %vm11575_vm3, %v1373_v53, %v1374_v54  ;;  %v1435_v63 = vor.u32 %v1434_v56, %v1431_v55  ;;  %v996_v1 = vshll.u32 %v8025_v57, 16  ;;  %v1000_v2 = vshrl.u32 %v8025_v57, 16 }
  0x11   :  { %1200 = vrot.lane.b32.xlu1 %v1177_v41, %s7897_s9  ;;  %1077 = vrot.lane.b32.xlu0 %v991_v42, %s7899_s13  ;;  %v8038_v0 = vor.u32 %v1442_v60, %v1439_v59  ;;  %v8045_v4 = vcombine.low %v875_v52, %v876_v61  ;;  %v994_v6 = vor.u32 %v992_v26, %v990_v32  ;;  %v1110_v8 = vrot.slane %v8025_v57, 1  ;;  %v7731_v41 = vld [vmem:[%s11565_s1 + $0x18] sm:$0xff]   ;;  %v7735_v60 = vld [vmem:[%s11565_s1 + $0x28] sm:$0xff]  }
  0x12   :  { %v998_v10 = vrot.slane %v996_v1, 1  ;;  %v1233_v11 = vrot.slane %v1000_v2, 5  ;;  %v1234_v12 = vrot.slane %v996_v1, 6  ;;  %v8057_v14 = vcombine.low %v876_v61, %v877_v3 }
  0x13   :  { %v1444_v9 = vsel %vm11573_vm4, %v1435_v63, %v8038_v0  ;;  %v1111_v15 = vsel %vm11597_vm0, %v1108_v16, %v1110_v8  ;;  %v1178_v17 = vrot.slane %v8045_v4, 1  ;;  %v1446_v21 = vshrl.u32 %v8045_v4, 16 }
  0x14   :  { %v999_v19 = vsel %vm11598_vm1, %v994_v6, %v998_v10  ;;  %v8068_v20 = vor.u32 %v1234_v12, %v1233_v11  ;;  %v1449_v22 = vshll.u32 %v8045_v4, 16  ;;  %v11582_v23 = vmov 0   ;;  %v7736_v6 = vld [vmem:[%s11565_s1 + $0x30] sm:$0xff]  }
  0x15   :  { %1289 = vrot.lane.b32.xlu1 %v1232_v48, %s7900_s16  ;;  %1287 = vrot.lane.b32.xlu0 %v1228_v43, %s7900_s16  ;;  %v1320_v16 = vrot.slane %v8025_v57, 6  ;;  %v1376_v26 = vrot.slane %v8045_v4, 6  ;;  %v1004_v27 = vshll.u32 %v8057_v14, 16  ;;  %v1179_v28 = vsel %vm11597_vm0, %v1176_v30, %v1178_v17  ;;  %v879_v43 = vld [vmem:[%s11564_s0 + $0x2c] sm:$0xf] }
  0x16   :  { %2134 = vmatprep.subr.bf16.mxu0 %v11582_v23  ;;  %v1236_v29 = vsel %vm11603_vm2, %v8005_v44, %v8068_v20  ;;  %v1448_v31 = vrot.slane %v1446_v21, 6  ;;  %v1451_v32 = vrot.slane %v1449_v22, 7  ;;  %v1002_v34 = vor.u32 %v1000_v2, %v998_v10 }
  0x17   :  { %2135 = vmatpush1.bf16.msra.mxu0 %v7726_v13  ;;  %v1006_v35 = vrot.slane %v1004_v27, 1  ;;  %v8097_v30 = vcombine.low %v877_v3, %v878_v25  ;;  %v1321_v36 = vsel %vm11575_vm3, %v1318_v49, %v1320_v16  ;;  %v1377_v37 = vsel %vm11575_vm3, %v1374_v54, %v1376_v26  ;;  %v880_v3 = vld [vmem:[%s11564_s0 + $0x30] sm:$0xf] }
  0x18   :  { %2136 = vmatprep.subr.bf16.mxu0 %v11582_v23  ;;  %v1452_v38 = vor.u32 %v1451_v32, %v1448_v31  ;;  %v1008_v39 = vshrl.u32 %v8057_v14, 16  ;;  %v1112_v42 = vrot.slane %v8057_v14, 1  ;;  %v1238_v46 = vrot.slane %v1004_v27, 6  ;;  %v883_v32 = vld [vmem:[%s11564_s0 + $0x3c] sm:$0xf] }
  0x19   :  { %1344 = vrot.lane.b32.xlu1 %v1319_v58, %s7901_s19  ;;  %1342 = vrot.lane.b32.xlu0 %v1317_v45, %s7901_s19  ;;  %v1007_v44 = vsel %vm11598_vm1, %v1002_v34, %v1006_v35  ;;  %v1180_v45 = vrot.slane %v8097_v30, 1  ;;  %v1455_v49 = vshrl.u32 %v8097_v30, 16  ;;  %v1458_v50 = vshll.u32 %v8097_v30, 16 }
  0x1a   :  { %v1453_v47 = vsel %vm11573_vm4, %v8038_v0, %v1452_v38  ;;  %v1237_v48 = vrot.slane %v1008_v39, 5  ;;  %v1113_v52 = vsel %vm11597_vm0, %v1110_v8, %v1112_v42  ;;  %v8134_v54 = vcombine.low %v878_v25, %v879_v43  ;;  %v881_v8 = vld [vmem:[%s11564_s0 + $0x34] sm:$0xf] }
  0x1b   :  { %2137 = vmatpush1.bf16.msra.mxu0 %v7728_v24  ;;  %v1181_v55 = vsel %vm11597_vm0, %v1178_v17, %v1180_v45  ;;  %v1457_v58 = vrot.slane %v1455_v49, 6  ;;  %v1460_v59 = vrot.slane %v1458_v50, 7  ;;  %v1378_v61 = vrot.slane %v8097_v30, 6 }
  0x1c   :  { %2138 = vmatprep.subr.bf16.mxu0 %v11582_v23  ;;  %v1239_v56 = vor.u32 %v1238_v46, %v1237_v48  ;;  %v1016_v2 = vshrl.u32 %v8134_v54, 16  ;;  %v1010_v10 = vor.u32 %v1008_v39, %v1006_v35  ;;  %v1114_v12 = vrot.slane %v8134_v54, 1 }
  0x1d   :  { %1400 = vrot.lane.b32.xlu1 %v1375_v62, %s7902_s22  ;;  %1398 = vrot.lane.b32.xlu0 %v1373_v53, %s7902_s22  ;;  %v1322_v53 = vrot.slane %v8057_v14, 6  ;;  %v1012_v62 = vshll.u32 %v8134_v54, 16  ;;  %v8150_v1 = vor.u32 %v1460_v59, %v1457_v58  ;;  %v8181_v24 = vcombine.low %v880_v3, %v881_v8  ;;  %v884_v59 = vld [vmem:[%s11564_s0 + $0x40] sm:$0xf] }
  0x1e   :  { %v1241_v17 = vrot.slane %v1016_v2, 5  ;;  %vm11574_vm5 = vcmask 1040384   ;;  %v1574_v49 = vrot.slane %v7997_v40, 7  ;;  %v1575_v50 = vrot.slane %v7978_v18, 7 }
  0x1f   :  { %2139 = vmatpush1.bf16.msra.mxu0 %v7730_v33  ;;  %v1323_v0 = vsel %vm11575_vm3, %v1320_v16, %v1322_v53  ;;  %v1014_v11 = vrot.slane %v1012_v62, 1  ;;  %v1462_v13 = vsel %vm11573_vm4, %v1452_v38, %v8150_v1  ;;  %v882_v16 = vld [vmem:[%s11564_s0 + $0x38] sm:$0xf]  ;;  %v7740_v33 = vld [vmem:[%s11565_s1 + $0x40] sm:$0xff]   ;;  %vm11577_vm6 = vsmask.f32 5376 }
  0x20   :  { %2140 = vmatprep.subr.bf16.mxu0 %v11582_v23  ;;  %v8212_v39 = vcombine.low %v881_v8, %v882_v16  ;;  %v1576_v40 = vsel %vm11574_vm5, %v1574_v49, %v1575_v50  ;;  %v885_v8 = vld [vmem:[%s11564_s0 + $0x44] sm:$0xf]  ;;  %vm11576_vm7 = vcmask 130048  }
  0x21   :  { %1546 = vrot.lane.b32.xlu1 %v1444_v9, %s7903_s25  ;;  %1544 = vrot.lane.b32.xlu0 %v1435_v63, %s7903_s25  ;;  %v1240_v63 = vsel %vm11603_vm2, %v8068_v20, %v1239_v56  ;;  %v1379_v9 = vsel %vm11575_vm3, %v1376_v26, %v1378_v61  ;;  %v7738_v20 = vld [vmem:[%s11565_s1 + $0x38] sm:$0xff]   ;;  %v1015_v25 = vsel %vm11598_vm1, %v1010_v10, %v1014_v11 }
  0x22   :  { %v1115_v26 = vsel %vm11597_vm0, %v1112_v42, %v1114_v12  ;;  %v1018_v46 = vor.u32 %v1016_v2, %v1014_v11  ;;  %v1473_v48 = vshrl.u32 %v8212_v39, 16  ;;  %v1836_v2 = vshll.u32 %v1576_v40, 16 }
  0x23   :  { %2141 = vmatpush1.bf16.msra.mxu0 %v7731_v41 }
  0x24   :  { %2142 = vmatprep.subr.bf16.mxu0 %v11582_v23  ;;  %v1838_v11 = vrot.slane %v1836_v2, 3  ;;  %v1579_v2 = vrot.slane %v8097_v30, 7 }
  0x25   :  { %1079 = vrot.lane.b32.xlu0 %v999_v19, %s7899_s13  ;;  %1134 = vrot.lane.b32.xlu1 %v1111_v15, %s7898_s10  ;;  %v8171_v15 = vcombine.low %v879_v43, %v880_v3  ;;  %v1242_v19 = vrot.slane %v1012_v62, 6  ;;  %v1024_v43 = vshrl.u32 %v8181_v24, 16 }
  0x27   :  { %2143 = vmatpush1.bf16.msra.mxu0 %v7733_v51  ;;  %v1464_v21 = vshrl.u32 %v8171_v15, 16  ;;  %v1467_v22 = vshll.u32 %v8171_v15, 16  ;;  %v1182_v27 = vrot.slane %v8171_v15, 1  ;;  %v1380_v31 = vrot.slane %v8171_v15, 6 }
  0x28   :  { %2144 = vmatprep.subr.bf16.mxu0 %v11582_v23  ;;  %v1116_v51 = vrot.slane %v8181_v24, 1 }
  0x29   :  { %1202 = vrot.lane.b32.xlu0 %v1179_v28, %s7897_s9  ;;  %1291 = vrot.lane.b32.xlu1 %v1236_v29, %s7900_s16  ;;  %v8191_v28 = vor.u32 %v1242_v19, %v1241_v17  ;;  %v1324_v29 = vrot.slane %v8134_v54, 6  ;;  %v1466_v34 = vrot.slane %v1464_v21, 6  ;;  %v1469_v35 = vrot.slane %v1467_v22, 7 }
  0x2a   :  { %v1381_v42 = vsel %vm11575_vm3, %v1378_v61, %v1380_v31  ;;  %v1828_v61 = vshll.u32 %v1574_v49, 16  ;;  %v1577_v21 = vrot.slane %v8045_v4, 7  ;;  %v1117_v22 = vsel %vm11597_vm0, %v1114_v12, %v1116_v51 }
  0x2b   :  { %2145 = vmatpush1.bf16.msra.mxu0 %v7735_v60  ;;  %v1244_v38 = vsel %vm11603_vm2, %v1239_v56, %v8191_v28  ;;  %v1325_v41 = vsel %vm11575_vm3, %v1322_v53, %v1324_v29  ;;  %v1326_v53 = vrot.slane %v8181_v24, 6  ;;  %v1245_v56 = vrot.slane %v1024_v43, 5 }
  0x2c   :  { %2146 = vmatprep.subr.bf16.mxu0 %v11582_v23  ;;  %v1825_v60 = vshrl.u32 %v1574_v49, 16 }
  0x2d   :  { %1346 = vrot.lane.b32.xlu0 %v1321_v36, %s7901_s19  ;;  %1402 = vrot.lane.b32.xlu1 %v1377_v37, %s7902_s22  ;;  %v1020_v36 = vshll.u32 %v8181_v24, 16  ;;  %v1183_v37 = vsel %vm11597_vm0, %v1180_v45, %v1182_v27  ;;  %v8223_v45 = vcombine.low %v882_v16, %v883_v32 }
  0x2f   :  { %2147 = vmatpush1.bf16.msra.mxu0 %v7736_v6  ;;  %v1246_v58 = vrot.slane %v1020_v36, 6  ;;  %v1028_v6 = vshll.u32 %v8223_v45, 16  ;;  %v1032_v19 = vshrl.u32 %v8223_v45, 16 }
  0x30   :  { %2148 = vmatprep.subr.bf16.mxu0 %v11582_v23 }
  0x31   :  { %1548 = vrot.lane.b32.xlu0 %v1453_v47, %s7903_s25  ;;  %1081 = vrot.lane.b32.xlu1 %v1007_v44, %s7899_s13  ;;  %v8221_v44 = vor.u32 %v1469_v35, %v1466_v34  ;;  %v1022_v47 = vrot.slane %v1020_v36, 1  ;;  %v8274_v34 = vrot.slane %v1028_v6, 1  ;;  %v1328_v35 = vrot.slane %v8223_v45, 6 }
  0x32   :  { %v1250_v49 = vrot.slane %v1028_v6, 6 }
  0x33   :  { %2149 = vmatpush1.bf16.msra.mxu0 %v7738_v20  ;;  %v1471_v18 = vsel %vm11573_vm4, %v8150_v1, %v8221_v44  ;;  %v1023_v62 = vsel %vm11598_vm1, %v1018_v46, %v1022_v47  ;;  %v1830_v1 = vrot.slane %v1828_v61, 3 }
  0x34   :  { %2150 = vmatprep.subr.bf16.mxu0 %v11582_v23 }
  0x35   :  { %1136 = vrot.lane.b32.xlu0 %v1113_v52, %s7898_s10  ;;  %1204 = vrot.lane.b32.xlu1 %v1181_v55, %s7897_s9  ;;  %v1184_v52 = vrot.slane %v8212_v39, 1  ;;  %v1476_v55 = vshll.u32 %v8212_v39, 16 }
  0x37   :  { %2151 = vmatpush1.bf16.msra.mxu0 %v7740_v33  ;;  %v1478_v3 = vrot.slane %v1476_v55, 7  ;;  %v1185_v16 = vsel %vm11597_vm0, %v1182_v27, %v1184_v52  ;;  %v8271_v33 = vcombine.low %v884_v59, %v885_v8 }
  0x38   :  { %5103 = vmatprep.subr.bf16.mxu0 %v11582_v23 }
  0x39   :  { %1293 = vrot.lane.b32.xlu0 %v1240_v63, %s7900_s16  ;;  %1348 = vrot.lane.b32.xlu1 %v1323_v0, %s7901_s19  ;;  %v1475_v63 = vrot.slane %v1473_v48, 6  ;;  %v1833_v0 = vshrl.u32 %v1576_v40, 16  ;;  %v1327_v48 = vsel %vm11575_vm3, %v1324_v29, %v1326_v53  ;;  %v1036_v55 = vshll.u32 %v8271_v33, 16 }
  0x3a   :  { %v1120_v61 = vrot.slane %v8271_v33, 1 }
  0x3b   :  { %v1835_v10 = vrot.slane %v1833_v0, 2  ;;  %v8282_v27 = vor.u32 %v1478_v3, %v1475_v63  ;;  %v1040_v63 = vshrl.u32 %v8271_v33, 16  ;;  %v8322_v0 = vrot.slane %v1036_v55, 1 }
  0x3c   :  { %v8332_v6 = vrot.slane %v1036_v55, 6 }
  0x3d   :  { %1404 = vrot.lane.b32.xlu0 %v1379_v9, %s7902_s22  ;;  %1550 = vrot.lane.b32.xlu1 %v1462_v13, %s7903_s25  ;;  %v1827_v9 = vrot.slane %v1825_v60, 2  ;;  %v8251_v13 = vcombine.low %v883_v32, %v884_v59  ;;  %v1839_v20 = vor.u32 %v1838_v11, %v1835_v10  ;;  %v1118_v32 = vrot.slane %v8223_v45, 1 }
  0x3e   :  { %v1026_v59 = vor.u32 %v1024_v43, %v1022_v47  ;;  %v1480_v29 = vsel %vm11573_vm4, %v8221_v44, %v8282_v27  ;;  %v887_v43 = vld [vmem:[%s11564_s0 + $0x4c] sm:$0xf]  ;;  %v1580_v10 = vsel %vm11574_vm5, %v1577_v21, %v1579_v2 }
  0x3f   :  { %v1831_v17 = vor.u32 %v1830_v1, %v1827_v9  ;;  %v1186_v12 = vrot.slane %v8251_v13, 1  ;;  %v1482_v36 = vshrl.u32 %v8251_v13, 16  ;;  %v1119_v3 = vsel %vm11597_vm0, %v1116_v51, %v1118_v32 }
  0x40   :  { %v1031_v44 = vsel %vm11598_vm1, %v1026_v59, %v8274_v34  ;;  %v1330_v9 = vrot.slane %v8271_v33, 6  ;;  %v1034_v59 = vor.u32 %v1032_v19, %v8274_v34 }
  0x41   :  { %1083 = vrot.lane.b32.xlu0 %v1015_v25, %s7899_s13  ;;  %1138 = vrot.lane.b32.xlu1 %v1115_v26, %s7898_s10  ;;  %v8267_v25 = vor.u32 %v1246_v58, %v1245_v56  ;;  %v1382_v26 = vrot.slane %v8212_v39, 6  ;;  %v1840_v4 = vsel %vm11577_vm6, %v1831_v17, %v1839_v20  ;;  %v8303_v40 = vrot.slane %v1482_v36, 6  ;;  %v8363_v36 = vld [vmem:[%s11564_s0 + $0x50] sm:$0xf] }
  0x42   :  { %6974 = vmatprep.mubr.msk.bf16.mxu0 %vm11576_vm7, %v1840_v4  ;;  %v1867_v17 = vshrl.u32 %v1580_v10, 16  ;;  %v1253_v4 = vrot.slane %v1040_v63, 5 }
  0x43   :  { %v1248_v46 = vsel %vm11603_vm2, %v8191_v28, %v8267_v25  ;;  %v1383_v28 = vsel %vm11575_vm3, %v1380_v31, %v1382_v26 }
  0x45   :  { %1206 = vrot.lane.b32.xlu0 %v1183_v37, %s7897_s9  ;;  %1295 = vrot.lane.b32.xlu1 %v1244_v38, %s7900_s16  ;;  %v1249_v37 = vrot.slane %v1032_v19, 5  ;;  %v1485_v38 = vshll.u32 %v8251_v13, 16 }
  0x47   :  { %v1487_v60 = vrot.slane %v1485_v38, 7  ;;  %v8343_v11 = vor.u32 %v1250_v49, %v1249_v37 }
  0x49   :  { %1350 = vrot.lane.b32.xlu0 %v1325_v41, %s7901_s19  ;;  %1406 = vrot.lane.b32.xlu1 %v1381_v42, %s7902_s22  ;;  %v886_v41 = vld [vmem:[%s11564_s0 + $0x48] sm:$0xf]  ;;  %v1578_v42 = vsel %vm11574_vm5, %v1575_v50, %v1577_v21  ;;  %v1384_v50 = vrot.slane %v8251_v13, 6  ;;  %v1252_v49 = vsel %vm11603_vm2, %v8267_v25, %v8343_v11 }
  0x4a   :  { %v1850_v56 = vshrl.u32 %v1578_v42, 16  ;;  %v1853_v58 = vshll.u32 %v1578_v42, 16  ;;  %v8345_v51 = vcombine.low %v886_v41, %v887_v43  ;;  %v1581_v42 = vrot.slane %v8171_v15, 7 }
  0x4c   :  { %v1852_v47 = vrot.slane %v1850_v56, 2  ;;  %v1044_v55 = vshll.u32 %v8345_v51, 16  ;;  %v1122_v56 = vrot.slane %v8345_v51, 1 }
  0x4d   :  { %1552 = vrot.lane.b32.xlu0 %v1471_v18, %s7903_s25  ;;  %1085 = vrot.lane.b32.xlu1 %v1023_v62, %s7899_s13  ;;  %v1855_v18 = vrot.slane %v1853_v58, 3  ;;  %v8319_v62 = vcombine.low %v885_v8, %v886_v41 }
  0x4f   :  { %v1856_v31 = vor.u32 %v1855_v18, %v1852_v47  ;;  %v1491_v8 = vshrl.u32 %v8319_v62, 16  ;;  %v1494_v30 = vshll.u32 %v8319_v62, 16  ;;  %v1188_v21 = vrot.slane %v8319_v62, 1 }
  0x50   :  { %v1386_v37 = vrot.slane %v8319_v62, 6  ;;  %v8385_v47 = vcombine.low %v887_v43, %v8363_v36  ;;  %v1385_v43 = vsel %vm11575_vm3, %v1382_v26, %v1384_v50  ;;  %v1048_v26 = vshrl.u32 %v8345_v51, 16 }
  0x51   :  { %1140 = vrot.lane.b32.xlu0 %v1117_v22, %s7898_s10  ;;  %1208 = vrot.lane.b32.xlu1 %v1185_v16, %s7897_s9  ;;  %v8340_v1 = vsel %vm11577_vm6, %v1839_v20, %v1856_v31  ;;  %v1870_v22 = vshll.u32 %v1580_v10, 16  ;;  %v1187_v16 = vsel %vm11597_vm0, %v1184_v52, %v1186_v12  ;;  %v1329_v20 = vsel %vm11575_vm3, %v1326_v53, %v1328_v35 }
  0x52   :  { %v8366_v38 = vrot.slane %v1491_v8, 6  ;;  %v1869_v52 = vrot.slane %v1867_v17, 2  ;;  %v1496_v53 = vrot.slane %v1494_v30, 7  ;;  %v1488_v8 = vor.u32 %v1487_v60, %v8303_v40 }
  0x53   :  { %v1872_v41 = vrot.slane %v1870_v22, 3 }
  0x54   :  { %v1489_v60 = vsel %vm11573_vm4, %v8282_v27, %v1488_v8 }
  0x55   :  { %1297 = vrot.lane.b32.xlu0 %v1248_v46, %s7900_s16  ;;  %1352 = vrot.lane.b32.xlu1 %v1327_v48, %s7901_s19  ;;  %v1583_v46 = vrot.slane %v8212_v39, 7  ;;  %v1585_v48 = vrot.slane %v8251_v13, 7  ;;  %v1873_v58 = vor.u32 %v1872_v41, %v1869_v52  ;;  %v1039_v52 = vsel %vm11598_vm1, %v1034_v59, %v8322_v0 }
  0x56   :  { %v1190_v39 = vrot.slane %v8385_v47, 1  ;;  %v1587_v59 = vrot.slane %v8319_v62, 7  ;;  %v1123_v13 = vsel %vm11597_vm0, %v1120_v61, %v1122_v56 }
  0x57   :  { %v1584_v15 = vsel %vm11574_vm5, %v1581_v42, %v1583_v46  ;;  %v8388_v25 = vsel %vm11577_vm6, %v1856_v31, %v1873_v58 }
  0x58   :  { %v1904_v19 = vshll.u32 %v1584_v15, 16 }
  0x59   :  { %1408 = vrot.lane.b32.xlu0 %v1383_v28, %s7902_s22  ;;  %1554 = vrot.lane.b32.xlu1 %v1480_v29, %s7903_s25  ;;  %v1582_v28 = vsel %vm11574_vm5, %v1579_v2, %v1581_v42  ;;  %v1586_v29 = vsel %vm11574_vm5, %v1583_v46, %v1585_v48  ;;  %v1332_v46 = vrot.slane %v8345_v51, 6 }
  0x5a   :  { %v1884_v18 = vshrl.u32 %v1582_v28, 16  ;;  %v1918_v34 = vshrl.u32 %v1586_v29, 16  ;;  %v1921_v2 = vshll.u32 %v1586_v29, 16  ;;  %v1906_v17 = vrot.slane %v1904_v19, 3 }
  0x5b   :  { %v1046_v19 = vrot.slane %v1044_v55, 1 }
  0x5c   :  { %v1886_v31 = vrot.slane %v1884_v18, 2  ;;  %v1920_v22 = vrot.slane %v1918_v34, 2  ;;  %v1189_v18 = vsel %vm11597_vm0, %v1186_v12, %v1188_v21  ;;  %v1257_v34 = vrot.slane %v1048_v26, 5 }
  0x5d   :  { %1087 = vrot.lane.b32.xlu0 %v1031_v44, %s7899_s13  ;;  %1142 = vrot.lane.b32.xlu1 %v1119_v3, %s7898_s10  ;;  %v1887_v44 = vshll.u32 %v1582_v28, 16  ;;  %v1901_v3 = vshrl.u32 %v1584_v15, 16  ;;  %v1588_v15 = vsel %vm11574_vm5, %v1585_v48, %v1587_v59  ;;  %v1255_v48 = vor.u32 %v8332_v6, %v1253_v4 }
  0x5e   :  { %v1935_v27 = vshrl.u32 %v1588_v15, 16  ;;  %v1938_v29 = vshll.u32 %v1588_v15, 16  ;;  %v1331_v12 = vsel %vm11575_vm3, %v1328_v35, %v1330_v9  ;;  %v1497_v6 = vor.u32 %v1496_v53, %v8366_v38 }
  0x5f   :  { %v1889_v30 = vrot.slane %v1887_v44, 3  ;;  %v1903_v10 = vrot.slane %v1901_v3, 2  ;;  %v1387_v35 = vsel %vm11575_vm3, %v1384_v50, %v1386_v37  ;;  %v1042_v53 = vor.u32 %v1040_v63, %v8322_v0 }
  0x60   :  { %v1937_v44 = vrot.slane %v1935_v27, 2  ;;  %v1940_v3 = vrot.slane %v1938_v29, 3  ;;  %v1498_v38 = vsel %vm11573_vm4, %v1488_v8, %v1497_v6 }
  0x61   :  { %1210 = vrot.lane.b32.xlu0 %v1187_v16, %s7897_s9  ;;  %1299 = vrot.lane.b32.xlu1 %v1252_v49, %s7900_s16  ;;  %v1923_v16 = vrot.slane %v1921_v2, 3  ;;  %v1890_v41 = vor.u32 %v1889_v30, %v1886_v31  ;;  %v1907_v42 = vor.u32 %v1906_v17, %v1903_v10  ;;  %v1500_v31 = vshrl.u32 %v8385_v47, 16 }
  0x62   :  { %v1941_v2 = vor.u32 %v1940_v3, %v1937_v44  ;;  %v1589_v30 = vrot.slane %v8385_v47, 7  ;;  %v1047_v10 = vsel %vm11598_vm1, %v1042_v53, %v1046_v19 }
  0x63   :  { %v1924_v40 = vor.u32 %v1923_v16, %v1920_v22  ;;  %v8408_v49 = vsel %vm11577_vm6, %v1873_v58, %v1890_v41  ;;  %v1121_v58 = vsel %vm11597_vm0, %v1118_v32, %v1120_v61  ;;  %v1256_v32 = vsel %vm11603_vm2, %v8343_v11, %v1255_v48  ;;  %v889_v11 = vld [vmem:[%s11564_s0 + $0x54] sm:$0xf] }
  0x64   :  { %v8474_v63 = vcombine.low %v8363_v36, %v889_v11  ;;  %v1590_v0 = vsel %vm11574_vm5, %v1587_v59, %v1589_v30  ;;  %v1191_v61 = vsel %vm11597_vm0, %v1188_v21, %v1190_v39  ;;  %v1388_v16 = vrot.slane %v8385_v47, 6 }
  0x65   :  { %1354 = vrot.lane.b32.xlu0 %v1329_v20, %s7901_s19  ;;  %1410 = vrot.lane.b32.xlu1 %v1385_v43, %s7902_s22  ;;  %v8412_v20 = vsel %vm11577_vm6, %v1890_v41, %v1907_v42  ;;  %v8415_v28 = vsel %vm11577_vm6, %v1907_v42, %v1924_v40  ;;  %v8444_v4 = vsel %vm11577_vm6, %v1924_v40, %v1941_v2  ;;  %v1258_v43 = vrot.slane %v1044_v55, 6 }
  0x66   :  { %v1503_v55 = vshll.u32 %v8385_v47, 16  ;;  %v1952_v8 = vshrl.u32 %v1590_v0, 16  ;;  %v1955_v17 = vshll.u32 %v1590_v0, 16  ;;  %v1502_v36 = vrot.slane %v1500_v31, 6 }
  0x67   :  { %v8471_v50 = vor.u32 %v1258_v43, %v1257_v34 }
  0x69   :  { %1556 = vrot.lane.b32.xlu0 %v1489_v60, %s7903_s25  ;;  %1089 = vrot.lane.b32.xlu1 %v1039_v52, %s7899_s13  ;;  %v1505_v52 = vrot.slane %v1503_v55, 7 }
  0x6d   :  { %1144 = vrot.lane.b32.xlu0 %v1121_v58, %s7898_s10  ;;  %1212 = vrot.lane.b32.xlu1 %v1189_v18, %s7897_s9 }
  0x71   :  { %1301 = vrot.lane.b32.xlu0 %v1256_v32, %s7900_s16  ;;  %1356 = vrot.lane.b32.xlu1 %v1331_v12, %s7901_s19 }
  0x75   :  { %1412 = vrot.lane.b32.xlu0 %v1387_v35, %s7902_s22  ;;  %1558 = vrot.lane.b32.xlu1 %v1498_v38, %s7903_s25 }
  0x79   :  { %1091 = vrot.lane.b32.xlu0 %v1047_v10, %s7899_s13  ;;  %1146 = vrot.lane.b32.xlu1 %v1123_v13, %s7898_s10 }
  0x7a   :  { %v8479_v22 = vpop.permute.xlu0 %1198 }
  0x7b   :  { %10 = vsyncpa [#allocation6], 0  ;;  %v1260_v41 = vsel %vm11603_vm2, %v1255_v48, %v8471_v50  ;;  %v1052_v42 = vshll.u32 %v8474_v63, 16  ;;  %v890_v40 = vld [vmem:[%s11564_s0 + $0x58] sm:$0xf]  ;;  %v1954_v60 = vrot.slane %v1952_v8, 2  ;;  %v8493_v15 = vpop.permute.xlu1 %1130  ;;  %v1333_v21 = vsel %vm11575_vm3, %v1330_v9, %v1332_v46 }
  0x7c   :  { %v1957_v59 = vrot.slane %v1955_v17, 3  ;;  %v8504_v29 = vor.u32 %v1505_v52, %v1502_v36  ;;  %v8506_v58 = vcombine.low %v889_v11, %v890_v40  ;;  %v1056_v18 = vshrl.u32 %v8474_v63, 16  ;;  %v868_v12 = vld [vmem:[%s11564_s0] sm:$0xc] }
  0x7d   :  { %1214 = vrot.lane.b32.xlu0 %v1191_v61, %s7897_s9  ;;  %1303 = vrot.lane.b32.xlu1 %v1260_v41, %s7900_s16  ;;  %v1389_v48 = vsel %vm11575_vm3, %v1386_v37, %v1388_v16  ;;  %v1050_v44 = vor.u32 %v1048_v26, %v1046_v19  ;;  %v1054_v3 = vrot.slane %v1052_v42, 1  ;;  %v1124_v43 = vrot.slane %v8474_v63, 1 }
  0x7e   :  { %v8495_v27 = vor.u32 %v1957_v59, %v1954_v60  ;;  %v1507_v62 = vsel %vm11573_vm4, %v1497_v6, %v8504_v29  ;;  %v1192_v37 = vrot.slane %v8506_v58, 1  ;;  %v1261_v26 = vrot.slane %v1056_v18, 5  ;;  %v7868_v6 = vld [vmem:[%s11564_s0 + $0x4] sm:$0xf] }
  0x7f   :  { %v1133_v9 = vpop.permute.xlu1 %1132  ;;  %v1076_v32 = vpop.permute.xlu0 %1075  ;;  %v1262_v19 = vrot.slane %v1052_v42, 6  ;;  %v1055_v31 = vsel %vm11598_vm1, %v1050_v44, %v1054_v3  ;;  %v1509_v11 = vshrl.u32 %v8506_v58, 16  ;;  %v1512_v35 = vshll.u32 %v8506_v58, 16  ;;  %v892_v44 = vld [vmem:[%s11564_s0 + $0x60] sm:$0xf] }
  0x80   :  { %v8518_v34 = vsel %vm11577_vm6, %v1941_v2, %v8495_v27  ;;  %v891_v2 = vld [vmem:[%s11564_s0 + $0x5c] sm:$0xf]  ;;  %v1591_v38 = vrot.slane %v8506_v58, 7  ;;  %v6932_v10 = vcombine.low %v868_v12, %v7868_v6  ;;  %v1125_v8 = vsel %vm11597_vm0, %v1122_v56, %v1124_v43 }
  0x81   :  { %1358 = vrot.lane.b32.xlu0 %v1333_v21, %s7901_s19  ;;  %1414 = vrot.lane.b32.xlu1 %v1389_v48, %s7902_s22  ;;  %v8539_v13 = vcombine.low %v890_v40, %v891_v2  ;;  %v1334_v17 = vrot.slane %v8474_v63, 6  ;;  %v8557_v52 = vor.u32 %v1262_v19, %v1261_v26  ;;  %v1511_v41 = vrot.slane %v1509_v11, 6 }
  0x82   :  { %v1592_v0 = vsel %vm11574_vm5, %v1589_v30, %v1591_v38  ;;  %v1193_v30 = vsel %vm11597_vm0, %v1190_v39, %v1192_v37  ;;  %v1514_v42 = vrot.slane %v1512_v35, 7  ;;  %vm11581_vm8 = vcmask 261120  }
  0x83   :  { %v1201_v53 = vpop.permute.xlu1 %1200  ;;  %v1078_v55 = vpop.permute.xlu0 %1077  ;;  %v1969_v61 = vshrl.u32 %v1592_v0, 16  ;;  %v1972_v36 = vshll.u32 %v1592_v0, 16  ;;  %v1060_v48 = vshll.u32 %v8539_v13, 16  ;;  %v1390_v39 = vrot.slane %v8506_v58, 6 }
  0x84   :  { %v1604_v56 = vsel %vm11576_vm7, %v7955_v5, %v1078_v55  ;;  %v1064_v12 = vshrl.u32 %v8539_v13, 16  ;;  %v1602_v26 = vsel %vm11576_vm7, %v6932_v10, %v1076_v32  ;;  %v1264_v5 = vsel %vm11603_vm2, %v8471_v50, %v8557_v52 }
  0x85   :  { %1560 = vrot.lane.b32.xlu0 %v1507_v62, %s7903_s25  ;;  %1093 = vrot.lane.b32.xlu1 %v1055_v31, %s7899_s13  ;;  %v1971_v59 = vrot.slane %v1969_v61, 2  ;;  %v1974_v21 = vrot.slane %v1972_v36, 3  ;;  %v1335_v19 = vsel %vm11575_vm3, %v1332_v46, %v1334_v17  ;;  %v8580_v31 = vor.u32 %v1514_v42, %v1511_v41  ;;  %v895_v42 = vld [vmem:[%s11564_s0 + $0x64] sm:$0xf] }
  0x86   :  { %v1631_v11 = vsel %vm11581_vm8, %v1604_v56, %v1133_v9  ;;  %v8583_v6 = vcombine.low %v891_v2, %v892_v44  ;;  %v1058_v50 = vor.u32 %v1056_v18, %v1054_v3  ;;  %v8590_v10 = vrot.slane %v1060_v48, 1 }
  0x87   :  { %v1290_v40 = vpop.permute.xlu1 %1289  ;;  %v1288_v60 = vpop.permute.xlu0 %1287  ;;  %v8569_v62 = vor.u32 %v1974_v21, %v1971_v59  ;;  %v1126_v0 = vrot.slane %v8539_v13, 1  ;;  %v1629_v46 = vsel %vm11581_vm8, %v1602_v26, %v8493_v15  ;;  %vm11572_vm9 = vcmask 392192  }
  0x88   :  { %v1265_v9 = vrot.slane %v1064_v12, 5  ;;  %v1266_v2 = vrot.slane %v1060_v48, 6  ;;  %vm11580_vm10 = vcmask 523264   ;;  %v1391_v18 = vsel %vm11575_vm3, %v1388_v16, %v1390_v39 }
  0x89   :  { %1148 = vrot.lane.b32.xlu0 %v1125_v8, %s7898_s10  ;;  %1216 = vrot.lane.b32.xlu1 %v1193_v30, %s7897_s9  ;;  %v8588_v32 = vsel %vm11577_vm6, %v8495_v27, %v8569_v62  ;;  %v1658_v27 = vsel %vm11572_vm9, %v1631_v11, %v1201_v53  ;;  %v1516_v15 = vsel %vm11573_vm4, %v8504_v29, %v8580_v31  ;;  %vm11571_vm11 = vcmask 654336   ;;  %v893_v53 = vld [vmem:[%s11564_s0 + $0x64] sm:$0x7] }
  0x8a   :  { %vm11578_vm12 = vcmask 785408   ;;  %v1194_v61 = vrot.slane %v8583_v6, 1  ;;  %v1656_v36 = vsel %vm11572_vm9, %v1629_v46, %v8479_v22  ;;  %vm11570_vm13 = vcmask 916480  }
  0x8b   :  { %v1345_v35 = vpop.permute.xlu1 %1344  ;;  %v1343_v55 = vpop.permute.xlu0 %1342  ;;  %v1063_v47 = vsel %vm11598_vm1, %v1058_v50, %v8590_v10  ;;  %v1127_v16 = vsel %vm11597_vm0, %v1124_v43, %v1126_v0  ;;  %v1685_v29 = vsel %vm11580_vm10, %v1658_v27, %v1290_v40  ;;  %v1683_v30 = vsel %vm11580_vm10, %v1656_v36, %v1288_v60 }
  0x8c   :  { %v8625_v41 = vor.u32 %v1266_v2, %v1265_v9  ;;  %v1518_v22 = vshrl.u32 %v8583_v6, 16  ;;  %v1712_v59 = vsel %vm11571_vm11, %v1685_v29, %v1345_v35  ;;  %v1710_v43 = vsel %vm11571_vm11, %v1683_v30, %v1343_v55 }
  0x8d   :  { %1305 = vrot.lane.b32.xlu0 %v1264_v5, %s7900_s16  ;;  %1360 = vrot.lane.b32.xlu1 %v1335_v19, %s7901_s19  ;;  %v1521_v40 = vshll.u32 %v8583_v6, 16  ;;  %v8634_v21 = vcombine.low %v892_v44, %v893_v53  ;;  %v1195_v5 = vsel %vm11597_vm0, %v1192_v37, %v1194_v61  ;;  %v1336_v19 = vrot.slane %v8539_v13, 6  ;;  %v8654_v37 = vld [vmem:[%s11564_s0 + $0x68] sm:$0xf] }
  0x8e   :  { %v1392_v55 = vrot.slane %v8583_v6, 6  ;;  %v8647_v50 = vcombine.low %v892_v44, %v895_v42  ;;  %vm860_vm14 = vcmask 257024  }
  0x8f   :  { %v1401_v3 = vpop.permute.xlu1 %1400  ;;  %v1399_v8 = vpop.permute.xlu0 %1398  ;;  %v1523_v44 = vrot.slane %v1521_v40, 7  ;;  %861 = vst.msk [vmem:[#allocation2] sm:$0xf] %vm860_vm14, %v11582_v23  ;;  %862 = vst.msk [vmem:[#allocation2 + $0x4] sm:$0xf] %vm860_vm14, %v11582_v23 }
  0x90   :  { %v1739_v60 = vsel %vm11578_vm12, %v1712_v59, %v1401_v3  ;;  %v1737_v56 = vsel %vm11578_vm12, %v1710_v43, %v1399_v8  ;;  %v1068_v3 = vshll.u32 %v8634_v21, 16  ;;  %v1337_v59 = vsel %vm11575_vm3, %v1334_v17, %v1336_v19 }
  0x91   :  { %1416 = vrot.lane.b32.xlu0 %v1391_v18, %s7902_s22  ;;  %1562 = vrot.lane.b32.xlu1 %v1516_v15, %s7903_s25  ;;  %v1268_v18 = vsel %vm11603_vm2, %v8557_v52, %v8625_v41  ;;  %v1520_v15 = vrot.slane %v1518_v22, 6  ;;  %v8668_v52 = vcombine.low %v895_v42, %v8654_v37  ;;  %v1270_v40 = vshrl.u32 %v8647_v50, 16 }
  0x92   :  { %v1393_v17 = vsel %vm11575_vm3, %v1390_v39, %v1392_v55  ;;  %v1066_v42 = vor.u32 %v1064_v12, %v8590_v10  ;;  %v1128_v39 = vrot.slane %v8647_v50, 1 }
  0x93   :  { %v1547_v48 = vpop.permute.xlu1 %1546  ;;  %v1545_v26 = vpop.permute.xlu0 %1544  ;;  %v1196_v12 = vrot.slane %v8668_v52, 1  ;;  %v1272_v10 = vrot.slane %v1270_v40, 5 }
  0x94   :  { %v1766_v11 = vsel %vm11570_vm13, %v1739_v60, %v1547_v48  ;;  %v1764_v35 = vsel %vm11570_vm13, %v1737_v56, %v1545_v26  ;;  %v8681_v60 = vor.u32 %v1523_v44, %v1520_v15  ;;  %v8686_v56 = vrot.slane %v1068_v3, 1 }
  0x95   :  { %v1816_v46 = vshrl.u32 %v1766_v11, 16  ;;  %v1819_v9 = vshll.u32 %v1766_v11, 16  ;;  %v1809_v2 = vshrl.u32 %v1764_v35, 16  ;;  %v1812_v27 = vshll.u32 %v1764_v35, 16  ;;  %1095 = vrot.lane.b32.xlu0 %v1063_v47, %s7899_s13  ;;  %1150 = vrot.lane.b32.xlu1 %v1127_v16, %s7898_s10 }
  0x97   :  { %v1818_v8 = vrot.slane %v1816_v46, 2  ;;  %v1821_v53 = vrot.slane %v1819_v9, 3  ;;  %v1811_v36 = vrot.slane %v1809_v2, 2  ;;  %v1814_v29 = vrot.slane %v1812_v27, 3  ;;  %v1080_v47 = vpop.permute.xlu0 %1079  ;;  %v1135_v30 = vpop.permute.xlu1 %1134 }
  0x98   :  { %v1606_v16 = vsel %vm11576_vm7, %v7960_v7, %v1080_v47  ;;  %v1273_v7 = vshll.u32 %v8647_v50, 16  ;;  %v1525_v9 = vsel %vm11573_vm4, %v8580_v31, %v8681_v60  ;;  %v1071_v2 = vsel %vm11598_vm1, %v1066_v42, %v8686_v56 }
  0x99   :  { %v8670_v22 = vor.u32 %v1821_v53, %v1818_v8  ;;  %v1815_v43 = vor.u32 %v1814_v29, %v1811_v36  ;;  %1218 = vrot.lane.b32.xlu0 %v1195_v5, %s7897_s9  ;;  %1307 = vrot.lane.b32.xlu1 %v1268_v18, %s7900_s16  ;;  %v1633_v48 = vsel %vm11581_vm8, %v1606_v16, %v1135_v30  ;;  %v1527_v27 = vshrl.u32 %v8668_v52, 16 }
  0x9a   :  { %v1275_v46 = vrot.slane %v1273_v7, 6  ;;  %v1530_v18 = vshll.u32 %v8668_v52, 16  ;;  %v6960_v53 = vcombine.low %v8654_v37, %v8654_v37  ;;  %v1338_v31 = vrot.slane %v8647_v50, 6 }
  0x9b   :  { %v1203_v26 = vpop.permute.xlu0 %1202  ;;  %v1292_v5 = vpop.permute.xlu1 %1291  ;;  %v1823_v11 = vsel %vm11577_vm6, %v1815_v43, %v8670_v22  ;;  %v1197_v36 = vsel %vm11597_vm0, %v1194_v61, %v1196_v12  ;;  %v1529_v47 = vrot.slane %v1527_v27, 6  ;;  %v1072_v27 = vshrl.u32 %v8634_v21, 16 }
  0x9c   :  { %v1660_v35 = vsel %vm11572_vm9, %v1633_v48, %v1203_v26  ;;  %2167 = vmatmul.mubr.bf16.vlgmr.msra.gmra.mrb[0].mxu0 %v1823_v11  ;;  %v1276_v29 = vor.u32 %v1275_v46, %v1272_v10  ;;  %v1532_v30 = vrot.slane %v1530_v18, 7  ;;  %v1279_v7 = vshrl.u32 %v6960_v53, 16 }
  0x9d   :  { %1362 = vrot.lane.b32.xlu0 %v1337_v59, %s7901_s19  ;;  %1418 = vrot.lane.b32.xlu1 %v1393_v17, %s7902_s22  ;;  %v1687_v15 = vsel %vm11580_vm10, %v1660_v35, %v1292_v5  ;;  %v1282_v61 = vshll.u32 %v6960_v53, 16  ;;  %v1339_v26 = vsel %vm11575_vm3, %v1336_v19, %v1338_v31  ;;  %v1394_v5 = vrot.slane %v8668_v52, 6 }
  0x9e   :  { %6975 = vmatprep.mubr.msk.bf16.mxu0 %vm11576_vm7, %v8340_v1  ;;  %v1129_v1 = vsel %vm11597_vm0, %v1126_v0, %v1128_v39  ;;  %v1277_v48 = vsel %vm11603_vm2, %v8625_v41, %v1276_v29  ;;  %v8736_v11 = vor.u32 %v1532_v30, %v1529_v47  ;;  %v900_v41 = vld [vmem:[%s11564_s0 + $0x70] sm:$0x1]  ;;  %v1281_v18 = vrot.slane %v1279_v7, 5 }
  0x9f   :  { %v1347_v44 = vpop.permute.xlu0 %1346  ;;  %v1403_v3 = vpop.permute.xlu1 %1402 }
  0xa0   :  { %v1714_v8 = vsel %vm11571_vm11, %v1687_v15, %v1347_v44  ;;  %v1284_v15 = vrot.slane %v1282_v61, 6  ;;  %v1395_v44 = vsel %vm11575_vm3, %v1392_v55, %v1394_v5  ;;  %v1074_v55 = vor.u32 %v1072_v27, %v8686_v56 }
  0xa1   :  { %1564 = vrot.lane.b32.xlu0 %v1525_v9, %s7903_s25  ;;  %1097 = vrot.lane.b32.xlu1 %v1071_v2, %s7899_s13  ;;  %v1741_v16 = vsel %vm11578_vm12, %v1714_v8, %v1403_v3  ;;  %v8741_v9 = vld [vmem:[%s11564_s0 + $0x6c] sm:$0xf]  ;;  %v1534_v3 = vsel %vm11573_vm4, %v8681_v60, %v8736_v11 }
  0xa2   :  { %v898_v8 = vld [vmem:[%s11564_s0 + $0x6c] sm:$0x1]  ;;  %v6962_v53 = vcombine.low %v8741_v9, %v900_v41  ;;  %v1285_v60 = vor.u32 %v1284_v15, %v1281_v18 }
  0xa3   :  { %v1549_v59 = vpop.permute.xlu0 %1548  ;;  %v1082_v43 = vpop.permute.xlu1 %1081 }
  0xa4   :  { %v1768_v40 = vsel %vm11570_vm13, %v1741_v16, %v1549_v59  ;;  %v1608_v42 = vsel %vm11576_vm7, %v8025_v57, %v1082_v43  ;;  %v6961_v59 = vcombine.low %v8654_v37, %v898_v8  ;;  %v1536_v43 = vshrl.u32 %v6962_v53, 16 }
  0xa5   :  { %v1841_v17 = vshrl.u32 %v1768_v40, 16  ;;  %v1844_v0 = vshll.u32 %v1768_v40, 16  ;;  %1152 = vrot.lane.b32.xlu0 %v1129_v1, %s7898_s10  ;;  %1220 = vrot.lane.b32.xlu1 %v1197_v36, %s7897_s9  ;;  %v1539_v40 = vshll.u32 %v6962_v53, 16  ;;  %v1286_v37 = vsel %vm11603_vm2, %v1276_v29, %v1285_v60 }
  0xa6   :  { %v1340_v56 = vrot.slane %v6961_v59, 6 }
  0xa7   :  { %v1843_v35 = vrot.slane %v1841_v17, 2  ;;  %v1846_v57 = vrot.slane %v1844_v0, 3  ;;  %v1137_v10 = vpop.permute.xlu0 %1136  ;;  %v1205_v46 = vpop.permute.xlu1 %1204 }
  0xa8   :  { %v1635_v2 = vsel %vm11581_vm8, %v1608_v42, %v1137_v10  ;;  %v1396_v10 = vrot.slane %v6962_v53, 6  ;;  %v1341_v29 = vsel %vm11575_vm3, %v1338_v31, %v1340_v56 }
  0xa9   :  { %v1847_v19 = vor.u32 %v1846_v57, %v1843_v35  ;;  %1309 = vrot.lane.b32.xlu0 %v1277_v48, %s7900_s16  ;;  %1364 = vrot.lane.b32.xlu1 %v1339_v26, %s7901_s19  ;;  %v1662_v1 = vsel %vm11572_vm9, %v1635_v2, %v1205_v46  ;;  %v1538_v48 = vrot.slane %v1536_v43, 6  ;;  %v1541_v26 = vrot.slane %v1539_v40, 7 }
  0xab   :  { %v1294_v36 = vpop.permute.xlu0 %1293  ;;  %v1349_v47 = vpop.permute.xlu1 %1348  ;;  %v1848_v30 = vsel %vm11577_vm6, %v8670_v22, %v1847_v19  ;;  %v1542_v27 = vor.u32 %v1541_v26, %v1538_v48 }
  0xac   :  { %v1689_v16 = vsel %vm11580_vm10, %v1662_v1, %v1294_v36  ;;  %2175 = vmatmul.mubr.bf16.gmra.mrb[4].mxu0 %v1848_v30 }
  0xad   :  { %1420 = vrot.lane.b32.xlu0 %v1395_v44, %s7902_s22  ;;  %1566 = vrot.lane.b32.xlu1 %v1534_v3, %s7903_s25  ;;  %v1716_v7 = vsel %vm11571_vm11, %v1689_v16, %v1349_v47  ;;  %v1397_v3 = vsel %vm11575_vm3, %v1394_v5, %v1396_v10  ;;  %v1543_v50 = vsel %vm11573_vm4, %v8736_v11, %v1542_v27 }
  0xae   :  { %6976 = vmatprep.mubr.msk.bf16.mxu0 %vm11576_vm7, %v8388_v25 }
  0xaf   :  { %v1405_v22 = vpop.permute.xlu0 %1404  ;;  %v1551_v17 = vpop.permute.xlu1 %1550 }
  0xb0   :  { %v1743_v0 = vsel %vm11578_vm12, %v1716_v7, %v1405_v22 }
  0xb1   :  { %v1770_v42 = vsel %vm11570_vm13, %v1743_v0, %v1551_v17  ;;  %1099 = vrot.lane.b32.xlu0 %v1074_v55, %s7899_s13  ;;  %1154 = vrot.lane.b32.xlu1 %v1128_v39, %s7898_s10 }
  0xb2   :  { %v1858_v25 = vshrl.u32 %v1770_v42, 16  ;;  %v1861_v61 = vshll.u32 %v1770_v42, 16 }
  0xb3   :  { %v1084_v35 = vpop.permute.xlu0 %1083  ;;  %v1139_v57 = vpop.permute.xlu1 %1138 }
  0xb4   :  { %v1860_v46 = vrot.slane %v1858_v25, 2  ;;  %v1863_v41 = vrot.slane %v1861_v61, 3  ;;  %v1610_v2 = vsel %vm11576_vm7, %v8057_v14, %v1084_v35 }
  0xb5   :  { %1222 = vrot.lane.b32.xlu0 %v1196_v12, %s7897_s9  ;;  %1311 = vrot.lane.b32.xlu1 %v1286_v37, %s7900_s16  ;;  %v1637_v18 = vsel %vm11581_vm8, %v1610_v2, %v1139_v57 }
  0xb6   :  { %v1864_v39 = vor.u32 %v1863_v41, %v1860_v46 }
  0xb7   :  { %v1207_v15 = vpop.permute.xlu0 %1206  ;;  %v1296_v44 = vpop.permute.xlu1 %1295 }
  0xb8   :  { %v1664_v14 = vsel %vm11572_vm9, %v1637_v18, %v1207_v15  ;;  %v1865_v8 = vsel %vm11577_vm6, %v1847_v19, %v1864_v39 }
  0xb9   :  { %1366 = vrot.lane.b32.xlu0 %v1341_v29, %s7901_s19  ;;  %2183 = vmatmul.mubr.bf16.gmra.mrb[8].mxu0 %v1865_v8  ;;  %v1691_v12 = vsel %vm11580_vm10, %v1664_v14, %v1296_v44 }
  0xba   :  { %1422 = vrot.lane.b32.xlu1 %v1397_v3, %s7902_s22  ;;  %6977 = vmatprep.mubr.msk.bf16.mxu0 %vm11576_vm7, %v8408_v49 }
  0xbb   :  { %v1351_v31 = vpop.permute.xlu0 %1350  ;;  %v1407_v53 = vpop.permute.xlu1 %1406 }
  0xbc   :  { %v1718_v5 = vsel %vm11571_vm11, %v1691_v12, %v1351_v31 }
  0xbd   :  { %1568 = vrot.lane.b32.xlu0 %v1543_v50, %s7903_s25  ;;  %v1745_v19 = vsel %vm11578_vm12, %v1718_v5, %v1407_v53 }
  0xbf   :  { %v1553_v1 = vpop.permute.xlu0 %1552  ;;  %v1086_v36 = vpop.permute.xlu1 %1085 }
  0xc0   :  { %v1772_v47 = vsel %vm11570_vm13, %v1745_v19, %v1553_v1  ;;  %v1612_v11 = vsel %vm11576_vm7, %v8134_v54, %v1086_v36 }
  0xc1   :  { %v1875_v30 = vshrl.u32 %v1772_v47, 16  ;;  %v1878_v16 = vshll.u32 %v1772_v47, 16 }
  0xc3   :  { %v1877_v49 = vrot.slane %v1875_v30, 2  ;;  %v1880_v55 = vrot.slane %v1878_v16, 3  ;;  %v1141_v60 = vpop.permute.xlu0 %1140  ;;  %v1209_v59 = vpop.permute.xlu1 %1208 }
  0xc4   :  { %v1639_v43 = vsel %vm11581_vm8, %v1612_v11, %v1141_v60 }
  0xc5   :  { %v1881_v40 = vor.u32 %v1880_v55, %v1877_v49  ;;  %v1666_v7 = vsel %vm11572_vm9, %v1639_v43, %v1209_v59 }
  0xc7   :  { %v1298_v22 = vpop.permute.xlu0 %1297  ;;  %v1353_v17 = vpop.permute.xlu1 %1352  ;;  %v1882_v54 = vsel %vm11577_vm6, %v1864_v39, %v1881_v40 }
  0xc8   :  { %v1693_v0 = vsel %vm11580_vm10, %v1666_v7, %v1298_v22  ;;  %2191 = vmatmul.mubr.bf16.gmra.mrb[12].mxu0 %v1882_v54 }
  0xc9   :  { %v1720_v42 = vsel %vm11571_vm11, %v1693_v0, %v1353_v17  ;;  %6978 = vmatprep.mubr.msk.bf16.mxu0 %vm11576_vm7, %v8412_v20 }
  0xcb   :  { %v1409_v37 = vpop.permute.xlu0 %1408  ;;  %v1555_v56 = vpop.permute.xlu1 %1554 }
  0xcc   :  { %v1747_v25 = vsel %vm11578_vm12, %v1720_v42, %v1409_v37 }
  0xcd   :  { %v1774_v61 = vsel %vm11570_vm13, %v1747_v25, %v1555_v56 }
  0xce   :  { %v1892_v48 = vshrl.u32 %v1774_v61, 16  ;;  %v1895_v26 = vshll.u32 %v1774_v61, 16 }
  0xcf   :  { %v1088_v35 = vpop.permute.xlu0 %1087  ;;  %v1143_v57 = vpop.permute.xlu1 %1142 }
  0xd0   :  { %v1894_v10 = vrot.slane %v1892_v48, 2  ;;  %v1897_v46 = vrot.slane %v1895_v26, 3  ;;  %v1614_v41 = vsel %vm11576_vm7, %v8181_v24, %v1088_v35 }
  0xd1   :  { %v1641_v2 = vsel %vm11581_vm8, %v1614_v41, %v1143_v57 }
  0xd2   :  { %v1898_v39 = vor.u32 %v1897_v46, %v1894_v10 }
  0xd3   :  { %v1211_v29 = vpop.permute.xlu0 %1210  ;;  %v1300_v20 = vpop.permute.xlu1 %1299 }
  0xd4   :  { %v1668_v27 = vsel %vm11572_vm9, %v1641_v2, %v1211_v29  ;;  %v1899_v18 = vsel %vm11577_vm6, %v1881_v40, %v1898_v39 }
  0xd5   :  { %v1695_v15 = vsel %vm11580_vm10, %v1668_v27, %v1300_v20  ;;  %2199 = vmatmul.mubr.bf16.gmra.mrb[16].mxu0 %v1899_v18  ;;  %v1593_v20 = vrot.slane %v8583_v6, 7 }
  0xd6   :  { %6979 = vmatprep.mubr.msk.bf16.mxu0 %vm11576_vm7, %v8415_v28 }
  0xd7   :  { %v1355_v44 = vpop.permute.xlu0 %1354  ;;  %v1411_v3 = vpop.permute.xlu1 %1410 }
  0xd8   :  { %v1722_v14 = vsel %vm11571_vm11, %v1695_v15, %v1355_v44 }
  0xd9   :  { %v1749_v24 = vsel %vm11578_vm12, %v1722_v14, %v1411_v3 }
  0xdb   :  { %v1557_v8 = vpop.permute.xlu0 %1556  ;;  %v1090_v50 = vpop.permute.xlu1 %1089 }
  0xdc   :  { %v1776_v12 = vsel %vm11570_vm13, %v1749_v24, %v1557_v8  ;;  %v1616_v5 = vsel %vm11576_vm7, %v8223_v45, %v1090_v50  ;;  %v1594_v8 = vsel %vm11574_vm5, %v1591_v38, %v1593_v20 }
  0xdd   :  { %v1909_v31 = vshrl.u32 %v1776_v12, 16  ;;  %v1912_v53 = vshll.u32 %v1776_v12, 16 }
  0xdf   :  { %v1911_v19 = vrot.slane %v1909_v31, 2  ;;  %v1914_v1 = vrot.slane %v1912_v53, 3  ;;  %v1145_v36 = vpop.permute.xlu0 %1144  ;;  %v1213_v47 = vpop.permute.xlu1 %1212 }
  0xe0   :  { %v1643_v28 = vsel %vm11581_vm8, %v1616_v5, %v1145_v36  ;;  %v1986_v5 = vshrl.u32 %v1594_v8, 16 }
  0xe1   :  { %v1915_v30 = vor.u32 %v1914_v1, %v1911_v19  ;;  %v1670_v16 = vsel %vm11572_vm9, %v1643_v28, %v1213_v47  ;;  %v1989_v19 = vshll.u32 %v1594_v8, 16 }
  0xe2   :  { %v1988_v38 = vrot.slane %v1986_v5, 2 }
  0xe3   :  { %v1302_v11 = vpop.permute.xlu0 %1301  ;;  %v1357_v49 = vpop.permute.xlu1 %1356  ;;  %v1916_v55 = vsel %vm11577_vm6, %v1898_v39, %v1915_v30  ;;  %v1991_v47 = vrot.slane %v1989_v19, 3 }
  0xe4   :  { %v1697_v60 = vsel %vm11580_vm10, %v1670_v16, %v1302_v11  ;;  %2207 = vmatmul.mubr.bf16.gmra.mrb[20].mxu0 %v1916_v55 }
  0xe5   :  { %v1724_v59 = vsel %vm11571_vm11, %v1697_v60, %v1357_v49  ;;  %6980 = vmatprep.mubr.msk.bf16.mxu0 %vm11576_vm7, %v8444_v4  ;;  %v1992_v60 = vor.u32 %v1991_v47, %v1988_v38 }
  0xe7   :  { %v1413_v45 = vpop.permute.xlu0 %1412  ;;  %v1559_v43 = vpop.permute.xlu1 %1558 }
  0xe8   :  { %v1751_v40 = vsel %vm11578_vm12, %v1724_v59, %v1413_v45  ;;  %v1595_v59 = vrot.slane %v8668_v52, 7  ;;  %v902_v52 = vld [vmem:[%s11564_s0 + $0x70] sm:$0x3] }
  0xe9   :  { %v1778_v7 = vsel %vm11570_vm13, %v1751_v40, %v1559_v43 }
  0xea   :  { %v1926_v22 = vshrl.u32 %v1778_v7, 16  ;;  %v1929_v17 = vshll.u32 %v1778_v7, 16 }
  0xeb   :  { %v1092_v54 = vpop.permute.xlu0 %1091  ;;  %v1147_v0 = vpop.permute.xlu1 %1146 }
  0xec   :  { %v1928_v42 = vrot.slane %v1926_v22, 2  ;;  %v1931_v37 = vrot.slane %v1929_v17, 3  ;;  %v1618_v56 = vsel %vm11576_vm7, %v8271_v33, %v1092_v54  ;;  %v1993_v54 = vsel %vm11577_vm6, %v8569_v62, %v1992_v60 }
  0xed   :  { %v1645_v25 = vsel %vm11581_vm8, %v1618_v56, %v1147_v0  ;;  %v1596_v0 = vsel %vm11574_vm5, %v1593_v20, %v1595_v59  ;;  %v6964_v62 = vcombine.low %v8741_v9, %v902_v52 }
  0xee   :  { %v1932_v61 = vor.u32 %v1931_v37, %v1928_v42  ;;  %v2003_v56 = vshrl.u32 %v1596_v0, 16 }
  0xef   :  { %v1215_v48 = vpop.permute.xlu0 %1214  ;;  %v1304_v4 = vpop.permute.xlu1 %1303 }
  0xf0   :  { %v1672_v26 = vsel %vm11572_vm9, %v1645_v25, %v1215_v48  ;;  %v1933_v35 = vsel %vm11577_vm6, %v1915_v30, %v1932_v61  ;;  %v2006_v25 = vshll.u32 %v1596_v0, 16 }
  0xf1   :  { %v1699_v57 = vsel %vm11580_vm10, %v1672_v26, %v1304_v4  ;;  %2215 = vmatmul.mubr.bf16.gmra.mrb[24].mxu0 %v1933_v35  ;;  %v2005_v35 = vrot.slane %v2003_v56, 2 }
  0xf2   :  { %6981 = vmatprep.mubr.msk.bf16.mxu0 %vm11576_vm7, %v8518_v34 }
  0xf3   :  { %v1359_v10 = vpop.permute.xlu0 %1358  ;;  %v1415_v46 = vpop.permute.xlu1 %1414 }
  0xf4   :  { %v1726_v41 = vsel %vm11571_vm11, %v1699_v57, %v1359_v10  ;;  %v2008_v57 = vrot.slane %v2006_v25, 3 }
  0xf5   :  { %v1753_v33 = vsel %vm11578_vm12, %v1726_v41, %v1415_v46  ;;  %v1597_v41 = vrot.slane %v6964_v62, 7  ;;  %v22_v62 = vlaneseq }
  0xf6   :  { %v2009_v20 = vor.u32 %v2008_v57, %v2005_v35 }
  0xf7   :  { %v1561_v2 = vpop.permute.xlu0 %1560  ;;  %v1094_v39 = vpop.permute.xlu1 %1093 }
  0xf8   :  { %v1780_v29 = vsel %vm11570_vm13, %v1753_v33, %v1561_v2  ;;  %v1620_v15 = vsel %vm11576_vm7, %v8345_v51, %v1094_v39 }
  0xf9   :  { %v1943_v27 = vshrl.u32 %v1780_v29, 16  ;;  %v1946_v18 = vshll.u32 %v1780_v29, 16 }
  0xfb   :  { %v1945_v44 = vrot.slane %v1943_v27, 2  ;;  %v1948_v3 = vrot.slane %v1946_v18, 3  ;;  %v1149_v34 = vpop.permute.xlu0 %1148  ;;  %v1217_v14 = vpop.permute.xlu1 %1216 }
  0xfc   :  { %v1647_v24 = vsel %vm11581_vm8, %v1620_v15, %v1149_v34 }
  0xfd   :  { %v1949_v50 = vor.u32 %v1948_v3, %v1945_v44  ;;  %v1674_v12 = vsel %vm11572_vm9, %v1647_v24, %v1217_v14  ;;  %v1598_v3 = vsel %vm11574_vm5, %v1595_v59, %v1597_v41  ;;  %v2010_v24 = vsel %vm11577_vm6, %v1992_v60, %v2009_v20 }
  0xff   :  { %v1306_v31 = vpop.permute.xlu0 %1305  ;;  %v1361_v6 = vpop.permute.xlu1 %1360  ;;  %v1950_v53 = vsel %vm11577_vm6, %v1932_v61, %v1949_v50 }
 0x100   :  { %v1701_v51 = vsel %vm11580_vm10, %v1674_v12, %v1306_v31  ;;  %2223 = vmatmul.mubr.bf16.gmra.mrb[28].mxu0 %v1950_v53  ;;  %v2020_v31 = vshrl.u32 %v1598_v3, 16 }
 0x101   :  { %v1728_v1 = vsel %vm11571_vm11, %v1701_v51, %v1361_v6  ;;  %6982 = vmatprep.mubr.msk.bf16.mxu0 %vm11576_vm7, %v8588_v32 }
 0x102   :  { %v2022_v51 = vrot.slane %v2020_v31, 2  ;;  %v2522_v31 = vld [vmem:[#allocation2] sm:$0x8] }
 0x103   :  { %v1417_v58 = vpop.permute.xlu0 %1416  ;;  %v1563_v36 = vpop.permute.xlu1 %1562 }
 0x104   :  { %v1755_v28 = vsel %vm11578_vm12, %v1728_v1, %v1417_v58 }
 0x105   :  { %v1782_v30 = vsel %vm11570_vm13, %v1755_v28, %v1563_v36 }
 0x106   :  { %v1960_v16 = vshrl.u32 %v1782_v30, 16  ;;  %v1963_v11 = vshll.u32 %v1782_v30, 16 }
 0x107   :  { %v1096_v49 = vpop.permute.xlu0 %1095  ;;  %v1151_v55 = vpop.permute.xlu1 %1150 }
 0x108   :  { %v1962_v45 = vrot.slane %v1960_v16, 2  ;;  %v1965_v43 = vrot.slane %v1963_v11, 3  ;;  %v1622_v32 = vsel %vm11576_vm7, %v8474_v63, %v1096_v49 }
 0x109   :  { %v1649_v40 = vsel %vm11581_vm8, %v1622_v32, %v1151_v55 }
 0x10a   :  { %v1966_v7 = vor.u32 %v1965_v43, %v1962_v45 }
 0x10b   :  { %v1219_v22 = vpop.permute.xlu0 %1218  ;;  %v1308_v17 = vpop.permute.xlu1 %1307 }
 0x10c   :  { %v1676_v42 = vsel %vm11572_vm9, %v1649_v40, %v1219_v22  ;;  %v1967_v37 = vsel %vm11577_vm6, %v1949_v50, %v1966_v7 }
 0x10d   :  { %v1703_v63 = vsel %vm11580_vm10, %v1676_v42, %v1308_v17  ;;  %2231 = vmatmul.mubr.bf16.gmra.mrb[32].mxu0 %v1967_v37 }
 0x10e   :  { %6983 = vmatprep.mubr.msk.bf16.mxu0 %vm11576_vm7, %v1993_v54 }
 0x10f   :  { %v1363_v61 = vpop.permute.xlu0 %1362  ;;  %v1419_v48 = vpop.permute.xlu1 %1418 }
 0x110   :  { %v1730_v4 = vsel %vm11571_vm11, %v1703_v63, %v1363_v61 }
 0x111   :  { %v1757_v26 = vsel %vm11578_vm12, %v1730_v4, %v1419_v48  ;;  %v8908_v4 = vshrl.u32 %v22_v62, 7 }
 0x113   :  { %v1565_v10 = vpop.permute.xlu0 %1564  ;;  %v1098_v46 = vpop.permute.xlu1 %1097  ;;  %11664 = vst [vmem:[#allocation8_spill] sm:$0xff] %v8908_v4  ;;  %v8913_v35 = vadd.s32 8, %v8908_v4  ;;  %vm623_vm5 = vcmp.eq.s32.totalorder %v8908_v4, 0  ;;  %v25_v41 = vadd.s32 16, %v8908_v4 }
 0x114   :  { %v1784_v33 = vsel %vm11570_vm13, %v1757_v26, %v1565_v10  ;;  %v1624_v29 = vsel %vm11576_vm7, %v8539_v13, %v1098_v46  ;;  %v2023_v13 = vshll.u32 %v1598_v3, 16  ;;  %v8910_v26 = vand.u32 127, %v22_v62 }
 0x115   :  { %v1977_v2 = vshrl.u32 %v1784_v33, 16  ;;  %v1980_v39 = vshll.u32 %v1784_v33, 16  ;;  %v6908_v57 = vadd.s32 4294967286, %v8913_v35  ;;  %v8939_v33 = vld [vmem:[%s11566_s2 + $0x1] ss:$0 sm:$0xff] }
 0x116   :  { %v2025_v1 = vrot.slane %v2023_v13, 3  ;;  %11665 = vst [vmem:[#allocation9_spill] sm:$0xff] %v8910_v26  ;;  %vm652_vm15 = vcmp.ge.s32.totalorder %v8910_v26, 16 }
 0x117   :  { %v1979_v27 = vrot.slane %v1977_v2, 2  ;;  %v1982_v18 = vrot.slane %v1980_v39, 3  ;;  %v1153_v9 = vpop.permute.xlu0 %1152  ;;  %v1221_v15 = vpop.permute.xlu1 %1220 }
 0x118   :  { %v1651_v44 = vsel %vm11581_vm8, %v1624_v29, %v1153_v9  ;;  %v2026_v16 = vor.u32 %v2025_v1, %v2022_v51  ;;  %v6884_v29 = vadd.s32 4294967276, %v25_v41 }
 0x119   :  { %v1983_v34 = vor.u32 %v1982_v18, %v1979_v27  ;;  %v1678_v14 = vsel %vm11572_vm9, %v1651_v44, %v1221_v15  ;;  %v26_v27 = vadd.s32 24, %v8908_v4 }
 0x11a   :  { %v2027_v32 = vsel %vm11577_vm6, %v2009_v20, %v2026_v16 }
 0x11b   :  { %v1310_v8 = vpop.permute.xlu0 %1309  ;;  %v1365_v50 = vpop.permute.xlu1 %1364  ;;  %v1984_v12 = vsel %vm11577_vm6, %v1966_v7, %v1983_v34 }
 0x11c   :  { %v1705_v6 = vsel %vm11580_vm10, %v1678_v14, %v1310_v8  ;;  %2239 = vmatmul.mubr.bf16.gmra.mrb[36].mxu0 %v1984_v12  ;;  %v2497_v8 = vld [vmem:[#allocation2 + $0x4] sm:$0xf] }
 0x11d   :  { %v1732_v53 = vsel %vm11571_vm11, %v1705_v6, %v1365_v50  ;;  %6984 = vmatprep.mubr.msk.bf16.mxu0 %vm11576_vm7, %v2010_v24  ;;  %v6885_v24 = vadd.s32 4294967276, %v26_v27  ;;  %v7025_v1 = vcombine.low %v2522_v31, %v2497_v8  ;;  %v7761_v27 = vld [vmem:[%s11565_s1 + $0xa0] sm:$0xff]  }
 0x11f   :  { %v1421_v5 = vpop.permute.xlu0 %1420  ;;  %v1567_v19 = vpop.permute.xlu1 %1566  ;;  %v6910_v51 = vadd.s32 4294967286, %v6885_v24 }
 0x120   :  { %v1759_v58 = vsel %vm11578_vm12, %v1732_v53, %v1421_v5 }
 0x121   :  { %v1786_v36 = vsel %vm11570_vm13, %v1759_v58, %v1567_v19 }
 0x122   :  { %v1994_v38 = vshrl.u32 %v1786_v36, 16  ;;  %v1997_v47 = vshll.u32 %v1786_v36, 16 }
 0x123   :  { %v1100_v28 = vpop.permute.xlu0 %1099  ;;  %v1155_v30 = vpop.permute.xlu1 %1154 }
 0x124   :  { %v1996_v11 = vrot.slane %v1994_v38, 2  ;;  %v1999_v49 = vrot.slane %v1997_v47, 3  ;;  %v1626_v55 = vsel %vm11576_vm7, %v8634_v21, %v1100_v28  ;;  %v2597_v47 = vshll.u32 %v7025_v1, 16 }
 0x125   :  { %v1653_v60 = vsel %vm11581_vm8, %v1626_v55, %v1155_v30  ;;  %v2595_v30 = vshrl.u32 %v7025_v1, 16  ;;  %v7758_v55 = vld [vmem:[%s11565_s1 + $0x90] sm:$0xff]  }
 0x126   :  { %v2000_v59 = vor.u32 %v1999_v49, %v1996_v11 }
 0x127   :  { %v1223_v45 = vpop.permute.xlu0 %1222  ;;  %v1312_v43 = vpop.permute.xlu1 %1311 }
 0x128   :  { %v1680_v40 = vsel %vm11572_vm9, %v1653_v60, %v1223_v45  ;;  %v2001_v7 = vsel %vm11577_vm6, %v1983_v34, %v2000_v59  ;;  %vm651_vm9 = vcmp.lt.s32.totalorder %v8910_v26, 8 }
 0x129   :  { %2247 = vmatmul.mubr.bf16.gmra.mrb[40].mxu0 %v2001_v7  ;;  %v1707_v22 = vsel %vm11580_vm10, %v1680_v40, %v1312_v43 }
 0x12a   :  { %6985 = vmatprep.mubr.msk.bf16.mxu0 %vm11576_vm7, %v2027_v32 }
 0x12b   :  { %v1367_v17 = vpop.permute.xlu0 %1366 }
 0x12c   :  { %v1734_v54 = vsel %vm11571_vm11, %v1707_v22, %v1367_v17  ;;  %v1423_v21 = vpop.permute.xlu1 %1422  ;;  %vm11579_vm11 = vcmp.ge.s32.totalorder %v8913_v35, 10 }
 0x12d   :  { %v1761_v0 = vsel %vm11578_vm12, %v1734_v54, %v1423_v21  ;;  %v8923_v10 = vsel %vm11579_vm11, %v6908_v57, %v8913_v35  ;;  %v11584_v54 = vmov 0.0   ;;  %v29_v57 = vadd.s32 48, %v8908_v4 }
 0x12e   :  { %vm624_vm12 = vcmp.eq.s32.totalorder %v8923_v10, 0  ;;  %7448 = vmatprep.subr.bf16.mxu1 %v11584_v54 }
 0x12f   :  { %v1569_v42 = vpop.permute.xlu0 %1568  ;;  %7449 = vmatpush3.bf16.msra.mxu1 %v7758_v55 }
 0x130   :  { %v1788_v37 = vsel %vm11570_vm13, %v1761_v0, %v1569_v42  ;;  %vm653_vm13 = vcmp.lt.s32.totalorder %v8910_v26, 24  ;;  %v28_v0 = vadd.s32 40, %v8908_v4  ;;  %v30_v42 = vadd.s32 56, %v8908_v4  ;;  %7450 = vmatprep.subr.bf16.mxu1 %v11584_v54 }
 0x131   :  { %v2011_v52 = vshrl.u32 %v1788_v37, 16  ;;  %v2014_v63 = vshll.u32 %v1788_v37, 16  ;;  %vm654_vm4 = vmand %vm652_vm15, %vm653_vm13  ;;  %vm275_vm15 = vcmp.ge.s32.totalorder %v25_v41, 20 }
 0x132   :  { %vm8926_vm3 = vmor %vm651_vm9, %vm654_vm4  ;;  %v325_v14 = vsel %vm275_vm15, %v6884_v29, %v25_v41  ;;  %v9014_v2 = vadd.s32 4294967256, %v28_v0 }
 0x133   :  { %v2013_v56 = vrot.slane %v2011_v52, 2  ;;  %v2016_v25 = vrot.slane %v2014_v63, 3  ;;  %vm785_vm13 = vmand %vm623_vm5, %vm8926_vm3  ;;  %v6909_v6 = vadd.s32 4294967286, %v325_v14 }
 0x134   :  { %vm8949_vm9 = vmand %vm624_vm12, %vm8926_vm3  ;;  %vm11592_vm12 = vmmov 1   ;;  %11676 = vst [vmem:[#allocation10_spill] sm:$0xff] %v9014_v2 }
 0x135   :  { %v2017_v61 = vor.u32 %v2016_v25, %v2013_v56  ;;  %v7759_v56 = vld [vmem:[%s11565_s1 + $0x98] sm:$0xff]  }
 0x136   :  { %7451 = vmatpush3.bf16.msra.mxu1 %v7759_v56 }
 0x137   :  { %v2018_v48 = vsel %vm11577_vm6, %v2000_v59, %v2017_v61  ;;  %vm599_vm6 = vcmp.lt.s32.totalorder %v8913_v35, 10  ;;  %7452 = vmatprep.subr.bf16.mxu1 %v11584_v54 }
 0x138   :  { %2255 = vmatmul.mubr.bf16.gmra.mrb[44].mxu0 %v2018_v48 }
 0x139   :  { %6986 = vmatprep.mubr.msk.bf16.mxu0 %vm11576_vm7, %v2026_v16  ;;  %vm650_vm7 = vcmp.lt.s32.totalorder %v8910_v26, 16  ;;  %v2599_v16 = vrot.slane %v2597_v47, 1  ;;  %v32_v47 = vadd.s32 72, %v8908_v4 }
 0x13a   :  { %vm8943_vm4 = vmand %vm599_vm6, %vm650_vm7  ;;  %7453 = vmatpush3.bf16.msra.mxu1 %v7761_v27 }
 0x13b   :  { %vm810_vm5 = vmor %vm650_vm7, %vm785_vm13  ;;  %v2600_v21 = vor.u32 %v2599_v16, %v2595_v30  ;;  %7454 = vmatprep.subr.bf16.mxu1 %v11584_v54 }
 0x13c   :  { %vm811_vm6 = vmor %vm8943_vm4, %vm8949_vm9  ;;  %vm350_vm4 = vcmp.ge.s32.totalorder %v325_v14, 10  ;;  %vm351_vm9 = vcmp.ge.s32.totalorder %v6885_v24, 10 }
 0x13d   :  { %vm835_vm11 = vmxor %vm810_vm5, %vm11592_vm12  ;;  %v8965_v36 = vsel %vm350_vm4, %v6909_v6, %v325_v14  ;;  %v8968_v38 = vsel %vm351_vm9, %v6910_v51, %v6885_v24  ;;  %vm628_vm9 = vcmp.eq.s32.totalorder %v9014_v2, 0 }
 0x13e   :  { %vm836_vm13 = vmxor %vm811_vm6, %vm11592_vm12 }
 0x140   :  { %2263 = vmatmul.mubr.bf16.gmra.mrb[48].mxu0 %v2017_v61 }
 0x16f   :  { %v2168_v20 = vpop.f32.mrb[0].mxu0 }
 0x170   :  { %v2169_v18 = vadd.f32 %v2168_v20, %v8939_v33  ;;  %v2170_v9 = vpop.f32.mrb[1].mxu0  ;;  %v6864_v20 = vadd.s32 4294967256, %v30_v42  ;;  %v7765_v42 = vld [vmem:[%s11565_s1 + $0xb8] sm:$0xff]  }
 0x171   :  { %v2171_v15 = vpop.f32.mrb[2].mxu0  ;;  %v2523_v9 = vld [vmem:[#allocation2 + $0x4] sm:$0x8] }
 0x172   :  { %vm2270_vm10 = vcmp.gt.f32.partialorder %v2169_v18, 0.0  ;;  %v2295_v44 = vmul.f32 0.1, %v2169_v18  ;;  %v2172_v3 = vadd.f32 %v2171_v15, %v8939_v33  ;;  %v2173_v34 = vpop.f32.mrb[3].mxu0 }
 0x173   :  { %v7762_v34 = vld [vmem:[%s11565_s1 + $0xa8] sm:$0xff]  }
 0x174   :  { %v2320_v50 = vsel %vm2270_vm10, %v2169_v18, %v2295_v44  ;;  %vm2271_vm8 = vcmp.gt.f32.partialorder %v2172_v3, 0.0  ;;  %v2296_v12 = vmul.f32 0.1, %v2172_v3  ;;  %vm625_vm10 = vcmp.eq.s32.totalorder %v8965_v36, 0  ;;  %7455 = vmatpush3.bf16.msra.mxu1 %v7762_v34 }
 0x175   :  { %v2345_v13 = vsel %vm835_vm11, %v2320_v50, 0.0  ;;  %vm626_vm11 = vcmp.eq.s32.totalorder %v8968_v38, 0  ;;  %v6863_v18 = vadd.s32 4294967256, %v29_v57  ;;  %v6889_v44 = vadd.s32 4294967276, %v6864_v20  ;;  %7456 = vmatprep.subr.bf16.mxu1 %v11584_v54 }
 0x176   :  { %v7261_v53 = vpack.c.bf16 %v2345_v13, %v2345_v13  ;;  %v2321_v5 = vsel %vm2271_vm8, %v2172_v3, %v2296_v12  ;;  %vm787_vm8 = vmand %vm625_vm10, %vm8926_vm3  ;;  %v31_v3 = vadd.s32 64, %v8908_v4  ;;  %vm280_vm10 = vcmp.ge.s32.totalorder %v6864_v20, 20 }
 0x177   :  { %v2346_v19 = vsel %vm836_vm13, %v2321_v5, 0.0  ;;  %vm8980_vm5 = vmand %vm626_vm11, %vm8926_vm3  ;;  %v6913_v13 = vadd.s32 4294967286, %v6863_v18  ;;  %v330_v1 = vsel %vm280_vm10, %v6889_v44, %v6864_v20 }
 0x178   :  { %2471 = vst.msk [vmem:[#allocation2 + $0x8] sm:$0xf] %vm860_vm14, %v7261_v53  ;;  %v7262_v58 = vpack.c.bf16 %v2346_v19, %v2346_v19  ;;  %vm8989_vm15 = vmxor %vm787_vm8, %vm11592_vm12  ;;  %vm354_vm8 = vcmp.ge.s32.totalorder %v6863_v18, 10 }
 0x179   :  { %vm838_vm13 = vmxor %vm8980_vm5, %vm11592_vm12 }
 0x17a   :  { %2472 = vst.msk [vmem:[#allocation2 + $0xc] sm:$0xf] %vm860_vm14, %v7262_v58  ;;  %vm9034_vm11 = vmand %vm628_vm9, %vm8926_vm3  ;;  %v6865_v58 = vadd.s32 4294967256, %v31_v3 }
 0x17f   :  { %v2176_v28 = vpop.f32.mrb[4].mxu0  ;;  %v8984_v45 = vld [vmem:[#allocation2 + $0x8] sm:$0xf] }
 0x180   :  { %v2177_v11 = vadd.f32 %v2176_v28, %v8939_v33  ;;  %v2178_v49 = vpop.f32.mrb[5].mxu0  ;;  %v7026_v12 = vcombine.low %v2523_v9, %v8984_v45  ;;  %v7763_v28 = vld [vmem:[%s11565_s1 + $0xb0] sm:$0xff]  }
 0x181   :  { %v2179_v59 = vpop.f32.mrb[6].mxu0  ;;  %v8986_v43 = vld [vmem:[#allocation2 + $0xc] sm:$0xf]  ;;  %v35_v49 = vadd.s32 96, %v8908_v4  ;;  %7457 = vmatpush3.bf16.msra.mxu1 %v7763_v28 }
 0x182   :  { %vm2272_vm6 = vcmp.gt.f32.partialorder %v2177_v11, 0.0  ;;  %v2297_v40 = vmul.f32 0.1, %v2177_v11  ;;  %v2180_v7 = vadd.f32 %v2179_v59, %v8939_v33  ;;  %v2181_v22 = vpop.f32.mrb[7].mxu0  ;;  %v8996_v17 = vcombine.low %v8984_v45, %v8986_v43  ;;  %7458 = vmatprep.subr.bf16.mxu1 %v11584_v54 }
 0x183   :  { %v2742_v59 = vrot.slane %v7026_v12, 1 }
 0x184   :  { %v2322_v37 = vsel %vm2272_vm6, %v2177_v11, %v2297_v40  ;;  %vm2273_vm4 = vcmp.gt.f32.partialorder %v2180_v7, 0.0  ;;  %v2298_v52 = vmul.f32 0.1, %v2180_v7  ;;  %v2602_v63 = vshll.u32 %v8996_v17, 16 }
 0x185   :  { %v2347_v25 = vsel %vm8989_vm15, %v2322_v37, 0.0  ;;  %v2606_v31 = vshrl.u32 %v8996_v17, 16  ;;  %vm840_vm15 = vmxor %vm9034_vm11, %vm11592_vm12  ;;  %7459 = vmatpush3.bf16.msra.mxu1 %v7765_v42 }
 0x186   :  { %v7263_v61 = vpack.c.bf16 %v2347_v25, %v2347_v25  ;;  %v2323_v48 = vsel %vm2273_vm4, %v2180_v7, %v2298_v52  ;;  %v9011_v62 = vrot.slane %v2602_v63, 1  ;;  %v2796_v40 = vrot.slane %v2602_v63, 6  ;;  %7460 = vmatprep.subr.bf16.mxu1 %v11584_v54 }
 0x187   :  { %v2348_v41 = vsel %vm838_vm13, %v2323_v48, 0.0  ;;  %v2795_v32 = vrot.slane %v2606_v31, 5  ;;  %v6914_v7 = vadd.s32 4294967286, %v330_v1  ;;  %vm355_vm13 = vcmp.ge.s32.totalorder %v330_v1, 10 }
 0x188   :  { %2473 = vst.msk [vmem:[#allocation2 + $0x10] sm:$0xf] %vm860_vm14, %v7263_v61  ;;  %v7264_v39 = vpack.c.bf16 %v2348_v41, %v2348_v41  ;;  %v2605_v29 = vsel %vm11598_vm1, %v2600_v21, %v9011_v62  ;;  %v9068_v52 = vsel %vm354_vm8, %v6913_v13, %v6863_v18  ;;  %v6866_v63 = vadd.s32 4294967256, %v32_v47 }
 0x189   :  { %2697 = vrot.lane.b32.xlu1 %v2605_v29, %s7898_s10  ;;  %v2608_v56 = vor.u32 %v2606_v31, %v9011_v62  ;;  %v6890_v61 = vadd.s32 4294967276, %v6865_v58  ;;  %v6819_v48 = vadd.s32 4294967196, %v35_v49  ;;  %v9072_v57 = vor.u32 %v2796_v40, %v2795_v32  ;;  %v7766_v62 = vld [vmem:[%s11565_s1 + $0xc0] sm:$0xff]  }
 0x18a   :  { %2474 = vst.msk [vmem:[#allocation2 + $0x14] sm:$0xf] %vm860_vm14, %v7264_v39  ;;  %v9074_v41 = vsel %vm355_vm13, %v6914_v7, %v330_v1  ;;  %vm60_vm4 = vcmp.ge.s32.totalorder %v35_v49, 100  ;;  %vm629_vm9 = vcmp.eq.s32.totalorder %v9068_v52, 0  ;;  %v6891_v20 = vadd.s32 4294967276, %v6866_v63  ;;  %7461 = vmatpush3.bf16.msra.mxu1 %v7766_v62 }
 0x18b   :  { %vm630_vm10 = vcmp.eq.s32.totalorder %v9074_v41, 0  ;;  %v6915_v27 = vadd.s32 4294967286, %v6890_v61  ;;  %v9087_v18 = vsel %vm60_vm4, %v6819_v48, %v35_v49  ;;  %vm9091_vm11 = vmand %vm629_vm9, %vm8926_vm3  ;;  %vm356_vm8 = vcmp.ge.s32.totalorder %v6890_v61, 10  ;;  %7462 = vmatprep.subr.bf16.mxu1 %v11584_v54 }
 0x18c   :  { %v2184_v15 = vpop.f32.mrb[8].mxu0  ;;  %v9104_v31 = vadd.s32 4294967286, %v6891_v20  ;;  %v6844_v13 = vadd.s32 4294967216, %v9087_v18  ;;  %vm135_vm13 = vcmp.ge.s32.totalorder %v9087_v18, 80 }
 0x18d   :  { %v2185_v14 = vadd.f32 %v2184_v15, %v8939_v33  ;;  %v2186_v24 = vpop.f32.mrb[9].mxu0  ;;  %v9121_v58 = vsel %vm356_vm8, %v6915_v27, %v6890_v61 }
 0x18e   :  { %v2187_v50 = vpop.f32.mrb[10].mxu0  ;;  %vm632_vm8 = vcmp.eq.s32.totalorder %v9104_v31, 0 }
 0x18f   :  { %vm2274_vm5 = vcmp.gt.f32.partialorder %v2185_v14, 0.0  ;;  %v2299_v6 = vmul.f32 0.1, %v2185_v14  ;;  %v2188_v53 = vadd.f32 %v2187_v50, %v8939_v33  ;;  %v2189_v5 = vpop.f32.mrb[11].mxu0  ;;  %v2500_v19 = vld [vmem:[#allocation2 + $0x10] sm:$0xf] }
 0x190   :  { %v7027_v51 = vcombine.low %v8986_v43, %v2500_v19 }
 0x191   :  { %v2324_v30 = vsel %vm2274_vm5, %v2185_v14, %v2299_v6  ;;  %vm2275_vm6 = vcmp.gt.f32.partialorder %v2188_v53, 0.0  ;;  %v2300_v16 = vmul.f32 0.1, %v2188_v53  ;;  %v9050_v11 = vld [vmem:[#allocation2 + $0x14] sm:$0xf]  ;;  %vm9100_vm5 = vmand %vm630_vm10, %vm8926_vm3  ;;  %v7767_v6 = vld [vmem:[%s11565_s1 + $0xc8] sm:$0xff]  }
 0x192   :  { %v7265_v55 = vpack.c.bf16 %v2324_v30, %v2324_v30  ;;  %v9054_v60 = vcombine.low %v2500_v19, %v9050_v11  ;;  %v9056_v45 = vrot.slane %v7027_v51, 1  ;;  %7463 = vmatpush3.bf16.msra.mxu1 %v7767_v6  ;;  %vm9132_vm4 = vmxor %vm9100_vm5, %vm11592_vm12  ;;  %vm11593_vm10 = vmmov 0  }
 0x193   :  { %v2325_v43 = vsel %vm2275_vm6, %v2188_v53, %v2300_v16  ;;  %7464 = vmatprep.mubr.msk.bf16.mxu1 %vm11593_vm10, %v11584_v54  ;;  %7516 = vmatprep.subr.bf16.mxu1 %v11584_v54 }
 0x194   :  { %2475 = vst.msk [vmem:[#allocation2 + $0x18] sm:$0xf] %vm860_vm14, %v7265_v55  ;;  %v2350_v22 = vsel %vm840_vm15, %v2325_v43, 0.0  ;;  %v2744_v21 = vsel %vm11597_vm0, %v2742_v59, %v9056_v45  ;;  %v2610_v0 = vshll.u32 %v9054_v60, 16  ;;  %v2614_v29 = vshrl.u32 %v9054_v60, 16  ;;  %vm9113_vm15 = vmxor %vm9091_vm11, %vm11592_vm12 }
 0x195   :  { %v7266_v37 = vpack.c.bf16 %v2350_v22, %v2350_v22  ;;  %2767 = vrot.lane.b32.xlu1 %v2744_v21, %s7900_s16  ;;  %v185_v21 = vsel %vm135_vm13, %v6844_v13, %v9087_v18  ;;  %vm631_vm11 = vcmp.eq.s32.totalorder %v9121_v58, 0 }
 0x196   :  { %v2612_v25 = vrot.slane %v2610_v0, 1  ;;  %v2798_v24 = vrot.slane %v2614_v29, 5  ;;  %v2799_v8 = vrot.slane %v2610_v0, 6  ;;  %vm210_vm5 = vcmp.ge.s32.totalorder %v185_v21, 40 }
 0x197   :  { %2476 = vst.msk [vmem:[#allocation2 + $0x1c] sm:$0xf] %vm860_vm14, %v7266_v37 }
 0x198   :  { %v2613_v39 = vsel %vm11598_vm1, %v2608_v56, %v2612_v25  ;;  %v2800_v49 = vor.u32 %v2799_v8, %v2798_v24  ;;  %v2616_v22 = vor.u32 %v2614_v29, %v2612_v25  ;;  %v9156_v56 = vadd.s32 88, %v8908_v4 }
 0x199   :  { %2699 = vrot.lane.b32.xlu0 %v2613_v39, %s7898_s10  ;;  %2856 = vrot.lane.b32.xlu1 %v9072_v57, %s7902_s22  ;;  %v6869_v39 = vadd.s32 4294967256, %v185_v21  ;;  %v33_v29 = vadd.s32 80, %v8908_v4 }
 0x19a   :  { %v2801_v25 = vsel %vm11603_vm2, %v9072_v57, %v2800_v49  ;;  %v6843_v62 = vadd.s32 4294967216, %v9156_v56 }
 0x19b   :  { %v2192_v15 = vpop.f32.mrb[12].mxu0  ;;  %v2502_v44 = vld [vmem:[#allocation2 + $0x18] sm:$0xf]  ;;  %v9181_v50 = vadd.s32 4294967216, %v33_v29 }
 0x19c   :  { %v2193_v3 = vadd.f32 %v2192_v15, %v8939_v33  ;;  %v2194_v34 = vpop.f32.mrb[13].mxu0  ;;  %v7028_v14 = vcombine.low %v9050_v11, %v2502_v44 }
 0x19d   :  { %v2195_v12 = vpop.f32.mrb[14].mxu0  ;;  %11687 = vst [vmem:[#allocation11_spill] sm:$0xff] %v9181_v50 }
 0x19e   :  { %vm2276_vm6 = vcmp.gt.f32.partialorder %v2193_v3, 0.0  ;;  %v2301_v5 = vmul.f32 0.1, %v2193_v3  ;;  %v2196_v19 = vadd.f32 %v2195_v12, %v8939_v33  ;;  %v2197_v51 = vpop.f32.mrb[15].mxu0  ;;  %v9118_v1 = vld [vmem:[#allocation2 + $0x1c] sm:$0xf] }
 0x19f   :  { %v9124_v47 = vcombine.low %v2502_v44, %v9118_v1  ;;  %v9126_v28 = vrot.slane %v7028_v14, 1  ;;  %v260_v44 = vsel %vm210_vm5, %v6869_v39, %v185_v21  ;;  %v6918_v12 = vadd.s32 4294967286, %v6843_v62 }
 0x1a0   :  { %v2326_v30 = vsel %vm2276_vm6, %v2193_v3, %v2301_v5  ;;  %vm2277_vm9 = vcmp.gt.f32.partialorder %v2196_v19, 0.0  ;;  %v2302_v11 = vmul.f32 0.1, %v2196_v19  ;;  %vm794_vm6 = vmand %vm632_vm8, %vm8926_vm3  ;;  %v6894_v5 = vadd.s32 4294967276, %v260_v44 }
 0x1a1   :  { %v2351_v55 = vsel %vm9113_vm15, %v2326_v30, 0.0  ;;  %v2746_v59 = vsel %vm11597_vm0, %v9056_v45, %v9126_v28  ;;  %v2618_v43 = vshll.u32 %v9124_v47, 16  ;;  %v2622_v32 = vshrl.u32 %v9124_v47, 16  ;;  %vm793_vm15 = vmand %vm631_vm11, %vm8926_vm3 }
 0x1a2   :  { %v7267_v40 = vpack.c.bf16 %v2351_v55, %v2351_v55  ;;  %v2327_v7 = vsel %vm2277_vm9, %v2196_v19, %v2302_v11  ;;  %2769 = vrot.lane.b32.xlu0 %v2746_v59, %s7900_s16  ;;  %vm843_vm13 = vmxor %vm793_vm15, %vm11592_vm12  ;;  %vm285_vm8 = vcmp.ge.s32.totalorder %v260_v44, 20  ;;  %vm359_vm5 = vcmp.ge.s32.totalorder %v6843_v62, 10 }
 0x1a3   :  { %v2352_v0 = vsel %vm9132_vm4, %v2327_v7, 0.0  ;;  %v2620_v42 = vrot.slane %v2618_v43, 1  ;;  %v2802_v45 = vrot.slane %v2622_v32, 5  ;;  %v2803_v37 = vrot.slane %v2618_v43, 6  ;;  %vm844_vm9 = vmxor %vm794_vm6, %vm11592_vm12 }
 0x1a4   :  { %2477 = vst.msk [vmem:[#allocation2 + $0x20] sm:$0xf] %vm860_vm14, %v7267_v40  ;;  %v7268_v63 = vpack.c.bf16 %v2352_v0, %v2352_v0  ;;  %v335_v7 = vsel %vm285_vm8, %v6894_v5, %v260_v44  ;;  %vm633_vm15 = vcmp.eq.s32.totalorder %v9181_v50, 0 }
 0x1a5   :  { %v2621_v61 = vsel %vm11598_vm1, %v2616_v22, %v2620_v42  ;;  %v9162_v48 = vor.u32 %v2803_v37, %v2802_v45  ;;  %v2624_v22 = vor.u32 %v2622_v32, %v2620_v42  ;;  %vm360_vm6 = vcmp.ge.s32.totalorder %v335_v7, 10 }
 0x1a6   :  { %2478 = vst.msk [vmem:[#allocation2 + $0x24] sm:$0xf] %vm860_vm14, %v7268_v63  ;;  %2858 = vrot.lane.b32.xlu0 %v2801_v25, %s7902_s22  ;;  %2701 = vrot.lane.b32.xlu1 %v2621_v61, %s7898_s10  ;;  %v6919_v25 = vadd.s32 4294967286, %v335_v7 }
 0x1a7   :  { %v2805_v9 = vsel %vm11603_vm2, %v2800_v49, %v9162_v48 }
 0x1a8   :  { %v2200_v57 = vpop.f32.mrb[16].mxu0 }
 0x1a9   :  { %v2201_v20 = vadd.f32 %v2200_v57, %v8939_v33  ;;  %v2202_v27 = vpop.f32.mrb[17].mxu0 }
 0x1aa   :  { %v2203_v15 = vpop.f32.mrb[18].mxu0  ;;  %2860 = vrot.lane.b32.xlu1 %v2805_v9, %s7902_s22  ;;  %v39_v27 = vadd.s32 128, %v8908_v4 }
 0x1ab   :  { %vm2278_vm4 = vcmp.gt.f32.partialorder %v2201_v20, 0.0  ;;  %v2303_v3 = vmul.f32 0.1, %v2201_v20  ;;  %v2204_v34 = vadd.f32 %v2203_v15, %v8939_v33  ;;  %v2205_v14 = vpop.f32.mrb[19].mxu0  ;;  %v2504_v24 = vld [vmem:[#allocation2 + $0x20] sm:$0xf] }
 0x1ac   :  { %v7029_v8 = vcombine.low %v9118_v1, %v2504_v24  ;;  %v36_v1 = vadd.s32 104, %v8908_v4 }
 0x1ad   :  { %v2328_v13 = vsel %vm2278_vm4, %v2201_v20, %v2303_v3  ;;  %vm2279_vm11 = vcmp.gt.f32.partialorder %v2204_v34, 0.0  ;;  %v2304_v6 = vmul.f32 0.1, %v2204_v34  ;;  %v2505_v53 = vld [vmem:[#allocation2 + $0x24] sm:$0xf]  ;;  %vm795_vm4 = vmand %vm633_vm15, %vm8926_vm3  ;;  %vm610_vm15 = vcmp.lt.s32.totalorder %v9087_v18, 10 }
 0x1ae   :  { %v2353_v19 = vsel %vm843_vm13, %v2328_v13, 0.0  ;;  %v9184_v51 = vcombine.low %v2504_v24, %v2505_v53  ;;  %v2747_v30 = vrot.slane %v7029_v8, 1  ;;  %v9203_v61 = vadd.s32 4294967196, %v36_v1  ;;  %vm845_vm8 = vmxor %vm795_vm4, %vm11592_vm12 }
 0x1af   :  { %v7269_v16 = vpack.c.bf16 %v2353_v19, %v2353_v19  ;;  %v2329_v11 = vsel %vm2279_vm11, %v2204_v34, %v2304_v6 }
 0x1b0   :  { %v2354_v49 = vsel %vm844_vm9, %v2329_v11, 0.0  ;;  %v2748_v55 = vsel %vm11597_vm0, %v9126_v28, %v2747_v30  ;;  %v2626_v59 = vshll.u32 %v9184_v51, 16  ;;  %v2630_v43 = vshrl.u32 %v9184_v51, 16 }
 0x1b1   :  { %2479 = vst.msk [vmem:[#allocation2 + $0x28] sm:$0xf] %vm860_vm14, %v7269_v16  ;;  %v7270_v40 = vpack.c.bf16 %v2354_v49, %v2354_v49  ;;  %2771 = vrot.lane.b32.xlu0 %v2748_v55, %s7900_s16  ;;  %v9198_v28 = vsel %vm359_vm5, %v6918_v12, %v6843_v62  ;;  %v9213_v62 = vsel %vm360_vm6, %v6919_v25, %v335_v7  ;;  %v6920_v20 = vadd.s32 4294967286, %v9203_v61 }
 0x1b2   :  { %v2628_v21 = vrot.slane %v2626_v59, 1  ;;  %v2806_v0 = vrot.slane %v2630_v43, 5  ;;  %v2807_v45 = vrot.slane %v2626_v59, 6  ;;  %vm634_vm13 = vcmp.eq.s32.totalorder %v9198_v28, 0 }
 0x1b3   :  { %2480 = vst.msk [vmem:[#allocation2 + $0x2c] sm:$0xf] %vm860_vm14, %v7270_v40  ;;  %vm9218_vm9 = vmand %vm634_vm13, %vm8926_vm3  ;;  %vm11595_vm11 = vcmp.ge.s32.totalorder %v9203_v61, 10  ;;  %vm635_vm6 = vcmp.eq.s32.totalorder %v9213_v62, 0 }
 0x1b4   :  { %v2629_v37 = vsel %vm11598_vm1, %v2624_v22, %v2628_v21  ;;  %v9201_v63 = vor.u32 %v2807_v45, %v2806_v0  ;;  %vm846_vm13 = vmxor %vm9218_vm9, %vm11592_vm12  ;;  %v9238_v13 = vsel %vm11595_vm11, %v6920_v20, %v9203_v61  ;;  %v2632_v1 = vor.u32 %v2630_v43, %v2628_v21 }
 0x1b5   :  { %2703 = vrot.lane.b32.xlu0 %v2629_v37, %s7898_s10  ;;  %vm611_vm9 = vcmp.lt.s32.totalorder %v9203_v61, 10  ;;  %v40_v0 = vadd.s32 136, %v8908_v4 }
 0x1b6   :  { %v2809_v57 = vsel %vm11603_vm2, %v9162_v48, %v9201_v63 }
 0x1b7   :  { %v2208_v32 = vpop.f32.mrb[20].mxu0 }
 0x1b8   :  { %v2209_v42 = vadd.f32 %v2208_v32, %v8939_v33  ;;  %v2210_v39 = vpop.f32.mrb[21].mxu0  ;;  %v2506_v29 = vld [vmem:[#allocation2 + $0x28] sm:$0xf]  ;;  %v38_v32 = vadd.s32 120, %v8908_v4 }
 0x1b9   :  { %v2211_v9 = vpop.f32.mrb[22].mxu0  ;;  %2862 = vrot.lane.b32.xlu0 %v2809_v57, %s7902_s22  ;;  %v7030_v15 = vcombine.low %v2505_v53, %v2506_v29 }
 0x1ba   :  { %vm2280_vm5 = vcmp.gt.f32.partialorder %v2209_v42, 0.0  ;;  %v2305_v48 = vmul.f32 0.1, %v2209_v42  ;;  %v2212_v44 = vadd.f32 %v2211_v9, %v8939_v33  ;;  %v2213_v3 = vpop.f32.mrb[23].mxu0  ;;  %v2507_v34 = vld [vmem:[#allocation2 + $0x2c] sm:$0xf] }
 0x1bb   :  { %v9226_v14 = vcombine.low %v2506_v29, %v2507_v34  ;;  %v9228_v24 = vrot.slane %v7030_v15, 1  ;;  %v6824_v29 = vadd.s32 4294967196, %v40_v0  ;;  %v6822_v3 = vadd.s32 4294967196, %v38_v32 }
 0x1bc   :  { %v2330_v8 = vsel %vm2280_vm5, %v2209_v42, %v2305_v48  ;;  %vm2281_vm4 = vcmp.gt.f32.partialorder %v2212_v44, 0.0  ;;  %v2306_v12 = vmul.f32 0.1, %v2212_v44  ;;  %vm636_vm5 = vcmp.eq.s32.totalorder %v9238_v13, 0 }
 0x1bd   :  { %v2355_v6 = vsel %vm845_vm8, %v2330_v8, 0.0  ;;  %v2750_v53 = vsel %vm11597_vm0, %v2747_v30, %v9228_v24  ;;  %v2634_v5 = vshll.u32 %v9226_v14, 16  ;;  %v2638_v19 = vshrl.u32 %v9226_v14, 16  ;;  %vm9253_vm8 = vmand %vm610_vm15, %vm650_vm7 }
 0x1be   :  { %v7271_v16 = vpack.c.bf16 %v2355_v6, %v2355_v6  ;;  %v2331_v11 = vsel %vm2281_vm4, %v2212_v44, %v2306_v12  ;;  %2773 = vrot.lane.b32.xlu1 %v2750_v53, %s7900_s16  ;;  %vm9276_vm15 = vmand %vm611_vm9, %vm650_vm7  ;;  %v6874_v53 = vadd.s32 4294967256, %v6824_v29  ;;  %v9312_v22 = vadd.s32 4294967276, %v6822_v3 }
 0x1bf   :  { %v2356_v49 = vsel %vm846_vm13, %v2331_v11, 0.0  ;;  %v2636_v55 = vrot.slane %v2634_v5, 1  ;;  %v2810_v59 = vrot.slane %v2638_v19, 5  ;;  %v2811_v40 = vrot.slane %v2634_v5, 6  ;;  %vm9263_vm13 = vmand %vm635_vm6, %vm8926_vm3 }
 0x1c0   :  { %2481 = vst.msk [vmem:[#allocation2 + $0x30] sm:$0xf] %vm860_vm14, %v7271_v16  ;;  %v7272_v30 = vpack.c.bf16 %v2356_v49, %v2356_v49  ;;  %vm9282_vm6 = vmand %vm636_vm5, %vm8926_vm3  ;;  %v41_v3 = vadd.s32 144, %v8908_v4 }
 0x1c1   :  { %v2637_v43 = vsel %vm11598_vm1, %v2632_v1, %v2636_v55  ;;  %v9267_v21 = vor.u32 %v2811_v40, %v2810_v59  ;;  %vm822_vm4 = vmor %vm9253_vm8, %vm9263_vm13  ;;  %v6823_v59 = vadd.s32 4294967196, %v39_v27  ;;  %11698 = vst [vmem:[#allocation12_spill] sm:$0xff] %v9312_v22  ;;  %v2640_v45 = vor.u32 %v2638_v19, %v2636_v55 }
 0x1c2   :  { %2482 = vst.msk [vmem:[#allocation2 + $0x34] sm:$0xf] %vm860_vm14, %v7272_v30  ;;  %2705 = vrot.lane.b32.xlu1 %v2637_v43, %s7898_s10  ;;  %vm823_vm7 = vmor %vm9276_vm15, %vm9282_vm6  ;;  %vm215_vm15 = vcmp.ge.s32.totalorder %v6824_v29, 40 }
 0x1c3   :  { %v2813_v57 = vsel %vm11603_vm2, %v9201_v63, %v9267_v21  ;;  %vm847_vm9 = vmxor %vm822_vm4, %vm11592_vm12  ;;  %v265_v0 = vsel %vm215_vm15, %v6874_v53, %v6824_v29  ;;  %vm638_vm4 = vcmp.eq.s32.totalorder %v9312_v22, 0 }
 0x1c4   :  { %v2216_v25 = vpop.f32.mrb[24].mxu0  ;;  %vm848_vm5 = vmxor %vm823_vm7, %vm11592_vm12  ;;  %vm290_vm6 = vcmp.ge.s32.totalorder %v265_v0, 20 }
 0x1c5   :  { %v2217_v42 = vadd.f32 %v2216_v25, %v8939_v33  ;;  %v2218_v39 = vpop.f32.mrb[25].mxu0 }
 0x1c6   :  { %v2219_v20 = vpop.f32.mrb[26].mxu0  ;;  %2864 = vrot.lane.b32.xlu1 %v2813_v57, %s7902_s22  ;;  %v6899_v57 = vadd.s32 4294967276, %v265_v0 }
 0x1c7   :  { %vm2282_vm8 = vcmp.gt.f32.partialorder %v2217_v42, 0.0  ;;  %v2307_v9 = vmul.f32 0.1, %v2217_v42  ;;  %v2220_v15 = vadd.f32 %v2219_v20, %v8939_v33  ;;  %v2221_v48 = vpop.f32.mrb[27].mxu0  ;;  %v2508_v44 = vld [vmem:[#allocation2 + $0x30] sm:$0xf] }
 0x1c8   :  { %v7031_v63 = vcombine.low %v2507_v34, %v2508_v44 }
 0x1c9   :  { %v2332_v8 = vsel %vm2282_vm8, %v2217_v42, %v2307_v9  ;;  %vm2283_vm13 = vcmp.gt.f32.partialorder %v2220_v15, 0.0  ;;  %v2308_v12 = vmul.f32 0.1, %v2220_v15  ;;  %v2509_v6 = vld [vmem:[#allocation2 + $0x34] sm:$0xf] }
 0x1ca   :  { %v2357_v5 = vsel %vm847_vm9, %v2332_v8, 0.0  ;;  %v9304_v16 = vcombine.low %v2508_v44, %v2509_v6  ;;  %v2751_v11 = vrot.slane %v7031_v63, 1  ;;  %vm9328_vm9 = vmand %vm638_vm4, %vm8926_vm3 }
 0x1cb   :  { %v7273_v1 = vpack.c.bf16 %v2357_v5, %v2357_v5  ;;  %v2333_v49 = vsel %vm2283_vm13, %v2220_v15, %v2308_v12  ;;  %v340_v15 = vsel %vm290_vm6, %v6899_v57, %v265_v0 }
 0x1cc   :  { %v2358_v40 = vsel %vm848_vm5, %v2333_v49, 0.0  ;;  %v2752_v34 = vsel %vm11597_vm0, %v9228_v24, %v2751_v11  ;;  %v2642_v30 = vshll.u32 %v9304_v16, 16  ;;  %v2646_v7 = vshrl.u32 %v9304_v16, 16  ;;  %vm850_vm5 = vmxor %vm9328_vm9, %vm11592_vm12 }
 0x1cd   :  { %2483 = vst.msk [vmem:[#allocation2 + $0x38] sm:$0xf] %vm860_vm14, %v7273_v1  ;;  %v7274_v43 = vpack.c.bf16 %v2358_v40, %v2358_v40  ;;  %2775 = vrot.lane.b32.xlu0 %v2752_v34, %s7900_s16  ;;  %v6898_v24 = vadd.s32 4294967276, %v6823_v59  ;;  %v6924_v59 = vadd.s32 4294967286, %v340_v15  ;;  %vm365_vm15 = vcmp.ge.s32.totalorder %v340_v15, 10 }
 0x1ce   :  { %v2644_v37 = vrot.slane %v2642_v30, 1  ;;  %v2814_v25 = vrot.slane %v2646_v7, 5  ;;  %v2815_v32 = vrot.slane %v2642_v30, 6 }
 0x1cf   :  { %2484 = vst.msk [vmem:[#allocation2 + $0x3c] sm:$0xf] %vm860_vm14, %v7274_v43  ;;  %v6923_v20 = vadd.s32 4294967286, %v6898_v24  ;;  %vm364_vm7 = vcmp.ge.s32.totalorder %v6898_v24, 10 }
 0x1d0   :  { %v2645_v42 = vsel %vm11598_vm1, %v2640_v45, %v2644_v37  ;;  %v9318_v39 = vor.u32 %v2815_v32, %v2814_v25  ;;  %v2648_v25 = vor.u32 %v2646_v7, %v2644_v37  ;;  %v6825_v32 = vadd.s32 4294967196, %v41_v3 }
 0x1d1   :  { %2707 = vrot.lane.b32.xlu0 %v2645_v42, %s7898_s10  ;;  %v9342_v49 = vsel %vm364_vm7, %v6923_v20, %v6898_v24  ;;  %v42_v24 = vadd.s32 152, %v8908_v4  ;;  %v45_v3 = vadd.s32 176, %v8908_v4 }
 0x1d2   :  { %v2817_v27 = vsel %vm11603_vm2, %v9267_v21, %v9318_v39  ;;  %vm639_vm6 = vcmp.eq.s32.totalorder %v9342_v49, 0  ;;  %v6875_v37 = vadd.s32 4294967256, %v6825_v32 }
 0x1d3   :  { %v2224_v29 = vpop.f32.mrb[28].mxu0  ;;  %vm9369_vm7 = vmand %vm639_vm6, %vm8926_vm3 }
 0x1d4   :  { %v2225_v19 = vadd.f32 %v2224_v29, %v8939_v33  ;;  %v2226_v55 = vpop.f32.mrb[29].mxu0  ;;  %v2510_v9 = vld [vmem:[#allocation2 + $0x38] sm:$0xf] }
 0x1d5   :  { %v2227_v44 = vpop.f32.mrb[30].mxu0  ;;  %2866 = vrot.lane.b32.xlu0 %v2817_v27, %s7902_s22  ;;  %v7032_v63 = vcombine.low %v2509_v6, %v2510_v9  ;;  %v43_v55 = vadd.s32 160, %v8908_v4 }
 0x1d6   :  { %vm2284_vm8 = vcmp.gt.f32.partialorder %v2225_v19, 0.0  ;;  %v2309_v8 = vmul.f32 0.1, %v2225_v19  ;;  %v2228_v12 = vadd.f32 %v2227_v44, %v8939_v33  ;;  %v2229_v21 = vpop.f32.mrb[31].mxu0  ;;  %v9335_v53 = vld [vmem:[#allocation2 + $0x3c] sm:$0xf] }
 0x1d7   :  { %v9338_v5 = vcombine.low %v2510_v9, %v9335_v53  ;;  %v9340_v1 = vrot.slane %v7032_v63, 1  ;;  %v6826_v9 = vadd.s32 4294967196, %v42_v24  ;;  %v6827_v44 = vadd.s32 4294967196, %v43_v55 }
 0x1d8   :  { %v2334_v40 = vsel %vm2284_vm8, %v2225_v19, %v2309_v8  ;;  %vm2285_vm13 = vcmp.gt.f32.partialorder %v2228_v12, 0.0  ;;  %v2310_v6 = vmul.f32 0.1, %v2228_v12  ;;  %v9357_v19 = vsel %vm365_vm15, %v6924_v59, %v340_v15 }
 0x1d9   :  { %v7275_v34 = vpack.c.bf16 %v2334_v40, %v2334_v40  ;;  %v2754_v30 = vsel %vm11597_vm0, %v2751_v11, %v9340_v1  ;;  %v2650_v43 = vshll.u32 %v9338_v5, 16  ;;  %v2654_v0 = vshrl.u32 %v9338_v5, 16 }
 0x1da   :  { %v2335_v45 = vsel %vm2285_vm13, %v2228_v12, %v2310_v6  ;;  %2777 = vrot.lane.b32.xlu1 %v2754_v30, %s7900_s16  ;;  %vm640_vm4 = vcmp.eq.s32.totalorder %v9357_v19, 0  ;;  %v44_v63 = vadd.s32 168, %v8908_v4  ;;  %vm366_vm8 = vcmp.ge.s32.totalorder %v6875_v37, 10 }
 0x1db   :  { %2485 = vst.msk [vmem:[#allocation2 + $0x40] sm:$0xf] %vm860_vm14, %v7275_v34  ;;  %v2360_v42 = vsel %vm850_vm5, %v2335_v45, 0.0  ;;  %v2652_v57 = vrot.slane %v2650_v43, 1  ;;  %v2818_v29 = vrot.slane %v2654_v0, 5  ;;  %v2819_v20 = vrot.slane %v2650_v43, 6  ;;  %vm9381_vm9 = vmand %vm640_vm4, %vm8926_vm3 }
 0x1dc   :  { %v7276_v11 = vpack.c.bf16 %v2360_v42, %v2360_v42  ;;  %v6925_v34 = vadd.s32 4294967286, %v6875_v37  ;;  %v6876_v30 = vadd.s32 4294967256, %v6826_v9  ;;  %vm851_vm5 = vmxor %vm9369_vm7, %vm11592_vm12  ;;  %v6877_v32 = vadd.s32 4294967256, %v6827_v44 }
 0x1dd   :  { %v2653_v27 = vsel %vm11598_vm1, %v2648_v25, %v2652_v57  ;;  %v9362_v7 = vor.u32 %v2819_v20, %v2818_v29  ;;  %v6828_v24 = vadd.s32 4294967196, %v44_v63  ;;  %v6829_v42 = vadd.s32 4294967196, %v45_v3  ;;  %vm852_vm15 = vmxor %vm9381_vm9, %vm11592_vm12 }
 0x1de   :  { %2486 = vst.msk [vmem:[#allocation2 + $0x44] sm:$0xf] %vm860_vm14, %v7276_v11  ;;  %2709 = vrot.lane.b32.xlu1 %v2653_v27, %s7898_s10  ;;  %v9399_v15 = vsel %vm366_vm8, %v6925_v34, %v6875_v37  ;;  %v9404_v63 = vadd.s32 4294967286, %v6876_v30  ;;  %v6902_v59 = vadd.s32 4294967276, %v6877_v32 }
 0x1df   :  { %v2821_v21 = vsel %vm11603_vm2, %v9318_v39, %v9362_v7  ;;  %vm145_vm4 = vcmp.ge.s32.totalorder %v6829_v42, 80  ;;  %vm641_vm7 = vcmp.eq.s32.totalorder %v9399_v15, 0 }
 0x1e0   :  { %v2232_v48 = vpop.f32.mrb[32].mxu0  ;;  %vm642_vm9 = vcmp.eq.s32.totalorder %v9404_v63, 0  ;;  %v6927_v32 = vadd.s32 4294967286, %v6902_v59  ;;  %vm803_vm8 = vmand %vm641_vm7, %vm8926_vm3 }
 0x1e1   :  { %v2233_v8 = vadd.f32 %v2232_v48, %v8939_v33  ;;  %v2234_v12 = vpop.f32.mrb[33].mxu0 }
 0x1e2   :  { %v2235_v40 = vpop.f32.mrb[34].mxu0  ;;  %2868 = vrot.lane.b32.xlu1 %v2821_v21, %s7902_s22  ;;  %v2512_v6 = vld [vmem:[#allocation2 + $0x40] sm:$0xf]  ;;  %v6854_v21 = vadd.s32 4294967216, %v6829_v42 }
 0x1e3   :  { %vm2286_vm13 = vcmp.gt.f32.partialorder %v2233_v8, 0.0  ;;  %v2311_v43 = vmul.f32 0.1, %v2233_v8  ;;  %v2236_v39 = vadd.f32 %v2235_v40, %v8939_v33  ;;  %v2237_v45 = vpop.f32.mrb[35].mxu0  ;;  %v7033_v25 = vcombine.low %v9335_v53, %v2512_v6 }
 0x1e4   :  { %v6878_v40 = vadd.s32 4294967256, %v6828_v24  ;;  %v195_v45 = vsel %vm145_vm4, %v6854_v21, %v6829_v42 }
 0x1e5   :  { %v2336_v29 = vsel %vm2286_vm13, %v2233_v8, %v2311_v43  ;;  %vm2287_vm6 = vcmp.gt.f32.partialorder %v2236_v39, 0.0  ;;  %v2312_v20 = vmul.f32 0.1, %v2236_v39  ;;  %v2513_v11 = vld [vmem:[#allocation2 + $0x44] sm:$0xf]  ;;  %v9394_v55 = vrot.slane %v7033_v25, 1 }
 0x1e6   :  { %v2361_v27 = vsel %vm851_vm5, %v2336_v29, 0.0  ;;  %v9396_v9 = vcombine.low %v2512_v6, %v2513_v11  ;;  %v2656_v6 = vor.u32 %v2654_v0, %v2652_v57  ;;  %v6903_v25 = vadd.s32 4294967276, %v6878_v40 }
 0x1e7   :  { %v7277_v53 = vpack.c.bf16 %v2361_v27, %v2361_v27  ;;  %v2337_v48 = vsel %vm2287_vm6, %v2236_v39, %v2312_v20  ;;  %v2756_v44 = vsel %vm11597_vm0, %v9340_v1, %v9394_v55  ;;  %vm368_vm5 = vcmp.ge.s32.totalorder %v6902_v59, 10  ;;  %vm9433_vm6 = vmxor %vm803_vm8, %vm11592_vm12 }
 0x1e8   :  { %v2362_v3 = vsel %vm852_vm15, %v2337_v48, 0.0  ;;  %2779 = vrot.lane.b32.xlu0 %v2756_v44, %s7900_s16  ;;  %v2658_v8 = vshll.u32 %v9396_v9, 16  ;;  %v2662_v12 = vshrl.u32 %v9396_v9, 16  ;;  %v6879_v57 = vadd.s32 4294967256, %v195_v45  ;;  %vm9427_vm15 = vmand %vm642_vm9, %vm8926_vm3 }
 0x1e9   :  { %2487 = vst.msk [vmem:[#allocation2 + $0x48] sm:$0xf] %vm860_vm14, %v7277_v53  ;;  %v7278_v37 = vpack.c.bf16 %v2362_v3, %v2362_v3  ;;  %vm220_vm13 = vcmp.ge.s32.totalorder %v195_v45, 40  ;;  %v6928_v44 = vadd.s32 4294967286, %v6903_v25  ;;  %v9440_v3 = vld [vmem:[%s11566_s2 + $0x1] ss:$0 sm:$0xff]  ;;  %v9444_v40 = vsel %vm368_vm5, %v6927_v32, %v6902_v59  ;;  %vm854_vm9 = vmxor %vm9427_vm15, %vm11592_vm12 }
 0x1ea   :  { %v2660_v1 = vrot.slane %v2658_v8, 1  ;;  %v2822_v34 = vrot.slane %v2662_v12, 5  ;;  %v2823_v30 = vrot.slane %v2658_v8, 6  ;;  %vm369_vm7 = vcmp.ge.s32.totalorder %v6903_v25, 10 }
 0x1eb   :  { %2488 = vst.msk [vmem:[#allocation2 + $0x4c] sm:$0xf] %vm860_vm14, %v7278_v37 }
 0x1ec   :  { %v2661_v43 = vsel %vm11598_vm1, %v2656_v6, %v2660_v1  ;;  %v9415_v39 = vor.u32 %v2823_v30, %v2822_v34  ;;  %v270_v34 = vsel %vm220_vm13, %v6879_v57, %v195_v45  ;;  %vm643_vm13 = vcmp.eq.s32.totalorder %v9444_v40, 0 }
 0x1ed   :  { %2711 = vrot.lane.b32.xlu0 %v2661_v43, %s7898_s10  ;;  %vm295_vm5 = vcmp.ge.s32.totalorder %v270_v34, 20 }
 0x1ee   :  { %v2825_v20 = vsel %vm11603_vm2, %v9362_v7, %v9415_v39 }
 0x1ef   :  { %v2240_v0 = vpop.f32.mrb[36].mxu0 }
 0x1f0   :  { %v2241_v24 = vadd.f32 %v2240_v0, %v8939_v33  ;;  %v2242_v29 = vpop.f32.mrb[37].mxu0  ;;  %v2514_v42 = vld [vmem:[#allocation2 + $0x48] sm:$0xf]  ;;  %v46_v0 = vadd.s32 184, %v8908_v4 }
 0x1f1   :  { %v2243_v53 = vpop.f32.mrb[38].mxu0  ;;  %2870 = vrot.lane.b32.xlu0 %v2825_v20, %s7902_s22  ;;  %v7034_v48 = vcombine.low %v2513_v11, %v2514_v42  ;;  %v2664_v20 = vor.u32 %v2662_v12, %v2660_v1 }
 0x1f2   :  { %vm2288_vm4 = vcmp.gt.f32.partialorder %v2241_v24, 0.0  ;;  %v2313_v7 = vmul.f32 0.1, %v2241_v24  ;;  %v2244_v8 = vadd.f32 %v9440_v3, %v2243_v53  ;;  %v2245_v21 = vpop.f32.mrb[39].mxu0  ;;  %v2515_v37 = vld [vmem:[#allocation2 + $0x4c] sm:$0xf] }
 0x1f3   :  { %v9446_v11 = vcombine.low %v2514_v42, %v2515_v37  ;;  %v9448_v6 = vrot.slane %v7034_v48, 1  ;;  %v6904_v42 = vadd.s32 4294967276, %v270_v34  ;;  %v9475_v12 = vadd.s32 4294967196, %v46_v0 }
 0x1f4   :  { %v2338_v30 = vsel %vm2288_vm4, %v2241_v24, %v2313_v7  ;;  %vm2289_vm8 = vcmp.gt.f32.partialorder %v2244_v8, 0.0  ;;  %v2314_v43 = vmul.f32 0.1, %v2244_v8 }
 0x1f5   :  { %v2363_v59 = vsel %vm9433_vm6, %v2338_v30, 0.0  ;;  %v2758_v32 = vsel %vm11597_vm0, %v9394_v55, %v9448_v6  ;;  %v2666_v29 = vshll.u32 %v9446_v11, 16  ;;  %v2670_v45 = vshrl.u32 %v9446_v11, 16  ;;  %vm805_vm6 = vmand %vm643_vm13, %vm8926_vm3 }
 0x1f6   :  { %v7279_v57 = vpack.c.bf16 %v2363_v59, %v2363_v59  ;;  %v2339_v24 = vsel %vm2289_vm8, %v2244_v8, %v2314_v43  ;;  %2781 = vrot.lane.b32.xlu1 %v2758_v32, %s7900_s16  ;;  %v9467_v55 = vsel %vm369_vm7, %v6928_v44, %v6903_v25  ;;  %v345_v1 = vsel %vm295_vm5, %v6904_v42, %v270_v34  ;;  %vm855_vm7 = vmxor %vm805_vm6, %vm11592_vm12 }
 0x1f7   :  { %v2364_v27 = vsel %vm854_vm9, %v2339_v24, 0.0  ;;  %v2668_v53 = vrot.slane %v2666_v29, 1  ;;  %v2826_v48 = vrot.slane %v2670_v45, 5  ;;  %v2827_v33 = vrot.slane %v2666_v29, 6 }
 0x1f8   :  { %2489 = vst.msk [vmem:[#allocation2 + $0x50] sm:$0xf] %vm860_vm14, %v7279_v57  ;;  %v7280_v7 = vpack.c.bf16 %v2364_v27, %v2364_v27  ;;  %vm644_vm15 = vcmp.eq.s32.totalorder %v9467_v55, 0  ;;  %v6929_v34 = vadd.s32 4294967286, %v345_v1  ;;  %v6855_v32 = vadd.s32 4294967216, %v9475_v12 }
 0x1f9   :  { %v2669_v21 = vsel %vm11598_vm1, %v2664_v20, %v2668_v53  ;;  %v9471_v8 = vor.u32 %v2827_v33, %v2826_v48  ;;  %vm9486_vm4 = vmand %vm644_vm15, %vm8926_vm3  ;;  %v47_v29 = vadd.s32 192, %v8908_v4  ;;  %vm370_vm8 = vcmp.ge.s32.totalorder %v345_v1, 10 }
 0x1fa   :  { %2490 = vst.msk [vmem:[#allocation2 + $0x54] sm:$0xf] %vm860_vm14, %v7280_v7  ;;  %2713 = vrot.lane.b32.xlu1 %v2669_v21, %s7898_s10  ;;  %vm856_vm5 = vmxor %vm9486_vm4, %vm11592_vm12  ;;  %vm371_vm15 = vcmp.ge.s32.totalorder %v6855_v32, 10 }
 0x1fb   :  { %v2829_v43 = vsel %vm11603_vm2, %v9415_v39, %v9471_v8  ;;  %v2698_v54 = vpop.permute.xlu1 %2697 }
 0x1fc   :  { %v2248_v25 = vpop.f32.mrb[40].mxu0 }
 0x1fd   :  { %v2249_v44 = vadd.f32 %v9440_v3, %v2248_v25  ;;  %v2250_v30 = vpop.f32.mrb[41].mxu0 }
 0x1fe   :  { %v2251_v0 = vpop.f32.mrb[42].mxu0  ;;  %2872 = vrot.lane.b32.xlu1 %v2829_v43, %s7902_s22  ;;  %v6930_v30 = vadd.s32 4294967286, %v6855_v32 }
 0x1ff   :  { %vm2290_vm9 = vcmp.gt.f32.partialorder %v2249_v44, 0.0  ;;  %v2315_v57 = vmul.f32 0.1, %v2249_v44  ;;  %v2252_v39 = vadd.f32 %v9440_v3, %v2251_v0  ;;  %v2253_v24 = vpop.f32.mrb[43].mxu0  ;;  %v2516_v20 = vld [vmem:[#allocation2 + $0x50] sm:$0xf]  ;;  %v9500_v0 = vsel %vm370_vm8, %v6929_v34, %v345_v1 }
 0x200   :  { %v7035_v42 = vcombine.low %v2515_v37, %v2516_v20  ;;  %v6831_v24 = vadd.s32 4294967196, %v47_v29  ;;  %v2672_v1 = vor.u32 %v2670_v45, %v2668_v53  ;;  %vm645_vm6 = vcmp.eq.s32.totalorder %v9500_v0, 0  ;;  %v7870_v45 = vld [vmem:[#allocation2 + $0x4] sm:$0xf] }
 0x201   :  { %v2340_v27 = vsel %vm2290_vm9, %v2249_v44, %v2315_v57  ;;  %vm2291_vm13 = vcmp.gt.f32.partialorder %v2252_v39, 0.0  ;;  %v2316_v48 = vmul.f32 0.1, %v2252_v39  ;;  %v2517_v33 = vld [vmem:[#allocation2 + $0x54] sm:$0xf]  ;;  %vm807_vm4 = vmand %vm645_vm6, %vm8926_vm3 }
 0x202   :  { %v2365_v7 = vsel %vm855_vm7, %v2340_v27, 0.0  ;;  %v9498_v21 = vcombine.low %v2516_v20, %v2517_v33  ;;  %v2759_v25 = vrot.slane %v7035_v42, 1  ;;  %v9513_v42 = vsel %vm371_vm15, %v6930_v30, %v6855_v32  ;;  %vm9526_vm9 = vmxor %vm807_vm4, %vm11592_vm12 }
 0x203   :  { %v7281_v43 = vpack.c.bf16 %v2365_v7, %v2365_v7  ;;  %v2341_v23 = vsel %vm2291_vm13, %v2252_v39, %v2316_v48  ;;  %11711 = vst [vmem:[#allocation13_spill] sm:$0xff] %v9513_v42  ;;  %v6856_v48 = vadd.s32 4294967216, %v6831_v24  ;;  %vm646_vm7 = vcmp.eq.s32.totalorder %v9513_v42, 0 }
 0x204   :  { %v2366_v37 = vsel %vm856_vm5, %v2341_v23, 0.0  ;;  %v2760_v44 = vsel %vm11597_vm0, %v9448_v6, %v2759_v25  ;;  %v2674_v59 = vshll.u32 %v9498_v21, 16  ;;  %v2678_v57 = vshrl.u32 %v9498_v21, 16  ;;  %v2496_v6 = vld [vmem:[#allocation2] sm:$0xc]  ;;  %vm808_vm5 = vmand %vm646_vm7, %vm8926_vm3 }
 0x205   :  { %2491 = vst.msk [vmem:[#allocation2 + $0x58] sm:$0xf] %vm860_vm14, %v7281_v43  ;;  %v7282_v20 = vpack.c.bf16 %v2366_v37, %v2366_v37  ;;  %2783 = vrot.lane.b32.xlu0 %v2760_v44, %s7900_s16  ;;  %v7012_v53 = vcombine.low %v2496_v6, %v7870_v45  ;;  %v6931_v24 = vadd.s32 4294967286, %v6856_v48  ;;  %vm11714_vm13 = vcmask 261120   ;;  %vm858_vm4 = vmxor %vm808_vm5, %vm11592_vm12 }
 0x206   :  { %v2676_v34 = vrot.slane %v2674_v59, 1  ;;  %v2830_v29 = vrot.slane %v2678_v57, 5  ;;  %v2831_v23 = vrot.slane %v2674_v59, 6  ;;  %vm11715_vm15 = vcmask 523264  }
 0x207   :  { %2492 = vst.msk [vmem:[#allocation2 + $0x5c] sm:$0xf] %vm860_vm14, %v7282_v20  ;;  %v2768_v7 = vpop.permute.xlu1 %2767  ;;  %v2884_v6 = vsel %vm11714_vm13, %v7012_v53, %v2698_v54  ;;  %vm647_vm6 = vcmp.eq.s32.totalorder %v6931_v24, 0  ;;  %vm11716_vm13 = vcmask 785408   ;;  %vm11719_vm5 = vcmask 261120  }
 0x208   :  { %v2677_v39 = vsel %vm11598_vm1, %v2672_v1, %v2676_v34  ;;  %v9515_v27 = vor.u32 %v2831_v23, %v2830_v29 }
 0x209   :  { %2715 = vrot.lane.b32.xlu0 %v2677_v39, %s7898_s10 }
 0x20a   :  { %v2833_v32 = vsel %vm11603_vm2, %v9471_v8, %v9515_v27 }
 0x20b   :  { %v2256_v43 = vpop.f32.mrb[44].mxu0  ;;  %v2857_v8 = vpop.permute.xlu1 %2856 }
 0x20c   :  { %v2257_v37 = vadd.f32 %v9440_v3, %v2256_v43  ;;  %v2258_v44 = vpop.f32.mrb[45].mxu0  ;;  %v2518_v30 = vld [vmem:[#allocation2 + $0x58] sm:$0xf]  ;;  %v2910_v43 = vsel %vm11715_vm15, %v2884_v6, %v2768_v7  ;;  %v2700_v26 = vpop.permute.xlu0 %2699 }
 0x20d   :  { %v2259_v20 = vpop.f32.mrb[46].mxu0  ;;  %2874 = vrot.lane.b32.xlu0 %v2833_v32, %s7902_s22  ;;  %v7036_v1 = vcombine.low %v2517_v33, %v2518_v30 }
 0x20e   :  { %vm2292_vm8 = vcmp.gt.f32.partialorder %v2257_v37, 0.0  ;;  %v2317_v29 = vmul.f32 0.1, %v2257_v37  ;;  %v2261_v23 = vpop.f32.mrb[47].mxu0  ;;  %v2260_v39 = vadd.f32 %v9440_v3, %v2259_v20  ;;  %v2519_v48 = vld [vmem:[#allocation2 + $0x5c] sm:$0xf] }
 0x20f   :  { %v9535_v45 = vrot.slane %v7036_v1, 1  ;;  %v9538_v32 = vcombine.low %v2518_v30, %v2519_v48  ;;  %v2936_v1 = vsel %vm11716_vm13, %v2910_v43, %v2857_v8 }
 0x210   :  { %v2342_v44 = vsel %vm2292_vm8, %v2257_v37, %v2317_v29  ;;  %vm2293_vm7 = vcmp.gt.f32.partialorder %v2260_v39, 0.0  ;;  %v2318_v54 = vmul.f32 0.1, %v2260_v39  ;;  %v2680_v29 = vor.u32 %v2678_v57, %v2676_v34 }
 0x211   :  { %v2367_v33 = vsel %vm9526_vm9, %v2342_v44, 0.0  ;;  %v2762_v53 = vsel %vm11597_vm0, %v2759_v25, %v9535_v45  ;;  %v2682_v7 = vshll.u32 %v9538_v32, 16  ;;  %v2686_v37 = vshrl.u32 %v9538_v32, 16  ;;  %vm9551_vm9 = vmand %vm647_vm6, %vm8926_vm3 }
 0x212   :  { %v7283_v20 = vpack.c.bf16 %v2367_v33, %v2367_v33  ;;  %2785 = vrot.lane.b32.xlu1 %v2762_v53, %s7900_s16  ;;  %v2343_v30 = vsel %vm2293_vm7, %v2260_v39, %v2318_v54  ;;  %v2978_v33 = vshrl.u32 %v2936_v1, 16  ;;  %v2981_v53 = vshll.u32 %v2936_v1, 16  ;;  %vm859_vm3 = vmxor %vm9551_vm9, %vm11592_vm12 }
 0x213   :  { %v2264_v59 = vpop.f32.mrb[48].mxu0  ;;  %v2368_v25 = vsel %vm858_vm4, %v2343_v30, 0.0  ;;  %v2684_v43 = vrot.slane %v2682_v7, 1  ;;  %v2834_v44 = vrot.slane %v2686_v37, 5  ;;  %v2835_v46 = vrot.slane %v2682_v7, 6  ;;  %vm11720_vm6 = vmmov %vm11716_vm13 }
 0x214   :  { %2493 = vst.msk [vmem:[#allocation2 + $0x60] sm:$0xf] %vm860_vm14, %v7283_v20  ;;  %v2265_v23 = vadd.f32 %v9440_v3, %v2264_v59  ;;  %v2770_v6 = vpop.permute.xlu0 %2769  ;;  %v2266_v8 = vpop.f32.mrb[49].mxu0  ;;  %v7284_v39 = vpack.c.bf16 %v2368_v25, %v2368_v25  ;;  %v2886_v3 = vsel %vm11719_vm5, %v8996_v17, %v2700_v26  ;;  %v2980_v25 = vrot.slane %v2978_v33, 2  ;;  %vm11725_vm7 = vmmov %vm11715_vm15 }
 0x215   :  { %v2267_v54 = vpop.f32.mrb[50].mxu0  ;;  %v2685_v20 = vsel %vm11598_vm1, %v2680_v29, %v2684_v43  ;;  %v2836_v1 = vor.u32 %v2835_v46, %v2834_v44  ;;  %v2912_v7 = vsel %vm11715_vm15, %v2886_v3, %v2770_v6  ;;  %v2983_v24 = vrot.slane %v2981_v53, 3  ;;  %vm11726_vm13 = vmmov %vm11720_vm6 }
 0x216   :  { %vm2294_vm8 = vcmp.gt.f32.partialorder %v2265_v23, 0.0  ;;  %v2319_v57 = vmul.f32 0.1, %v2265_v23  ;;  %v2268_v34 = vpop.f32.mrb[51].mxu0  ;;  %2494 = vst.msk [vmem:[#allocation2 + $0x64] sm:$0xf] %vm860_vm14, %v7284_v39  ;;  %2717 = vrot.lane.b32.xlu1 %v2685_v20, %s7898_s10 }
 0x217   :  { %v2837_v26 = vsel %vm11603_vm2, %v9515_v27, %v2836_v1  ;;  %v2984_v39 = vor.u32 %v2983_v24, %v2980_v25  ;;  %vm11721_vm4 = vsmask.f32 5376  ;;  %v2688_v24 = vor.u32 %v2686_v37, %v2684_v43 }
 0x218   :  { %v2344_v30 = vsel %vm2294_vm8, %v2265_v23, %v2319_v57  ;;  %v2859_v59 = vpop.permute.xlu0 %2858  ;;  %v2702_v53 = vpop.permute.xlu1 %2701  ;;  %vm11727_vm9 = vmmov %vm11721_vm4  ;;  %vm557_vm12 = vcmp.le.s32.totalorder %v9104_v31, 8 }
 0x219   :  { %v2369_v8 = vsel %vm859_vm3, %v2344_v30, 0.0  ;;  %v2938_v54 = vsel %vm11720_vm6, %v2912_v7, %v2859_v59  ;;  %vm11728_vm3 = vmmov %vm11719_vm5 }
 0x21a   :  { %v7285_v34 = vpack.c.bf16 %v2369_v8, %v2369_v8  ;;  %v2985_v42 = vshrl.u32 %v2938_v54, 16  ;;  %v2988_v29 = vshll.u32 %v2938_v54, 16  ;;  %2876 = vrot.lane.b32.xlu1 %v2837_v26, %s7902_s22  ;;  %v11722_v8 = vmov 0.0   ;;  %vm11729_vm8 = vmmov %vm11725_vm7 }
 0x21b   :  { %v2520_v17 = vld [vmem:[#allocation2 + $0x60] sm:$0xf]  ;;  %vm11731_vm15 = vmmov %vm11721_vm4 }
 0x21c   :  { %2495 = vst.msk [vmem:[#allocation2 + $0x68] sm:$0xf] %vm860_vm14, %v7285_v34  ;;  %v2987_v23 = vrot.slane %v2985_v42, 2  ;;  %v2990_v44 = vrot.slane %v2988_v29, 3  ;;  %v7037_v6 = vcombine.low %v2519_v48, %v2520_v17  ;;  %v7772_v42 = vld [vmem:[%s11565_s1 + $0xd0] sm:$0xff]   ;;  %vm11723_vm14 = vmmov %vm11719_vm5 }
 0x21d   :  { %v2521_v57 = vld [vmem:[#allocation2 + $0x64] sm:$0x7]  ;;  %v2888_v54 = vsel %vm11723_vm14, %v9054_v60, %v2702_v53  ;;  %vm11730_vm5 = vmmov %vm11720_vm6 }
 0x21e   :  { %v2991_v33 = vor.u32 %v2990_v44, %v2987_v23  ;;  %v2763_v46 = vrot.slane %v7037_v6, 1  ;;  %v2524_v20 = vld [vmem:[#allocation2 + $0x64] sm:$0xf]  ;;  %v9571_v3 = vcombine.low %v2520_v17, %v2521_v57  ;;  %v11724_v23 = vmov 0   ;;  %v2861_v44 = vpop.permute.xlu1 %2860  ;;  %vm11732_vm6 = vmmov %vm11728_vm3 }
 0x21f   :  { %v7039_v30 = vcombine.low %v2520_v17, %v2524_v20  ;;  %vm11734_vm14 = vmmov %vm11730_vm5 }
 0x220   :  { %v2992_v7 = vsel %vm11721_vm4, %v2984_v39, %v2991_v33  ;;  %v2764_v27 = vsel %vm11597_vm0, %v9535_v45, %v2763_v46  ;;  %v2690_v48 = vshll.u32 %v9571_v3, 16  ;;  %vm11733_vm4 = vmmov %vm11725_vm7 }
 0x221   :  { %7465 = vmatmul.mubr.bf16.vlgmr.msra.gmra.mrb[0].mxu1 %v2992_v7  ;;  %2787 = vrot.lane.b32.xlu0 %v2764_v27, %s7900_s16  ;;  %v2839_v59 = vshrl.u32 %v7039_v30, 16  ;;  %v2842_v25 = vshll.u32 %v7039_v30, 16 }
 0x222   :  { %7468 = vmatprep.mubr.msk.bf16.mxu1 %vm11593_vm10, %v11722_v8  ;;  %7517 = vmatpush3.bf16.msra.mxu1 %v7772_v42  ;;  %v2692_v34 = vrot.slane %v2690_v48, 1 }
 0x223   :  { %v2772_v45 = vpop.permute.xlu0 %2771  ;;  %v2841_v29 = vrot.slane %v2839_v59, 5  ;;  %v2844_v26 = vrot.slane %v2842_v25, 6  ;;  %v2525_v17 = vld [vmem:[#allocation2 + $0x68] sm:$0xf]  ;;  %7674 = vmatprep.subr.bf16.mxu1 %v11724_v23 }
 0x224   :  { %v2914_v6 = vsel %vm11725_vm7, %v2888_v54, %v2772_v45  ;;  %v7038_v39 = vcombine.low %v2524_v20, %v2525_v17  ;;  %v7040_v57 = vcombine.low %v2525_v17, %v2525_v17  ;;  %v2693_v43 = vsel %vm11598_vm1, %v2688_v24, %v2692_v34  ;;  %vm11735_vm7 = vmmov %vm11727_vm9 }
 0x225   :  { %v2940_v37 = vsel %vm11726_vm13, %v2914_v6, %v2861_v44  ;;  %v2845_v30 = vor.u32 %v2844_v26, %v2841_v29  ;;  %2719 = vrot.lane.b32.xlu0 %v2693_v43, %s7898_s10  ;;  %v2694_v20 = vshrl.u32 %v9571_v3, 16  ;;  %vm11736_vm13 = vmmov %vm11728_vm3 }
 0x226   :  { %v2993_v7 = vshrl.u32 %v2940_v37, 16  ;;  %v2996_v27 = vshll.u32 %v2940_v37, 16  ;;  %v2765_v60 = vrot.slane %v7038_v39, 1  ;;  %v2848_v53 = vshrl.u32 %v7040_v57, 16 }
 0x227   :  { %v2851_v42 = vshll.u32 %v7040_v57, 16  ;;  %v2846_v54 = vsel %vm11603_vm2, %v2836_v1, %v2845_v30  ;;  %v2704_v26 = vpop.permute.xlu0 %2703  ;;  %v2696_v17 = vor.u32 %v2694_v20, %v2692_v34 }
 0x228   :  { %v2995_v48 = vrot.slane %v2993_v7, 2  ;;  %v2998_v59 = vrot.slane %v2996_v27, 3  ;;  %v2766_v25 = vsel %vm11597_vm0, %v2763_v46, %v2765_v60  ;;  %v2850_v45 = vrot.slane %v2848_v53, 5 }
 0x229   :  { %2789 = vrot.lane.b32.xlu1 %v2766_v25, %s7900_s16  ;;  %v2853_v24 = vrot.slane %v2851_v42, 6  ;;  %2878 = vrot.lane.b32.xlu0 %v2846_v54, %s7902_s22  ;;  %v2890_v1 = vsel %vm11728_vm3, %v9124_v47, %v2704_v26  ;;  %vm11738_vm3 = vmmov %vm11730_vm5 }
 0x22a   :  { %v2999_v29 = vor.u32 %v2998_v59, %v2995_v48 }
 0x22b   :  { %v2854_v6 = vor.u32 %v2853_v24, %v2850_v45  ;;  %v2863_v57 = vpop.permute.xlu0 %2862 }
 0x22c   :  { %v3000_v44 = vsel %vm11727_vm9, %v2991_v33, %v2999_v29  ;;  %vm11737_vm9 = vmmov %vm11733_vm4 }
 0x22d   :  { %2721 = vrot.lane.b32.xlu1 %v2696_v17, %s7898_s10  ;;  %7469 = vmatmul.mubr.bf16.gmra.mrb[4].mxu1 %v3000_v44  ;;  %v2855_v39 = vsel %vm11603_vm2, %v2845_v30, %v2854_v6 }
 0x22e   :  { %2791 = vrot.lane.b32.xlu0 %v2765_v60, %s7900_s16  ;;  %7472 = vmatprep.mubr.msk.bf16.mxu1 %vm11593_vm10, %v11722_v8 }
 0x230   :  { %v2774_v46 = vpop.permute.xlu1 %2773 }
 0x231   :  { %v2916_v34 = vsel %vm11729_vm8, %v2890_v1, %v2774_v46  ;;  %2880 = vrot.lane.b32.xlu1 %v2855_v39, %s7902_s22  ;;  %vm11739_vm8 = vmmov %vm11735_vm7 }
 0x232   :  { %v2942_v33 = vsel %vm11730_vm5, %v2916_v34, %v2863_v57  ;;  %vm11740_vm5 = vmmov %vm11732_vm6 }
 0x233   :  { %v3001_v37 = vshrl.u32 %v2942_v33, 16  ;;  %v3004_v43 = vshll.u32 %v2942_v33, 16 }
 0x234   :  { %v2706_v42 = vpop.permute.xlu1 %2705 }
 0x235   :  { %v3003_v7 = vrot.slane %v3001_v37, 2  ;;  %v3006_v27 = vrot.slane %v3004_v43, 3  ;;  %v2892_v47 = vsel %vm11732_vm6, %v9184_v51, %v2706_v42  ;;  %vm11742_vm6 = vmmov %vm11738_vm3 }
 0x237   :  { %v3007_v60 = vor.u32 %v3006_v27, %v3003_v7 }
 0x238   :  { %v2865_v48 = vpop.permute.xlu1 %2864 }
 0x239   :  { %v3008_v53 = vsel %vm11731_vm15, %v2999_v29, %v3007_v60  ;;  %vm11741_vm15 = vmmov %vm11733_vm4 }
 0x23a   :  { %7473 = vmatmul.mubr.bf16.gmra.mrb[8].mxu1 %v3008_v53 }
 0x23b   :  { %7476 = vmatprep.mubr.msk.bf16.mxu1 %vm11593_vm10, %v11722_v8 }
 0x23f   :  { %v2776_v30 = vpop.permute.xlu0 %2775 }
 0x240   :  { %v2918_v59 = vsel %vm11733_vm4, %v2892_v47, %v2776_v30  ;;  %vm11743_vm4 = vmmov %vm11735_vm7 }
 0x241   :  { %v2944_v25 = vsel %vm11734_vm14, %v2918_v59, %v2865_v48  ;;  %vm11744_vm14 = vmmov %vm11740_vm5 }
 0x242   :  { %v3009_v54 = vshrl.u32 %v2944_v25, 16  ;;  %v3012_v20 = vshll.u32 %v2944_v25, 16 }
 0x243   :  { %v2708_v29 = vpop.permute.xlu0 %2707 }
 0x244   :  { %v3011_v45 = vrot.slane %v3009_v54, 2  ;;  %v3014_v24 = vrot.slane %v3012_v20, 3  ;;  %v2894_v51 = vsel %vm11736_vm13, %v9226_v14, %v2708_v29  ;;  %vm11746_vm13 = vmmov %vm11738_vm3 }
 0x246   :  { %v3015_v26 = vor.u32 %v3014_v24, %v3011_v45 }
 0x247   :  { %v2867_v6 = vpop.permute.xlu0 %2866 }
 0x248   :  { %v3016_v17 = vsel %vm11735_vm7, %v3007_v60, %v3015_v26  ;;  %vm11745_vm7 = vmmov %vm11737_vm9 }
 0x249   :  { %7477 = vmatmul.mubr.bf16.gmra.mrb[12].mxu1 %v3016_v17 }
 0x24a   :  { %7480 = vmatprep.mubr.msk.bf16.mxu1 %vm11593_vm10, %v11722_v8 }
 0x24c   :  { %v2778_v44 = vpop.permute.xlu1 %2777 }
 0x24d   :  { %v2920_v1 = vsel %vm11737_vm9, %v2894_v51, %v2778_v44  ;;  %vm11747_vm9 = vmmov %vm11743_vm4 }
 0x24e   :  { %v2946_v46 = vsel %vm11738_vm3, %v2920_v1, %v2867_v6  ;;  %vm11748_vm3 = vmmov %vm11740_vm5 }
 0x24f   :  { %v3017_v39 = vshrl.u32 %v2946_v46, 16  ;;  %v3020_v57 = vshll.u32 %v2946_v46, 16 }
 0x250   :  { %v2710_v43 = vpop.permute.xlu1 %2709 }
 0x251   :  { %v3019_v34 = vrot.slane %v3017_v39, 2  ;;  %v3022_v33 = vrot.slane %v3020_v57, 3  ;;  %v2896_v14 = vsel %vm11740_vm5, %v9304_v16, %v2710_v43  ;;  %vm11750_vm5 = vmmov %vm11742_vm6 }
 0x253   :  { %v3023_v37 = vor.u32 %v3022_v33, %v3019_v34 }
 0x254   :  { %v2869_v60 = vpop.permute.xlu1 %2868 }
 0x255   :  { %v3024_v7 = vsel %vm11739_vm8, %v3015_v26, %v3023_v37  ;;  %vm11749_vm8 = vmmov %vm11745_vm7 }
 0x256   :  { %7481 = vmatmul.mubr.bf16.gmra.mrb[16].mxu1 %v3024_v7 }
 0x257   :  { %7484 = vmatprep.mubr.msk.bf16.mxu1 %vm11593_vm10, %v11722_v8 }
 0x25a   :  { %v2780_v27 = vpop.permute.xlu0 %2779 }
 0x25b   :  { %v2922_v53 = vsel %vm11741_vm15, %v2896_v14, %v2780_v27  ;;  %vm11751_vm15 = vmmov %vm11743_vm4 }
 0x25c   :  { %v2948_v42 = vsel %vm11742_vm6, %v2922_v53, %v2869_v60  ;;  %vm11752_vm6 = vmmov %vm11748_vm3 }
 0x25d   :  { %v3025_v47 = vshrl.u32 %v2948_v42, 16  ;;  %v3028_v30 = vshll.u32 %v2948_v42, 16 }
 0x25f   :  { %v3027_v48 = vrot.slane %v3025_v47, 2  ;;  %v3030_v59 = vrot.slane %v3028_v30, 3  ;;  %v2712_v54 = vpop.permute.xlu0 %2711 }
 0x260   :  { %v2898_v16 = vsel %vm11744_vm14, %v9338_v5, %v2712_v54  ;;  %vm11754_vm14 = vmmov %vm11750_vm5 }
 0x261   :  { %v3031_v25 = vor.u32 %v3030_v59, %v3027_v48 }
 0x263   :  { %v3032_v20 = vsel %vm11743_vm4, %v3023_v37, %v3031_v25  ;;  %v2871_v24 = vpop.permute.xlu0 %2870  ;;  %vm11753_vm4 = vmmov %vm11745_vm7 }
 0x264   :  { %7485 = vmatmul.mubr.bf16.gmra.mrb[20].mxu1 %v3032_v20 }
 0x265   :  { %7488 = vmatprep.mubr.msk.bf16.mxu1 %vm11593_vm10, %v11722_v8 }
 0x268   :  { %v2782_v45 = vpop.permute.xlu1 %2781 }
 0x269   :  { %v2924_v26 = vsel %vm11745_vm7, %v2898_v16, %v2782_v45  ;;  %vm11755_vm7 = vmmov %vm11747_vm9 }
 0x26a   :  { %v2950_v29 = vsel %vm11746_vm13, %v2924_v26, %v2871_v24  ;;  %vm11756_vm13 = vmmov %vm11748_vm3 }
 0x26b   :  { %v3033_v17 = vshrl.u32 %v2950_v29, 16  ;;  %v3036_v51 = vshll.u32 %v2950_v29, 16 }
 0x26c   :  { %v2714_v39 = vpop.permute.xlu1 %2713 }
 0x26d   :  { %v3035_v44 = vrot.slane %v3033_v17, 2  ;;  %v3038_v6 = vrot.slane %v3036_v51, 3  ;;  %v2900_v5 = vsel %vm11748_vm3, %v9396_v9, %v2714_v39  ;;  %vm11758_vm3 = vmmov %vm11750_vm5 }
 0x26f   :  { %v3039_v1 = vor.u32 %v3038_v6, %v3035_v44 }
 0x270   :  { %v2873_v34 = vpop.permute.xlu1 %2872 }
 0x271   :  { %v3040_v46 = vsel %vm11747_vm9, %v3031_v25, %v3039_v1  ;;  %vm11757_vm9 = vmmov %vm11753_vm4 }
 0x272   :  { %7489 = vmatmul.mubr.bf16.gmra.mrb[24].mxu1 %v3040_v46 }
 0x273   :  { %7492 = vmatprep.mubr.msk.bf16.mxu1 %vm11593_vm10, %v11722_v8 }
 0x277   :  { %v2784_v57 = vpop.permute.xlu0 %2783 }
 0x278   :  { %v2926_v33 = vsel %vm11749_vm8, %v2900_v5, %v2784_v57  ;;  %vm11759_vm8 = vmmov %vm11752_vm6 }
 0x279   :  { %v2952_v37 = vsel %vm11750_vm5, %v2926_v33, %v2873_v34  ;;  %vm11760_vm5 = vmmov %vm11753_vm4 }
 0x27a   :  { %v3041_v43 = vshrl.u32 %v2952_v37, 16  ;;  %v3044_v7 = vshll.u32 %v2952_v37, 16 }
 0x27b   :  { %v2716_v53 = vpop.permute.xlu0 %2715 }
 0x27c   :  { %v3043_v14 = vrot.slane %v3041_v43, 2  ;;  %v3046_v27 = vrot.slane %v3044_v7, 3  ;;  %v2902_v9 = vsel %vm11752_vm6, %v9446_v11, %v2716_v53  ;;  %vm11762_vm6 = vmmov %vm11758_vm3 }
 0x27e   :  { %v3047_v60 = vor.u32 %v3046_v27, %v3043_v14 }
 0x27f   :  { %v2875_v30 = vpop.permute.xlu0 %2874 }
 0x280   :  { %v3048_v42 = vsel %vm11751_vm15, %v3039_v1, %v3047_v60  ;;  %vm11761_vm15 = vmmov %vm11755_vm7 }
 0x281   :  { %7493 = vmatmul.mubr.bf16.gmra.mrb[28].mxu1 %v3048_v42 }
 0x282   :  { %7496 = vmatprep.mubr.msk.bf16.mxu1 %vm11593_vm10, %v11722_v8 }
 0x284   :  { %v2786_v47 = vpop.permute.xlu1 %2785 }
 0x285   :  { %v2928_v48 = vsel %vm11753_vm4, %v2902_v9, %v2786_v47  ;;  %vm11763_vm4 = vmmov %vm11759_vm8 }
 0x286   :  { %v2954_v59 = vsel %vm11754_vm14, %v2928_v48, %v2875_v30  ;;  %vm11764_vm14 = vmmov %vm11760_vm5 }
 0x287   :  { %v3049_v25 = vshrl.u32 %v2954_v59, 16  ;;  %v3052_v54 = vshll.u32 %v2954_v59, 16 }
 0x288   :  { %v2718_v26 = vpop.permute.xlu1 %2717 }
 0x289   :  { %v3051_v20 = vrot.slane %v3049_v25, 2  ;;  %v3054_v16 = vrot.slane %v3052_v54, 3  ;;  %v2904_v11 = vsel %vm11756_vm13, %v9498_v21, %v2718_v26  ;;  %vm11766_vm13 = vmmov %vm11761_vm15 }
 0x28b   :  { %v3055_v45 = vor.u32 %v3054_v16, %v3051_v20 }
 0x28c   :  { %v2877_v17 = vpop.permute.xlu1 %2876 }
 0x28d   :  { %v3056_v24 = vsel %vm11755_vm7, %v3047_v60, %v3055_v45  ;;  %vm11765_vm7 = vmmov %vm11758_vm3 }
 0x28e   :  { %7497 = vmatmul.mubr.bf16.gmra.mrb[32].mxu1 %v3056_v24 }
 0x28f   :  { %7500 = vmatprep.mubr.msk.bf16.mxu1 %vm11593_vm10, %v11722_v8 }
 0x293   :  { %v2788_v29 = vpop.permute.xlu0 %2787 }
 0x294   :  { %v2930_v51 = vsel %vm11757_vm9, %v2904_v11, %v2788_v29  ;;  %vm11767_vm9 = vmmov %vm11766_vm13 }
 0x295   :  { %v2956_v44 = vsel %vm11758_vm3, %v2930_v51, %v2877_v17 }
 0x296   :  { %v3057_v6 = vshrl.u32 %v2956_v44, 16  ;;  %v3060_v1 = vshll.u32 %v2956_v44, 16 }
 0x297   :  { %v2720_v5 = vpop.permute.xlu0 %2719 }
 0x298   :  { %v3059_v46 = vrot.slane %v3057_v6, 2  ;;  %v3062_v39 = vrot.slane %v3060_v1, 3  ;;  %v2906_v34 = vsel %vm11759_vm8, %v9538_v32, %v2720_v5 }
 0x29a   :  { %v3063_v57 = vor.u32 %v3062_v39, %v3059_v46 }
 0x29b   :  { %v2790_v33 = vpop.permute.xlu1 %2789  ;;  %v2879_v37 = vpop.permute.xlu0 %2878 }
 0x29c   :  { %v2932_v43 = vsel %vm11760_vm5, %v2906_v34, %v2790_v33  ;;  %v3064_v21 = vsel %vm11761_vm15, %v3055_v45, %v3063_v57  ;;  %vm11768_vm5 = vcmask 130048  }
 0x29d   :  { %v2958_v7 = vsel %vm11762_vm6, %v2932_v43, %v2879_v37  ;;  %7501 = vmatmul.mubr.bf16.gmra.mrb[36].mxu1 %v3064_v21  ;;  %vm11769_vm15 = vmmov %vm11768_vm5 }
 0x29e   :  { %v3065_v14 = vshrl.u32 %v2958_v7, 16  ;;  %v3068_v27 = vshll.u32 %v2958_v7, 16  ;;  %7504 = vmatprep.mubr.msk.bf16.mxu1 %vm11593_vm10, %v11722_v8  ;;  %vm11770_vm6 = vmmov %vm11768_vm5 }
 0x29f   :  { %v2722_v60 = vpop.permute.xlu1 %2721 }
 0x2a0   :  { %v3067_v53 = vrot.slane %v3065_v14, 2  ;;  %v3070_v42 = vrot.slane %v3068_v27, 3  ;;  %v2792_v9 = vpop.permute.xlu0 %2791  ;;  %v2908_v32 = vsel %vm11763_vm4, %v9571_v3, %v2722_v60  ;;  %v9677_v3 = vld [vmem:[%s11566_s2 + $0x2] ss:$0 sm:$0xff] }
 0x2a1   :  { %v2934_v30 = vsel %vm11764_vm14, %v2908_v32, %v2792_v9 }
 0x2a2   :  { %v3071_v47 = vor.u32 %v3070_v42, %v3067_v53 }
 0x2a3   :  { %v2881_v48 = vpop.permute.xlu1 %2880 }
 0x2a4   :  { %v2960_v59 = vsel %vm11765_vm7, %v2934_v30, %v2881_v48  ;;  %v3072_v25 = vsel %vm11766_vm13, %v3063_v57, %v3071_v47  ;;  %vm11771_vm7 = vmmov %vm11768_vm5 }
 0x2a5   :  { %v3073_v54 = vshrl.u32 %v2960_v59, 16  ;;  %v3076_v20 = vshll.u32 %v2960_v59, 16  ;;  %7505 = vmatmul.mubr.bf16.gmra.mrb[40].mxu1 %v3072_v25  ;;  %vm11772_vm13 = vmmov %vm11768_vm5 }
 0x2a6   :  { %7508 = vmatprep.mubr.msk.bf16.mxu1 %vm11593_vm10, %v11722_v8 }
 0x2a7   :  { %v3075_v16 = vrot.slane %v3073_v54, 2  ;;  %v3078_v45 = vrot.slane %v3076_v20, 3 }
 0x2a9   :  { %v3079_v24 = vor.u32 %v3078_v45, %v3075_v16 }
 0x2ab   :  { %v3080_v26 = vsel %vm11767_vm9, %v3071_v47, %v3079_v24  ;;  %vm11773_vm9 = vmmov %vm11768_vm5 }
 0x2ad   :  { %7509 = vmatmul.mubr.bf16.gmra.mrb[44].mxu1 %v3080_v26 }
 0x2ae   :  { %7512 = vmatprep.mubr.msk.bf16.mxu1 %vm11593_vm10, %v11722_v8 }
 0x2b5   :  { %7513 = vmatmul.mubr.bf16.gmra.mrb[48].mxu1 %v3079_v24 }
 0x2b6   :  { %7518 = vmatprep.mubr.msk.bf16.mxu1 %vm11593_vm10, %v11722_v8 }
 0x2f4   :  { %v3176_v11 = vpop.f32.mrb[0].mxu1 }
 0x2f5   :  { %v3177_v29 = vadd.f32 %v3176_v11, %v9677_v3  ;;  %v7466_v17 = vpop.f32.mrb[1].mxu1 }
 0x2f6   :  { %v3179_v51 = vpop.f32.mrb[2].mxu1 }
 0x2f7   :  { %vm3278_vm3 = vcmp.gt.f32.partialorder %v3177_v29, 0.0  ;;  %v3303_v44 = vmul.f32 0.1, %v3177_v29  ;;  %v3180_v6 = vadd.f32 %v3179_v51, %v9677_v3  ;;  %v7467_v1 = vpop.f32.mrb[3].mxu1 }
 0x2f9   :  { %v3328_v46 = vsel %vm3278_vm3, %v3177_v29, %v3303_v44  ;;  %vm3279_vm8 = vcmp.gt.f32.partialorder %v3180_v6, 0.0  ;;  %v3304_v39 = vmul.f32 0.1, %v3180_v6 }
 0x2fa   :  { %3353 = vst.msk [vmem:[#allocation4] sm:$0xff] %vm11768_vm5, %v3328_v46 }
 0x2fb   :  { %v3329_v5 = vsel %vm3279_vm8, %v3180_v6, %v3304_v39 }
 0x2fc   :  { %3354 = vst.msk [vmem:[#allocation4 + $0x8] sm:$0xff] %vm11769_vm15, %v3329_v5  ;;  %v3381_v57 = vpack.c.bf16 %v3329_v5, %v3328_v46  ;;  %vm11774_vm15 = vmmov %vm11768_vm5 }
 0x2fe   :  { %7519 = vmatmul.mubr.msk.bf16.vlgmr.msra.gmra.mrb[52].mxu1 %vm11770_vm6, %v3381_v57  ;;  %vm11775_vm6 = vmmov %vm11768_vm5 }
 0x2ff   :  { %7522 = vmatprep.mubr.msk.bf16.mxu1 %vm11593_vm10, %v11722_v8 }
 0x300   :  { %v3184_v34 = vpop.f32.mrb[4].mxu1 }
 0x301   :  { %v3185_v33 = vadd.f32 %v3184_v34, %v9677_v3  ;;  %v7470_v37 = vpop.f32.mrb[5].mxu1 }
 0x302   :  { %v3187_v43 = vpop.f32.mrb[6].mxu1 }
 0x303   :  { %vm3280_vm4 = vcmp.gt.f32.partialorder %v3185_v33, 0.0  ;;  %v3305_v21 = vmul.f32 0.1, %v3185_v33  ;;  %v3188_v7 = vadd.f32 %v3187_v43, %v9677_v3  ;;  %v7471_v14 = vpop.f32.mrb[7].mxu1 }
 0x305   :  { %v3330_v27 = vsel %vm3280_vm4, %v3185_v33, %v3305_v21  ;;  %vm3281_vm14 = vcmp.gt.f32.partialorder %v3188_v7, 0.0  ;;  %v3306_v60 = vmul.f32 0.1, %v3188_v7 }
 0x306   :  { %3355 = vst.msk [vmem:[#allocation4 + $0x10] sm:$0xff] %vm11771_vm7, %v3330_v27  ;;  %vm11776_vm7 = vmmov %vm11768_vm5 }
 0x307   :  { %v3331_v53 = vsel %vm3281_vm14, %v3188_v7, %v3306_v60 }
 0x308   :  { %3356 = vst.msk [vmem:[#allocation4 + $0x18] sm:$0xff] %vm11772_vm13, %v3331_v53  ;;  %v3382_v42 = vpack.c.bf16 %v3331_v53, %v3330_v27  ;;  %vm11777_vm13 = vmmov %vm11768_vm5 }
 0x30a   :  { %7523 = vmatmul.mubr.msk.bf16.gmra.mrb[56].mxu1 %vm11773_vm9, %v3382_v42  ;;  %vm11778_vm9 = vmmov %vm11768_vm5 }
 0x30b   :  { %7526 = vmatprep.mubr.msk.bf16.mxu1 %vm11593_vm10, %v11722_v8 }
 0x30d   :  { %v3192_v9 = vpop.f32.mrb[8].mxu1 }
 0x30e   :  { %v3193_v32 = vadd.f32 %v3192_v9, %v9677_v3  ;;  %v7474_v47 = vpop.f32.mrb[9].mxu1 }
 0x30f   :  { %v3195_v30 = vpop.f32.mrb[10].mxu1 }
 0x310   :  { %vm3282_vm3 = vcmp.gt.f32.partialorder %v3193_v32, 0.0  ;;  %v3307_v48 = vmul.f32 0.1, %v3193_v32  ;;  %v3196_v59 = vadd.f32 %v3195_v30, %v9677_v3  ;;  %v7475_v25 = vpop.f32.mrb[11].mxu1 }
 0x312   :  { %v3332_v54 = vsel %vm3282_vm3, %v3193_v32, %v3307_v48  ;;  %vm3283_vm8 = vcmp.gt.f32.partialorder %v3196_v59, 0.0  ;;  %v3308_v20 = vmul.f32 0.1, %v3196_v59 }
 0x313   :  { %3357 = vst.msk [vmem:[#allocation4 + $0x20] sm:$0xff] %vm11768_vm5, %v3332_v54 }
 0x314   :  { %v3333_v16 = vsel %vm3283_vm8, %v3196_v59, %v3308_v20 }
 0x315   :  { %3358 = vst.msk [vmem:[#allocation4 + $0x28] sm:$0xff] %vm11774_vm15, %v3333_v16  ;;  %v3383_v45 = vpack.c.bf16 %v3333_v16, %v3332_v54  ;;  %vm11779_vm15 = vmmov %vm11768_vm5 }
 0x317   :  { %7527 = vmatmul.mubr.msk.bf16.gmra.mrb[60].mxu1 %vm11775_vm6, %v3383_v45  ;;  %vm11780_vm6 = vmmov %vm11768_vm5 }
 0x318   :  { %7530 = vmatprep.mubr.msk.bf16.mxu1 %vm11593_vm10, %v11722_v8 }
 0x31c   :  { %v3200_v24 = vpop.f32.mrb[12].mxu1 }
 0x31d   :  { %v3201_v26 = vadd.f32 %v3200_v24, %v9677_v3  ;;  %v7478_v11 = vpop.f32.mrb[13].mxu1 }
 0x31e   :  { %v3203_v29 = vpop.f32.mrb[14].mxu1 }
 0x31f   :  { %vm3284_vm4 = vcmp.gt.f32.partialorder %v3201_v26, 0.0  ;;  %v3309_v17 = vmul.f32 0.1, %v3201_v26  ;;  %v3204_v51 = vadd.f32 %v3203_v29, %v9677_v3  ;;  %v7479_v44 = vpop.f32.mrb[15].mxu1 }
 0x321   :  { %v3334_v6 = vsel %vm3284_vm4, %v3201_v26, %v3309_v17  ;;  %vm3285_vm14 = vcmp.gt.f32.partialorder %v3204_v51, 0.0  ;;  %v3310_v1 = vmul.f32 0.1, %v3204_v51 }
 0x322   :  { %3359 = vst.msk [vmem:[#allocation4 + $0x30] sm:$0xff] %vm11776_vm7, %v3334_v6  ;;  %vm11781_vm7 = vmmov %vm11768_vm5 }
 0x323   :  { %v3335_v46 = vsel %vm3285_vm14, %v3204_v51, %v3310_v1 }
 0x324   :  { %3360 = vst.msk [vmem:[#allocation4 + $0x38] sm:$0xff] %vm11777_vm13, %v3335_v46  ;;  %v3384_v39 = vpack.c.bf16 %v3335_v46, %v3334_v6  ;;  %vm11782_vm13 = vmmov %vm11768_vm5 }
 0x326   :  { %7531 = vmatmul.mubr.msk.bf16.gmra.mrb[64].mxu1 %vm11778_vm9, %v3384_v39  ;;  %vm11783_vm9 = vmmov %vm11768_vm5 }
 0x327   :  { %7534 = vmatprep.mubr.msk.bf16.mxu1 %vm11593_vm10, %v11722_v8 }
 0x329   :  { %v3208_v5 = vpop.f32.mrb[16].mxu1 }
 0x32a   :  { %v3209_v57 = vadd.f32 %v3208_v5, %v9677_v3  ;;  %v7482_v34 = vpop.f32.mrb[17].mxu1 }
 0x32b   :  { %v3211_v33 = vpop.f32.mrb[18].mxu1 }
 0x32c   :  { %vm3286_vm3 = vcmp.gt.f32.partialorder %v3209_v57, 0.0  ;;  %v3311_v37 = vmul.f32 0.1, %v3209_v57  ;;  %v3212_v43 = vadd.f32 %v3211_v33, %v9677_v3  ;;  %v7483_v21 = vpop.f32.mrb[19].mxu1 }
 0x32e   :  { %v3336_v7 = vsel %vm3286_vm3, %v3209_v57, %v3311_v37  ;;  %vm3287_vm8 = vcmp.gt.f32.partialorder %v3212_v43, 0.0  ;;  %v3312_v14 = vmul.f32 0.1, %v3212_v43 }
 0x32f   :  { %3361 = vst.msk [vmem:[#allocation4 + $0x40] sm:$0xff] %vm11768_vm5, %v3336_v7 }
 0x330   :  { %v3337_v27 = vsel %vm3287_vm8, %v3212_v43, %v3312_v14 }
 0x331   :  { %3362 = vst.msk [vmem:[#allocation4 + $0x48] sm:$0xff] %vm11779_vm15, %v3337_v27  ;;  %v3385_v60 = vpack.c.bf16 %v3337_v27, %v3336_v7  ;;  %vm11784_vm15 = vmmov %vm11768_vm5  ;;  %v11599_v27 = vmov 0.0|0.0  }
 0x333   :  { %7535 = vmatmul.mubr.msk.bf16.gmra.mrb[68].mxu1 %vm11780_vm6, %v3385_v60  ;;  %vm11785_vm6 = vmmov %vm11768_vm5 }
 0x334   :  { %7538 = vmatprep.mubr.msk.bf16.mxu1 %vm11593_vm10, %v11722_v8 }
 0x337   :  { %v3216_v53 = vpop.f32.mrb[20].mxu1 }
 0x338   :  { %v3217_v42 = vadd.f32 %v3216_v53, %v9677_v3  ;;  %v7486_v9 = vpop.f32.mrb[21].mxu1 }
 0x339   :  { %v3219_v32 = vpop.f32.mrb[22].mxu1 }
 0x33a   :  { %vm3288_vm4 = vcmp.gt.f32.partialorder %v3217_v42, 0.0  ;;  %v3313_v47 = vmul.f32 0.1, %v3217_v42  ;;  %v3220_v30 = vadd.f32 %v3219_v32, %v9677_v3  ;;  %v7487_v48 = vpop.f32.mrb[23].mxu1 }
 0x33c   :  { %v3338_v59 = vsel %vm3288_vm4, %v3217_v42, %v3313_v47  ;;  %vm3289_vm14 = vcmp.gt.f32.partialorder %v3220_v30, 0.0  ;;  %v3314_v25 = vmul.f32 0.1, %v3220_v30  ;;  %vm11604_vm4 = vcmask 125952  }
 0x33d   :  { %3363 = vst.msk [vmem:[#allocation4 + $0x50] sm:$0xff] %vm11781_vm7, %v3338_v59 }
 0x33e   :  { %v3339_v54 = vsel %vm3289_vm14, %v3220_v30, %v3314_v25  ;;  %864 = vst.msk [vmem:[#allocation3] sm:$0xf] %vm11604_vm4, %v11724_v23  ;;  %865 = vst.msk [vmem:[#allocation3 + $0x4] sm:$0xf] %vm11604_vm4, %v11724_v23 }
 0x33f   :  { %3364 = vst.msk [vmem:[#allocation4 + $0x58] sm:$0xff] %vm11782_vm13, %v3339_v54  ;;  %v3386_v20 = vpack.c.bf16 %v3339_v54, %v3338_v59  ;;  %vm11786_vm13 = vmmov %vm11768_vm5 }
 0x340   :  { %866 = vst.msk [vmem:[#allocation3 + $0x6c] sm:$0xf] %vm11604_vm4, %v11724_v23  ;;  %867 = vst.msk [vmem:[#allocation3 + $0x70] sm:$0xf] %vm11604_vm4, %v11724_v23 }
 0x341   :  { %7539 = vmatmul.mubr.msk.bf16.gmra.mrb[72].mxu1 %vm11783_vm9, %v3386_v20  ;;  %vm11787_vm9 = vmmov %vm11768_vm5  ;;  %3826 = vst.msk [vmem:[#allocation3 + $0x8] sm:$0xf] %vm11604_vm4, %v11599_v27 }
 0x342   :  { %7542 = vmatprep.mubr.msk.bf16.mxu1 %vm11593_vm10, %v11722_v8 }
 0x345   :  { %v3224_v16 = vpop.f32.mrb[24].mxu1 }
 0x346   :  { %v3225_v45 = vadd.f32 %v3224_v16, %v9677_v3  ;;  %v7490_v24 = vpop.f32.mrb[25].mxu1 }
 0x347   :  { %v3227_v26 = vpop.f32.mrb[26].mxu1 }
 0x348   :  { %vm3290_vm3 = vcmp.gt.f32.partialorder %v3225_v45, 0.0  ;;  %v3315_v11 = vmul.f32 0.1, %v3225_v45  ;;  %v3228_v29 = vadd.f32 %v3227_v26, %v9677_v3  ;;  %v7491_v17 = vpop.f32.mrb[27].mxu1 }
 0x34a   :  { %v3340_v51 = vsel %vm3290_vm3, %v3225_v45, %v3315_v11  ;;  %vm3291_vm8 = vcmp.gt.f32.partialorder %v3228_v29, 0.0  ;;  %v3316_v44 = vmul.f32 0.1, %v3228_v29  ;;  %vm11788_vm3 = vmmov %vm11768_vm5 }
 0x34b   :  { %3365 = vst.msk [vmem:[#allocation4 + $0x60] sm:$0xff] %vm11768_vm5, %v3340_v51 }
 0x34c   :  { %v3341_v6 = vsel %vm3291_vm8, %v3228_v29, %v3316_v44 }
 0x34d   :  { %3366 = vst.msk [vmem:[#allocation4 + $0x68] sm:$0xff] %vm11784_vm15, %v3341_v6  ;;  %v3387_v1 = vpack.c.bf16 %v3341_v6, %v3340_v51  ;;  %vm11789_vm15 = vmmov %vm11788_vm3 }
 0x34f   :  { %7543 = vmatmul.mubr.msk.bf16.gmra.mrb[76].mxu1 %vm11785_vm6, %v3387_v1  ;;  %vm11790_vm6 = vmmov %vm11788_vm3 }
 0x350   :  { %7546 = vmatprep.mubr.msk.bf16.mxu1 %vm11593_vm10, %v11722_v8 }
 0x354   :  { %v3232_v46 = vpop.f32.mrb[28].mxu1 }
 0x355   :  { %v3233_v39 = vadd.f32 %v3232_v46, %v9677_v3  ;;  %v7494_v5 = vpop.f32.mrb[29].mxu1 }
 0x356   :  { %v3235_v57 = vpop.f32.mrb[30].mxu1 }
 0x357   :  { %vm3292_vm14 = vcmp.gt.f32.partialorder %v3233_v39, 0.0  ;;  %v3317_v34 = vmul.f32 0.1, %v3233_v39  ;;  %v3236_v33 = vadd.f32 %v3235_v57, %v9677_v3  ;;  %v7495_v37 = vpop.f32.mrb[31].mxu1 }
 0x359   :  { %v3342_v43 = vsel %vm3292_vm14, %v3233_v39, %v3317_v34  ;;  %vm3293_vm7 = vcmp.gt.f32.partialorder %v3236_v33, 0.0  ;;  %v3318_v21 = vmul.f32 0.1, %v3236_v33  ;;  %vm11791_vm14 = vmmov %vm11788_vm3 }
 0x35a   :  { %3367 = vst.msk [vmem:[#allocation4 + $0x70] sm:$0xff] %vm11786_vm13, %v3342_v43 }
 0x35b   :  { %v3343_v7 = vsel %vm3293_vm7, %v3236_v33, %v3318_v21 }
 0x35c   :  { %3368 = vst.msk [vmem:[#allocation4 + $0x78] sm:$0xff] %vm11787_vm9, %v3343_v7  ;;  %v3388_v14 = vpack.c.bf16 %v3343_v7, %v3342_v43  ;;  %vm11792_vm9 = vmmov %vm11788_vm3 }
 0x35e   :  { %7547 = vmatmul.mubr.msk.bf16.gmra.mrb[80].mxu1 %vm11788_vm3, %v3388_v14 }
 0x35f   :  { %7550 = vmatprep.mubr.msk.bf16.mxu1 %vm11593_vm10, %v11722_v8 }
 0x361   :  { %v3240_v60 = vpop.f32.mrb[32].mxu1 }
 0x362   :  { %v3241_v53 = vadd.f32 %v3240_v60, %v9677_v3  ;;  %v7498_v42 = vpop.f32.mrb[33].mxu1 }
 0x363   :  { %v3243_v9 = vpop.f32.mrb[34].mxu1 }
 0x364   :  { %vm3294_vm8 = vcmp.gt.f32.partialorder %v3241_v53, 0.0  ;;  %v3319_v32 = vmul.f32 0.1, %v3241_v53  ;;  %v3244_v47 = vadd.f32 %v3243_v9, %v9677_v3  ;;  %v7499_v30 = vpop.f32.mrb[35].mxu1 }
 0x366   :  { %v3344_v48 = vsel %vm3294_vm8, %v3241_v53, %v3319_v32  ;;  %vm3295_vm5 = vcmp.gt.f32.partialorder %v3244_v47, 0.0  ;;  %v3320_v59 = vmul.f32 0.1, %v3244_v47  ;;  %vm11793_vm8 = vmmov %vm11788_vm3 }
 0x367   :  { %3369 = vst.msk [vmem:[#allocation4 + $0x80] sm:$0xff] %vm11789_vm15, %v3344_v48 }
 0x368   :  { %v3345_v25 = vsel %vm3295_vm5, %v3244_v47, %v3320_v59 }
 0x369   :  { %3370 = vst.msk [vmem:[#allocation4 + $0x88] sm:$0xff] %vm11790_vm6, %v3345_v25  ;;  %v3389_v54 = vpack.c.bf16 %v3345_v25, %v3344_v48  ;;  %vm11794_vm6 = vmmov %vm11788_vm3 }
 0x36b   :  { %7551 = vmatmul.mubr.msk.bf16.gmra.mrb[84].mxu1 %vm11791_vm14, %v3389_v54  ;;  %vm11795_vm14 = vmmov %vm11788_vm3 }
 0x36c   :  { %7554 = vmatprep.mubr.msk.bf16.mxu1 %vm11593_vm10, %v11722_v8 }
 0x370   :  { %v3248_v20 = vpop.f32.mrb[36].mxu1 }
 0x371   :  { %v3249_v16 = vadd.f32 %v3248_v20, %v9677_v3  ;;  %v7502_v45 = vpop.f32.mrb[37].mxu1 }
 0x372   :  { %v3251_v24 = vpop.f32.mrb[38].mxu1 }
 0x373   :  { %vm3296_vm7 = vcmp.gt.f32.partialorder %v3249_v16, 0.0  ;;  %v3321_v26 = vmul.f32 0.1, %v3249_v16  ;;  %v3252_v11 = vadd.f32 %v3251_v24, %v9677_v3  ;;  %v7503_v29 = vpop.f32.mrb[39].mxu1 }
 0x375   :  { %v3346_v17 = vsel %vm3296_vm7, %v3249_v16, %v3321_v26  ;;  %vm3297_vm13 = vcmp.gt.f32.partialorder %v3252_v11, 0.0  ;;  %v3322_v51 = vmul.f32 0.1, %v3252_v11  ;;  %vm11796_vm7 = vmmov %vm11788_vm3 }
 0x376   :  { %3371 = vst.msk [vmem:[#allocation4 + $0x90] sm:$0xff] %vm11792_vm9, %v3346_v17 }
 0x377   :  { %v3347_v44 = vsel %vm3297_vm13, %v3252_v11, %v3322_v51 }
 0x378   :  { %3372 = vst.msk [vmem:[#allocation4 + $0x98] sm:$0xff] %vm11788_vm3, %v3347_v44  ;;  %v3390_v6 = vpack.c.bf16 %v3347_v44, %v3346_v17  ;;  %v3256_v1 = vpop.f32.mrb[40].mxu1 }
 0x379   :  { %v3257_v46 = vadd.f32 %v3256_v1, %v9677_v3  ;;  %v7506_v39 = vpop.f32.mrb[41].mxu1 }
 0x37a   :  { %v3259_v5 = vpop.f32.mrb[42].mxu1  ;;  %7555 = vmatmul.mubr.msk.bf16.gmra.mrb[88].mxu1 %vm11793_vm8, %v3390_v6  ;;  %vm11797_vm8 = vmmov %vm11788_vm3 }
 0x37b   :  { %vm3298_vm5 = vcmp.gt.f32.partialorder %v3257_v46, 0.0  ;;  %v3323_v57 = vmul.f32 0.1, %v3257_v46  ;;  %v3260_v34 = vadd.f32 %v3259_v5, %v9677_v3  ;;  %v7507_v33 = vpop.f32.mrb[43].mxu1  ;;  %7558 = vmatprep.mubr.msk.bf16.mxu1 %vm11593_vm10, %v11722_v8 }
 0x37c   :  { %v3852_v33 = vld [vmem:[#allocation3 + $0x4] sm:$0xf] }
 0x37d   :  { %v3348_v37 = vsel %vm3298_vm5, %v3257_v46, %v3323_v57  ;;  %vm3299_vm15 = vcmp.gt.f32.partialorder %v3260_v34, 0.0  ;;  %v3324_v43 = vmul.f32 0.1, %v3260_v34  ;;  %vm11798_vm5 = vmmov %vm11788_vm3 }
 0x37e   :  { %3373 = vst.msk [vmem:[#allocation4 + $0xa0] sm:$0xff] %vm11794_vm6, %v3348_v37  ;;  %vm11799_vm6 = vmmov %vm11788_vm3 }
 0x37f   :  { %v3349_v21 = vsel %vm3299_vm15, %v3260_v34, %v3324_v43 }
 0x380   :  { %3374 = vst.msk [vmem:[#allocation4 + $0xa8] sm:$0xff] %vm11795_vm14, %v3349_v21  ;;  %v3391_v7 = vpack.c.bf16 %v3349_v21, %v3348_v37  ;;  %v3264_v14 = vpop.f32.mrb[44].mxu1  ;;  %vm11800_vm14 = vmmov %vm11788_vm3 }
 0x381   :  { %v3265_v60 = vadd.f32 %v3264_v14, %v9677_v3  ;;  %v7510_v53 = vpop.f32.mrb[45].mxu1  ;;  %v12151_v14 = vld [vmem:[#allocation8_spill] sm:$0xff] }
 0x382   :  { %v3267_v42 = vpop.f32.mrb[46].mxu1  ;;  %7559 = vmatmul.mubr.msk.bf16.gmra.mrb[92].mxu1 %vm11796_vm7, %v3391_v7  ;;  %vm499_vm7 = vcmp.ge.s32.totalorder %v8923_v10, 1 }
 0x383   :  { %vm3300_vm13 = vcmp.gt.f32.partialorder %v3265_v60, 0.0  ;;  %v3325_v9 = vmul.f32 0.1, %v3265_v60  ;;  %v3268_v32 = vadd.f32 %v3267_v42, %v9677_v3  ;;  %v7511_v47 = vpop.f32.mrb[47].mxu1  ;;  %7562 = vmatprep.mubr.msk.bf16.mxu1 %vm11593_vm10, %v11722_v8 }
 0x384   :  { %v11806_v47 = vmov 0 }
 0x385   :  { %v3350_v30 = vsel %vm3300_vm13, %v3265_v60, %v3325_v9  ;;  %vm3301_vm9 = vcmp.gt.f32.partialorder %v3268_v32, 0.0  ;;  %v3326_v48 = vmul.f32 0.1, %v3268_v32  ;;  %vm11801_vm13 = vcmp.ge.s32.totalorder %v8913_v35, 10  ;;  %v3877_v35 = vld [vmem:[#allocation3] sm:$0x8] }
 0x386   :  { %3375 = vst.msk [vmem:[#allocation4 + $0xb0] sm:$0xff] %vm11788_vm3, %v3350_v30  ;;  %vm549_vm3 = vcmp.le.s32.totalorder %v8923_v10, 8  ;;  %v7101_v21 = vcombine.low %v3877_v35, %v3852_v33  ;;  %v9804_v9 = vld [vmem:[#allocation3 + $0x8] sm:$0xf] }
 0x387   :  { %v3351_v59 = vsel %vm3301_vm9, %v3268_v32, %v3326_v48  ;;  %vm524_vm9 = vmand %vm11801_vm13, %vm499_vm7  ;;  %vm551_vm7 = vcmp.le.s32.totalorder %v8968_v38, 8 }
 0x388   :  { %3376 = vst.msk [vmem:[#allocation4 + $0xb8] sm:$0xff] %vm11797_vm8, %v3351_v59  ;;  %v3392_v25 = vpack.c.bf16 %v3351_v59, %v3350_v30  ;;  %v3272_v54 = vpop.f32.mrb[48].mxu1  ;;  %vm9786_vm8 = vmand %vm524_vm9, %vm549_vm3  ;;  %v3957_v30 = vshll.u32 %v7101_v21, 16 }
 0x389   :  { %v3273_v20 = vadd.f32 %v3272_v54, %v9677_v3  ;;  %v7514_v16 = vpop.f32.mrb[49].mxu1  ;;  %v9780_v3 = vld [vmem:[%s11566_s2 + $0x3] ss:$0 sm:$0xff] }
 0x38a   :  { %v3275_v45 = vpop.f32.mrb[50].mxu1  ;;  %7563 = vmatmul.mubr.msk.bf16.gmra.mrb[96].mxu1 %vm11798_vm5, %v3392_v25 }
 0x38b   :  { %vm3302_vm15 = vcmp.gt.f32.partialorder %v3273_v20, 0.0  ;;  %v3327_v24 = vmul.f32 0.1, %v3273_v20  ;;  %v7515_v26 = vpop.f32.mrb[51].mxu1  ;;  %7566 = vmatprep.mubr.msk.bf16.mxu1 %vm11593_vm10, %v11722_v8  ;;  %vm11821_vm10 = vcmask 1041408  }
 0x38d   :  { %v3352_v11 = vsel %vm3302_vm15, %v3273_v20, %v3327_v24  ;;  %vm500_vm15 = vcmp.ge.s32.totalorder %v8965_v36, 1  ;;  %v3955_v24 = vshrl.u32 %v7101_v21, 16 }
 0x38e   :  { %3377 = vst.msk [vmem:[#allocation4 + $0xc0] sm:$0xff] %vm11799_vm6, %v3352_v11  ;;  %v3393_v29 = vpack.c.bf16 %v3352_v11, %v3352_v11  ;;  %vm550_vm6 = vcmp.le.s32.totalorder %v8965_v36, 8  ;;  %v27_v36 = vadd.s32 32, %v8908_v4 }
 0x38f   :  { %vm9798_vm13 = vmand %vm500_vm15, %vm550_vm6 }
 0x390   :  { %v6886_v16 = vadd.s32 4294967276, %v27_v36 }
 0x392   :  { %7567 = vmatmul.mubr.msk.bf16.gmra.mrb[100].mxu1 %vm11800_vm14, %v3393_v29  ;;  %vm501_vm14 = vcmp.ge.s32.totalorder %v8968_v38, 1  ;;  %v3959_v29 = vrot.slane %v3957_v30, 1 }
 0x393   :  { %vm9806_vm3 = vmand %vm501_vm14, %vm551_vm7  ;;  %vm11590_vm14 = vcmp.ge.s32.totalorder %v9014_v2, 1 }
 0x394   :  { %v11807_v47 = vsel %vm9806_vm3, 4294967295, %v11806_v47 }
 0x395   :  { %11808 = vst [vmem:[#allocation14_spill] sm:$0xff] %v11807_v47 }
 0x3d1   :  { %v3473_v17 = vpop.f32.mrb[52].mxu1 }
 0x3d2   :  { %v7520_v51 = vpop.f32.mrb[53].mxu1 }
 0x3d3   :  { %v3476_v44 = vpop.f32.mrb[54].mxu1  ;;  %v4086_v51 = vrot.slane %v7101_v21, 1  ;;  %v7785_v21 = vld [vmem:[%s11565_s1 + $0x50] sm:$0xff]  }
 0x3d4   :  { %v3477_v6 = vadd.f32 %v3476_v44, %v9780_v3  ;;  %v7521_v1 = vpop.f32.mrb[55].mxu1 }
 0x3d5   :  { %v7784_v1 = vld [vmem:[%s11565_s1 + $0x48] sm:$0xff]  }
 0x3d6   :  { %vm3576_vm5 = vcmp.gt.f32.partialorder %v3477_v6, 0.0  ;;  %v3601_v39 = vmul.f32 0.1, %v3477_v6  ;;  %5104 = vmatpush1.bf16.msra.mxu0 %v7784_v1  ;;  %7683 = vmatpush1.bf16.msra.mxu1 %v7784_v1 }
 0x3d7   :  { %5105 = vmatprep.subr.bf16.mxu0 %v11724_v23  ;;  %7675 = vmatprep.subr.bf16.mxu1 %v11724_v23 }
 0x3d8   :  { %v3626_v5 = vsel %vm3576_vm5, %v3477_v6, %v3601_v39  ;;  %v9828_v6 = vadd.s32 4294967286, %v6886_v16 }
 0x3d9   :  { %v3701_v57 = vsel %vm9786_vm8, %v3626_v5, 0.0  ;;  %v3960_v5 = vor.u32 %v3959_v29, %v3955_v24  ;;  %v7786_v29 = vld [vmem:[%s11565_s1 + $0x58] sm:$0xff]  }
 0x3da   :  { %v7287_v34 = vpack.c.bf16 %v3701_v57, %v3701_v57  ;;  %11809 = vst [vmem:[#allocation15_spill] sm:$0xff] %v9828_v6  ;;  %vm11591_vm15 = vcmp.le.s32.totalorder %v9828_v6, 8  ;;  %5106 = vmatpush1.bf16.msra.mxu0 %v7785_v21  ;;  %7684 = vmatpush1.bf16.msra.mxu1 %v7785_v21 }
 0x3db   :  { %5107 = vmatprep.subr.bf16.mxu0 %v11724_v23  ;;  %7676 = vmatprep.subr.bf16.mxu1 %v11724_v23 }
 0x3dc   :  { %3827 = vst.msk [vmem:[#allocation3 + $0xc] sm:$0xf] %vm11604_vm4, %v7287_v34 }
 0x3dd   :  { %v3481_v10 = vpop.f32.mrb[56].mxu1 }
 0x3de   :  { %v3482_v37 = vadd.f32 %v3481_v10, %v9780_v3  ;;  %v7524_v43 = vpop.f32.mrb[57].mxu1  ;;  %5108 = vmatpush1.bf16.msra.mxu0 %v7786_v29  ;;  %7685 = vmatpush1.bf16.msra.mxu1 %v7786_v29 }
 0x3df   :  { %v3484_v7 = vpop.f32.mrb[58].mxu1  ;;  %v3879_v43 = vld [vmem:[#allocation3 + $0x4] sm:$0x8]  ;;  %5109 = vmatprep.subr.bf16.mxu0 %v11724_v23  ;;  %7677 = vmatprep.subr.bf16.mxu1 %v11724_v23 }
 0x3e0   :  { %vm3577_vm9 = vcmp.gt.f32.partialorder %v3482_v37, 0.0  ;;  %v3602_v60 = vmul.f32 0.1, %v3482_v37  ;;  %v3485_v53 = vadd.f32 %v3484_v7, %v9780_v3  ;;  %v7525_v42 = vpop.f32.mrb[59].mxu1  ;;  %v7087_v7 = vcombine.low %v11599_v27, %v11599_v27 }
 0x3e1   :  { %v7103_v1 = vcombine.low %v3879_v43, %v9804_v9 }
 0x3e2   :  { %v3627_v32 = vsel %vm3577_vm9, %v3482_v37, %v3602_v60  ;;  %vm3578_vm5 = vcmp.gt.f32.partialorder %v3485_v53, 0.0  ;;  %v3603_v38 = vmul.f32 0.1, %v3485_v53  ;;  %3850 = vst.msk [vmem:[#allocation3 + $0x68] sm:$0xf] %vm11604_vm4, %v7087_v7  ;;  %vm11810_vm9 = vcmask 1041408  }
 0x3e3   :  { %v3702_v48 = vsel %vm9798_vm13, %v3627_v32, 0.0  ;;  %v9812_v59 = vld [vmem:[#allocation3 + $0xc] sm:$0xf] }
 0x3e4   :  { %v7288_v25 = vpack.c.bf16 %v3702_v48, %v3702_v48  ;;  %v3628_v54 = vsel %vm3578_vm5, %v3485_v53, %v3603_v38  ;;  %v9816_v20 = vcombine.low %v9804_v9, %v9812_v59  ;;  %v3884_v48 = vld [vmem:[#allocation3 + $0xc] sm:$0xe]  ;;  %vm504_vm5 = vcmp.ge.s32.totalorder %v9068_v52, 1 }
 0x3e5   :  { %v3703_v45 = vsel %vm9806_vm3, %v3628_v54, 0.0 }
 0x3e6   :  { %3828 = vst.msk [vmem:[#allocation3 + $0x10] sm:$0xf] %vm11604_vm4, %v7288_v25  ;;  %v7289_v26 = vpack.c.bf16 %v3703_v45, %v3703_v45  ;;  %v4296_v11 = vrot.slane %v9816_v20, 6  ;;  %v3962_v17 = vshll.u32 %v9816_v20, 16  ;;  %v4087_v44 = vrot.slane %v9816_v20, 1 }
 0x3e7   :  { %v3966_v34 = vshrl.u32 %v9816_v20, 16 }
 0x3e8   :  { %3829 = vst.msk [vmem:[#allocation3 + $0x14] sm:$0xf] %vm11604_vm4, %v7289_v26  ;;  %4321 = vrot.lane.b32.xlu0 %v4296_v11, %s7901_s19  ;;  %v9833_v57 = vrot.slane %v3962_v17, 1  ;;  %v4088_v10 = vsel %vm11597_vm0, %v4086_v51, %v4087_v44  ;;  %v4207_v30 = vrot.slane %v3962_v17, 6 }
 0x3e9   :  { %v4206_v38 = vrot.slane %v3966_v34, 5 }
 0x3ea   :  { %v3489_v39 = vpop.f32.mrb[60].mxu1  ;;  %v3965_v32 = vsel %vm11598_vm1, %v3960_v5, %v9833_v57 }
 0x3eb   :  { %v3490_v33 = vadd.f32 %v3489_v39, %v9780_v3  ;;  %v7528_v35 = vpop.f32.mrb[61].mxu1  ;;  %v9869_v5 = vor.u32 %v4207_v30, %v4206_v38 }
 0x3ec   :  { %4111 = vrot.lane.b32.xlu0 %v4088_v10, %s7898_s10  ;;  %v3492_v37 = vpop.f32.mrb[62].mxu1 }
 0x3ed   :  { %vm3579_vm6 = vcmp.gt.f32.partialorder %v3490_v33, 0.0  ;;  %v3604_v60 = vmul.f32 0.1, %v3490_v33  ;;  %v3493_v53 = vadd.f32 %v3492_v37, %v9780_v3  ;;  %v7529_v42 = vpop.f32.mrb[63].mxu1  ;;  %v3855_v36 = vld [vmem:[#allocation3 + $0x10] sm:$0xf] }
 0x3ee   :  { %v7119_v45 = vcombine.low %v3884_v48, %v3855_v36  ;;  %v9873_v35 = vcombine.low %v9812_v59, %v3855_v36 }
 0x3ef   :  { %v3629_v25 = vsel %vm3579_vm6, %v3490_v33, %v3604_v60  ;;  %vm3580_vm7 = vcmp.gt.f32.partialorder %v3493_v53, 0.0  ;;  %v3605_v54 = vmul.f32 0.1, %v3493_v53  ;;  %v3856_v16 = vld [vmem:[#allocation3 + $0x14] sm:$0xf]  ;;  %vm554_vm6 = vcmp.le.s32.totalorder %v9068_v52, 8 }
 0x3f0   :  { %v3704_v24 = vsel %vm11591_vm15, %v3629_v25, 0.0  ;;  %4057 = vrot.lane.b32.xlu0 %v3965_v32, %s7899_s13  ;;  %v9861_v26 = vcombine.low %v3855_v36, %v3856_v16  ;;  %v4407_v21 = vshrl.u32 %v7119_v45, 16  ;;  %v4410_v7 = vshll.u32 %v7119_v45, 16 }
 0x3f1   :  { %v7290_v17 = vpack.c.bf16 %v3704_v24, %v3704_v24  ;;  %v3630_v51 = vsel %vm3580_vm7, %v3493_v53, %v3605_v54  ;;  %v4551_v60 = vrot.slane %v7119_v45, 7  ;;  %v4352_v53 = vrot.slane %v9873_v35, 6  ;;  %v7789_v54 = vld [vmem:[%s11565_s1 + $0x60] sm:$0xff]  }
 0x3f2   :  { %v3705_v39 = vsel %vm11590_vm14, %v3630_v51, 0.0  ;;  %v4089_v33 = vrot.slane %v9861_v26, 1  ;;  %v3970_v37 = vshll.u32 %v9861_v26, 16  ;;  %v4297_v59 = vrot.slane %v9861_v26, 6  ;;  %5110 = vmatpush1.bf16.msra.mxu0 %v7789_v54  ;;  %7686 = vmatpush1.bf16.msra.mxu1 %v7789_v54  ;;  %vm9933_vm14 = vmand %vm504_vm5, %vm554_vm6 }
 0x3f3   :  { %3830 = vst.msk [vmem:[#allocation3 + $0x18] sm:$0xf] %vm11604_vm4, %v7290_v17  ;;  %v7291_v10 = vpack.c.bf16 %v3705_v39, %v3705_v39  ;;  %v3974_v43 = vshrl.u32 %v9861_v26, 16  ;;  %v4154_v32 = vrot.slane %v7103_v1, 1  ;;  %v4155_v38 = vrot.slane %v9873_v35, 1  ;;  %5111 = vmatprep.subr.bf16.mxu0 %v11724_v23  ;;  %7678 = vmatprep.subr.bf16.mxu1 %v11724_v23 }
 0x3f4   :  { %4267 = vrot.lane.b32.xlu0 %v9869_v5, %s7900_s16  ;;  %v4090_v9 = vsel %vm11597_vm0, %v4087_v44, %v4089_v33  ;;  %v4210_v36 = vrot.slane %v3970_v37, 6  ;;  %v4409_v30 = vrot.slane %v4407_v21, 6  ;;  %v4412_v44 = vrot.slane %v4410_v7, 7 }
 0x3f5   :  { %3831 = vst.msk [vmem:[#allocation3 + $0x1c] sm:$0xf] %vm11604_vm4, %v7291_v10  ;;  %4113 = vrot.lane.b32.xlu1 %v4090_v9, %s7898_s10  ;;  %v4209_v42 = vrot.slane %v3974_v43, 5  ;;  %v4298_v48 = vsel %vm11810_vm9, %v4296_v11, %v4297_v59  ;;  %v9902_v25 = vrot.slane %v3970_v37, 1  ;;  %v4794_v24 = vshrl.u32 %v4551_v60, 16  ;;  %v7790_v10 = vld [vmem:[%s11565_s1 + $0x68] sm:$0xff]  }
 0x3f6   :  { %v4797_v29 = vshll.u32 %v4551_v60, 16  ;;  %vm505_vm7 = vcmp.ge.s32.totalorder %v9074_v41, 1  ;;  %v3968_v11 = vor.u32 %v3966_v34, %v9833_v57  ;;  %vm555_vm9 = vcmp.le.s32.totalorder %v9074_v41, 8  ;;  %5112 = vmatpush1.bf16.msra.mxu0 %v7790_v10  ;;  %7687 = vmatpush1.bf16.msra.mxu1 %v7790_v10 }
 0x3f7   :  { %v9915_v1 = vor.u32 %v4210_v36, %v4209_v42  ;;  %v4156_v21 = vsel %vm11597_vm0, %v4154_v32, %v4155_v38  ;;  %v9924_v7 = vor.u32 %v4412_v44, %v4409_v30  ;;  %v11811_v57 = vmov 0  ;;  %vm9953_vm5 = vmand %vm505_vm7, %vm555_vm9  ;;  %5113 = vmatprep.subr.bf16.mxu0 %v11724_v23  ;;  %7679 = vmatprep.subr.bf16.mxu1 %v11724_v23 }
 0x3f8   :  { %4377 = vrot.lane.b32.xlu0 %v4352_v53, %s7902_s22  ;;  %v11812_v57 = vsel %vm9933_vm14, 4294967295, %v11811_v57  ;;  %v4796_v44 = vrot.slane %v4794_v24, 2  ;;  %v7793_v24 = vld [vmem:[%s11565_s1 + $0x70] sm:$0xff]   ;;  %vm11818_vm7 = vcmask 1041408   ;;  %vm506_vm9 = vcmp.ge.s32.totalorder %v9121_v58, 1 }
 0x3f9   :  { %v3497_v45 = vpop.f32.mrb[64].mxu1  ;;  %4323 = vrot.lane.b32.xlu1 %v4298_v48, %s7901_s19  ;;  %11813 = vst [vmem:[#allocation16_spill] sm:$0xff] %v11812_v57  ;;  %v4799_v48 = vrot.slane %v4797_v29, 3 }
 0x3fa   :  { %v3498_v17 = vadd.f32 %v3497_v45, %v9780_v3  ;;  %v7532_v51 = vpop.f32.mrb[65].mxu1  ;;  %v3857_v39 = vld [vmem:[#allocation3 + $0x18] sm:$0xf]  ;;  %v11814_v45 = vmov 0  ;;  %5114 = vmatpush1.bf16.msra.mxu0 %v7793_v24  ;;  %7688 = vmatpush1.bf16.msra.mxu1 %v7793_v24  ;;  %v3976_v24 = vor.u32 %v3974_v43, %v9902_v25 }
 0x3fb   :  { %v3500_v37 = vpop.f32.mrb[66].mxu1  ;;  %v9926_v9 = vcombine.low %v3856_v16, %v3857_v39  ;;  %v3973_v16 = vsel %vm11598_vm1, %v3968_v11, %v9902_v25  ;;  %v11815_v45 = vsel %vm9953_vm5, 4294967295, %v11814_v45  ;;  %v4212_v11 = vsel %vm11603_vm2, %v9869_v5, %v9915_v1  ;;  %5115 = vmatprep.subr.bf16.mxu0 %v11724_v23  ;;  %7680 = vmatprep.subr.bf16.mxu1 %v11724_v23 }
 0x3fc   :  { %vm3581_vm15 = vcmp.gt.f32.partialorder %v3498_v17, 0.0  ;;  %v3606_v34 = vmul.f32 0.1, %v3498_v17  ;;  %v3501_v42 = vadd.f32 %v3500_v37, %v9780_v3  ;;  %4179 = vrot.lane.b32.xlu0 %v4156_v21, %s7897_s9  ;;  %v7533_v36 = vpop.f32.mrb[67].mxu1  ;;  %v9941_v32 = vld [vmem:[#allocation3 + $0x1c] sm:$0xf] }
 0x3fd   :  { %4059 = vrot.lane.b32.xlu1 %v3973_v16, %s7899_s13  ;;  %v9946_v52 = vcombine.low %v3857_v39, %v9941_v32  ;;  %v4552_v30 = vrot.slane %v9926_v9, 7  ;;  %11816 = vst [vmem:[#allocation17_spill] sm:$0xff] %v11815_v45 }
 0x3fe   :  { %v3631_v54 = vsel %vm3581_vm15, %v3498_v17, %v3606_v34  ;;  %vm3582_vm6 = vcmp.gt.f32.partialorder %v3501_v42, 0.0  ;;  %v3607_v51 = vmul.f32 0.1, %v3501_v42  ;;  %v4157_v17 = vrot.slane %v9926_v9, 1 }
 0x3ff   :  { %v3706_v29 = vsel %vm9933_vm14, %v3631_v54, 0.0  ;;  %v4299_v41 = vrot.slane %v9946_v52, 6  ;;  %vm11817_vm15 = vcmask 1040384   ;;  %v3978_v10 = vshll.u32 %v9946_v52, 16 }
 0x400   :  { %v4553_v39 = vsel %vm11817_vm15, %v4551_v60, %v4552_v30  ;;  %v7292_v5 = vpack.c.bf16 %v3706_v29, %v3706_v29  ;;  %v3632_v37 = vsel %vm3582_vm6, %v3501_v42, %v3607_v51  ;;  %4522 = vrot.lane.b32.xlu0 %v9924_v7, %s7903_s25  ;;  %v7794_v51 = vld [vmem:[%s11565_s1 + $0x78] sm:$0xff]   ;;  %vm556_vm6 = vcmp.le.s32.totalorder %v9121_v58, 8 }
 0x401   :  { %v4802_v21 = vshrl.u32 %v4553_v39, 16  ;;  %v4805_v34 = vshll.u32 %v4553_v39, 16  ;;  %v3707_v36 = vsel %vm9953_vm5, %v3632_v37, 0.0  ;;  %4269 = vrot.lane.b32.xlu1 %v4212_v11, %s7900_s16  ;;  %v4300_v60 = vsel %vm11818_vm7, %v4297_v59, %v4299_v41  ;;  %5116 = vmatpush1.bf16.msra.mxu0 %v7794_v51 }
 0x402   :  { %3832 = vst.msk [vmem:[#allocation3 + $0x20] sm:$0xf] %vm11604_vm4, %v7292_v5  ;;  %v7293_v42 = vpack.c.bf16 %v3707_v36, %v3707_v36  ;;  %v9987_v29 = vrot.slane %v3978_v10, 1  ;;  %v4415_v11 = vshrl.u32 %v9926_v9, 16  ;;  %v4418_v39 = vshll.u32 %v9926_v9, 16  ;;  %5117 = vmatprep.subr.bf16.mxu0 %v11724_v23  ;;  %7689 = vmatpush1.bf16.msra.mxu1 %v7794_v51 }
 0x403   :  { %v4804_v16 = vrot.slane %v4802_v21, 2  ;;  %v4807_v54 = vrot.slane %v4805_v34, 3  ;;  %v4158_v59 = vsel %vm11597_vm0, %v4155_v38, %v4157_v17  ;;  %v4800_v5 = vor.u32 %v4799_v48, %v4796_v44  ;;  %7681 = vmatprep.subr.bf16.mxu1 %v11724_v23 }
 0x404   :  { %3833 = vst.msk [vmem:[#allocation3 + $0x24] sm:$0xf] %vm11604_vm4, %v7293_v42  ;;  %4325 = vrot.lane.b32.xlu0 %v4300_v60, %s7901_s19  ;;  %v4353_v21 = vrot.slane %v9926_v9, 6  ;;  %vm11819_vm15 = vsmask.f32 5376  ;;  %v4091_v44 = vrot.slane %v9946_v52, 1  ;;  %v3981_v42 = vsel %vm11598_vm1, %v3976_v24, %v9987_v29 }
 0x405   :  { %v9999_v37 = vor.u32 %v4807_v54, %v4804_v16  ;;  %4181 = vrot.lane.b32.xlu1 %v4158_v59, %s7897_s9  ;;  %v11596_v48 = vshrl.u32 %v9946_v52, 16  ;;  %vm11820_vm7 = vcmask 130048   ;;  %v4417_v43 = vrot.slane %v4415_v11, 6 }
 0x406   :  { %v3505_v34 = vpop.f32.mrb[68].mxu1  ;;  %v4420_v25 = vrot.slane %v4418_v39, 7  ;;  %v4354_v54 = vsel %vm11821_vm10, %v4352_v53, %v4353_v21  ;;  %v11822_v11 = vmov 0  ;;  %v4092_v58 = vsel %vm11597_vm0, %v4089_v33, %v4091_v44 }
 0x407   :  { %v4809_v38 = vsel %vm11819_vm15, %v4800_v5, %v9999_v37  ;;  %v3506_v36 = vadd.f32 %v3505_v34, %v9780_v3  ;;  %v7536_v60 = vpop.f32.mrb[69].mxu1  ;;  %vm507_vm15 = vcmp.ge.s32.totalorder %v9104_v31, 1  ;;  %v4213_v53 = vrot.slane %v11596_v48, 5  ;;  %v7796_v34 = vld [vmem:[%s11565_s1 + $0x80] sm:$0xff]   ;;  %v7797_v31 = vld [vmem:[%s11565_s1 + $0x88] sm:$0xff]  }
 0x408   :  { %7130 = vmatprep.mubr.msk.bf16.mxu0 %vm11820_vm7, %v4809_v38  ;;  %4061 = vrot.lane.b32.xlu0 %v3981_v42, %s7899_s13  ;;  %v3508_v16 = vpop.f32.mrb[70].mxu1  ;;  %vm10030_vm7 = vmand %vm506_vm9, %vm556_vm6  ;;  %v4214_v51 = vrot.slane %v3978_v10, 6  ;;  %v11825_v60 = vmov 0  ;;  %v4421_v42 = vor.u32 %v4420_v25, %v4417_v43  ;;  %vm459_vm6 = vcmp.le.s32.totalorder %v9156_v56, 89 }
 0x409   :  { %v11823_v11 = vsel %vm10030_vm7, 4294967295, %v11822_v11  ;;  %vm3583_vm11 = vcmp.gt.f32.partialorder %v3506_v36, 0.0  ;;  %v3608_v39 = vmul.f32 0.1, %v3506_v36  ;;  %v3509_v59 = vadd.f32 %v3508_v16, %v9780_v3  ;;  %v7537_v5 = vpop.f32.mrb[71].mxu1  ;;  %4379 = vrot.lane.b32.xlu1 %v4354_v54, %s7902_s22  ;;  %vm10054_vm10 = vmand %vm507_vm15, %vm557_vm12  ;;  %5118 = vmatpush1.bf16.msra.mxu0 %v7796_v34 }
 0x40a   :  { %11824 = vst [vmem:[#allocation18_spill] sm:$0xff] %v11823_v11  ;;  %v3859_v24 = vld [vmem:[#allocation3 + $0x20] sm:$0xf]  ;;  %v11826_v60 = vsel %vm10054_vm10, 4294967295, %v11825_v60  ;;  %7690 = vmatpush1.bf16.msra.mxu1 %v7796_v34  ;;  %5119 = vmatprep.subr.bf16.mxu0 %v11724_v23  ;;  %vm11828_vm12 = vsmask.f32 1280 }
 0x40b   :  { %v10043_v35 = vcombine.low %v9941_v32, %v3859_v24  ;;  %v3633_v38 = vsel %vm3583_vm11, %v3506_v36, %v3608_v39  ;;  %11827 = vst [vmem:[#allocation19_spill] sm:$0xff] %v11826_v60  ;;  %vm3584_vm9 = vcmp.gt.f32.partialorder %v3509_v59, 0.0  ;;  %v3609_v33 = vmul.f32 0.1, %v3509_v59  ;;  %v10058_v32 = vld [vmem:[#allocation3 + $0x24] sm:$0xf]  ;;  %7682 = vmatprep.subr.bf16.mxu1 %v11724_v23 }
 0x40c   :  { %v3708_v10 = vsel %vm10030_vm7, %v3633_v38, 0.0  ;;  %v10063_v16 = vcombine.low %v3859_v24, %v10058_v32  ;;  %vm11829_vm11 = vcmask 1040384   ;;  %vm509_vm15 = vcmp.ge.s32.totalorder %v9198_v28, 1 }
 0x40d   :  { %v4159_v36 = vrot.slane %v10043_v35, 1  ;;  %v4424_v54 = vshrl.u32 %v10043_v35, 16  ;;  %v7294_v39 = vpack.c.bf16 %v3708_v10, %v3708_v10  ;;  %v3634_v5 = vsel %vm3584_vm9, %v3509_v59, %v3609_v33  ;;  %4115 = vrot.lane.b32.xlu1 %v4092_v58, %s7898_s10  ;;  %5120 = vmatpush1.bf16.msra.mxu0 %v7797_v31 }
 0x40e   :  { %v4427_v43 = vshll.u32 %v10043_v35, 16  ;;  %v3709_v25 = vsel %vm10054_vm10, %v3634_v5, 0.0  ;;  %v11601_v38 = vrot.slane %v10063_v16, 1  ;;  %v3986_v33 = vshll.u32 %v10063_v16, 16  ;;  %7691 = vmatpush1.bf16.msra.mxu1 %v7797_v31  ;;  %7626 = vmatprep.subr.bf16.mxu0 %v11599_v27 }
 0x40f   :  { %v4160_v24 = vsel %vm11597_vm0, %v4157_v17, %v4159_v36  ;;  %v4426_v34 = vrot.slane %v4424_v54, 6  ;;  %3834 = vst.msk [vmem:[#allocation3 + $0x28] sm:$0xf] %vm11604_vm4, %v7294_v39  ;;  %v7295_v59 = vpack.c.bf16 %v3709_v25, %v3709_v25  ;;  %v4422_v10 = vsel %vm11828_vm12, %v9924_v7, %v4421_v42  ;;  %7570 = vmatprep.subr.bf16.mxu1 %v11722_v8 }
 0x410   :  { %4183 = vrot.lane.b32.xlu0 %v4160_v24, %s7897_s9  ;;  %v4429_v58 = vrot.slane %v4427_v43, 7  ;;  %v4215_v5 = vor.u32 %v4214_v51, %v4213_v53  ;;  %v3990_v48 = vshrl.u32 %v10063_v16, 16  ;;  %v4554_v17 = vrot.slane %v10043_v35, 7 }
 0x411   :  { %3835 = vst.msk [vmem:[#allocation3 + $0x2c] sm:$0xf] %vm11604_vm4, %v7295_v59  ;;  %4524 = vrot.lane.b32.xlu1 %v4422_v10, %s7903_s25  ;;  %v4094_v54 = vsel %vm11597_vm0, %v4091_v44, %v11601_v38  ;;  %v4218_v51 = vrot.slane %v3986_v33, 6  ;;  %v4355_v25 = vrot.slane %v10043_v35, 6  ;;  %vm11602_vm9 = vcmp.ge.s32.totalorder %v9181_v50, 1 }
 0x412   :  { %v10097_v7 = vor.u32 %v4429_v58, %v4426_v34  ;;  %v4217_v53 = vrot.slane %v3990_v48, 5  ;;  %v4555_v31 = vsel %vm11829_vm11, %v4552_v30, %v4554_v17  ;;  %v4216_v43 = vsel %vm11603_vm2, %v9915_v1, %v4215_v5  ;;  %vm10117_vm11 = vmand %vm459_vm6, %vm509_vm15 }
 0x413   :  { %v4819_v44 = vshrl.u32 %v4555_v31, 16  ;;  %v4822_v24 = vshll.u32 %v4555_v31, 16  ;;  %vm559_vm12 = vcmp.le.s32.totalorder %v9198_v28, 8  ;;  %vm11832_vm0 = vsmask.f32 1280 }
 0x414   :  { %4117 = vrot.lane.b32.xlu0 %v4094_v54, %s7898_s10  ;;  %v3513_v39 = vpop.f32.mrb[72].mxu1  ;;  %v4431_v1 = vsel %vm11832_vm0, %v4421_v42, %v10097_v7  ;;  %v10123_v58 = vor.u32 %v4218_v51, %v4217_v53  ;;  %vm11833_vm6 = vcmask 1041408   ;;  %v4301_v42 = vrot.slane %v10063_v16, 6  ;;  %vm10140_vm0 = vmand %vm10117_vm11, %vm559_vm12 }
 0x415   :  { %v3514_v30 = vadd.f32 %v3513_v39, %v9780_v3  ;;  %v7540_v34 = vpop.f32.mrb[73].mxu1  ;;  %4271 = vrot.lane.b32.xlu1 %v4216_v43, %s7900_s16  ;;  %v4821_v54 = vrot.slane %v4819_v44, 2  ;;  %v4824_v31 = vrot.slane %v4822_v24, 3  ;;  %v4356_v38 = vsel %vm11833_vm6, %v4353_v21, %v4355_v25  ;;  %vm11837_vm12 = vmmov %vm11833_vm6 }
 0x416   :  { %v3516_v59 = vpop.f32.mrb[74].mxu1  ;;  %v3861_v10 = vld [vmem:[#allocation3 + $0x28] sm:$0xf]  ;;  %v11834_v44 = vmov 0  ;;  %v4220_v24 = vsel %vm11603_vm2, %v4215_v5, %v10123_v58  ;;  %vm460_vm11 = vcmp.le.s32.totalorder %v9087_v18, 89  ;;  %v11850_v35 = vrot.slane %v10063_v16, 1 }
 0x417   :  { %vm3585_vm1 = vcmp.gt.f32.partialorder %v3514_v30, 0.0  ;;  %v3610_v39 = vmul.f32 0.1, %v3514_v30  ;;  %v3517_v34 = vadd.f32 %v3516_v59, %v9780_v3  ;;  %v7541_v43 = vpop.f32.mrb[75].mxu1  ;;  %v10128_v27 = vcombine.low %v10058_v32, %v3861_v10 }
 0x418   :  { %4526 = vrot.lane.b32.xlu0 %v4431_v1, %s7903_s25  ;;  %v10134_v53 = vld [vmem:[#allocation3 + $0x2c] sm:$0xf]  ;;  %v11835_v44 = vsel %vm10140_vm0, 4294967295, %v11834_v44  ;;  %v10155_v59 = vor.u32 %v4824_v31, %v4821_v54  ;;  %v4302_v1 = vsel %vm11837_vm12, %v4299_v41, %v4301_v42  ;;  %v11838_v41 = vshrl.u32 %v9946_v52, 16 }
 0x419   :  { %v3635_v51 = vsel %vm3585_vm1, %v3514_v30, %v3610_v39  ;;  %11836 = vst [vmem:[#allocation20_spill] sm:$0xff] %v11835_v44  ;;  %vm3586_vm15 = vcmp.gt.f32.partialorder %v3517_v34, 0.0  ;;  %v3611_v32 = vmul.f32 0.1, %v3517_v34  ;;  %4381 = vrot.lane.b32.xlu1 %v4356_v38, %s7902_s22  ;;  %v10146_v9 = vcombine.low %v3861_v10, %v10134_v53 }
 0x41a   :  { %v3710_v21 = vsel %vm11602_vm9, %v3635_v51, 0.0  ;;  %v11606_v28 = vrot.slane %v10128_v27, 6  ;;  %vm435_vm1 = vcmp.ge.s32.totalorder %v9087_v18, 10  ;;  %v3988_v10 = vrot.slane %v3986_v33, 1 }
 0x41b   :  { %v7296_v30 = vpack.c.bf16 %v3710_v21, %v3710_v21  ;;  %v3636_v56 = vsel %vm3586_vm15, %v3517_v34, %v3611_v32  ;;  %v11605_v39 = vrot.slane %v10146_v9, 6  ;;  %v3994_v54 = vshll.u32 %v10146_v9, 16  ;;  %vm485_vm12 = vmand %vm435_vm1, %vm460_vm11 }
 0x41c   :  { %4273 = vrot.lane.b32.xlu0 %v4220_v24, %s7900_s16  ;;  %v3711_v38 = vsel %vm10140_vm0, %v3636_v56, 0.0  ;;  %v4433_v31 = vshrl.u32 %v10128_v27, 16  ;;  %v4358_v34 = vsel %vm11833_vm6, %v4355_v25, %v11606_v28  ;;  %v3984_v33 = vor.u32 %v11838_v41, %v9987_v29 }
 0x41d   :  { %3836 = vst.msk [vmem:[#allocation3 + $0x30] sm:$0xf] %vm11604_vm4, %v7296_v30  ;;  %v7297_v5 = vpack.c.bf16 %v3711_v38, %v3711_v38  ;;  %4327 = vrot.lane.b32.xlu1 %v4302_v1, %s7901_s19  ;;  %v4436_v43 = vshll.u32 %v10128_v27, 16  ;;  %vm560_vm9 = vcmp.le.s32.totalorder %v9213_v62, 8  ;;  %v4161_v51 = vrot.slane %v10128_v27, 1 }
 0x41e   :  { %vm11839_vm6 = vsmask.f32 5376  ;;  %v11607_v29 = vrot.slane %v10128_v27, 7  ;;  %vm11840_vm2 = vsmask.f32 7424  ;;  %vm561_vm15 = vcmp.le.s32.totalorder %v9238_v13, 8 }
 0x41f   :  { %3837 = vst.msk [vmem:[#allocation3 + $0x34] sm:$0xf] %vm11604_vm4, %v7297_v5  ;;  %v10185_v25 = vsel %vm11839_vm6, %v9999_v37, %v10155_v59  ;;  %v3989_v32 = vsel %vm11840_vm2, %v3984_v33, %v3988_v10  ;;  %vm511_vm4 = vcmp.ge.s32.totalorder %v9238_v13, 1  ;;  %v4095_v18 = vrot.slane %v10146_v9, 1 }
 0x420   :  { %4383 = vrot.lane.b32.xlu0 %v4358_v34, %s7902_s22  ;;  %vm11841_vm1 = vcmask 1041408   ;;  %v10196_v24 = vrot.slane %v3994_v54, 1  ;;  %v4435_v37 = vrot.slane %v4433_v31, 6  ;;  %vm11842_vm2 = vcmask 1040384  }
 0x421   :  { %4063 = vrot.lane.b32.xlu1 %v3989_v32, %s7899_s13  ;;  %v4304_v21 = vsel %vm11841_vm1, %v4301_v42, %v11605_v39  ;;  %v4557_v30 = vsel %vm11842_vm2, %v4554_v17, %v11607_v29  ;;  %vm11843_vm11 = vcmp.ge.s32.totalorder %v9213_v62, 1  ;;  %v4438_v1 = vrot.slane %v4436_v43, 7 }
 0x422   :  { %vm10205_vm6 = vmand %vm485_vm12, %vm11843_vm11  ;;  %v3521_v38 = vpop.f32.mrb[76].mxu1  ;;  %v3998_v5 = vshrl.u32 %v10146_v9, 16  ;;  %v4836_v42 = vshrl.u32 %v4557_v30, 16  ;;  %v4839_v34 = vshll.u32 %v4557_v30, 16  ;;  %vm11846_vm1 = vcmask 1046528  }
 0x423   :  { %v3522_v31 = vadd.f32 %v3521_v38, %v9780_v3  ;;  %v7544_v41 = vpop.f32.mrb[77].mxu1  ;;  %v4162_v17 = vsel %vm11846_vm1, %v4159_v36, %v4161_v51  ;;  %v3992_v33 = vor.u32 %v3990_v48, %v3988_v10  ;;  %v37_v32 = vadd.s32 112, %v8908_v4  ;;  %vm11851_vm11 = vmmov %vm11846_vm1 }
 0x424   :  { %4329 = vrot.lane.b32.xlu0 %v4304_v21, %s7901_s19  ;;  %vm11847_vm12 = vcmp.ge.s32.totalorder %v9203_v61, 10  ;;  %v3524_v30 = vpop.f32.mrb[78].mxu1  ;;  %v4096_v36 = vsel %vm11851_vm11, %v11850_v35, %v4095_v18  ;;  %v3863_v21 = vld [vmem:[#allocation3 + $0x30] sm:$0xf]  ;;  %v4222_v38 = vrot.slane %v3994_v54, 6  ;;  %v4838_v48 = vrot.slane %v4836_v42, 2  ;;  %vm10235_vm1 = vmand %vm10205_vm6, %vm560_vm9 }
 0x425   :  { %vm10222_vm2 = vmand %vm11847_vm12, %vm511_vm4  ;;  %v4841_v10 = vrot.slane %v4839_v34, 3  ;;  %v11852_v61 = vmov 0  ;;  %vm3587_vm4 = vcmp.gt.f32.partialorder %v3522_v31, 0.0  ;;  %v3612_v41 = vmul.f32 0.1, %v3522_v31  ;;  %v7545_v28 = vpop.f32.mrb[79].mxu1  ;;  %4185 = vrot.lane.b32.xlu1 %v4162_v17, %s7897_s9 }
 0x426   :  { %v11853_v61 = vsel %vm10235_vm1, 4294967295, %v11852_v61  ;;  %v3525_v39 = vadd.f32 %v3524_v30, %v9780_v3  ;;  %v10242_v35 = vcombine.low %v10134_v53, %v3863_v21  ;;  %vm11855_vm12 = vsmask.f32 7424  ;;  %v3864_v62 = vld [vmem:[#allocation3 + $0x34] sm:$0xf]  ;;  %vm10254_vm9 = vmand %vm10222_vm2, %vm561_vm15 }
 0x427   :  { %11854 = vst [vmem:[#allocation21_spill] sm:$0xff] %v11853_v61  ;;  %v3997_v54 = vsel %vm11855_vm12, %v3992_v33, %v10196_v24  ;;  %v4439_v42 = vor.u32 %v4438_v1, %v4435_v37  ;;  %v4221_v56 = vrot.slane %v3998_v5, 5  ;;  %v10248_v34 = vor.u32 %v4841_v10, %v4838_v48  ;;  %vm11859_vm15 = vmmov %vm11851_vm11 }
 0x428   :  { %v3637_v29 = vsel %vm3587_vm4, %v3522_v31, %v3612_v41  ;;  %v11856_v28 = vmov 0  ;;  %vm3588_vm6 = vcmp.gt.f32.partialorder %v3525_v39, 0.0  ;;  %v3613_v53 = vmul.f32 0.1, %v3525_v39  ;;  %4065 = vrot.lane.b32.xlu0 %v3997_v54, %s7899_s13 }
 0x429   :  { %v11857_v28 = vsel %vm10254_vm9, 4294967295, %v11856_v28  ;;  %v10259_v17 = vcombine.low %v3863_v21, %v3864_v62  ;;  %v3712_v37 = vsel %vm10235_vm1, %v3637_v29, 0.0  ;;  %v11609_v1 = vrot.slane %v10242_v35, 1  ;;  %4119 = vrot.lane.b32.xlu1 %v4096_v36, %s7898_s10 }
 0x42a   :  { %11858 = vst [vmem:[#allocation22_spill] sm:$0xff] %v11857_v28  ;;  %v4442_v31 = vshrl.u32 %v10242_v35, 16  ;;  %v4445_v13 = vshll.u32 %v10242_v35, 16  ;;  %v7298_v33 = vpack.c.bf16 %v3712_v37, %v3712_v37  ;;  %v3638_v43 = vsel %vm3588_vm6, %v3525_v39, %v3613_v53  ;;  %vm11864_vm6 = vmmov %vm11859_vm15 }
 0x42b   :  { %v11608_v30 = vrot.slane %v10259_v17, 1  ;;  %v6821_v48 = vadd.s32 4294967196, %v37_v32  ;;  %v3713_v21 = vsel %vm10254_vm9, %v3638_v43, 0.0  ;;  %v4164_v29 = vsel %vm11859_vm15, %v4161_v51, %v11609_v1 }
 0x42c   :  { %v4444_v10 = vrot.slane %v4442_v31, 6  ;;  %v4447_v41 = vrot.slane %v4445_v13, 7  ;;  %vm11860_vm2 = vcmask 125952   ;;  %v7299_v54 = vpack.c.bf16 %v3713_v21, %v3713_v21  ;;  %4187 = vrot.lane.b32.xlu0 %v4164_v29, %s7897_s9 }
 0x42d   :  { %3838 = vst.msk [vmem:[#allocation3 + $0x38] sm:$0xf] %vm11860_vm2, %v7298_v33  ;;  %v4002_v39 = vshll.u32 %v10259_v17, 16  ;;  %vm11861_vm11 = vsmask.f32 1280  ;;  %v4223_v32 = vor.u32 %v4222_v38, %v4221_v56  ;;  %v11610_v53 = vshrl.u32 %v10259_v17, 16  ;;  %vm11863_vm12 = vmmov %vm11860_vm2 }
 0x42e   :  { %v4440_v36 = vsel %vm11861_vm11, %v10097_v7, %v4439_v42  ;;  %vm11862_vm4 = vsmask.f32 5376  ;;  %3839 = vst.msk [vmem:[#allocation3 + $0x3c] sm:$0xf] %vm11863_vm12, %v7299_v54  ;;  %v4558_v31 = vrot.slane %v10242_v35, 7  ;;  %v4098_v7 = vsel %vm11864_vm6, %v4095_v18, %v11608_v30 }
 0x42f   :  { %v10282_v37 = vsel %vm11862_vm4, %v10155_v59, %v10248_v34  ;;  %4528 = vrot.lane.b32.xlu1 %v4440_v36, %s7903_s25  ;;  %v4226_v51 = vrot.slane %v4002_v39, 6  ;;  %v10292_v38 = vadd.s32 4294967286, %v6821_v48  ;;  %v10294_v56 = vor.u32 %v4447_v41, %v4444_v10 }
 0x430   :  { %v4225_v59 = vrot.slane %v11610_v53, 5  ;;  %4121 = vrot.lane.b32.xlu0 %v4098_v7, %s7898_s10  ;;  %v11866_v13 = vrot.slane %v10128_v27, 7  ;;  %vm11867_vm15 = vcmask 1040384   ;;  %vm11868_vm2 = vsmask.f32 2304 }
 0x431   :  { %11865 = vst [vmem:[#allocation23_spill] sm:$0xff] %v10292_v38  ;;  %v4224_v43 = vsel %vm11868_vm2, %v10123_v58, %v4223_v32  ;;  %v4359_v18 = vrot.slane %v10242_v35, 6  ;;  %v3529_v29 = vpop.f32.mrb[80].mxu1  ;;  %vm11612_vm11 = vcmp.le.s32.totalorder %v10292_v38, 8  ;;  %vm11869_vm4 = vsmask.f32 1280 }
 0x432   :  { %v4559_v33 = vsel %vm11867_vm15, %v11866_v13, %v4558_v31  ;;  %v10308_v10 = vor.u32 %v4226_v51, %v4225_v59  ;;  %v3530_v41 = vadd.f32 %v3529_v29, %v9780_v3  ;;  %v7548_v54 = vpop.f32.mrb[81].mxu1  ;;  %v4449_v36 = vsel %vm11869_vm4, %v4439_v42, %v10294_v56 }
 0x433   :  { %v4853_v48 = vshrl.u32 %v4559_v33, 16  ;;  %v4856_v21 = vshll.u32 %v4559_v33, 16  ;;  %4275 = vrot.lane.b32.xlu1 %v4224_v43, %s7900_s16  ;;  %v3532_v13 = vpop.f32.mrb[82].mxu1  ;;  %v4305_v58 = vrot.slane %v10259_v17, 6  ;;  %v11870_v29 = vrot.slane %v10128_v27, 6 }
 0x434   :  { %v3865_v7 = vld [vmem:[#allocation3 + $0x38] sm:$0xf]  ;;  %4530 = vrot.lane.b32.xlu0 %v4449_v36, %s7903_s25  ;;  %vm3589_vm12 = vcmp.gt.f32.partialorder %v3530_v41, 0.0  ;;  %v3614_v51 = vmul.f32 0.1, %v3530_v41  ;;  %v3533_v59 = vadd.f32 %v3532_v13, %v9780_v3  ;;  %v7549_v1 = vpop.f32.mrb[83].mxu1 }
 0x435   :  { %v10316_v33 = vcombine.low %v3864_v62, %v3865_v7  ;;  %v4855_v30 = vrot.slane %v4853_v48, 2  ;;  %v4858_v43 = vrot.slane %v4856_v21, 3  ;;  %vm11871_vm6 = vcmask 1041408   ;;  %v10322_v42 = vld [vmem:[#allocation3 + $0x3c] sm:$0xf] }
 0x436   :  { %v4360_v54 = vsel %vm11871_vm6, %v11870_v29, %v4359_v18  ;;  %vm11611_vm15 = vcmp.ge.s32.totalorder %v9312_v22, 1  ;;  %v4228_v62 = vsel %vm11868_vm2, %v4223_v32, %v10308_v10  ;;  %v10329_v48 = vcombine.low %v3865_v7, %v10322_v42  ;;  %vm11874_vm2 = vmmov %vm11871_vm6 }
 0x437   :  { %4385 = vrot.lane.b32.xlu1 %v4360_v54, %s7902_s22  ;;  %v3639_v21 = vsel %vm3589_vm12, %v3530_v41, %v3614_v51  ;;  %vm3590_vm4 = vcmp.gt.f32.partialorder %v3533_v59, 0.0  ;;  %v3615_v36 = vmul.f32 0.1, %v3533_v59  ;;  %v11613_v1 = vrot.slane %v10316_v33, 6 }
 0x438   :  { %v3714_v27 = vsel %vm11612_vm11, %v3639_v21, 0.0  ;;  %4277 = vrot.lane.b32.xlu0 %v4228_v62, %s7900_s16  ;;  %v10335_v13 = vor.u32 %v4858_v43, %v4855_v30  ;;  %v11872_v53 = vrot.slane %v10146_v9, 6  ;;  %v4004_v7 = vrot.slane %v4002_v39, 1 }
 0x439   :  { %v7300_v29 = vpack.c.bf16 %v3714_v27, %v3714_v27  ;;  %v3640_v54 = vsel %vm3590_vm4, %v3533_v59, %v3615_v36  ;;  %v11614_v51 = vrot.slane %v10329_v48, 6  ;;  %v4451_v21 = vshrl.u32 %v10316_v33, 16 }
 0x43a   :  { %v4306_v32 = vsel %vm11871_vm6, %v11872_v53, %v4305_v58  ;;  %v3715_v41 = vsel %vm11611_vm15, %v3640_v54, 0.0  ;;  %v4454_v62 = vshll.u32 %v10316_v33, 16  ;;  %vm11873_vm12 = vcmask 125952  }
 0x43b   :  { %4331 = vrot.lane.b32.xlu1 %v4306_v32, %s7901_s19  ;;  %3840 = vst.msk [vmem:[#allocation3 + $0x40] sm:$0xf] %vm11873_vm12, %v7300_v29  ;;  %v7301_v30 = vpack.c.bf16 %v3715_v41, %v3715_v41  ;;  %v4362_v43 = vsel %vm11874_vm2, %v4359_v18, %v11613_v1  ;;  %v4000_v39 = vor.u32 %v3998_v5, %v10196_v24  ;;  %v4010_v53 = vshll.u32 %v10329_v48, 16 }
 0x43c   :  { %4387 = vrot.lane.b32.xlu0 %v4362_v43, %s7902_s22  ;;  %vm514_vm4 = vcmp.ge.s32.totalorder %v9342_v49, 1  ;;  %vm11875_vm6 = vsmask.f32 5376  ;;  %v11615_v36 = vrot.slane %v10316_v33, 7  ;;  %vm11876_vm2 = vsmask.f32 7424 }
 0x43d   :  { %v10359_v59 = vsel %vm11875_vm6, %v10248_v34, %v10335_v13  ;;  %3841 = vst.msk [vmem:[#allocation3 + $0x44] sm:$0xf] %vm11873_vm12, %v7301_v30  ;;  %v4005_v18 = vsel %vm11876_vm2, %v4000_v39, %v4004_v7  ;;  %vm564_vm15 = vcmp.le.s32.totalorder %v9342_v49, 8  ;;  %v4165_v24 = vrot.slane %v10316_v33, 1 }
 0x43e   :  { %v11616_v5 = vrot.slane %v10329_v48, 1  ;;  %vm11877_vm11 = vcmask 1041408   ;;  %v4453_v34 = vrot.slane %v4451_v21, 6  ;;  %v4456_v29 = vrot.slane %v4454_v62, 7  ;;  %v3537_v32 = vpop.f32.mrb[84].mxu1 }
 0x43f   :  { %4067 = vrot.lane.b32.xlu1 %v4005_v18, %s7899_s13  ;;  %v4308_v27 = vsel %vm11877_vm11, %v4305_v58, %v11614_v51  ;;  %vm11878_vm6 = vcmask 1040384   ;;  %v10376_v41 = vrot.slane %v4010_v53, 1  ;;  %v3538_v18 = vadd.f32 %v3537_v32, %v9780_v3  ;;  %v7552_v1 = vpop.f32.mrb[85].mxu1  ;;  %vm10397_vm11 = vmand %vm514_vm4, %vm564_vm15 }
 0x440   :  { %v4561_v54 = vsel %vm11878_vm6, %v4558_v31, %v11615_v36  ;;  %4333 = vrot.lane.b32.xlu0 %v4308_v27, %s7901_s19  ;;  %v11879_v58 = vshrl.u32 %v10259_v17, 16  ;;  %v3540_v31 = vpop.f32.mrb[86].mxu1  ;;  %v11880_v62 = vrot.slane %v10242_v35, 1  ;;  %vm11881_vm2 = vcmask 1046528  }
 0x441   :  { %v4870_v43 = vshrl.u32 %v4561_v54, 16  ;;  %v4873_v39 = vshll.u32 %v4561_v54, 16  ;;  %v11882_v54 = vrot.slane %v10259_v17, 1  ;;  %vm11883_vm6 = vmmov %vm11881_vm2  ;;  %v11884_v36 = vmov 0 }
 0x442   :  { %v4008_v21 = vor.u32 %v11879_v58, %v4004_v7  ;;  %v4166_v51 = vsel %vm11881_vm2, %v11880_v62, %v4165_v24  ;;  %v11885_v36 = vsel %vm10397_vm11, 4294967295, %v11884_v36  ;;  %vm3591_vm12 = vcmp.gt.f32.partialorder %v3538_v18, 0.0  ;;  %v7553_v58 = vpop.f32.mrb[87].mxu1  ;;  %v3867_v62 = vld [vmem:[#allocation3 + $0x40] sm:$0xf] }
 0x443   :  { %v4100_v1 = vsel %vm11883_vm6, %v11882_v54, %v11616_v5  ;;  %v4872_v32 = vrot.slane %v4870_v43, 2  ;;  %v4875_v27 = vrot.slane %v4873_v39, 3  ;;  %11886 = vst [vmem:[#allocation24_spill] sm:$0xff] %v11885_v36  ;;  %v3616_v35 = vmul.f32 0.1, %v3538_v18  ;;  %4189 = vrot.lane.b32.xlu1 %v4166_v51, %s7897_s9 }
 0x444   :  { %v3541_v7 = vadd.f32 %v3540_v31, %v9780_v3  ;;  %v4457_v30 = vor.u32 %v4456_v29, %v4453_v34  ;;  %vm11887_vm2 = vsmask.f32 7424  ;;  %v10406_v39 = vcombine.low %v10322_v42, %v3867_v62  ;;  %v3868_v34 = vld [vmem:[#allocation3 + $0x44] sm:$0xf]  ;;  %v3851_v36 = vld [vmem:[#allocation3] sm:$0xc] }
 0x445   :  { %v4013_v43 = vsel %vm11887_vm2, %v4008_v21, %v10376_v41  ;;  %v11888_v49 = vshrl.u32 %v10329_v48, 16  ;;  %v4230_v5 = vrot.slane %v4010_v53, 6  ;;  %v3641_v23 = vsel %vm3591_vm12, %v3538_v18, %v3616_v35 }
 0x446   :  { %vm11889_vm15 = vcmp.le.s32.totalorder %v9357_v19, 8  ;;  %vm11890_vm4 = vcmp.ge.s32.totalorder %v9357_v19, 1  ;;  %v11891_v3 = vmov 0  ;;  %vm3592_vm9 = vcmp.gt.f32.partialorder %v3541_v7, 0.0  ;;  %4069 = vrot.lane.b32.xlu0 %v4013_v43, %s7899_s13 }
 0x447   :  { %v4229_v54 = vrot.slane %v11888_v49, 5  ;;  %vm10414_vm6 = vmand %vm11890_vm4, %vm11889_vm15  ;;  %v3617_v51 = vmul.f32 0.1, %v3541_v7  ;;  %v10419_v42 = vor.u32 %v4875_v27, %v4872_v32  ;;  %v3716_v29 = vsel %vm10397_vm11, %v3641_v23, 0.0  ;;  %4123 = vrot.lane.b32.xlu1 %v4100_v1, %s7898_s10 }
 0x448   :  { %v11892_v3 = vsel %vm10414_vm6, 4294967295, %v11891_v3  ;;  %v10423_v53 = vcombine.low %v3867_v62, %v3868_v34  ;;  %v11622_v18 = vrot.slane %v10406_v39, 1  ;;  %v4460_v19 = vshrl.u32 %v10406_v39, 16 }
 0x449   :  { %11893 = vst [vmem:[#allocation25_spill] sm:$0xff] %v11892_v3  ;;  %v7302_v21 = vpack.c.bf16 %v3716_v29, %v3716_v29  ;;  %v3642_v31 = vsel %vm3592_vm9, %v3541_v7, %v3617_v51  ;;  %v4463_v35 = vshll.u32 %v10406_v39, 16  ;;  %vm11894_vm12 = vcmask 1046528  }
 0x44a   :  { %v3717_v58 = vsel %vm10414_vm6, %v3642_v31, 0.0  ;;  %v4168_v32 = vsel %vm11894_vm12, %v4165_v24, %v11622_v18  ;;  %v11619_v23 = vrot.slane %v10423_v53, 1  ;;  %v4462_v27 = vrot.slane %v4460_v19, 6 }
 0x44b   :  { %vm11895_vm2 = vcmask 125952   ;;  %v7303_v62 = vpack.c.bf16 %v3717_v58, %v3717_v58  ;;  %4191 = vrot.lane.b32.xlu0 %v4168_v32, %s7897_s9  ;;  %v4465_v7 = vrot.slane %v4463_v35, 7  ;;  %v4018_v1 = vshll.u32 %v10423_v53, 16 }
 0x44c   :  { %3842 = vst.msk [vmem:[#allocation3 + $0x48] sm:$0xf] %vm11895_vm2, %v7302_v21  ;;  %vm11896_vm9 = vsmask.f32 1280  ;;  %v4231_v49 = vor.u32 %v4230_v5, %v4229_v54  ;;  %v11621_v51 = vshrl.u32 %v10423_v53, 16  ;;  %vm11898_vm4 = vmmov %vm11895_vm2  ;;  %v11623_v19 = vrot.slane %v10406_v39, 7 }
 0x44d   :  { %v4458_v43 = vsel %vm11896_vm9, %v10294_v56, %v4457_v30  ;;  %vm11897_vm15 = vsmask.f32 5376  ;;  %3843 = vst.msk [vmem:[#allocation3 + $0x4c] sm:$0xf] %vm11898_vm4, %v7303_v62  ;;  %v4234_v29 = vrot.slane %v4018_v1, 6  ;;  %v11899_v21 = vrot.slane %v10329_v48, 1 }
 0x44e   :  { %v10444_v24 = vsel %vm11897_vm15, %v10335_v13, %v10419_v42  ;;  %4532 = vrot.lane.b32.xlu1 %v4458_v43, %s7903_s25  ;;  %v10454_v5 = vor.u32 %v4465_v7, %v4462_v27  ;;  %v4233_v54 = vrot.slane %v11621_v51, 5  ;;  %v11900_v13 = vrot.slane %v10316_v33, 7  ;;  %v3545_v62 = vpop.f32.mrb[88].mxu1  ;;  %v10477_v43 = vld [vmem:[%s11566_s2 + $0x3] ss:$0 sm:$0xff] }
 0x44f   :  { %v4102_v56 = vsel %vm11894_vm12, %v11899_v21, %v11619_v23  ;;  %vm11901_vm9 = vcmask 1040384   ;;  %vm11902_vm15 = vsmask.f32 2304  ;;  %v4363_v58 = vrot.slane %v10406_v39, 6  ;;  %v7556_v21 = vpop.f32.mrb[89].mxu1 }
 0x450   :  { %4125 = vrot.lane.b32.xlu0 %v4102_v56, %s7898_s10  ;;  %v4563_v31 = vsel %vm11901_vm9, %v11900_v13, %v11623_v19  ;;  %v4232_v35 = vsel %vm11902_vm15, %v10308_v10, %v4231_v49  ;;  %v10472_v7 = vor.u32 %v4234_v29, %v4233_v54  ;;  %v3546_v10 = vadd.f32 %v10477_v43, %v3545_v62 }
 0x451   :  { %v4887_v32 = vshrl.u32 %v4563_v31, 16  ;;  %v4890_v27 = vshll.u32 %v4563_v31, 16  ;;  %vm11903_vm9 = vsmask.f32 1280  ;;  %v3548_v31 = vpop.f32.mrb[90].mxu1  ;;  %v4309_v29 = vrot.slane %v10423_v53, 6 }
 0x452   :  { %4279 = vrot.lane.b32.xlu1 %v4232_v35, %s7900_s16  ;;  %v4467_v56 = vsel %vm11903_vm9, %v4457_v30, %v10454_v5  ;;  %vm11904_vm12 = vcmp.le.s32.totalorder %v9399_v15, 8  ;;  %vm11905_vm2 = vcmp.ge.s32.totalorder %v9399_v15, 1  ;;  %v11906_v30 = vmov 0  ;;  %v7557_v51 = vpop.f32.mrb[91].mxu1 }
 0x453   :  { %v3869_v13 = vld [vmem:[#allocation3 + $0x48] sm:$0xf]  ;;  %v4889_v35 = vrot.slane %v4887_v32, 2  ;;  %v4892_v23 = vrot.slane %v4890_v27, 3  ;;  %vm10492_vm6 = vmand %vm11905_vm2, %vm11904_vm12  ;;  %vm3593_vm9 = vcmp.gt.f32.partialorder %v3546_v10, 0.0  ;;  %v3549_v21 = vadd.f32 %v10477_v43, %v3548_v31 }
 0x454   :  { %4534 = vrot.lane.b32.xlu0 %v4467_v56, %s7903_s25  ;;  %v10486_v54 = vcombine.low %v3868_v34, %v3869_v13  ;;  %v11907_v30 = vsel %vm10492_vm6, 4294967295, %v11906_v30  ;;  %v3618_v62 = vmul.f32 0.1, %v3546_v10  ;;  %v11909_v56 = vrot.slane %v10316_v33, 6  ;;  %v10500_v18 = vld [vmem:[#allocation3 + $0x4c] sm:$0xf] }
 0x455   :  { %11908 = vst [vmem:[#allocation26_spill] sm:$0xff] %v11907_v30  ;;  %vm11910_vm15 = vcmask 1041408   ;;  %vm11911_vm4 = vsmask.f32 2304  ;;  %v10507_v32 = vcombine.low %v3869_v13, %v10500_v18  ;;  %v4020_v27 = vrot.slane %v4018_v1, 1 }
 0x456   :  { %v4364_v34 = vsel %vm11910_vm15, %v11909_v56, %v4363_v58  ;;  %v4236_v15 = vsel %vm11911_vm4, %v4231_v49, %v10472_v7  ;;  %v3643_v19 = vsel %vm3593_vm9, %v3546_v10, %v3618_v62  ;;  %vm11912_vm12 = vcmp.le.s32.totalorder %v9404_v63, 8 }
 0x457   :  { %4389 = vrot.lane.b32.xlu1 %v4364_v34, %s7902_s22  ;;  %vm11913_vm11 = vcmp.ge.s32.totalorder %v9404_v63, 1  ;;  %v11914_v33 = vmov 0  ;;  %vm3594_vm15 = vcmp.gt.f32.partialorder %v3549_v21, 0.0  ;;  %v3619_v51 = vmul.f32 0.1, %v3549_v21 }
 0x458   :  { %vm10513_vm1 = vmand %vm11913_vm11, %vm11912_vm12  ;;  %v3718_v49 = vsel %vm10492_vm6, %v3643_v19, 0.0  ;;  %4281 = vrot.lane.b32.xlu0 %v4236_v15, %s7900_s16  ;;  %v4469_v1 = vshrl.u32 %v10486_v54, 16  ;;  %v4472_v10 = vshll.u32 %v10486_v54, 16  ;;  %v10523_v13 = vor.u32 %v4892_v23, %v4889_v35  ;;  %v3553_v19 = vpop.f32.mrb[92].mxu1 }
 0x459   :  { %v11915_v33 = vsel %vm10513_vm1, 4294967295, %v11914_v33  ;;  %v7304_v63 = vpack.c.bf16 %v3718_v49, %v3718_v49  ;;  %v3644_v62 = vsel %vm3594_vm15, %v3549_v21, %v3619_v51  ;;  %v11917_v56 = vrot.slane %v10329_v48, 6  ;;  %v7560_v51 = vpop.f32.mrb[93].mxu1 }
 0x45a   :  { %11916 = vst [vmem:[#allocation27_spill] sm:$0xff] %v11915_v33  ;;  %vm11918_vm11 = vcmask 1041408   ;;  %v3719_v31 = vsel %vm10513_vm1, %v3644_v62, 0.0  ;;  %v11919_v15 = vshrl.u32 %v10329_v48, 16  ;;  %vm11920_vm15 = vcmask 125952  }
 0x45b   :  { %v4310_v34 = vsel %vm11918_vm11, %v11917_v56, %v4309_v29  ;;  %3844 = vst.msk [vmem:[#allocation3 + $0x50] sm:$0xf] %vm11920_vm15, %v7304_v63  ;;  %v7305_v35 = vpack.c.bf16 %v3719_v31, %v3719_v31  ;;  %v3554_v21 = vadd.f32 %v10477_v43, %v3553_v19  ;;  %v11921_v49 = vrot.slane %v10486_v54, 6 }
 0x45c   :  { %4335 = vrot.lane.b32.xlu1 %v4310_v34, %s7901_s19  ;;  %v4016_v30 = vor.u32 %v11919_v15, %v10376_v41  ;;  %v4026_v56 = vshll.u32 %v10507_v32, 16  ;;  %v3556_v34 = vpop.f32.mrb[94].mxu1  ;;  %vm11922_vm2 = vsmask.f32 7424  ;;  %v4471_v15 = vrot.slane %v4469_v1, 6 }
 0x45d   :  { %v4366_v62 = vsel %vm11918_vm11, %v4363_v58, %v11921_v49  ;;  %v4474_v23 = vrot.slane %v4472_v10, 7  ;;  %vm11923_vm15 = vsmask.f32 5376  ;;  %vm11924_vm9 = vcmask 125952   ;;  %v7561_v1 = vpop.f32.mrb[95].mxu1 }
 0x45e   :  { %4391 = vrot.lane.b32.xlu0 %v4366_v62, %s7902_s22  ;;  %v4021_v41 = vsel %vm11922_vm2, %v4016_v30, %v4020_v27  ;;  %v10549_v31 = vsel %vm11923_vm15, %v10419_v42, %v10523_v13  ;;  %3845 = vst.msk [vmem:[#allocation3 + $0x54] sm:$0xf] %vm11924_vm9, %v7305_v35  ;;  %vm11925_vm12 = vcmp.le.s32.totalorder %v9444_v40, 8  ;;  %vm11926_vm11 = vcmp.ge.s32.totalorder %v9444_v40, 1  ;;  %v11932_v35 = vld [vmem:[#allocation13_spill] sm:$0xff] }
 0x45f   :  { %vm10556_vm4 = vmand %vm11926_vm11, %vm11925_vm12  ;;  %v11927_v58 = vmov 0  ;;  %vm3595_vm1 = vcmp.gt.f32.partialorder %v3554_v21, 0.0  ;;  %v3620_v63 = vmul.f32 0.1, %v3554_v21  ;;  %v3557_v30 = vadd.f32 %v10477_v43, %v3556_v34 }
 0x460   :  { %v11928_v58 = vsel %vm10556_vm4, 4294967295, %v11927_v58  ;;  %v4169_v10 = vrot.slane %v10486_v54, 1  ;;  %4071 = vrot.lane.b32.xlu1 %v4021_v41, %s7899_s13  ;;  %v11930_v42 = vrot.slane %v10507_v32, 6  ;;  %vm11931_vm2 = vcmask 1041408   ;;  %v10577_v41 = vpop.permute.xlu0 %4321 }
 0x461   :  { %11929 = vst [vmem:[#allocation28_spill] sm:$0xff] %v11928_v58  ;;  %vm521_vm9 = vcmp.ge.s32.totalorder %v11932_v35, 1  ;;  %v11633_v51 = vrot.slane %v10486_v54, 7  ;;  %v3645_v49 = vsel %vm3595_vm1, %v3554_v21, %v3620_v63  ;;  %vm11933_vm12 = vcmp.le.s32.totalorder %v9467_v55, 8 }
 0x462   :  { %v4312_v19 = vsel %vm11931_vm2, %v4309_v29, %v11930_v42  ;;  %vm11934_vm15 = vcmp.ge.s32.totalorder %v9467_v55, 1  ;;  %v11935_v62 = vmov 0  ;;  %vm3596_vm6 = vcmp.gt.f32.partialorder %v3557_v30, 0.0 }
 0x463   :  { %vm10573_vm11 = vmand %vm11934_vm15, %vm11933_vm12  ;;  %v3621_v34 = vmul.f32 0.1, %v3557_v30  ;;  %v10579_v29 = vrot.slane %v4026_v56, 1  ;;  %v3720_v1 = vsel %vm10556_vm4, %v3645_v49, 0.0  ;;  %4337 = vrot.lane.b32.xlu0 %v4312_v19, %s7901_s19  ;;  %v10584_v21 = vor.u32 %v4474_v23, %v4471_v15  ;;  %v3561_v15 = vpop.f32.mrb[96].mxu1 }
 0x464   :  { %v11936_v62 = vsel %vm10573_vm11, 4294967295, %v11935_v62  ;;  %v11634_v63 = vshrl.u32 %v10507_v32, 16  ;;  %v11938_v55 = vrot.slane %v10406_v39, 7  ;;  %vm11939_vm1 = vcmask 1040384  }
 0x465   :  { %11937 = vst [vmem:[#allocation13_spill] sm:$0xff] %v11936_v62  ;;  %v7306_v40 = vpack.c.bf16 %v3720_v1, %v3720_v1  ;;  %v3646_v33 = vsel %vm3596_vm6, %v3557_v30, %v3621_v34  ;;  %v11940_v3 = vrot.slane %v10406_v39, 1  ;;  %vm11941_vm2 = vcmask 1046528   ;;  %v7564_v34 = vpop.f32.mrb[97].mxu1 }
 0x466   :  { %v10592_v42 = vsel %vm11939_vm1, %v11938_v55, %v11633_v51  ;;  %v11942_v49 = vshrl.u32 %v10423_v53, 16  ;;  %v3721_v23 = vsel %vm10573_vm11, %v3646_v33, 0.0  ;;  %vm570_vm12 = vcmp.le.s32.totalorder %v9500_v0, 8  ;;  %v3871_v55 = vld [vmem:[#allocation3 + $0x50] sm:$0xf] }
 0x467   :  { %v4170_v58 = vsel %vm11941_vm2, %v11940_v3, %v4169_v10  ;;  %vm11943_vm1 = vcmask 125952   ;;  %v7307_v30 = vpack.c.bf16 %v3721_v23, %v3721_v23  ;;  %v3562_v39 = vadd.f32 %v10477_v43, %v3561_v15  ;;  %v10606_v3 = vpop.permute.xlu0 %4111  ;;  %v10627_v23 = vld [vmem:[#allocation3 + $0x54] sm:$0xf] }
 0x468   :  { %v4024_v19 = vor.u32 %v11942_v49, %v4020_v27  ;;  %4193 = vrot.lane.b32.xlu1 %v4170_v58, %s7897_s9  ;;  %3846 = vst.msk [vmem:[#allocation3 + $0x58] sm:$0xf] %vm11943_vm1, %v7306_v40  ;;  %vm11944_vm6 = vsmask.f32 7424  ;;  %v10611_v33 = vcombine.low %v10500_v18, %v3871_v55  ;;  %vm11945_vm2 = vcmp.le.s32.totalorder %v9475_v12, 89  ;;  %v3564_v40 = vpop.f32.mrb[98].mxu1 }
 0x469   :  { %vm10617_vm15 = vmand %vm11945_vm2, %vm521_vm9  ;;  %v11948_v1 = vrot.slane %v10507_v32, 1  ;;  %v11949_v49 = vrot.slane %v10423_v53, 1  ;;  %vm11950_vm1 = vcmask 1046528   ;;  %v4237_v12 = vrot.slane %v11634_v63, 5 }
 0x46a   :  { %v4029_v27 = vsel %vm11944_vm6, %v4024_v19, %v10579_v29  ;;  %vm11951_vm6 = vsmask.f32 1280  ;;  %v4238_v15 = vrot.slane %v4026_v56, 6  ;;  %vm11952_vm9 = vcmask 125952  }
 0x46b   :  { %4073 = vrot.lane.b32.xlu0 %v4029_v27, %s7899_s13  ;;  %v4104_v19 = vsel %vm11950_vm1, %v11949_v49, %v11948_v1  ;;  %v4476_v18 = vsel %vm11951_vm6, %v10454_v5, %v10584_v21  ;;  %3847 = vst.msk [vmem:[#allocation3 + $0x5c] sm:$0xf] %vm11952_vm9, %v7307_v30  ;;  %vm11953_vm2 = vcmp.ge.s32.totalorder %v9500_v0, 1  ;;  %v11954_v34 = vmov 0  ;;  %v7565_v49 = vpop.f32.mrb[99].mxu1 }
 0x46c   :  { %vm10639_vm11 = vmand %vm11953_vm2, %vm570_vm12  ;;  %vm3597_vm1 = vcmp.gt.f32.partialorder %v3562_v39, 0.0  ;;  %v3622_v27 = vmul.f32 0.1, %v3562_v39  ;;  %v3565_v1 = vadd.f32 %v10477_v43, %v3564_v40  ;;  %v10645_v5 = vcombine.low %v3871_v55, %v10627_v23  ;;  %4127 = vrot.lane.b32.xlu1 %v4104_v19, %s7898_s10  ;;  %v4058_v40 = vpop.permute.xlu0 %4057  ;;  %v3569_v28 = vpop.f32.mrb[100].mxu1 }
 0x46d   :  { %v11955_v34 = vsel %vm10639_vm11, 4294967295, %v11954_v34  ;;  %v11641_v56 = vrot.slane %v10611_v33, 1  ;;  %v4478_v30 = vshrl.u32 %v10611_v33, 16  ;;  %v4481_v0 = vshll.u32 %v10611_v33, 16  ;;  %v10676_v28 = vpop.permute.xlu1 %4113 }
 0x46e   :  { %11956 = vst [vmem:[#allocation29_spill] sm:$0xff] %v11955_v34  ;;  %v4904_v51 = vshrl.u32 %v10592_v42, 16  ;;  %v3647_v63 = vsel %vm3597_vm1, %v3562_v39, %v3622_v27  ;;  %vm11957_vm12 = vcmp.le.s32.totalorder %v11932_v35, 8  ;;  %v11958_v43 = vmov 0  ;;  %v10672_v34 = vld [vmem:[#allocation3 + $0x6c] sm:$0xf] }
 0x46f   :  { %vm10656_vm6 = vmand %vm10617_vm15, %vm11957_vm12  ;;  %vm3598_vm9 = vcmp.gt.f32.partialorder %v3565_v1, 0.0  ;;  %v3623_v55 = vmul.f32 0.1, %v3565_v1  ;;  %v4907_v19 = vshll.u32 %v10592_v42, 16  ;;  %v3722_v49 = vsel %vm10639_vm11, %v3647_v63, 0.0 }
 0x470   :  { %v11959_v43 = vsel %vm10656_vm6, 4294967295, %v11958_v43  ;;  %vm11961_vm2 = vcmask 1046528   ;;  %v11643_v35 = vrot.slane %v10645_v5, 1  ;;  %v4480_v27 = vrot.slane %v4478_v30, 6  ;;  %4536 = vrot.lane.b32.xlu1 %v4476_v18, %s7903_s25  ;;  %v4268_v30 = vpop.permute.xlu0 %4267 }
 0x471   :  { %11960 = vst [vmem:[#allocation30_spill] sm:$0xff] %v11959_v43  ;;  %v4172_v39 = vsel %vm11961_vm2, %v4169_v10, %v11641_v56  ;;  %v7308_v58 = vpack.c.bf16 %v3722_v49, %v3722_v49  ;;  %v3648_v62 = vsel %vm3598_vm9, %v3565_v1, %v3623_v55  ;;  %v4239_v22 = vor.u32 %v4238_v15, %v4237_v12  ;;  %v7568_v1 = vpop.f32.mrb[101].mxu1  ;;  %v3885_v49 = vld [vmem:[#allocation3 + $0x70] sm:$0x3]  ;;  %vm11964_vm1 = vmmov %vm11961_vm2 }
 0x472   :  { %4195 = vrot.lane.b32.xlu0 %v4172_v39, %s7897_s9  ;;  %v4483_v38 = vrot.slane %v4481_v0, 7  ;;  %v3723_v42 = vsel %vm10656_vm6, %v3648_v62, 0.0  ;;  %v4034_v63 = vshll.u32 %v10645_v5, 16  ;;  %vm11962_vm15 = vcmask 125952   ;;  %v7872_v0 = vld [vmem:[#allocation3 + $0x4] sm:$0xf] }
 0x473   :  { %3848 = vst.msk [vmem:[#allocation3 + $0x60] sm:$0xf] %vm11962_vm15, %v7308_v58  ;;  %v7309_v10 = vpack.c.bf16 %v3723_v42, %v3723_v42  ;;  %v4038_v55 = vshrl.u32 %v10645_v5, 16  ;;  %v4906_v12 = vrot.slane %v4904_v51, 2  ;;  %v4909_v15 = vrot.slane %v4907_v19, 3  ;;  %v3572_v62 = vpop.f32.mrb[102].mxu1  ;;  %vm11965_vm12 = vmmov %vm11962_vm15 }
 0x474   :  { %v7088_v39 = vcombine.low %v3851_v36, %v7872_v0  ;;  %v11963_v18 = vrot.slane %v10507_v32, 1  ;;  %v10683_v58 = vor.u32 %v4483_v38, %v4480_v27  ;;  %v4242_v42 = vrot.slane %v4034_v63, 6  ;;  %v3873_v1 = vld [vmem:[#allocation3 + $0x58] sm:$0xf]  ;;  %v3874_v43 = vld [vmem:[#allocation3 + $0x5c] sm:$0xf]  ;;  %v4378_v38 = vpop.permute.xlu0 %4377 }
 0x475   :  { %3849 = vst.msk [vmem:[#allocation3 + $0x64] sm:$0xf] %vm11965_vm12, %v7309_v10  ;;  %v7569_v51 = vpop.f32.mrb[103].mxu1  ;;  %vm11966_vm9 = vsmask.f32 2304  ;;  %v4367_v19 = vrot.slane %v10611_v33, 6  ;;  %v7120_v62 = vcombine.low %v10672_v34, %v3885_v49  ;;  %v10692_v27 = vcombine.low %v3873_v1, %v3874_v43 }
 0x476   :  { %v4106_v56 = vsel %vm11964_vm1, %v11963_v18, %v11643_v35  ;;  %v4240_v36 = vsel %vm11966_vm9, %v10472_v7, %v4239_v22  ;;  %v4241_v0 = vrot.slane %v4038_v55, 5  ;;  %v10695_v18 = vcombine.low %v10627_v23, %v3873_v1  ;;  %v10700_v51 = vpop.permute.xlu1 %4323 }
 0x477   :  { %4129 = vrot.lane.b32.xlu0 %v4106_v56, %s7898_s10  ;;  %4283 = vrot.lane.b32.xlu1 %v4240_v36, %s7900_s16  ;;  %v10697_v10 = vor.u32 %v4909_v15, %v4906_v12  ;;  %vm11967_vm2 = vcmask 130048   ;;  %vm11968_vm15 = vsmask.f32 1280  ;;  %v11969_v49 = vrot.slane %v10486_v54, 6 }
 0x478   :  { %v4578_v56 = vsel %vm11967_vm2, %v7088_v39, %v4058_v40  ;;  %v4485_v7 = vsel %vm11968_vm15, %v10584_v21, %v10683_v58  ;;  %v10705_v35 = vor.u32 %v4242_v42, %v4241_v0  ;;  %vm11970_vm1 = vcmask 1041408   ;;  %v10716_v39 = vld [vmem:[#allocation3 + $0x68] sm:$0xf]  ;;  %v4180_v1 = vpop.permute.xlu0 %4179 }
 0x479   :  { %v4368_v36 = vsel %vm11970_vm1, %v11969_v49, %v4367_v19  ;;  %v4313_v23 = vrot.slane %v10645_v5, 6  ;;  %v11971_v40 = vshrl.u32 %v10507_v32, 16  ;;  %v4036_v15 = vrot.slane %v4034_v63, 1 }
 0x47a   :  { %v4574_v21 = vrot.slane %v7120_v62, 7  ;;  %vm11972_vm12 = vcmask 261120   ;;  %vm11973_vm9 = vsmask.f32 5376  ;;  %vm11974_vm2 = vcmask 392192  }
 0x47b   :  { %4538 = vrot.lane.b32.xlu0 %v4485_v7, %s7903_s25  ;;  %4393 = vrot.lane.b32.xlu1 %v4368_v36, %s7902_s22  ;;  %v4032_v12 = vor.u32 %v11971_v40, %v10579_v29  ;;  %v4604_v42 = vsel %vm11972_vm12, %v4578_v56, %v10606_v3  ;;  %v4042_v7 = vshll.u32 %v10692_v27, 16  ;;  %v10725_v49 = vsel %vm11973_vm9, %v10523_v13, %v10697_v10  ;;  %v4060_v29 = vpop.permute.xlu1 %4059 }
 0x47c   :  { %v4630_v36 = vsel %vm11974_vm2, %v4604_v42, %v4180_v1  ;;  %vm11975_vm15 = vsmask.f32 2304  ;;  %v3878_v62 = vld [vmem:[#allocation3 + $0x64] sm:$0xf]  ;;  %v4487_v40 = vshrl.u32 %v10695_v18, 16  ;;  %v4490_v3 = vshll.u32 %v10695_v18, 16  ;;  %v4523_v44 = vpop.permute.xlu0 %4522 }
 0x47d   :  { %v4244_v63 = vsel %vm11975_vm15, %v4239_v22, %v10705_v35  ;;  %vm11976_vm1 = vcmask 523264   ;;  %v11977_v0 = vrot.slane %v10507_v32, 6  ;;  %vm11978_vm12 = vcmask 1041408  }
 0x47e   :  { %v4656_v56 = vsel %vm11976_vm1, %v4630_v36, %v4268_v30  ;;  %v10738_v61 = vcombine.low %v3878_v62, %v10716_v39  ;;  %vm11979_vm9 = vcmask 654336   ;;  %vm11980_vm2 = vsmask.f32 7424  ;;  %v3875_v36 = vld [vmem:[#allocation3 + $0x60] sm:$0xf]  ;;  %vm11983_vm1 = vmmov %vm11978_vm12 }
 0x47f   :  { %4285 = vrot.lane.b32.xlu0 %v4244_v63, %s7900_s16  ;;  %v4314_v13 = vsel %vm11978_vm12, %v11977_v0, %v4313_v23  ;;  %v4682_v22 = vsel %vm11979_vm9, %v4656_v56, %v10577_v41  ;;  %v4037_v1 = vsel %vm11980_vm2, %v4032_v12, %v4036_v15  ;;  %v4173_v30 = vrot.slane %v10695_v18, 1  ;;  %v4270_v11 = vpop.permute.xlu1 %4269 }
 0x480   :  { %4339 = vrot.lane.b32.xlu1 %v4314_v13, %s7901_s19  ;;  %vm11981_vm15 = vcmask 785408   ;;  %v11650_v50 = vrot.slane %v10738_v61, 7  ;;  %v4040_v60 = vor.u32 %v4038_v55, %v4036_v15  ;;  %v11982_v42 = vrot.slane %v10695_v18, 6 }
 0x481   :  { %v4708_v63 = vsel %vm11981_vm15, %v4682_v22, %v4378_v38  ;;  %v4489_v45 = vrot.slane %v4487_v40, 6  ;;  %v4492_v41 = vrot.slane %v4490_v3, 7  ;;  %v4246_v56 = vrot.slane %v4042_v7, 6  ;;  %vm11989_vm15 = vmmov %vm11983_vm1 }
 0x482   :  { %v4370_v13 = vsel %vm11983_vm1, %v4367_v19, %v11982_v42  ;;  %vm11984_vm12 = vcmask 916480   ;;  %vm11985_vm9 = vcmask 1040384   ;;  %v10757_v22 = vcombine.low %v3874_v43, %v3875_v36 }
 0x483   :  { %v4734_v12 = vsel %vm11984_vm12, %v4708_v63, %v4523_v44  ;;  %4395 = vrot.lane.b32.xlu0 %v4370_v13, %s7902_s22  ;;  %v4575_v38 = vsel %vm11985_vm9, %v11650_v50, %v4574_v21  ;;  %v11986_v55 = vshrl.u32 %v10692_v27, 16  ;;  %vm11987_vm2 = vcmask 130048   ;;  %v10775_v50 = vpop.permute.xlu0 %4325 }
 0x484   :  { %v4580_v0 = vsel %vm11987_vm2, %v9816_v20, %v4060_v29  ;;  %4075 = vrot.lane.b32.xlu1 %v4037_v1, %s7899_s13  ;;  %v4989_v19 = vshrl.u32 %v4575_v38, 16  ;;  %v4992_v40 = vshll.u32 %v4575_v38, 16  ;;  %v4107_v44 = vrot.slane %v10692_v27, 1  ;;  %v4182_v1 = vpop.permute.xlu1 %4181 }
 0x485   :  { %v4245_v15 = vrot.slane %v11986_v55, 5  ;;  %v11988_v3 = vrot.slane %v10692_v27, 6  ;;  %v11990_v21 = vrot.slane %v10611_v33, 1  ;;  %vm11991_vm1 = vcmask 1046528  }
 0x486   :  { %v10771_v63 = vrot.slane %v4042_v7, 1  ;;  %v10773_v13 = vcombine.low %v3875_v36, %v3878_v62  ;;  %v4778_v55 = vshrl.u32 %v4734_v12, 16  ;;  %v4781_v29 = vshll.u32 %v4734_v12, 16 }
 0x487   :  { %v4316_v42 = vsel %vm11989_vm15, %v4313_v23, %v11988_v3  ;;  %v4174_v43 = vsel %vm11991_vm1, %v11990_v21, %v4173_v30  ;;  %v4991_v38 = vrot.slane %v4989_v19, 2  ;;  %v4994_v57 = vrot.slane %v4992_v40, 3  ;;  %v3876_v21 = vld [vmem:[#allocation3 + $0x64] sm:$0x7] }
 0x488   :  { %vm11992_vm12 = vcmask 261120   ;;  %4341 = vrot.lane.b32.xlu0 %v4316_v42, %s7901_s19  ;;  %v11655_v23 = vrot.slane %v10757_v22, 1  ;;  %v10781_v3 = vor.u32 %v4492_v41, %v4489_v45  ;;  %v10783_v7 = vor.u32 %v4246_v56, %v4245_v15  ;;  %4197 = vrot.lane.b32.xlu1 %v4174_v43, %s7897_s9 }
 0x489   :  { %v4606_v2 = vsel %vm11992_vm12, %v4580_v0, %v10676_v28  ;;  %vm11993_vm9 = vcmask 392192   ;;  %v10787_v12 = vor.u32 %v4994_v57, %v4991_v38  ;;  %v4496_v19 = vshrl.u32 %v10757_v22, 16  ;;  %v4062_v38 = vpop.permute.xlu0 %4061 }
 0x48a   :  { %v4632_v62 = vsel %vm11993_vm9, %v4606_v2, %v4182_v1  ;;  %v4499_v40 = vshll.u32 %v10757_v22, 16  ;;  %v11654_v28 = vrot.slane %v10773_v13, 1  ;;  %v4371_v0 = vrot.slane %v10757_v22, 6  ;;  %v4380_v2 = vpop.permute.xlu1 %4379 }
 0x48b   :  { %v11653_v45 = vrot.slane %v10738_v61, 6  ;;  %v10794_v41 = vrot.slane %v4778_v55, 2  ;;  %v10796_v56 = vrot.slane %v4781_v29, 3  ;;  %7142 = vmatprep.mubr.msk.bf16.mxu1 %vm11987_vm2, %v10787_v12  ;;  %vm11994_vm15 = vsmask.f32 7424 }
 0x48c   :  { %v4045_v57 = vsel %vm11994_vm15, %v4040_v60, %v10771_v63  ;;  %v4566_v15 = vrot.slane %v10611_v33, 7  ;;  %vm11995_vm1 = vcmask 523264   ;;  %v11996_v43 = vrot.slane %v10645_v5, 1 }
 0x48d   :  { %v4658_v42 = vsel %vm11995_vm1, %v4632_v62, %v4270_v11  ;;  %4077 = vrot.lane.b32.xlu0 %v4045_v57, %s7899_s13  ;;  %vm11997_vm12 = vcmask 1046528   ;;  %vm11998_vm9 = vsmask.f32 1280  ;;  %v10811_v1 = vcombine.low %v3875_v36, %v3876_v21 }
 0x48e   :  { %v4108_v55 = vsel %vm11997_vm12, %v11996_v43, %v4107_v44  ;;  %v4494_v29 = vsel %vm11998_vm9, %v10683_v58, %v10781_v3  ;;  %vm11999_vm2 = vmmov %vm11997_vm12  ;;  %vm12000_vm15 = vsmask.f32 2304  ;;  %v4498_v33 = vrot.slane %v4496_v19, 6  ;;  %v4116_v19 = vpop.permute.xlu1 %4115 }
 0x48f   :  { %4131 = vrot.lane.b32.xlu1 %v4108_v55, %s7898_s10  ;;  %v4176_v60 = vsel %vm11999_vm2, %v4173_v30, %v11655_v23  ;;  %v4248_v11 = vsel %vm12000_vm15, %v10705_v35, %v10783_v7  ;;  %v4501_v62 = vrot.slane %v4499_v40, 7  ;;  %vm12001_vm1 = vmmov %vm11999_vm2  ;;  %vm12002_vm12 = vcmask 1041408  }
 0x490   :  { %v4110_v57 = vsel %vm12001_vm1, %v4107_v44, %v11654_v28  ;;  %v4374_v58 = vsel %vm12002_vm12, %v4371_v0, %v11653_v45  ;;  %v12003_v36 = vrot.slane %v10695_v18, 6  ;;  %vm12004_vm9 = vmmov %vm12002_vm12  ;;  %vm12005_vm2 = vcmask 654336  }
 0x491   :  { %v4684_v35 = vsel %vm12005_vm2, %v4658_v42, %v10700_v51  ;;  %v12006_v40 = vrot.slane %v10486_v54, 7  ;;  %vm12007_vm15 = vcmask 1040384   ;;  %v4568_v55 = vrot.slane %v10695_v18, 7  ;;  %4199 = vrot.lane.b32.xlu0 %v4176_v60, %s7897_s9  ;;  %v4184_v51 = vpop.permute.xlu0 %4183 }
 0x492   :  { %v4372_v21 = vsel %vm12004_vm9, %v12003_v36, %v4371_v0  ;;  %vm12008_vm1 = vcmask 130048   ;;  %v4050_v0 = vshll.u32 %v10811_v1, 16  ;;  %vm12009_vm12 = vcmask 261120   ;;  %vm12010_vm9 = vmmov %vm12007_vm15  ;;  %v4525_v43 = vpop.permute.xlu1 %4524 }
 0x493   :  { %v4567_v44 = vsel %vm12007_vm15, %v12006_v40, %v4566_v15  ;;  %v4582_v45 = vsel %vm12008_vm1, %v9861_v26, %v4062_v38  ;;  %4540 = vrot.lane.b32.xlu1 %v4494_v29, %s7903_s25  ;;  %v10844_v42 = vor.u32 %v4501_v62, %v4498_v33  ;;  %v4569_v54 = vsel %vm12010_vm9, %v4566_v15, %v4568_v55  ;;  %vm12012_vm15 = vmmov %vm12010_vm9 }
 0x494   :  { %v4921_v36 = vshrl.u32 %v4567_v44, 16  ;;  %v4924_v28 = vshll.u32 %v4567_v44, 16  ;;  %v4608_v23 = vsel %vm12009_vm12, %v4582_v45, %v4116_v19  ;;  %v4570_v18 = vrot.slane %v10757_v22, 7  ;;  %vm12014_vm1 = vmmov %vm12010_vm9 }
 0x495   :  { %vm12011_vm2 = vcmask 785408   ;;  %v4250_v38 = vshrl.u32 %v10773_v13, 16  ;;  %v4938_v6 = vshrl.u32 %v4569_v54, 16  ;;  %v4941_v44 = vshll.u32 %v4569_v54, 16  ;;  %4133 = vrot.lane.b32.xlu0 %v4110_v57, %s7898_s10 }
 0x496   :  { %v4710_v40 = vsel %vm12011_vm2, %v4684_v35, %v4380_v2  ;;  %v4923_v60 = vrot.slane %v4921_v36, 2  ;;  %v4926_v30 = vrot.slane %v4924_v28, 3  ;;  %v4571_v45 = vsel %vm12012_vm15, %v4568_v55, %v4570_v18  ;;  %v10859_v36 = vpop.permute.xlu0 %4117 }
 0x497   :  { %v12013_v29 = vrot.slane %v10738_v61, 7  ;;  %vm12015_vm12 = vcmask 392192   ;;  %vm12016_vm9 = vcmask 916480   ;;  %v4253_v2 = vshll.u32 %v10773_v13, 16  ;;  %4287 = vrot.lane.b32.xlu1 %v4248_v11, %s7900_s16 }
 0x498   :  { %v4634_v62 = vsel %vm12015_vm12, %v4608_v23, %v4184_v51  ;;  %v4736_v15 = vsel %vm12016_vm9, %v4710_v40, %v4525_v43  ;;  %v4927_v35 = vor.u32 %v4926_v30, %v4923_v60  ;;  %v4940_v55 = vrot.slane %v4938_v6, 2 }
 0x499   :  { %v4573_v33 = vsel %vm12014_vm1, %v4570_v18, %v12013_v29  ;;  %v4785_v19 = vshrl.u32 %v4736_v15, 16  ;;  %v4788_v28 = vshll.u32 %v4736_v15, 16  ;;  %v4943_v54 = vrot.slane %v4941_v44, 3  ;;  %v4272_v29 = vpop.permute.xlu1 %4271  ;;  %4399 = vrot.lane.b32.xlu0 %v4374_v58, %s7902_s22 }
 0x49a   :  { %vm12017_vm2 = vsmask.f32 5376  ;;  %v4955_v23 = vshrl.u32 %v4571_v45, 16  ;;  %v4958_v51 = vshll.u32 %v4571_v45, 16  ;;  %v4972_v43 = vshrl.u32 %v4573_v33, 16 }
 0x49b   :  { %v10863_v18 = vsel %vm12017_vm2, %v10697_v10, %v4927_v35  ;;  %v4787_v40 = vrot.slane %v4785_v19, 2  ;;  %v4790_v57 = vrot.slane %v4788_v28, 3  ;;  %v4944_v4 = vor.u32 %v4943_v54, %v4940_v55  ;;  %4397 = vrot.lane.b32.xlu1 %v4372_v21, %s7902_s22  ;;  %v4527_v10 = vpop.permute.xlu0 %4526  ;;  %vm12019_vm1 = vmmov %vm12017_vm2 }
 0x49c   :  { %v4975_v30 = vshll.u32 %v4573_v33, 16  ;;  %vm12018_vm15 = vcmask 523264   ;;  %v4957_v11 = vrot.slane %v4955_v23, 2  ;;  %v4960_v15 = vrot.slane %v4958_v51, 3  ;;  %vm12023_vm2 = vmmov %vm12019_vm1 }
 0x49d   :  { %v4660_v60 = vsel %vm12018_vm15, %v4634_v62, %v4272_v29  ;;  %v4974_v6 = vrot.slane %v4972_v43, 2  ;;  %v4791_v44 = vor.u32 %v4790_v57, %v4787_v40  ;;  %v4317_v47 = vrot.slane %v10773_v13, 6  ;;  %v4382_v55 = vpop.permute.xlu1 %4381 }
 0x49e   :  { %v10870_v45 = vsel %vm12019_vm1, %v4927_v35, %v4944_v4  ;;  %v4977_v19 = vrot.slane %v4975_v30, 3  ;;  %vm12020_vm12 = vsmask.f32 1280  ;;  %v4052_v62 = vrot.slane %v4050_v0, 1  ;;  %v3883_v35 = vld [vmem:[#allocation3 + $0x70] sm:$0x1] }
 0x49f   :  { %v4503_v33 = vsel %vm12020_vm12, %v10781_v3, %v10844_v42  ;;  %v4252_v28 = vrot.slane %v4250_v38, 5  ;;  %v4961_v58 = vor.u32 %v4960_v15, %v4957_v11  ;;  %vm12021_vm9 = vcmask 654336   ;;  %vm12028_vm12 = vmmov %vm12023_vm2 }
 0x4a0   :  { %v4686_v54 = vsel %vm12021_vm9, %v4660_v60, %v10775_v50  ;;  %v12022_v21 = vor.u32 %v10796_v56, %v10794_v41  ;;  %v4255_v51 = vrot.slane %v4253_v2, 6  ;;  %v4978_v43 = vor.u32 %v4977_v19, %v4974_v6  ;;  %4542 = vrot.lane.b32.xlu0 %v4503_v33, %s7903_s25  ;;  %v4274_v2 = vpop.permute.xlu0 %4273  ;;  %vm12032_vm6 = vmmov %vm12028_vm12 }
 0x4a1   :  { %vm12024_vm15 = vcmask 785408   ;;  %v12025_v3 = vrot.slane %v10738_v61, 1  ;;  %v12026_v0 = vrot.slane %v10757_v22, 1  ;;  %vm12027_vm1 = vcmask 1046528   ;;  %v4328_v11 = vpop.permute.xlu1 %4327 }
 0x4a2   :  { %v4792_v23 = vsel %vm12023_vm2, %v12022_v21, %v4791_v44  ;;  %v4712_v40 = vsel %vm12024_vm15, %v4686_v54, %v4382_v55  ;;  %v4054_v50 = vshrl.u32 %v10811_v1, 16  ;;  %v10890_v41 = vsel %vm12028_vm12, %v4944_v4, %v4961_v58  ;;  %vm12031_vm15 = vmmov %vm12028_vm12 }
 0x4a3   :  { %5136 = vmatmul.mubr.bf16.vlgmr.msra.gmra.mrb[52].mxu0 %v4792_v23  ;;  %v4178_v38 = vsel %vm12027_vm1, %v12026_v0, %v12025_v3  ;;  %vm12029_vm9 = vcmask 916480   ;;  %vm12030_vm2 = vcmask 130048   ;;  %v10897_v57 = vsel %vm12031_vm15, %v4961_v58, %v4978_v43 }
 0x4a4   :  { %v4738_v56 = vsel %vm12029_vm9, %v4712_v40, %v4527_v10  ;;  %4201 = vrot.lane.b32.xlu1 %v4178_v38, %s7897_s9  ;;  %7131 = vmatprep.mubr.msk.bf16.mxu0 %vm12030_vm2, %v10185_v25  ;;  %v10901_v22 = vsel %vm12032_vm6, %v4978_v43, %v10787_v12  ;;  %v4056_v60 = vor.u32 %v4054_v50, %v4052_v62  ;;  %v12033_v15 = vrot.slane %v10692_v27, 6  ;;  %v3881_v10 = vld [vmem:[#allocation3 + $0x6c] sm:$0x1]  ;;  %v4384_v55 = vpop.permute.xlu0 %4383  ;;  %vm12038_vm9 = vmmov %vm12030_vm2 }
 0x4a5   :  { %v4810_v29 = vshrl.u32 %v4738_v56, 16  ;;  %v4813_v30 = vshll.u32 %v4738_v56, 16  ;;  %v10904_v4 = vcombine.low %v10672_v34, %v3883_v35  ;;  %vm12034_vm1 = vcmask 1041408   ;;  %v4064_v43 = vpop.permute.xlu1 %4063  ;;  %vm12039_vm2 = vmmov %vm12031_vm15 }
 0x4a6   :  { %v4318_v25 = vsel %vm12034_vm1, %v12033_v15, %v4317_v47  ;;  %v4256_v6 = vor.u32 %v4255_v51, %v4252_v28  ;;  %v10913_v19 = vcombine.low %v10716_v39, %v10716_v39  ;;  %4081 = vrot.lane.b32.xlu0 %v4056_v60, %s7899_s13  ;;  %v4505_v34 = vshrl.u32 %v10738_v61, 16  ;;  %vm12040_vm15 = vmmov %vm12038_vm9 }
 0x4a7   :  { %v4812_v12 = vrot.slane %v4810_v29, 2  ;;  %v4815_v33 = vrot.slane %v4813_v30, 3  ;;  %v4508_v58 = vshll.u32 %v10738_v61, 16  ;;  %v12035_v54 = vshrl.u32 %v10692_v27, 16 }
 0x4a8   :  { %4343 = vrot.lane.b32.xlu1 %v4318_v25, %s7901_s19  ;;  %v7117_v23 = vcombine.low %v10716_v39, %v3881_v10  ;;  %v4514_v51 = vshrl.u32 %v10904_v4, 16  ;;  %v4517_v35 = vshll.u32 %v10904_v4, 16  ;;  %vm12036_vm6 = vsmask.f32 2304 }
 0x4a9   :  { %v4048_v28 = vor.u32 %v12035_v54, %v10771_v63  ;;  %v10922_v21 = vor.u32 %v4815_v33, %v4812_v12  ;;  %v4257_v40 = vsel %vm12036_vm6, %v10783_v7, %v4256_v6  ;;  %vm12037_vm12 = vsmask.f32 7424  ;;  %v4330_v7 = vpop.permute.xlu0 %4329 }
 0x4aa   :  { %v4259_v0 = vshrl.u32 %v10913_v19, 16  ;;  %v4262_v38 = vshll.u32 %v10913_v19, 16  ;;  %v4584_v63 = vsel %vm12038_vm9, %v9946_v52, %v4064_v43  ;;  %4289 = vrot.lane.b32.xlu0 %v4257_v40, %s7900_s16  ;;  %v4507_v50 = vrot.slane %v4505_v34, 6 }
 0x4ab   :  { %v4053_v3 = vsel %vm12037_vm12, %v4048_v28, %v4052_v62  ;;  %v4817_v39 = vsel %vm12039_vm2, %v4791_v44, %v10922_v21  ;;  %v4510_v56 = vrot.slane %v4508_v58, 7  ;;  %v4186_v62 = vpop.permute.xlu1 %4185  ;;  %vm12041_vm1 = vcmask 261120  }
 0x4ac   :  { %4079 = vrot.lane.b32.xlu1 %v4053_v3, %s7899_s13  ;;  %5144 = vmatmul.mubr.bf16.gmra.mrb[56].mxu0 %v4817_v39  ;;  %v4610_v29 = vsel %vm12041_vm1, %v4584_v63, %v10859_v36  ;;  %v4319_v30 = vrot.slane %v7117_v23, 6  ;;  %v4516_v60 = vrot.slane %v4514_v51, 6  ;;  %v4519_v15 = vrot.slane %v4517_v35, 7 }
 0x4ad   :  { %7132 = vmatprep.mubr.msk.bf16.mxu0 %vm12040_vm15, %v10282_v37  ;;  %vm12042_vm6 = vcmask 392192   ;;  %v12043_v44 = vrot.slane %v10738_v61, 1  ;;  %v4511_v10 = vor.u32 %v4510_v56, %v4507_v50  ;;  %v4261_v12 = vrot.slane %v4259_v0, 5  ;;  %v4066_v58 = vpop.permute.xlu0 %4065 }
 0x4ae   :  { %v4636_v25 = vsel %vm12042_vm6, %v4610_v29, %v4186_v62  ;;  %v4264_v33 = vrot.slane %v4262_v38, 6  ;;  %vm12044_vm12 = vcmask 523264   ;;  %v12045_v37 = vrot.slane %v10773_v13, 1 }
 0x4af   :  { %4203 = vrot.lane.b32.xlu0 %v12043_v44, %s7897_s9  ;;  %v4662_v34 = vsel %vm12044_vm12, %v4636_v25, %v4274_v2  ;;  %v4120_v36 = vpop.permute.xlu1 %4119  ;;  %vm12046_vm9 = vcmask 1041408   ;;  %v4520_v28 = vor.u32 %v4519_v15, %v4516_v60  ;;  %vm12047_vm2 = vsmask.f32 1280 }
 0x4b0   :  { %4135 = vrot.lane.b32.xlu1 %v12045_v37, %s7898_s10  ;;  %v4320_v54 = vsel %vm12046_vm9, %v4317_v47, %v4319_v30  ;;  %v4512_v23 = vsel %vm12047_vm2, %v10844_v42, %v4511_v10  ;;  %vm12048_vm15 = vcmask 654336   ;;  %v4265_v35 = vor.u32 %v4264_v33, %v4261_v12  ;;  %vm12051_vm12 = vmmov %vm12047_vm2 }
 0x4b1   :  { %v4688_v51 = vsel %vm12048_vm15, %v4662_v34, %v4328_v11  ;;  %vm12049_vm1 = vcmask 130048   ;;  %v4188_v43 = vpop.permute.xlu0 %4187  ;;  %vm12050_vm6 = vcmask 785408   ;;  %v4521_v47 = vsel %vm12051_vm12, %v4511_v10, %v4520_v28 }
 0x4b2   :  { %v4586_v2 = vsel %vm12049_vm1, %v10063_v16, %v4066_v58  ;;  %v4714_v3 = vsel %vm12050_vm6, %v4688_v51, %v4384_v55  ;;  %vm12052_vm9 = vcmask 261120   ;;  %vm12053_vm11 = vcmask 916480  }
 0x4b3   :  { %4345 = vrot.lane.b32.xlu0 %v4320_v54, %s7901_s19  ;;  %v4529_v40 = vpop.permute.xlu1 %4528  ;;  %v4612_v0 = vsel %vm12052_vm9, %v4586_v2, %v4120_v36  ;;  %vm12054_vm2 = vsmask.f32 2304  ;;  %v4375_v11 = vrot.slane %v10904_v4, 6  ;;  %vm12055_vm15 = vcmask 392192  }
 0x4b4   :  { %4544 = vrot.lane.b32.xlu1 %v4512_v23, %s7903_s25  ;;  %v4740_v38 = vsel %vm12053_vm11, %v4714_v3, %v4529_v40  ;;  %v4266_v42 = vsel %vm12054_vm2, %v4256_v6, %v4265_v35  ;;  %v4638_v56 = vsel %vm12055_vm15, %v4612_v0, %v4188_v43  ;;  %vm12056_vm1 = vcmask 523264  }
 0x4b5   :  { %v4827_v63 = vshrl.u32 %v4740_v38, 16  ;;  %v4830_v39 = vshll.u32 %v4740_v38, 16  ;;  %v4122_v50 = vpop.permute.xlu0 %4121  ;;  %v12057_v60 = vrot.slane %v10738_v61, 6  ;;  %vm12058_vm11 = vcmask 1041408  }
 0x4b6   :  { %vm12059_vm6 = vcmask 654336   ;;  %vm12060_vm12 = vsmask.f32 5376  ;;  %vm12061_vm9 = vcmask 785408   ;;  %vm12062_vm2 = vcmask 916480  }
 0x4b7   :  { %4546 = vrot.lane.b32.xlu0 %v4521_v47, %s7903_s25  ;;  %v4829_v55 = vrot.slane %v4827_v63, 2  ;;  %v4832_v62 = vrot.slane %v4830_v39, 3  ;;  %v4276_v29 = vpop.permute.xlu1 %4275  ;;  %v4376_v6 = vsel %vm12058_vm11, %v12057_v60, %v4375_v11  ;;  %vm12063_vm15 = vcmask 130048   ;;  %vm12065_vm11 = vmmov %vm12060_vm12 }
 0x4b8   :  { %4291 = vrot.lane.b32.xlu1 %v4266_v42, %s7900_s16  ;;  %v4664_v30 = vsel %vm12056_vm1, %v4638_v56, %v4276_v29  ;;  %vm12064_vm1 = vmmov %vm12063_vm15  ;;  %vm12121_vm0 = vcmask 916480  }
 0x4b9   :  { %v4833_v4 = vor.u32 %v4832_v62, %v4829_v55  ;;  %v4531_v15 = vpop.permute.xlu0 %4530  ;;  %v4690_v44 = vsel %vm12059_vm6, %v4664_v30, %v4330_v7  ;;  %vm12066_vm6 = vmmov %vm12064_vm1 }
 0x4bb   :  { %5379 = vrot.lane.b32.xlu0 %v9861_v26, %s7899_s13  ;;  %v4386_v25 = vpop.permute.xlu1 %4385  ;;  %v4834_v10 = vsel %vm12060_vm12, %v10922_v21, %v4833_v4  ;;  %vm12067_vm12 = vcmask 261120  }
 0x4bc   :  { %4401 = vrot.lane.b32.xlu1 %v4376_v6, %s7902_s22  ;;  %v4716_v12 = vsel %vm12061_vm9, %v4690_v44, %v4386_v25  ;;  %5152 = vmatmul.mubr.bf16.gmra.mrb[60].mxu0 %v4834_v10  ;;  %vm12068_vm9 = vcmask 392192  }
 0x4bd   :  { %v4742_v26 = vsel %vm12062_vm2, %v4716_v12, %v4531_v15  ;;  %7133 = vmatprep.mubr.msk.bf16.mxu0 %vm12063_vm15, %v10359_v59  ;;  %v4278_v61 = vpop.permute.xlu0 %4277  ;;  %vm12069_vm2 = vcmask 523264   ;;  %vm12070_vm15 = vcmask 654336  }
 0x4be   :  { %v4844_v33 = vshrl.u32 %v4742_v26, 16  ;;  %v4847_v7 = vshll.u32 %v4742_v26, 16 }
 0x4bf   :  { %5383 = vrot.lane.b32.xlu0 %v10063_v16, %s7899_s13  ;;  %v4332_v34 = vpop.permute.xlu1 %4331 }
 0x4c0   :  { %5377 = vrot.lane.b32.xlu1 %v9816_v20, %s7899_s13  ;;  %v4846_v37 = vrot.slane %v4844_v33, 2  ;;  %v4849_v21 = vrot.slane %v4847_v7, 3 }
 0x4c1   :  { %v4388_v16 = vpop.permute.xlu0 %4387 }
 0x4c2   :  { %v4850_v58 = vor.u32 %v4849_v21, %v4846_v37 }
 0x4c3   :  { %5387 = vrot.lane.b32.xlu0 %v10259_v17, %s7899_s13  ;;  %v4068_v36 = vpop.permute.xlu1 %4067 }
 0x4c4   :  { %5381 = vrot.lane.b32.xlu1 %v9946_v52, %s7899_s13  ;;  %v4588_v20 = vsel %vm12064_vm1, %v10146_v9, %v4068_v36  ;;  %v4851_v59 = vsel %vm12065_vm11, %v4833_v4, %v4850_v58  ;;  %vm12071_vm11 = vcmask 785408  }
 0x4c5   :  { %5160 = vmatmul.mubr.bf16.gmra.mrb[64].mxu0 %v4851_v59  ;;  %v4334_v54 = vpop.permute.xlu0 %4333  ;;  %v4614_v28 = vsel %vm12067_vm12, %v4588_v20, %v4122_v50 }
 0x4c6   :  { %7134 = vmatprep.mubr.msk.bf16.mxu0 %vm12066_vm6, %v10444_v24  ;;  %vm12072_vm6 = vmmov %vm12067_vm12  ;;  %vm12073_vm12 = vcmask 916480  }
 0x4c7   :  { %5391 = vrot.lane.b32.xlu0 %v10423_v53, %s7899_s13  ;;  %v4190_v52 = vpop.permute.xlu1 %4189 }
 0x4c8   :  { %5385 = vrot.lane.b32.xlu1 %v10146_v9, %s7899_s13  ;;  %v4640_v23 = vsel %vm12068_vm9, %v4614_v28, %v4190_v52 }
 0x4c9   :  { %v4666_v51 = vsel %vm12069_vm2, %v4640_v23, %v4278_v61  ;;  %v4070_v35 = vpop.permute.xlu0 %4069 }
 0x4ca   :  { %v4692_v24 = vsel %vm12070_vm15, %v4666_v51, %v4332_v34  ;;  %v4590_v2 = vsel %vm12064_vm1, %v10259_v17, %v4070_v35  ;;  %vm12074_vm1 = vsmask.f32 5376 }
 0x4cb   :  { %5395 = vrot.lane.b32.xlu0 %v10645_v5, %s7899_s13  ;;  %v4124_v9 = vpop.permute.xlu1 %4123  ;;  %v4718_v3 = vsel %vm12071_vm11, %v4692_v24, %v4388_v16 }
 0x4cc   :  { %5389 = vrot.lane.b32.xlu1 %v10329_v48, %s7899_s13  ;;  %v4616_v47 = vsel %vm12072_vm6, %v4590_v2, %v4124_v9  ;;  %vm12075_vm6 = vmmov %vm12073_vm12 }
 0x4cd   :  { %v4192_v43 = vpop.permute.xlu0 %4191 }
 0x4ce   :  { %v4642_v11 = vsel %vm12068_vm9, %v4616_v47, %v4192_v43 }
 0x4cf   :  { %5399 = vrot.lane.b32.xlu0 %v10773_v13, %s7899_s13  ;;  %v4533_v40 = vpop.permute.xlu1 %4532 }
 0x4d0   :  { %5393 = vrot.lane.b32.xlu1 %v10507_v32, %s7899_s13  ;;  %v4744_v0 = vsel %vm12073_vm12, %v4718_v3, %v4533_v40  ;;  %vm12076_vm12 = vcmask 130048  }
 0x4d1   :  { %v4861_v38 = vshrl.u32 %v4744_v0, 16  ;;  %v4864_v42 = vshll.u32 %v4744_v0, 16  ;;  %v4126_v13 = vpop.permute.xlu0 %4125  ;;  %vm12077_vm9 = vmmov %vm12076_vm12 }
 0x4d3   :  { %v4863_v17 = vrot.slane %v4861_v38, 2  ;;  %v4866_v63 = vrot.slane %v4864_v42, 3  ;;  %v4280_v39 = vpop.permute.xlu1 %4279 }
 0x4d4   :  { %5397 = vrot.lane.b32.xlu1 %v10692_v27, %s7899_s13  ;;  %v4668_v50 = vsel %vm12069_vm2, %v4642_v11, %v4280_v39  ;;  %vm12078_vm2 = vmmov %vm12074_vm1 }
 0x4d5   :  { %v4867_v56 = vor.u32 %v4866_v63, %v4863_v17  ;;  %v4535_v55 = vpop.permute.xlu0 %4534  ;;  %v4694_v29 = vsel %vm12070_vm15, %v4668_v50, %v4334_v54  ;;  %vm12079_vm15 = vmmov %vm12077_vm9 }
 0x4d7   :  { %v4390_v62 = vpop.permute.xlu1 %4389  ;;  %v4868_v30 = vsel %vm12074_vm1, %v4850_v58, %v4867_v56  ;;  %vm12080_vm1 = vcmask 261120  }
 0x4d8   :  { %5401 = vrot.lane.b32.xlu1 %v10913_v19, %s7899_s13  ;;  %v4720_v60 = vsel %vm12071_vm11, %v4694_v29, %v4390_v62  ;;  %5168 = vmatmul.mubr.bf16.gmra.mrb[68].mxu0 %v4868_v30  ;;  %vm12081_vm11 = vcmask 392192   ;;  %vm12085_vm4 = vmmov %vm12080_vm1 }
 0x4d9   :  { %v4746_v6 = vsel %vm12075_vm6, %v4720_v60, %v4535_v55  ;;  %7135 = vmatprep.mubr.msk.bf16.mxu0 %vm12076_vm12, %v10549_v31  ;;  %v4282_v4 = vpop.permute.xlu0 %4281  ;;  %vm12082_vm6 = vcmask 523264   ;;  %vm12083_vm12 = vcmask 654336  }
 0x4da   :  { %v4878_v15 = vshrl.u32 %v4746_v6, 16  ;;  %v4881_v25 = vshll.u32 %v4746_v6, 16 }
 0x4db   :  { %v4336_v44 = vpop.permute.xlu1 %4335 }
 0x4dc   :  { %v4880_v10 = vrot.slane %v4878_v15, 2  ;;  %v4883_v12 = vrot.slane %v4881_v25, 3 }
 0x4dd   :  { %v4392_v19 = vpop.permute.xlu0 %4391 }
 0x4de   :  { %v4884_v26 = vor.u32 %v4883_v12, %v4880_v10 }
 0x4df   :  { %v4072_v61 = vpop.permute.xlu1 %4071 }
 0x4e0   :  { %v4592_v33 = vsel %vm12077_vm9, %v10329_v48, %v4072_v61  ;;  %v4885_v7 = vsel %vm12078_vm2, %v4867_v56, %v4884_v26  ;;  %vm12084_vm2 = vcmask 785408  }
 0x4e1   :  { %5176 = vmatmul.mubr.bf16.gmra.mrb[72].mxu0 %v4885_v7  ;;  %v4338_v34 = vpop.permute.xlu0 %4337  ;;  %v4618_v37 = vsel %vm12080_vm1, %v4592_v33, %v4126_v13  ;;  %vm12087_vm1 = vmmov %vm12081_vm11 }
 0x4e2   :  { %7136 = vmatprep.mubr.msk.bf16.mxu0 %vm12079_vm15, %v10725_v49  ;;  %vm12086_vm15 = vcmask 916480  }
 0x4e3   :  { %v4194_v31 = vpop.permute.xlu1 %4193 }
 0x4e4   :  { %v4644_v21 = vsel %vm12081_vm11, %v4618_v37, %v4194_v31  ;;  %vm12088_vm11 = vmmov %vm12082_vm6 }
 0x4e5   :  { %v4670_v16 = vsel %vm12082_vm6, %v4644_v21, %v4282_v4  ;;  %v4074_v58 = vpop.permute.xlu0 %4073  ;;  %vm12089_vm6 = vmmov %vm12083_vm12 }
 0x4e6   :  { %v4696_v20 = vsel %vm12083_vm12, %v4670_v16, %v4336_v44  ;;  %v4594_v48 = vsel %vm12077_vm9, %v10423_v53, %v4074_v58  ;;  %vm12090_vm12 = vsmask.f32 5376  ;;  %vm12092_vm9 = vmmov %vm12086_vm15 }
 0x4e7   :  { %v4128_v36 = vpop.permute.xlu1 %4127  ;;  %v4722_v52 = vsel %vm12084_vm2, %v4696_v20, %v4392_v19 }
 0x4e8   :  { %v4620_v49 = vsel %vm12085_vm4, %v4594_v48, %v4128_v36  ;;  %vm12091_vm4 = vmmov %vm12084_vm2  ;;  %vm12093_vm2 = vcmask 130048  }
 0x4e9   :  { %v4196_v59 = vpop.permute.xlu0 %4195 }
 0x4ea   :  { %v4646_v9 = vsel %vm12087_vm1, %v4620_v49, %v4196_v59  ;;  %vm12095_vm1 = vmmov %vm12090_vm12 }
 0x4eb   :  { %v4537_v54 = vpop.permute.xlu1 %4536 }
 0x4ec   :  { %v4748_v28 = vsel %vm12086_vm15, %v4722_v52, %v4537_v54  ;;  %vm12094_vm15 = vmmov %vm12093_vm2 }
 0x4ed   :  { %v4895_v23 = vshrl.u32 %v4748_v28, 16  ;;  %v4898_v51 = vshll.u32 %v4748_v28, 16  ;;  %v4130_v35 = vpop.permute.xlu0 %4129 }
 0x4ef   :  { %v4897_v24 = vrot.slane %v4895_v23, 2  ;;  %v4900_v2 = vrot.slane %v4898_v51, 3  ;;  %v4284_v43 = vpop.permute.xlu1 %4283 }
 0x4f0   :  { %v4672_v40 = vsel %vm12088_vm11, %v4646_v9, %v4284_v43  ;;  %vm12096_vm11 = vmmov %vm12093_vm2 }
 0x4f1   :  { %v4901_v3 = vor.u32 %v4900_v2, %v4897_v24  ;;  %v4539_v53 = vpop.permute.xlu0 %4538  ;;  %v4698_v0 = vsel %vm12089_vm6, %v4672_v40, %v4338_v34  ;;  %vm12097_vm6 = vcmask 261120  }
 0x4f3   :  { %v4394_v47 = vpop.permute.xlu1 %4393  ;;  %v4902_v38 = vsel %vm12090_vm12, %v4884_v26, %v4901_v3  ;;  %vm12098_vm12 = vcmask 392192  }
 0x4f4   :  { %v4724_v42 = vsel %vm12091_vm4, %v4698_v0, %v4394_v47  ;;  %5184 = vmatmul.mubr.bf16.gmra.mrb[76].mxu0 %v4902_v38  ;;  %vm12099_vm4 = vcmask 523264  }
 0x4f5   :  { %v4750_v13 = vsel %vm12092_vm9, %v4724_v42, %v4539_v53  ;;  %7137 = vmatprep.mubr.msk.bf16.mxu0 %vm12093_vm2, %v10863_v18  ;;  %v4286_v63 = vpop.permute.xlu0 %4285  ;;  %vm12100_vm9 = vcmask 654336  }
 0x4f6   :  { %v4912_v11 = vshrl.u32 %v4750_v13, 16  ;;  %v4915_v17 = vshll.u32 %v4750_v13, 16 }
 0x4f7   :  { %v4340_v39 = vpop.permute.xlu1 %4339 }
 0x4f8   :  { %v4914_v50 = vrot.slane %v4912_v11, 2  ;;  %v4917_v56 = vrot.slane %v4915_v17, 3 }
 0x4f9   :  { %v4396_v55 = vpop.permute.xlu0 %4395 }
 0x4fa   :  { %v4918_v62 = vor.u32 %v4917_v56, %v4914_v50 }
 0x4fb   :  { %v4076_v29 = vpop.permute.xlu1 %4075 }
 0x4fc   :  { %v4596_v30 = vsel %vm12094_vm15, %v10507_v32, %v4076_v29  ;;  %v4919_v60 = vsel %vm12095_vm1, %v4901_v3, %v4918_v62  ;;  %vm12101_vm15 = vcmask 785408   ;;  %vm12102_vm1 = vmmov %vm12097_vm6 }
 0x4fd   :  { %5192 = vmatmul.mubr.bf16.gmra.mrb[80].mxu0 %v4919_v60  ;;  %v4342_v6 = vpop.permute.xlu0 %4341  ;;  %v4622_v4 = vsel %vm12097_vm6, %v4596_v30, %v4130_v35  ;;  %vm12104_vm6 = vmmov %vm12098_vm12 }
 0x4fe   :  { %7138 = vmatprep.mubr.msk.bf16.mxu0 %vm12096_vm11, %v10870_v45  ;;  %vm12103_vm11 = vcmask 916480  }
 0x4ff   :  { %v4198_v18 = vpop.permute.xlu1 %4197 }
 0x500   :  { %v4648_v15 = vsel %vm12098_vm12, %v4622_v4, %v4198_v18  ;;  %vm12105_vm12 = vmmov %vm12099_vm4 }
 0x501   :  { %v4674_v25 = vsel %vm12099_vm4, %v4648_v15, %v4286_v63  ;;  %v4078_v44 = vpop.permute.xlu0 %4077  ;;  %vm12106_vm4 = vmmov %vm12100_vm9 }
 0x502   :  { %v4700_v12 = vsel %vm12100_vm9, %v4674_v25, %v4340_v39  ;;  %v4598_v32 = vsel %vm12093_vm2, %v10645_v5, %v4078_v44  ;;  %vm12107_vm9 = vsmask.f32 5376  ;;  %vm12108_vm2 = vmmov %vm12101_vm15 }
 0x503   :  { %v4132_v10 = vpop.permute.xlu1 %4131  ;;  %v4726_v61 = vsel %vm12101_vm15, %v4700_v12, %v4396_v55  ;;  %vm12109_vm15 = vcmask 130048  }
 0x504   :  { %v4624_v45 = vsel %vm12102_vm1, %v4598_v32, %v4132_v10  ;;  %vm12110_vm1 = vmmov %vm12103_vm11 }
 0x505   :  { %v4200_v19 = vpop.permute.xlu0 %4199 }
 0x506   :  { %v4650_v37 = vsel %vm12104_vm6, %v4624_v45, %v4200_v19  ;;  %vm12112_vm6 = vmmov %vm12109_vm15  ;;  %v7802_v45 = vld [vmem:[%s11565_s1 + $0xd8] sm:$0xff]  }
 0x507   :  { %v4541_v26 = vpop.permute.xlu1 %4540 }
 0x508   :  { %v4752_v33 = vsel %vm12103_vm11, %v4726_v61, %v4541_v26  ;;  %vm12111_vm11 = vmmov %vm12107_vm9 }
 0x509   :  { %v4929_v7 = vshrl.u32 %v4752_v33, 16  ;;  %v4932_v34 = vshll.u32 %v4752_v33, 16  ;;  %v4134_v31 = vpop.permute.xlu0 %4133 }
 0x50b   :  { %v4931_v21 = vrot.slane %v4929_v7, 2  ;;  %v4934_v16 = vrot.slane %v4932_v34, 3  ;;  %v4288_v58 = vpop.permute.xlu1 %4287  ;;  %v7803_v34 = vld [vmem:[%s11565_s1 + $0xe0] sm:$0xff]  }
 0x50c   :  { %v4676_v36 = vsel %vm12105_vm12, %v4650_v37, %v4288_v58  ;;  %vm12113_vm12 = vmmov %vm12112_vm6 }
 0x50d   :  { %v4935_v20 = vor.u32 %v4934_v16, %v4931_v21  ;;  %v4400_v5 = vpop.permute.xlu0 %4399  ;;  %v4702_v59 = vsel %vm12106_vm4, %v4676_v36, %v4342_v6  ;;  %vm12114_vm4 = vcmask 261120  }
 0x50f   :  { %v4398_v48 = vpop.permute.xlu1 %4397  ;;  %v4936_v54 = vsel %vm12107_vm9, %v4918_v62, %v4935_v20  ;;  %vm12115_vm9 = vcmask 392192  }
 0x510   :  { %v4728_v52 = vsel %vm12108_vm2, %v4702_v59, %v4398_v48  ;;  %5200 = vmatmul.mubr.bf16.gmra.mrb[84].mxu0 %v4936_v54  ;;  %vm12116_vm2 = vcmask 523264   ;;  %v5314_v59 = vld [vmem:[#allocation4] sm:$0xff] }
 0x511   :  { %7139 = vmatprep.mubr.msk.bf16.mxu0 %vm12109_vm15, %v10890_v41  ;;  %vm12117_vm15 = vcmask 654336  }
 0x512   :  { %v4543_v49 = vpop.permute.xlu0 %4542 }
 0x513   :  { %v4754_v28 = vsel %vm12110_vm1, %v4728_v52, %v4543_v49  ;;  %vm12118_vm1 = vmmov %vm12112_vm6  ;;  %v5315_v52 = vld [vmem:[#allocation4 + $0x8] sm:$0xff] }
 0x514   :  { %v4946_v51 = vshrl.u32 %v4754_v28, 16  ;;  %v4949_v35 = vshll.u32 %v4754_v28, 16 }
 0x516   :  { %v4202_v23 = vpop.permute.xlu1 %4201  ;;  %v4948_v9 = vrot.slane %v4946_v51, 2  ;;  %v4951_v24 = vrot.slane %v4949_v35, 3 }
 0x518   :  { %v4082_v2 = vpop.permute.xlu0 %4081  ;;  %v4952_v40 = vor.u32 %v4951_v24, %v4948_v9 }
 0x519   :  { %v4602_v63 = vsel %vm12118_vm1, %v10811_v1, %v4082_v2 }
 0x51a   :  { %v4344_v43 = vpop.permute.xlu1 %4343  ;;  %v4953_v53 = vsel %vm12111_vm11, %v4935_v20, %v4952_v40  ;;  %vm12119_vm11 = vcmask 785408  }
 0x51b   :  { %5208 = vmatmul.mubr.bf16.gmra.mrb[88].mxu0 %v4953_v53 }
 0x51c   :  { %v4290_v3 = vpop.permute.xlu0 %4289  ;;  %7140 = vmatprep.mubr.msk.bf16.mxu0 %vm12113_vm12, %v10897_v57  ;;  %vm12122_vm12 = vmmov %vm12115_vm9 }
 0x51e   :  { %v4080_v47 = vpop.permute.xlu1 %4079 }
 0x51f   :  { %v4600_v0 = vsel %vm12112_vm6, %v10692_v27, %v4080_v47  ;;  %vm12120_vm6 = vmmov %vm12114_vm4 }
 0x520   :  { %v4626_v41 = vsel %vm12114_vm4, %v4600_v0, %v4134_v31  ;;  %vm12123_vm4 = vmmov %vm12116_vm2 }
 0x521   :  { %v4652_v38 = vsel %vm12115_vm9, %v4626_v41, %v4202_v23  ;;  %v4204_v11 = vpop.permute.xlu0 %4203  ;;  %vm12124_vm9 = vmmov %vm12117_vm15  ;;  %v5316_v41 = vld [vmem:[#allocation4 + $0x10] sm:$0xff] }
 0x522   :  { %v4136_v42 = vpop.permute.xlu1 %4135  ;;  %v4678_v13 = vsel %vm12116_vm2, %v4652_v38, %v4290_v3  ;;  %vm12125_vm2 = vsmask.f32 5376 }
 0x523   :  { %v4704_v17 = vsel %vm12117_vm15, %v4678_v13, %v4344_v43  ;;  %v4628_v27 = vsel %vm12120_vm6, %v4602_v63, %v4136_v42  ;;  %vm12126_vm15 = vmmov %vm12119_vm11  ;;  %vm12128_vm6 = vmmov 0   ;;  %v5317_v42 = vld [vmem:[#allocation4 + $0x18] sm:$0xff] }
 0x524   :  { %v4730_v50 = vsel %vm12119_vm11, %v4704_v17, %v4400_v5  ;;  %v4654_v6 = vsel %vm12122_vm12, %v4628_v27, %v4204_v11  ;;  %vm12127_vm11 = vmmov %vm12125_vm2 }
 0x525   :  { %v4346_v62 = vpop.permute.xlu0 %4345 }
 0x526   :  { %v4545_v39 = vpop.permute.xlu1 %4544 }
 0x527   :  { %v4756_v57 = vsel %vm12121_vm0, %v4730_v50, %v4545_v39 }
 0x528   :  { %v4963_v56 = vshrl.u32 %v4756_v57, 16  ;;  %v4966_v55 = vshll.u32 %v4756_v57, 16 }
 0x529   :  { %v4547_v44 = vpop.permute.xlu0 %4546 }
 0x52a   :  { %v4965_v29 = vrot.slane %v4963_v56, 2  ;;  %v4968_v30 = vrot.slane %v4966_v55, 3  ;;  %v4292_v60 = vpop.permute.xlu1 %4291 }
 0x52b   :  { %v4680_v18 = vsel %vm12123_vm4, %v4654_v6, %v4292_v60  ;;  %v5318_v6 = vld [vmem:[#allocation4 + $0x20] sm:$0xff] }
 0x52c   :  { %v4969_v4 = vor.u32 %v4968_v30, %v4965_v29  ;;  %v4706_v1 = vsel %vm12124_vm9, %v4680_v18, %v4346_v62 }
 0x52d   :  { %v5380_v63 = vpop.permute.xlu0 %5379 }
 0x52e   :  { %v4402_v15 = vpop.permute.xlu1 %4401  ;;  %v4970_v25 = vsel %vm12125_vm2, %v4952_v40, %v4969_v4  ;;  %vm12129_vm2 = vmmov %vm12118_vm1 }
 0x52f   :  { %v4732_v10 = vsel %vm12126_vm15, %v4706_v1, %v4402_v15  ;;  %5216 = vmatmul.mubr.bf16.gmra.mrb[92].mxu0 %v4970_v25  ;;  %vm12130_vm15 = vcmask 261120  }
 0x530   :  { %v4758_v12 = vsel %vm12121_vm0, %v4732_v10, %v4547_v44  ;;  %7141 = vmatprep.mubr.msk.bf16.mxu0 %vm12118_vm1, %v10901_v22  ;;  %v11108_v22 = vld [vmem:[%s11566_s2 + $0x4] ss:$0 sm:$0xff] }
 0x531   :  { %v4980_v32 = vshrl.u32 %v4758_v12, 16  ;;  %v4983_v19 = vshll.u32 %v4758_v12, 16 }
 0x532   :  { %v5378_v24 = vpop.permute.xlu1 %5377 }
 0x533   :  { %v4982_v26 = vrot.slane %v4980_v32, 2  ;;  %v4985_v61 = vrot.slane %v4983_v19, 3 }
 0x535   :  { %v4986_v33 = vor.u32 %v4985_v61, %v4982_v26 }
 0x536   :  { %v5382_v32 = vpop.permute.xlu1 %5381 }
 0x537   :  { %5232 = vmatmul.mubr.bf16.vlgmr.msra.gmra.mrb[104].mxu1 %v4986_v33  ;;  %v4987_v7 = vsel %vm12127_vm11, %v4969_v4, %v4986_v33  ;;  %vm12131_vm11 = vmmov %vm12130_vm15  ;;  %v5319_v4 = vld [vmem:[#allocation4 + $0x28] sm:$0xff] }
 0x538   :  { %5224 = vmatmul.mubr.bf16.gmra.mrb[96].mxu0 %v4987_v7  ;;  %7571 = vmatpush3.bf16.msra.mxu1 %v7802_v45 }
 0x539   :  { %7572 = vmatprep.subr.bf16.mxu1 %v11722_v8  ;;  %7574 = vmatprep.mubr.msk.bf16.mxu1 %vm12128_vm6, %v11722_v8 }
 0x53c   :  { %7573 = vmatpush3.bf16.msra.mxu1 %v7803_v34 }
 0x576   :  { %v5137_v31 = vpop.f32.mrb[52].mxu0 }
 0x577   :  { %v5138_v37 = vadd.f32 %v5137_v31, %v11108_v22  ;;  %v5139_v21 = vpop.f32.mrb[53].mxu0  ;;  %v5320_v31 = vld [vmem:[#allocation4 + $0x30] sm:$0xff] }
 0x578   :  { %v5140_v16 = vpop.f32.mrb[54].mxu0  ;;  %v5321_v21 = vld [vmem:[#allocation4 + $0x38] sm:$0xff] }
 0x579   :  { %vm5239_vm12 = vcmp.gt.f32.partialorder %v5138_v37, 0.0  ;;  %v5264_v58 = vmul.f32 0.1, %v5138_v37  ;;  %v5141_v36 = vadd.f32 %v5140_v16, %v11108_v22  ;;  %v5142_v20 = vpop.f32.mrb[55].mxu0 }
 0x57a   :  { %v5384_v20 = vpop.permute.xlu0 %5383 }
 0x57b   :  { %v5289_v5 = vsel %vm5239_vm12, %v5138_v37, %v5264_v58  ;;  %vm5240_vm4 = vcmp.gt.f32.partialorder %v5141_v36, 0.0  ;;  %v5265_v48 = vmul.f32 0.1, %v5141_v36 }
 0x57c   :  { %v5339_v49 = vadd.f32 %v5314_v59, %v5289_v5 }
 0x57d   :  { %v5290_v54 = vsel %vm5240_vm4, %v5141_v36, %v5265_v48 }
 0x57e   :  { %v5340_v28 = vadd.f32 %v5315_v52, %v5290_v54 }
 0x57f   :  { %v5145_v23 = vpop.f32.mrb[56].mxu0 }
 0x580   :  { %v5364_v51 = vpack.c.bf16 %v5340_v28, %v5339_v49  ;;  %v5146_v35 = vadd.f32 %v5145_v23, %v11108_v22  ;;  %v5147_v9 = vpop.f32.mrb[57].mxu0 }
 0x581   :  { %v5148_v2 = vpop.f32.mrb[58].mxu0  ;;  %v5322_v9 = vld [vmem:[#allocation4 + $0x40] sm:$0xff] }
 0x582   :  { %vm5241_vm9 = vcmp.gt.f32.partialorder %v5146_v35, 0.0  ;;  %v5266_v43 = vmul.f32 0.1, %v5146_v35  ;;  %v5149_v40 = vadd.f32 %v5148_v2, %v11108_v22  ;;  %v5150_v3 = vpop.f32.mrb[59].mxu0  ;;  %v5405_v53 = vsel %vm12129_vm2, %v5364_v51, %v5378_v24  ;;  %vm12132_vm2 = vmmov %vm12118_vm1  ;;  %v5323_v2 = vld [vmem:[#allocation4 + $0x48] sm:$0xff] }
 0x583   :  { %7575 = vmatmul.mubr.msk.bf16.vlgmr.msra.gmra.mrb[108].mxu1 %vm12130_vm15, %v5405_v53  ;;  %vm12133_vm15 = vmmov %vm12131_vm11 }
 0x584   :  { %v5291_v47 = vsel %vm5241_vm9, %v5146_v35, %v5266_v43  ;;  %vm5242_vm0 = vcmp.gt.f32.partialorder %v5149_v40, 0.0  ;;  %v5267_v0 = vmul.f32 0.1, %v5149_v40  ;;  %7578 = vmatprep.mubr.msk.bf16.mxu1 %vm12128_vm6, %v11722_v8 }
 0x585   :  { %v5341_v13 = vadd.f32 %v5316_v41, %v5291_v47  ;;  %v5386_v41 = vpop.permute.xlu1 %5385 }
 0x586   :  { %v5292_v38 = vsel %vm5242_vm0, %v5149_v40, %v5267_v0 }
 0x587   :  { %v5342_v11 = vadd.f32 %v5317_v42, %v5292_v38 }
 0x589   :  { %v5365_v17 = vpack.c.bf16 %v5342_v11, %v5341_v13 }
 0x58b   :  { %v5408_v39 = vsel %vm12118_vm1, %v5365_v17, %v5380_v63 }
 0x58c   :  { %7579 = vmatmul.mubr.msk.bf16.gmra.mrb[112].mxu1 %vm12131_vm11, %v5408_v39 }
 0x58d   :  { %7582 = vmatprep.mubr.msk.bf16.mxu1 %vm12128_vm6, %v11722_v8 }
 0x58f   :  { %v5153_v50 = vpop.f32.mrb[60].mxu0 }
 0x590   :  { %v5154_v27 = vadd.f32 %v5153_v50, %v11108_v22  ;;  %v5155_v57 = vpop.f32.mrb[61].mxu0  ;;  %v5324_v50 = vld [vmem:[#allocation4 + $0x50] sm:$0xff] }
 0x591   :  { %v5156_v56 = vpop.f32.mrb[62].mxu0  ;;  %v5325_v57 = vld [vmem:[#allocation4 + $0x58] sm:$0xff] }
 0x592   :  { %vm5243_vm12 = vcmp.gt.f32.partialorder %v5154_v27, 0.0  ;;  %v5268_v55 = vmul.f32 0.1, %v5154_v27  ;;  %v5157_v62 = vadd.f32 %v5156_v56, %v11108_v22  ;;  %v5158_v29 = vpop.f32.mrb[63].mxu0 }
 0x593   :  { %v5388_v29 = vpop.permute.xlu0 %5387 }
 0x594   :  { %v5293_v30 = vsel %vm5243_vm12, %v5154_v27, %v5268_v55  ;;  %vm5244_vm4 = vcmp.gt.f32.partialorder %v5157_v62, 0.0  ;;  %v5269_v60 = vmul.f32 0.1, %v5157_v62 }
 0x595   :  { %v5343_v15 = vadd.f32 %v5318_v6, %v5293_v30 }
 0x596   :  { %v5294_v18 = vsel %vm5244_vm4, %v5157_v62, %v5269_v60 }
 0x597   :  { %v5344_v1 = vadd.f32 %v5319_v4, %v5294_v18 }
 0x598   :  { %v5161_v25 = vpop.f32.mrb[64].mxu0 }
 0x599   :  { %v5162_v44 = vadd.f32 %v5161_v25, %v11108_v22  ;;  %v5163_v10 = vpop.f32.mrb[65].mxu0  ;;  %v5366_v12 = vpack.c.bf16 %v5344_v1, %v5343_v15 }
 0x59a   :  { %v5164_v19 = vpop.f32.mrb[66].mxu0 }
 0x59b   :  { %vm5245_vm9 = vcmp.gt.f32.partialorder %v5162_v44, 0.0  ;;  %v5270_v26 = vmul.f32 0.1, %v5162_v44  ;;  %v5165_v61 = vadd.f32 %v5164_v19, %v11108_v22  ;;  %v5166_v45 = vpop.f32.mrb[67].mxu0  ;;  %v5411_v33 = vsel %vm12132_vm2, %v5366_v12, %v5382_v32  ;;  %vm12134_vm2 = vmmov %vm12118_vm1  ;;  %v5326_v12 = vld [vmem:[#allocation4 + $0x60] sm:$0xff]  ;;  %v5327_v19 = vld [vmem:[#allocation4 + $0x68] sm:$0xff] }
 0x59c   :  { %7583 = vmatmul.mubr.msk.bf16.gmra.mrb[116].mxu1 %vm12133_vm15, %v5411_v33  ;;  %vm12135_vm15 = vmmov %vm12131_vm11 }
 0x59d   :  { %v5295_v7 = vsel %vm5245_vm9, %v5162_v44, %v5270_v26  ;;  %vm5246_vm0 = vcmp.gt.f32.partialorder %v5165_v61, 0.0  ;;  %v5271_v34 = vmul.f32 0.1, %v5165_v61  ;;  %7586 = vmatprep.mubr.msk.bf16.mxu1 %vm12128_vm6, %v11722_v8 }
 0x59e   :  { %v5345_v16 = vadd.f32 %v5320_v31, %v5295_v7  ;;  %v5390_v31 = vpop.permute.xlu1 %5389 }
 0x59f   :  { %v5296_v37 = vsel %vm5246_vm0, %v5165_v61, %v5271_v34 }
 0x5a0   :  { %v5346_v58 = vadd.f32 %v5321_v21, %v5296_v37 }
 0x5a2   :  { %v5367_v36 = vpack.c.bf16 %v5346_v58, %v5345_v16 }
 0x5a4   :  { %v5414_v5 = vsel %vm12118_vm1, %v5367_v36, %v5384_v20 }
 0x5a5   :  { %7587 = vmatmul.mubr.msk.bf16.gmra.mrb[120].mxu1 %vm12131_vm11, %v5414_v5 }
 0x5a6   :  { %7590 = vmatprep.mubr.msk.bf16.mxu1 %vm12128_vm6, %v11722_v8 }
 0x5ab   :  { %v5169_v48 = vpop.f32.mrb[68].mxu0 }
 0x5ac   :  { %v5170_v59 = vadd.f32 %v5169_v48, %v11108_v22  ;;  %v5171_v54 = vpop.f32.mrb[69].mxu0  ;;  %v5328_v48 = vld [vmem:[#allocation4 + $0x70] sm:$0xff] }
 0x5ad   :  { %v5172_v52 = vpop.f32.mrb[70].mxu0  ;;  %v5329_v54 = vld [vmem:[#allocation4 + $0x78] sm:$0xff] }
 0x5ae   :  { %vm5247_vm12 = vcmp.gt.f32.partialorder %v5170_v59, 0.0  ;;  %v5272_v49 = vmul.f32 0.1, %v5170_v59  ;;  %v5173_v28 = vadd.f32 %v5172_v52, %v11108_v22  ;;  %v5174_v23 = vpop.f32.mrb[71].mxu0 }
 0x5af   :  { %v5392_v23 = vpop.permute.xlu0 %5391 }
 0x5b0   :  { %v5297_v51 = vsel %vm5247_vm12, %v5170_v59, %v5272_v49  ;;  %vm5248_vm4 = vcmp.gt.f32.partialorder %v5173_v28, 0.0  ;;  %v5273_v35 = vmul.f32 0.1, %v5173_v28 }
 0x5b1   :  { %v5347_v43 = vadd.f32 %v5322_v9, %v5297_v51 }
 0x5b2   :  { %v5298_v24 = vsel %vm5248_vm4, %v5173_v28, %v5273_v35 }
 0x5b3   :  { %v5348_v40 = vadd.f32 %v5323_v2, %v5298_v24 }
 0x5b4   :  { %v5177_v3 = vpop.f32.mrb[72].mxu0 }
 0x5b5   :  { %v5178_v53 = vadd.f32 %v5177_v3, %v11108_v22  ;;  %v5179_v47 = vpop.f32.mrb[73].mxu0  ;;  %v5368_v0 = vpack.c.bf16 %v5348_v40, %v5347_v43 }
 0x5b6   :  { %v5180_v38 = vpop.f32.mrb[74].mxu0 }
 0x5b7   :  { %vm5249_vm9 = vcmp.gt.f32.partialorder %v5178_v53, 0.0  ;;  %v5274_v42 = vmul.f32 0.1, %v5178_v53  ;;  %v5181_v13 = vadd.f32 %v5180_v38, %v11108_v22  ;;  %v5182_v11 = vpop.f32.mrb[75].mxu0  ;;  %v5417_v17 = vsel %vm12134_vm2, %v5368_v0, %v5386_v41  ;;  %vm12136_vm2 = vmmov %vm12118_vm1  ;;  %v5330_v0 = vld [vmem:[#allocation4 + $0x80] sm:$0xff]  ;;  %v5331_v38 = vld [vmem:[#allocation4 + $0x88] sm:$0xff] }
 0x5b8   :  { %7591 = vmatmul.mubr.msk.bf16.gmra.mrb[124].mxu1 %vm12135_vm15, %v5417_v17  ;;  %vm12137_vm15 = vmmov %vm12131_vm11  ;;  %v5394_v17 = vpop.permute.xlu1 %5393 }
 0x5b9   :  { %v5299_v63 = vsel %vm5249_vm9, %v5178_v53, %v5274_v42  ;;  %vm5250_vm0 = vcmp.gt.f32.partialorder %v5181_v13, 0.0  ;;  %v5275_v39 = vmul.f32 0.1, %v5181_v13  ;;  %7594 = vmatprep.mubr.msk.bf16.mxu1 %vm12128_vm6, %v11722_v8 }
 0x5ba   :  { %v5349_v56 = vadd.f32 %v5324_v50, %v5299_v63 }
 0x5bb   :  { %v5300_v27 = vsel %vm5250_vm0, %v5181_v13, %v5275_v39 }
 0x5bc   :  { %v5350_v55 = vadd.f32 %v5325_v57, %v5300_v27 }
 0x5be   :  { %v5369_v62 = vpack.c.bf16 %v5350_v55, %v5349_v56 }
 0x5c0   :  { %v5420_v30 = vsel %vm12118_vm1, %v5369_v62, %v5388_v29 }
 0x5c1   :  { %7595 = vmatmul.mubr.msk.bf16.gmra.mrb[128].mxu1 %vm12131_vm11, %v5420_v30 }
 0x5c2   :  { %7598 = vmatprep.mubr.msk.bf16.mxu1 %vm12128_vm6, %v11722_v8 }
 0x5c7   :  { %v5185_v60 = vpop.f32.mrb[76].mxu0 }
 0x5c8   :  { %v5186_v6 = vadd.f32 %v5185_v60, %v11108_v22  ;;  %v5187_v18 = vpop.f32.mrb[77].mxu0  ;;  %v5332_v60 = vld [vmem:[#allocation4 + $0x90] sm:$0xff] }
 0x5c9   :  { %v5188_v4 = vpop.f32.mrb[78].mxu0  ;;  %v5333_v18 = vld [vmem:[#allocation4 + $0x98] sm:$0xff] }
 0x5ca   :  { %vm5251_vm12 = vcmp.gt.f32.partialorder %v5186_v6, 0.0  ;;  %v5276_v15 = vmul.f32 0.1, %v5186_v6  ;;  %v5189_v1 = vadd.f32 %v5188_v4, %v11108_v22  ;;  %v5190_v25 = vpop.f32.mrb[79].mxu0 }
 0x5cb   :  { %v5396_v25 = vpop.permute.xlu0 %5395 }
 0x5cc   :  { %v5301_v44 = vsel %vm5251_vm12, %v5186_v6, %v5276_v15  ;;  %vm5252_vm4 = vcmp.gt.f32.partialorder %v5189_v1, 0.0  ;;  %v5277_v10 = vmul.f32 0.1, %v5189_v1 }
 0x5cd   :  { %v5351_v26 = vadd.f32 %v5326_v12, %v5301_v44 }
 0x5ce   :  { %v5302_v32 = vsel %vm5252_vm4, %v5189_v1, %v5277_v10 }
 0x5cf   :  { %v5352_v61 = vadd.f32 %v5327_v19, %v5302_v32 }
 0x5d0   :  { %v5193_v45 = vpop.f32.mrb[80].mxu0 }
 0x5d1   :  { %v5194_v33 = vadd.f32 %v5193_v45, %v11108_v22  ;;  %v5195_v7 = vpop.f32.mrb[81].mxu0  ;;  %v5370_v34 = vpack.c.bf16 %v5352_v61, %v5351_v26 }
 0x5d2   :  { %v5196_v37 = vpop.f32.mrb[82].mxu0 }
 0x5d3   :  { %vm5253_vm9 = vcmp.gt.f32.partialorder %v5194_v33, 0.0  ;;  %v5278_v21 = vmul.f32 0.1, %v5194_v33  ;;  %v5197_v16 = vadd.f32 %v5196_v37, %v11108_v22  ;;  %v5198_v58 = vpop.f32.mrb[83].mxu0  ;;  %v5423_v36 = vsel %vm12136_vm2, %v5370_v34, %v5390_v31  ;;  %vm12139_vm2 = vmmov %vm12131_vm11  ;;  %v5334_v34 = vld [vmem:[#allocation4 + $0xa0] sm:$0xff]  ;;  %v5335_v37 = vld [vmem:[#allocation4 + $0xa8] sm:$0xff] }
 0x5d4   :  { %7599 = vmatmul.mubr.msk.bf16.gmra.mrb[132].mxu1 %vm12137_vm15, %v5423_v36 }
 0x5d5   :  { %v5303_v20 = vsel %vm5253_vm9, %v5194_v33, %v5278_v21  ;;  %vm5254_vm0 = vcmp.gt.f32.partialorder %v5197_v16, 0.0  ;;  %v5279_v5 = vmul.f32 0.1, %v5197_v16  ;;  %7602 = vmatprep.mubr.msk.bf16.mxu1 %vm12128_vm6, %v11722_v8  ;;  %vm12138_vm9 = vmmov %vm12118_vm1  ;;  %v5398_v21 = vpop.permute.xlu1 %5397 }
 0x5d6   :  { %v5353_v52 = vadd.f32 %v5328_v48, %v5303_v20 }
 0x5d7   :  { %v5304_v59 = vsel %vm5254_vm0, %v5197_v16, %v5279_v5 }
 0x5d8   :  { %v5354_v49 = vadd.f32 %v5329_v54, %v5304_v59 }
 0x5da   :  { %v5371_v28 = vpack.c.bf16 %v5354_v49, %v5353_v52 }
 0x5dc   :  { %v5426_v51 = vsel %vm12118_vm1, %v5371_v28, %v5392_v23 }
 0x5dd   :  { %7603 = vmatmul.mubr.msk.bf16.gmra.mrb[136].mxu1 %vm12131_vm11, %v5426_v51  ;;  %vm12140_vm11 = vmmov %vm12139_vm2 }
 0x5de   :  { %7606 = vmatprep.mubr.msk.bf16.mxu1 %vm12128_vm6, %v11722_v8 }
 0x5e3   :  { %v5201_v35 = vpop.f32.mrb[84].mxu0 }
 0x5e4   :  { %v5202_v9 = vadd.f32 %v5201_v35, %v11108_v22  ;;  %v5203_v24 = vpop.f32.mrb[85].mxu0 }
 0x5e5   :  { %v5204_v2 = vpop.f32.mrb[86].mxu0 }
 0x5e6   :  { %vm5255_vm12 = vcmp.gt.f32.partialorder %v5202_v9, 0.0  ;;  %v5280_v43 = vmul.f32 0.1, %v5202_v9  ;;  %v5205_v40 = vadd.f32 %v5204_v2, %v11108_v22  ;;  %v5206_v3 = vpop.f32.mrb[87].mxu0 }
 0x5e7   :  { %v5336_v3 = vld [vmem:[#allocation4 + $0xb0] sm:$0xff] }
 0x5e8   :  { %v5305_v53 = vsel %vm5255_vm12, %v5202_v9, %v5280_v43  ;;  %vm5256_vm4 = vcmp.gt.f32.partialorder %v5205_v40, 0.0  ;;  %v5281_v47 = vmul.f32 0.1, %v5205_v40 }
 0x5e9   :  { %v5355_v42 = vadd.f32 %v5330_v0, %v5305_v53 }
 0x5ea   :  { %v5306_v41 = vsel %vm5256_vm4, %v5205_v40, %v5281_v47  ;;  %v5337_v47 = vld [vmem:[#allocation4 + $0xb8] sm:$0xff] }
 0x5eb   :  { %v5356_v13 = vadd.f32 %v5331_v38, %v5306_v41 }
 0x5ed   :  { %v5372_v11 = vpack.c.bf16 %v5356_v13, %v5355_v42  ;;  %v5400_v42 = vpop.permute.xlu0 %5399  ;;  %v5338_v13 = vld [vmem:[#allocation4 + $0xc0] sm:$0xff] }
 0x5ee   :  { %v5209_v63 = vpop.f32.mrb[88].mxu0 }
 0x5ef   :  { %v5210_v39 = vadd.f32 %v5209_v63, %v11108_v22  ;;  %v5211_v50 = vpop.f32.mrb[89].mxu0  ;;  %v5429_v27 = vsel %vm12138_vm9, %v5372_v11, %v5394_v17 }
 0x5f0   :  { %v5212_v57 = vpop.f32.mrb[90].mxu0  ;;  %7607 = vmatmul.mubr.msk.bf16.gmra.mrb[140].mxu1 %vm12139_vm2, %v5429_v27  ;;  %vm12141_vm2 = vmmov %vm12118_vm1 }
 0x5f1   :  { %vm5257_vm15 = vcmp.gt.f32.partialorder %v5210_v39, 0.0  ;;  %v5282_v56 = vmul.f32 0.1, %v5210_v39  ;;  %v5213_v55 = vadd.f32 %v5212_v57, %v11108_v22  ;;  %v5214_v62 = vpop.f32.mrb[91].mxu0  ;;  %7610 = vmatprep.mubr.msk.bf16.mxu1 %vm12128_vm6, %v11722_v8  ;;  %v11188_v57 = vld [vmem:[%s11566_s2 + $0x5] ss:$0 sm:$0xff] }
 0x5f3   :  { %v5307_v29 = vsel %vm5257_vm15, %v5210_v39, %v5282_v56  ;;  %vm5258_vm0 = vcmp.gt.f32.partialorder %v5213_v55, 0.0  ;;  %v5283_v30 = vmul.f32 0.1, %v5213_v55  ;;  %vm12142_vm15 = vmmov %vm12140_vm11  ;;  %v5402_v39 = vpop.permute.xlu1 %5401 }
 0x5f4   :  { %v5357_v4 = vadd.f32 %v5332_v60, %v5307_v29 }
 0x5f5   :  { %v5308_v6 = vsel %vm5258_vm0, %v5213_v55, %v5283_v30 }
 0x5f6   :  { %v5358_v15 = vadd.f32 %v5333_v18, %v5308_v6 }
 0x5f8   :  { %v5373_v1 = vpack.c.bf16 %v5358_v15, %v5357_v4 }
 0x5fa   :  { %v5432_v44 = vsel %vm12118_vm1, %v5373_v1, %v5396_v25  ;;  %v12148_v25 = vmov 0.0|0.0  }
 0x5fb   :  { %7611 = vmatmul.mubr.msk.bf16.gmra.mrb[144].mxu1 %vm12140_vm11, %v5432_v44  ;;  %vm12143_vm11 = vmmov %vm12141_vm2 }
 0x5fc   :  { %7614 = vmatprep.mubr.msk.bf16.mxu1 %vm12128_vm6, %v11722_v8 }
 0x602   :  { %v5217_v10 = vpop.f32.mrb[92].mxu0 }
 0x603   :  { %v5218_v12 = vadd.f32 %v5217_v10, %v11108_v22  ;;  %v5219_v32 = vpop.f32.mrb[93].mxu0 }
 0x604   :  { %v5220_v19 = vpop.f32.mrb[94].mxu0 }
 0x605   :  { %vm5259_vm12 = vcmp.gt.f32.partialorder %v5218_v12, 0.0  ;;  %v5284_v26 = vmul.f32 0.1, %v5218_v12  ;;  %v5221_v61 = vadd.f32 %v5220_v19, %v11108_v22  ;;  %v5222_v45 = vpop.f32.mrb[95].mxu0 }
 0x607   :  { %v5309_v33 = vsel %vm5259_vm12, %v5218_v12, %v5284_v26  ;;  %vm5260_vm4 = vcmp.gt.f32.partialorder %v5221_v61, 0.0  ;;  %v5285_v7 = vmul.f32 0.1, %v5221_v61  ;;  %vm12144_vm12 = vmmov %vm12142_vm15  ;;  %v12168_v26 = vld [vmem:[#allocation20_spill] sm:$0xff] }
 0x608   :  { %v5359_v16 = vadd.f32 %v5334_v34, %v5309_v33 }
 0x609   :  { %v5310_v31 = vsel %vm5260_vm4, %v5221_v61, %v5285_v7  ;;  %vm12145_vm4 = vmmov %vm12141_vm2 }
 0x60a   :  { %v5360_v58 = vadd.f32 %v5335_v37, %v5310_v31  ;;  %v5233_v36 = vpop.f32.mrb[104].mxu1 }
 0x60b   :  { %v5225_v20 = vpop.f32.mrb[96].mxu0  ;;  %v5235_v5 = vpop.f32.mrb[105].mxu1  ;;  %v5234_v48 = vadd.f32 %v5233_v36, %v11108_v22  ;;  %v5722_v36 = vmul.u32 100, %v12151_v14 }
 0x60c   :  { %v5226_v59 = vadd.f32 %v5225_v20, %v11108_v22  ;;  %v5227_v54 = vpop.f32.mrb[97].mxu0  ;;  %v5236_v52 = vpop.f32.mrb[106].mxu1  ;;  %v5374_v49 = vpack.c.bf16 %v5360_v58, %v5359_v16  ;;  %v12150_v16 = vld [vmem:[#allocation9_spill] sm:$0xff]  ;;  %v5725_v20 = vadd.s32 1, %v12151_v14 }
 0x60d   :  { %v5228_v28 = vpop.f32.mrb[98].mxu0  ;;  %v5237_v23 = vpop.f32.mrb[107].mxu1  ;;  %v5288_v2 = vmul.f32 0.1, %v5234_v48  ;;  %vm5263_vm1 = vcmp.gt.f32.partialorder %v5234_v48, 0.0  ;;  %v5721_v58 = vadd.s32 128, %v12150_v16 }
 0x60e   :  { %vm5261_vm9 = vcmp.gt.f32.partialorder %v5226_v59, 0.0  ;;  %v5286_v51 = vmul.f32 0.1, %v5226_v59  ;;  %v5229_v35 = vadd.f32 %v5228_v28, %v11108_v22  ;;  %v5230_v9 = vpop.f32.mrb[99].mxu0  ;;  %v5435_v24 = vsel %vm12141_vm2, %v5374_v49, %v5398_v21  ;;  %v12154_v49 = vld [vmem:[#allocation15_spill] sm:$0xff]  ;;  %v12156_v28 = vld [vmem:[#allocation10_spill] sm:$0xff] }
 0x60f   :  { %7615 = vmatmul.mubr.msk.bf16.gmra.mrb[148].mxu1 %vm12142_vm15, %v5435_v24  ;;  %v5313_v38 = vsel %vm5263_vm1, %v5234_v48, %v5288_v2  ;;  %v5816_v23 = vld [vmem:[%s11567_s3 + $0x8] sm:$0xff] }
 0x610   :  { %v5311_v43 = vsel %vm5261_vm9, %v5226_v59, %v5286_v51  ;;  %vm5262_vm0 = vcmp.gt.f32.partialorder %v5229_v35, 0.0  ;;  %v5287_v40 = vmul.f32 0.1, %v5229_v35  ;;  %7618 = vmatprep.mubr.msk.bf16.mxu1 %vm12128_vm6, %v11722_v8  ;;  %v5363_v11 = vadd.f32 %v5338_v13, %v5313_v38  ;;  %vm12146_vm9 = vmmov %vm12144_vm12 }
 0x611   :  { %v5361_v0 = vadd.f32 %v5336_v3, %v5311_v43  ;;  %v5726_v59 = vmul.u32 100, %v5725_v20  ;;  %v12170_v20 = vld [vmem:[#allocation21_spill] sm:$0xff] }
 0x612   :  { %v5312_v53 = vsel %vm5262_vm0, %v5229_v35, %v5287_v40  ;;  %v5376_v63 = vpack.c.bf16 %v5363_v11, %v5363_v11  ;;  %v5820_v35 = vld [vmem:[%s11567_s3 + $0x28] sm:$0xff] }
 0x613   :  { %v5362_v41 = vadd.f32 %v5337_v47, %v5312_v53 }
 0x614   :  { %v5441_v50 = vsel %vm12145_vm4, %v5376_v63, %v5402_v39  ;;  %vm12157_vm4 = vcmp.ge.s32.totalorder %v12156_v28, 1 }
 0x615   :  { %v5375_v22 = vpack.c.bf16 %v5362_v41, %v5361_v0 }
 0x617   :  { %v5438_v17 = vsel %vm12143_vm11, %v5375_v22, %v5400_v42 }
 0x618   :  { %7619 = vmatmul.mubr.msk.bf16.gmra.mrb[152].mxu1 %vm12144_vm12, %v5438_v17  ;;  %vm12155_vm12 = vcmp.le.s32.totalorder %v12154_v49, 8 }
 0x619   :  { %7622 = vmatprep.mubr.msk.bf16.mxu1 %vm12128_vm6, %v11722_v8  ;;  %vm12147_vm6 = vmmov 1  }
 0x61a   :  { %vm7628_vm15 = vmpackc.low %vm9786_vm8, %vm12147_vm6  ;;  %vm5728_vm6 = vcmp.lt.s32.totalorder %v5721_v58, %v5726_v59 }
 0x61b   :  { %vm7632_vm8 = vmpackc.low %vm9806_vm3, %vm9798_vm13  ;;  %vm11208_vm3 = vcmp.ge.s32.totalorder %v5721_v58, %v5722_v36 }
 0x620   :  { %7623 = vmatmul.mubr.msk.bf16.gmra.mrb[156].mxu1 %vm12146_vm9, %v5441_v50  ;;  %vm7636_vm9 = vmpackc.low %vm12157_vm4, %vm12155_vm12 }
 0x656   :  { %v5519_v27 = vpop.f32.mrb[108].mxu1 }
 0x657   :  { %v7576_v56 = vpop.f32.mrb[109].mxu1 }
 0x658   :  { %v5522_v55 = vpop.f32.mrb[110].mxu1 }
 0x659   :  { %v5523_v62 = vadd.f32 %v5522_v55, %v11188_v57  ;;  %v7577_v29 = vpop.f32.mrb[111].mxu1 }
 0x65b   :  { %vm5622_vm2 = vcmp.gt.f32.partialorder %v5523_v62, 0.0  ;;  %v5647_v30 = vmul.f32 0.1, %v5523_v62 }
 0x65d   :  { %v5672_v60 = vsel %vm5622_vm2, %v5523_v62, %v5647_v30  ;;  %vm11217_vm2 = vcmp.ge.s32.totalorder %v12150_v16, %v5722_v36 }
 0x65e   :  { %v7627_v6 = vpack.c.bf16 %v5672_v60, %v11722_v8 }
 0x65f   :  { %v5527_v18 = vpop.f32.mrb[112].mxu1 }
 0x660   :  { %v5528_v4 = vadd.f32 %v5527_v18, %v11188_v57  ;;  %v7580_v15 = vpop.f32.mrb[113].mxu1  ;;  %7629 = vmatpush1.bf16.msk.msra.mxu0 %vm7628_vm15, %v7627_v6  ;;  %vm5735_vm15 = vcmask 588800  }
 0x661   :  { %v5530_v1 = vpop.f32.mrb[114].mxu1  ;;  %7630 = vmatprep.subr.bf16.mxu0 %v12148_v25 }
 0x662   :  { %v5648_v44 = vmul.f32 0.1, %v5528_v4  ;;  %v5531_v10 = vadd.f32 %v5530_v1, %v11188_v57  ;;  %v7581_v12 = vpop.f32.mrb[115].mxu1  ;;  %vm5623_vm0 = vcmp.gt.f32.partialorder %v5528_v4, 0.0 }
 0x664   :  { %vm5624_vm1 = vcmp.gt.f32.partialorder %v5531_v10, 0.0  ;;  %v5649_v32 = vmul.f32 0.1, %v5531_v10  ;;  %v5673_v19 = vsel %vm5623_vm0, %v5528_v4, %v5648_v44  ;;  %vm11222_vm0 = vcmp.lt.s32.totalorder %v12150_v16, %v5726_v59 }
 0x666   :  { %v5674_v46 = vsel %vm5624_vm1, %v5531_v10, %v5649_v32  ;;  %vm5730_vm1 = vmand %vm11208_vm3, %vm5728_vm6 }
 0x667   :  { %v7631_v61 = vpack.c.bf16 %v5674_v46, %v5673_v19  ;;  %v7159_v43 = vsel %vm5730_vm1, 1.0, %v11722_v8  ;;  %vm7640_vm3 = vmpackc.low %vm9953_vm5, %vm9933_vm14  ;;  %v12166_v46 = vld [vmem:[#allocation11_spill] sm:$0xff] }
 0x668   :  { %7183 = vmatprep.mubr.msk.f32.mxu0 %vm5735_vm15, %v7159_v43  ;;  %vm7644_vm14 = vmpackc.low %vm10054_vm10, %vm10030_vm7  ;;  %vm12167_vm7 = vcmp.ge.s32.totalorder %v12166_v46, 1  ;;  %vm12169_vm10 = vnez %v12168_v26 }
 0x669   :  { %7633 = vmatpush1.bf16.msk.msra.mxu0 %vm7632_vm8, %v7631_v61  ;;  %vm5729_vm8 = vmand %vm11217_vm2, %vm11222_vm0  ;;  %vm12195_vm2 = vcmask 130048  }
 0x66a   :  { %7634 = vmatprep.subr.bf16.mxu0 %v12148_v25  ;;  %vm7648_vm6 = vmpackc.low %vm12169_vm10, %vm12167_vm7 }
 0x66b   :  { %vm12196_vm0 = vmmov %vm12195_vm2 }
 0x66f   :  { %v5535_v45 = vpop.f32.mrb[116].mxu1 }
 0x670   :  { %v5536_v33 = vadd.f32 %v5535_v45, %v11188_v57  ;;  %v7584_v7 = vpop.f32.mrb[117].mxu1 }
 0x671   :  { %v5538_v34 = vpop.f32.mrb[118].mxu1 }
 0x672   :  { %v5650_v31 = vmul.f32 0.1, %v5536_v33  ;;  %v5539_v37 = vadd.f32 %v5538_v34, %v11188_v57  ;;  %v7585_v21 = vpop.f32.mrb[119].mxu1  ;;  %vm5625_vm11 = vcmp.gt.f32.partialorder %v5536_v33, 0.0 }
 0x674   :  { %vm5626_vm13 = vcmp.gt.f32.partialorder %v5539_v37, 0.0  ;;  %v5651_v5 = vmul.f32 0.1, %v5539_v37  ;;  %v5675_v54 = vsel %vm5625_vm11, %v5536_v33, %v5650_v31 }
 0x676   :  { %v5676_v52 = vsel %vm5626_vm13, %v5539_v37, %v5651_v5  ;;  %v12172_v5 = vld [vmem:[#allocation22_spill] sm:$0xff] }
 0x677   :  { %v7635_v51 = vpack.c.bf16 %v5676_v52, %v5675_v54 }
 0x678   :  { %v5543_v9 = vpop.f32.mrb[120].mxu1 }
 0x679   :  { %v5544_v24 = vadd.f32 %v5543_v9, %v11188_v57  ;;  %v7588_v2 = vpop.f32.mrb[121].mxu1  ;;  %7637 = vmatpush1.bf16.msk.msra.mxu0 %vm7636_vm9, %v7635_v51 }
 0x67a   :  { %v5546_v40 = vpop.f32.mrb[122].mxu1  ;;  %7638 = vmatprep.subr.bf16.mxu0 %v12148_v25 }
 0x67b   :  { %v5652_v3 = vmul.f32 0.1, %v5544_v24  ;;  %v5547_v53 = vadd.f32 %v5546_v40, %v11188_v57  ;;  %v7589_v47 = vpop.f32.mrb[123].mxu1  ;;  %vm5627_vm11 = vcmp.gt.f32.partialorder %v5544_v24, 0.0  ;;  %v12174_v40 = vld [vmem:[#allocation23_spill] sm:$0xff] }
 0x67d   :  { %vm5628_vm13 = vcmp.gt.f32.partialorder %v5547_v53, 0.0  ;;  %v5653_v0 = vmul.f32 0.1, %v5547_v53  ;;  %v5677_v41 = vsel %vm5627_vm11, %v5544_v24, %v5652_v3  ;;  %vm12171_vm11 = vnez %v12170_v20  ;;  %v12176_v3 = vld [vmem:[#allocation12_spill] sm:$0xff] }
 0x67f   :  { %v5678_v38 = vsel %vm5628_vm13, %v5547_v53, %v5653_v0  ;;  %vm12173_vm13 = vnez %v12172_v5 }
 0x680   :  { %v7639_v42 = vpack.c.bf16 %v5678_v38, %v5677_v41 }
 0x682   :  { %7641 = vmatpush1.bf16.msk.msra.mxu0 %vm7640_vm3, %v7639_v42  ;;  %vm7652_vm3 = vmpackc.low %vm12173_vm13, %vm12171_vm11 }
 0x683   :  { %7642 = vmatprep.subr.bf16.mxu0 %v12148_v25 }
 0x68b   :  { %v5551_v13 = vpop.f32.mrb[124].mxu1 }
 0x68c   :  { %v5552_v11 = vadd.f32 %v5551_v13, %v11188_v57  ;;  %v7592_v17 = vpop.f32.mrb[125].mxu1 }
 0x68d   :  { %v5554_v63 = vpop.f32.mrb[126].mxu1 }
 0x68e   :  { %v5654_v39 = vmul.f32 0.1, %v5552_v11  ;;  %v5555_v50 = vadd.f32 %v5554_v63, %v11188_v57  ;;  %v7593_v27 = vpop.f32.mrb[127].mxu1  ;;  %vm5629_vm12 = vcmp.gt.f32.partialorder %v5552_v11, 0.0  ;;  %v12178_v63 = vld [vmem:[#allocation24_spill] sm:$0xff] }
 0x690   :  { %vm5630_vm4 = vcmp.gt.f32.partialorder %v5555_v50, 0.0  ;;  %v5655_v56 = vmul.f32 0.1, %v5555_v50  ;;  %v5679_v55 = vsel %vm5629_vm12, %v5552_v11, %v5654_v39  ;;  %v12180_v39 = vld [vmem:[#allocation25_spill] sm:$0xff] }
 0x692   :  { %v5680_v62 = vsel %vm5630_vm4, %v5555_v50, %v5655_v56 }
 0x693   :  { %v7643_v60 = vpack.c.bf16 %v5680_v62, %v5679_v55 }
 0x694   :  { %v5559_v6 = vpop.f32.mrb[128].mxu1 }
 0x695   :  { %v5560_v18 = vadd.f32 %v5559_v6, %v11188_v57  ;;  %v7596_v4 = vpop.f32.mrb[129].mxu1  ;;  %7645 = vmatpush1.bf16.msk.msra.mxu0 %vm7644_vm14, %v7643_v60  ;;  %vm12175_vm14 = vcmp.le.s32.totalorder %v12174_v40, 8  ;;  %v5815_v40 = vld [vmem:[%s11567_s3] sm:$0xff] }
 0x696   :  { %v5562_v15 = vpop.f32.mrb[130].mxu1  ;;  %7646 = vmatprep.subr.bf16.mxu0 %v12148_v25 }
 0x697   :  { %v5656_v1 = vmul.f32 0.1, %v5560_v18  ;;  %v5563_v44 = vadd.f32 %v5562_v15, %v11188_v57  ;;  %v7597_v10 = vpop.f32.mrb[131].mxu1  ;;  %vm5631_vm5 = vcmp.gt.f32.partialorder %v5560_v18, 0.0  ;;  %v12182_v15 = vld [vmem:[#allocation26_spill] sm:$0xff] }
 0x699   :  { %vm5632_vm9 = vcmp.gt.f32.partialorder %v5563_v44, 0.0  ;;  %v5657_v12 = vmul.f32 0.1, %v5563_v44  ;;  %v5681_v32 = vsel %vm5631_vm5, %v5560_v18, %v5656_v1  ;;  %vm12177_vm5 = vcmp.ge.s32.totalorder %v12176_v3, 1  ;;  %v12184_v1 = vld [vmem:[#allocation27_spill] sm:$0xff] }
 0x69a   :  { %v5819_v3 = vld [vmem:[%s11567_s3 + $0x20] sm:$0xff] }
 0x69b   :  { %v5682_v19 = vsel %vm5632_vm9, %v5563_v44, %v5657_v12  ;;  %vm7656_vm9 = vmpackc.low %vm12177_vm5, %vm12175_vm14 }
 0x69c   :  { %v7647_v61 = vpack.c.bf16 %v5682_v19, %v5681_v32 }
 0x69e   :  { %7649 = vmatpush1.bf16.msk.msra.mxu0 %vm7648_vm6, %v7647_v61  ;;  %vm12179_vm6 = vnez %v12178_v63 }
 0x69f   :  { %7650 = vmatprep.subr.bf16.mxu0 %v12148_v25 }
 0x6a7   :  { %v5567_v45 = vpop.f32.mrb[132].mxu1 }
 0x6a8   :  { %v5568_v33 = vadd.f32 %v5567_v45, %v11188_v57  ;;  %v7600_v7 = vpop.f32.mrb[133].mxu1 }
 0x6a9   :  { %v5570_v34 = vpop.f32.mrb[134].mxu1 }
 0x6aa   :  { %v5658_v31 = vmul.f32 0.1, %v5568_v33  ;;  %v5571_v37 = vadd.f32 %v5570_v34, %v11188_v57  ;;  %v7601_v21 = vpop.f32.mrb[135].mxu1  ;;  %vm5633_vm15 = vcmp.gt.f32.partialorder %v5568_v33, 0.0  ;;  %v12186_v34 = vld [vmem:[#allocation28_spill] sm:$0xff] }
 0x6ac   :  { %vm5634_vm1 = vcmp.gt.f32.partialorder %v5571_v37, 0.0  ;;  %v5659_v16 = vmul.f32 0.1, %v5571_v37  ;;  %v5683_v58 = vsel %vm5633_vm15, %v5568_v33, %v5658_v31  ;;  %vm12181_vm15 = vnez %v12180_v39  ;;  %v12188_v31 = vld [vmem:[#allocation13_spill] sm:$0xff] }
 0x6ae   :  { %v5684_v36 = vsel %vm5634_vm1, %v5571_v37, %v5659_v16  ;;  %vm7660_vm1 = vmpackc.low %vm12181_vm15, %vm12179_vm6 }
 0x6af   :  { %v7651_v48 = vpack.c.bf16 %v5684_v36, %v5683_v58 }
 0x6b0   :  { %v5575_v59 = vpop.f32.mrb[136].mxu1 }
 0x6b1   :  { %v5576_v54 = vadd.f32 %v5575_v59, %v11188_v57  ;;  %v7604_v52 = vpop.f32.mrb[137].mxu1  ;;  %7653 = vmatpush1.bf16.msk.msra.mxu0 %vm7652_vm3, %v7651_v48  ;;  %vm12183_vm3 = vnez %v12182_v15  ;;  %v7811_v15 = vld [vmem:[%s11568_s4 + $0x50] sm:$0xff]  }
 0x6b2   :  { %v5578_v49 = vpop.f32.mrb[138].mxu1  ;;  %7654 = vmatprep.subr.bf16.mxu0 %v12148_v25 }
 0x6b3   :  { %v5660_v28 = vmul.f32 0.1, %v5576_v54  ;;  %v5579_v51 = vadd.f32 %v5578_v49, %v11188_v57  ;;  %v7605_v9 = vpop.f32.mrb[139].mxu1  ;;  %vm5635_vm12 = vcmp.gt.f32.partialorder %v5576_v54, 0.0  ;;  %v12190_v49 = vld [vmem:[#allocation29_spill] sm:$0xff] }
 0x6b5   :  { %vm5636_vm4 = vcmp.gt.f32.partialorder %v5579_v51, 0.0  ;;  %v5661_v24 = vmul.f32 0.1, %v5579_v51  ;;  %v5685_v2 = vsel %vm5635_vm12, %v5576_v54, %v5660_v28  ;;  %vm12185_vm12 = vnez %v12184_v1  ;;  %v12192_v28 = vld [vmem:[#allocation30_spill] sm:$0xff]  ;;  %v7813_v1 = vld [vmem:[%s11568_s4 + $0x10] sm:$0xff]  }
 0x6b7   :  { %v5686_v43 = vsel %vm5636_vm4, %v5579_v51, %v5661_v24  ;;  %vm7664_vm4 = vmpackc.low %vm12185_vm12, %vm12183_vm3  ;;  %vm6791_vm12 = vcmask 74752  }
 0x6b8   :  { %v7655_v53 = vpack.c.bf16 %v5686_v43, %v5685_v2  ;;  %v7909_v43 = vmov 1.0   ;;  %vm12198_vm3 = vmmov %vm12196_vm0 }
 0x6ba   :  { %7657 = vmatpush1.bf16.msk.msra.mxu0 %vm7656_vm9, %v7655_v53  ;;  %vm12187_vm9 = vnez %v12186_v34  ;;  %v7185_v53 = vcombine.low %v5815_v40, %v5819_v3  ;;  %v7826_v34 = vld [vmem:[%s11568_s4 + $0x158] sm:$0xff]  }
 0x6bb   :  { %7658 = vmatprep.subr.bf16.mxu0 %v12148_v25 }
 0x6c3   :  { %v5583_v47 = vpop.f32.mrb[140].mxu1 }
 0x6c4   :  { %v5584_v0 = vadd.f32 %v5583_v47, %v11188_v57  ;;  %v7608_v41 = vpop.f32.mrb[141].mxu1  ;;  %v7186_v47 = vcombine.high %v5815_v40, %v5819_v3 }
 0x6c5   :  { %v5586_v38 = vpop.f32.mrb[142].mxu1  ;;  %v7188_v41 = vcombine.high %v5816_v23, %v5820_v35 }
 0x6c6   :  { %v5662_v22 = vmul.f32 0.1, %v5584_v0  ;;  %v5587_v8 = vadd.f32 %v5586_v38, %v11188_v57  ;;  %v7609_v42 = vpop.f32.mrb[143].mxu1  ;;  %vm5637_vm7 = vcmp.gt.f32.partialorder %v5584_v0, 0.0  ;;  %v7804_v38 = vld [vmem:[%s11568_s4 + $0x140] sm:$0xff]  }
 0x6c7   :  { %7404 = vmatprep.subr.bf16.mxu1 %v7804_v38  ;;  %v7812_v42 = vld [vmem:[%s11568_s4 + $0x108] sm:$0xff]  }
 0x6c8   :  { %vm5638_vm10 = vcmp.gt.f32.partialorder %v5587_v8, 0.0  ;;  %v5663_v13 = vmul.f32 0.1, %v5587_v8  ;;  %v5687_v11 = vsel %vm5637_vm7, %v5584_v0, %v5662_v22  ;;  %vm12189_vm7 = vnez %v12188_v31  ;;  %v7805_v22 = vld [vmem:[%s11568_s4 + $0x100] sm:$0xff]   ;;  %v7827_v31 = vld [vmem:[%s11568_s4 + $0x118] sm:$0xff]  }
 0x6c9   :  { %v7187_v0 = vcombine.low %v5816_v23, %v5820_v35  ;;  %7405 = vmatpush3.bf16.msra.mxu1 %v7805_v22 }
 0x6ca   :  { %v5688_v17 = vsel %vm5638_vm10, %v5587_v8, %v5663_v13  ;;  %vm7668_vm10 = vmpackc.low %vm12189_vm7, %vm12187_vm9  ;;  %v7810_v8 = vld [vmem:[%s11568_s4 + $0x148] sm:$0xff]  }
 0x6cb   :  { %v7659_v50 = vpack.c.bf16 %v5688_v17, %v5687_v11  ;;  %7406 = vmatprep.subr.bf16.mxu1 %v7810_v8  ;;  %v5817_v11 = vld [vmem:[%s11567_s3 + $0x10] sm:$0xff] }
 0x6cc   :  { %v5821_v17 = vld [vmem:[%s11567_s3 + $0x30] sm:$0xff] }
 0x6cd   :  { %7661 = vmatpush1.bf16.msk.msra.mxu0 %vm7660_vm1, %v7659_v50  ;;  %vm12191_vm1 = vnez %v12190_v49  ;;  %7407 = vmatpush3.bf16.msra.mxu1 %v7812_v42  ;;  %v5811_v49 = vld [vmem:[%s11566_s2] ss:$8 sm:$0xf0] }
 0x6ce   :  { %v5591_v27 = vpop.f32.mrb[144].mxu1  ;;  %7662 = vmatprep.subr.bf16.mxu0 %v12148_v25 }
 0x6cf   :  { %v5592_v56 = vadd.f32 %v5591_v27, %v11188_v57  ;;  %v7612_v55 = vpop.f32.mrb[145].mxu1  ;;  %v7190_v27 = vcombine.high %v5817_v11, %v5821_v17 }
 0x6d0   :  { %v5594_v62 = vpop.f32.mrb[146].mxu1  ;;  %v5822_v55 = vld [vmem:[%s11567_s3 + $0x38] sm:$0xff] }
 0x6d1   :  { %v5664_v29 = vmul.f32 0.1, %v5592_v56  ;;  %v5595_v30 = vadd.f32 %v5594_v62, %v11188_v57  ;;  %v7613_v60 = vpop.f32.mrb[147].mxu1  ;;  %vm5639_vm11 = vcmp.gt.f32.partialorder %v5592_v56, 0.0  ;;  %v7189_v62 = vcombine.low %v5817_v11, %v5821_v17 }
 0x6d2   :  { %v7806_v60 = vld [vmem:[%s11568_s4 + $0x40] sm:$0xff]   ;;  %v5842_v17 = vsub.s32 4, %v12151_v14 }
 0x6d3   :  { %vm5640_vm13 = vcmp.gt.f32.partialorder %v5595_v30, 0.0  ;;  %v5665_v6 = vmul.f32 0.1, %v5595_v30  ;;  %v5689_v18 = vsel %vm5639_vm11, %v5592_v56, %v5664_v29  ;;  %vm12193_vm11 = vnez %v12192_v28  ;;  %v5818_v56 = vld [vmem:[%s11567_s3 + $0x18] sm:$0xff] }
 0x6d4   :  { %v7192_v29 = vcombine.high %v5818_v56, %v5822_v55 }
 0x6d5   :  { %v5690_v4 = vsel %vm5640_vm13, %v5595_v30, %v5665_v6  ;;  %vm7672_vm13 = vmpackc.low %vm12193_vm11, %vm12191_vm1  ;;  %v7191_v30 = vcombine.low %v5818_v56, %v5822_v55  ;;  %v7807_v6 = vld [vmem:[%s11568_s4] sm:$0xff]  }
 0x6d6   :  { %v7663_v44 = vpack.c.bf16 %v5690_v4, %v5689_v18  ;;  %v7808_v18 = vld [vmem:[%s11568_s4 + $0x48] sm:$0xff]  }
 0x6d7   :  { %v7809_v4 = vld [vmem:[%s11568_s4 + $0x8] sm:$0xff]  }
 0x6d8   :  { %7665 = vmatpush1.bf16.msk.msra.mxu0 %vm7664_vm4, %v7663_v44  ;;  %v7814_v44 = vld [vmem:[%s11568_s4 + $0x58] sm:$0xff]  }
 0x6d9   :  { %7666 = vmatprep.subr.bf16.mxu0 %v12148_v25 }
 0x6e2   :  { %v5599_v10 = vpop.f32.mrb[148].mxu1 }
 0x6e3   :  { %v5600_v12 = vadd.f32 %v5599_v10, %v11188_v57  ;;  %v7616_v32 = vpop.f32.mrb[149].mxu1  ;;  %v7815_v10 = vld [vmem:[%s11568_s4 + $0x18] sm:$0xff]  }
 0x6e4   :  { %v5602_v19 = vpop.f32.mrb[150].mxu1  ;;  %v7817_v32 = vld [vmem:[%s11568_s4 + $0x20] sm:$0xff]  }
 0x6e5   :  { %v5666_v46 = vmul.f32 0.1, %v5600_v12  ;;  %v5603_v26 = vadd.f32 %v5602_v19, %v11188_v57  ;;  %v7617_v61 = vpop.f32.mrb[151].mxu1  ;;  %vm5641_vm14 = vcmp.gt.f32.partialorder %v5600_v12, 0.0  ;;  %v7818_v19 = vld [vmem:[%s11568_s4 + $0x68] sm:$0xff]  }
 0x6e6   :  { %v7820_v61 = vld [vmem:[%s11568_s4 + $0x28] sm:$0xff]  }
 0x6e7   :  { %vm5642_vm5 = vcmp.gt.f32.partialorder %v5603_v26, 0.0  ;;  %v5667_v45 = vmul.f32 0.1, %v5603_v26  ;;  %v5691_v33 = vsel %vm5641_vm14, %v5600_v12, %v5666_v46  ;;  %v7816_v12 = vld [vmem:[%s11568_s4 + $0x60] sm:$0xff]   ;;  %v7819_v46 = vld [vmem:[%s11568_s4 + $0x150] sm:$0xff]  }
 0x6e8   :  { %7408 = vmatprep.subr.bf16.mxu1 %v7819_v46 }
 0x6e9   :  { %v5692_v7 = vsel %vm5642_vm5, %v5603_v26, %v5667_v45  ;;  %v7821_v26 = vld [vmem:[%s11568_s4 + $0x110] sm:$0xff]  }
 0x6ea   :  { %v7667_v37 = vpack.c.bf16 %v5692_v7, %v5691_v33  ;;  %7409 = vmatpush3.bf16.msra.mxu1 %v7821_v26  ;;  %v7822_v45 = vld [vmem:[%s11568_s4 + $0x70] sm:$0xff]   ;;  %v7824_v7 = vld [vmem:[%s11568_s4 + $0x78] sm:$0xff]  }
 0x6eb   :  { %v5607_v21 = vpop.f32.mrb[152].mxu1  ;;  %v7823_v33 = vld [vmem:[%s11568_s4 + $0x30] sm:$0xff]   ;;  %7410 = vmatprep.subr.bf16.mxu1 %v7826_v34 }
 0x6ec   :  { %v5608_v16 = vadd.f32 %v5607_v21, %v11188_v57  ;;  %v7620_v58 = vpop.f32.mrb[153].mxu1  ;;  %7669 = vmatpush1.bf16.msk.msra.mxu0 %vm7668_vm10, %v7667_v37  ;;  %v7825_v37 = vld [vmem:[%s11568_s4 + $0x38] sm:$0xff]   ;;  %v7828_v21 = vld [vmem:[%s11568_s4 + $0xc0] sm:$0xff]  }
 0x6ed   :  { %v5610_v36 = vpop.f32.mrb[154].mxu1  ;;  %7670 = vmatprep.subr.bf16.mxu0 %v12148_v25  ;;  %v7831_v58 = vld [vmem:[%s11568_s4 + $0x120] sm:$0xff]  }
 0x6ee   :  { %v5668_v20 = vmul.f32 0.1, %v5608_v16  ;;  %v5611_v5 = vadd.f32 %v5610_v36, %v11188_v57  ;;  %v7621_v48 = vpop.f32.mrb[155].mxu1  ;;  %vm5643_vm6 = vcmp.gt.f32.partialorder %v5608_v16, 0.0  ;;  %v12194_v57 = vmov 0   ;;  %7411 = vmatpush3.bf16.msra.mxu1 %v7827_v31  ;;  %v7834_v36 = vld [vmem:[%s11568_s4 + $0x168] sm:$0xff]  }
 0x6ef   :  { %v7839_v48 = vld [vmem:[%s11568_s4 + $0x130] sm:$0xff]  }
 0x6f0   :  { %vm5644_vm15 = vcmp.gt.f32.partialorder %v5611_v5, 0.0  ;;  %v5669_v59 = vmul.f32 0.1, %v5611_v5  ;;  %v5693_v54 = vsel %vm5643_vm6, %v5608_v16, %v5668_v20  ;;  %v7830_v16 = vld [vmem:[%s11568_s4 + $0x160] sm:$0xff]   ;;  %v7835_v20 = vld [vmem:[%s11568_s4 + $0x128] sm:$0xff]  }
 0x6f1   :  { %7412 = vmatprep.subr.bf16.mxu1 %v7830_v16 }
 0x6f2   :  { %v5694_v52 = vsel %vm5644_vm15, %v5611_v5, %v5669_v59  ;;  %7413 = vmatpush3.bf16.msra.mxu1 %v7831_v58  ;;  %v7838_v5 = vld [vmem:[%s11568_s4 + $0x170] sm:$0xff]   ;;  %v7842_v59 = vld [vmem:[%s11568_s4 + $0x178] sm:$0xff]  }
 0x6f3   :  { %v7671_v51 = vpack.c.bf16 %v5694_v52, %v5693_v54  ;;  %v5615_v9 = vpop.f32.mrb[156].mxu1  ;;  %7414 = vmatprep.subr.bf16.mxu1 %v7834_v36  ;;  %v7843_v54 = vld [vmem:[%s11568_s4 + $0x138] sm:$0xff]  }
 0x6f4   :  { %v7624_v24 = vpop.f32.mrb[157].mxu1  ;;  %v5810_v52 = vld [vmem:[%s11566_s2] ss:$8 sm:$0xf]  ;;  %v5830_v9 = vsub.s32 1, %v12151_v14 }
 0x6f5   :  { %v5618_v2 = vpop.f32.mrb[158].mxu1  ;;  %7673 = vmatpush1.bf16.msk.msra.mxu0 %vm7672_vm13, %v7671_v51  ;;  %v11438_v28 = vor.u32 %v5811_v49, %v5810_v52  ;;  %v5826_v51 = vsub.s32 0, %v12151_v14  ;;  %v7840_v52 = vld [vmem:[%s11568_s4 + $0xd8] sm:$0xff]  }
 0x6f6   :  { %v7625_v25 = vpop.f32.mrb[159].mxu1  ;;  %5907 = vmatprep.subr.bf16.mxu0 %v7186_v47  ;;  %7415 = vmatpush3.bf16.msra.mxu1 %v7835_v20 }
 0x6f7   :  { %7416 = vmatprep.subr.bf16.mxu1 %v7838_v5  ;;  %v5827_v24 = vrot.slane %v11438_v28, %v5826_v51  ;;  %v5831_v2 = vrot.slane %v11438_v28, %v5830_v9 }
 0x6f8   :  { %7184 = vmatmul.mubr.msk.f32.vlgmr.msra.gmra.mrb[100].mxu0 %vm5729_vm8, %v7909_v43  ;;  %vm12197_vm8 = vmmov %vm12196_vm0 }
 0x6f9   :  { %5939 = vmatprep.mubr.bf16.mxu0 %v12194_v57  ;;  %5908 = vmatpush1.bf16.msra.mxu0 %v7185_v53  ;;  %v5838_v53 = vsub.s32 3, %v12151_v14 }
 0x6fa   :  { %5948 = vmatprep.subr.bf16.mxu0 %v7188_v41  ;;  %7417 = vmatpush3.bf16.msra.mxu1 %v7839_v48  ;;  %v7837_v48 = vld [vmem:[%s11568_s4 + $0x90] sm:$0xff]  }
 0x6fb   :  { %7418 = vmatprep.subr.bf16.mxu1 %v7842_v59  ;;  %v5839_v38 = vrot.slane %v11438_v28, %v5838_v53 }
 0x6fe   :  { %7419 = vmatpush3.bf16.msra.mxu1 %v7843_v54 }
 0x7cb   :  { %v5805_v13 = vpop.f32.mrb[100].mxu0 }
 0x7cc   :  { %v5809_v63 = vmul.f32 0.015625, %v5805_v13  ;;  %v5807_v39 = vpop.f32.mrb[101].mxu0 }
 0x7ce   :  { %v5814_v50 = vpack.c.bf16 %v5809_v63, %v5809_v63 }
 0x7d0   :  { %7193 = vmatmul.mubr.msk.bf16.vlgmr.msra.gmra.mrb[104].mxu0 %vm12195_vm2, %v5814_v50 }
 0x7d1   :  { %5949 = vmatpush1.bf16.msra.mxu0 %v7187_v0  ;;  %5980 = vmatprep.mubr.bf16.mxu0 %v12194_v57 }
 0x7d2   :  { %5989 = vmatprep.subr.bf16.mxu0 %v7190_v27  ;;  %v5846_v27 = vsub.s32 5, %v12151_v14 }
 0x7d8   :  { %7194 = vmatmul.mubr.msk.bf16.vlgmr.msra.gmra.mrb[108].mxu0 %vm12196_vm0, %v5814_v50 }
 0x7d9   :  { %5990 = vmatpush1.bf16.msra.mxu0 %v7189_v62  ;;  %6021 = vmatprep.mubr.bf16.mxu0 %v12194_v57 }
 0x7da   :  { %6030 = vmatprep.subr.bf16.mxu0 %v7192_v29 }
 0x7e0   :  { %7195 = vmatmul.mubr.msk.bf16.vlgmr.msra.gmra.mrb[112].mxu0 %vm12197_vm8, %v5814_v50 }
 0x7e1   :  { %6031 = vmatpush1.bf16.msra.mxu0 %v7191_v30  ;;  %6062 = vmatprep.mubr.bf16.mxu0 %v12194_v57  ;;  %v5843_v30 = vrot.slane %v11438_v28, %v5842_v17  ;;  %v7848_v17 = vld [vmem:[%s11568_s4 + $0xf0] sm:$0xff]  }
 0x7e2   :  { %7360 = vmatprep.subr.bf16.mxu0 %v7806_v60 }
 0x7e8   :  { %7196 = vmatmul.mubr.msk.bf16.vlgmr.msra.gmra.mrb[116].mxu0 %vm12198_vm3, %v5814_v50 }
 0x7e9   :  { %7361 = vmatpush3.bf16.msra.mxu0 %v7807_v6 }
 0x7ea   :  { %7362 = vmatprep.subr.bf16.mxu0 %v7808_v18  ;;  %v5847_v18 = vrot.slane %v11438_v28, %v5846_v27  ;;  %v7850_v27 = vld [vmem:[%s11568_s4 + $0xf8] sm:$0xff]  }
 0x7ed   :  { %7363 = vmatpush3.bf16.msra.mxu0 %v7809_v4  ;;  %v7829_v4 = vld [vmem:[%s11568_s4 + $0x80] sm:$0xff]  }
 0x7ee   :  { %7364 = vmatprep.subr.bf16.mxu0 %v7811_v15 }
 0x7f1   :  { %7365 = vmatpush3.bf16.msra.mxu0 %v7813_v1  ;;  %v5834_v1 = vsub.s32 2, %v12151_v14 }
 0x7f2   :  { %7366 = vmatprep.subr.bf16.mxu0 %v7814_v44  ;;  %v7832_v44 = vld [vmem:[%s11568_s4 + $0xc8] sm:$0xff]  }
 0x7f5   :  { %7367 = vmatpush3.bf16.msra.mxu0 %v7815_v10 }
 0x7f6   :  { %7368 = vmatprep.subr.bf16.mxu0 %v7816_v12 }
 0x7f9   :  { %7369 = vmatpush3.bf16.msra.mxu0 %v7817_v32 }
 0x7fa   :  { %7370 = vmatprep.subr.bf16.mxu0 %v7818_v19 }
 0x7fd   :  { %7371 = vmatpush3.bf16.msra.mxu0 %v7820_v61 }
 0x7fe   :  { %7372 = vmatprep.subr.bf16.mxu0 %v7822_v45  ;;  %v7833_v45 = vld [vmem:[%s11568_s4 + $0x88] sm:$0xff]  }
 0x801   :  { %7373 = vmatpush3.bf16.msra.mxu0 %v7823_v33  ;;  %v5854_v33 = vsub.s32 7, %v12151_v14 }
 0x802   :  { %7374 = vmatprep.subr.bf16.mxu0 %v7824_v7  ;;  %v5835_v7 = vrot.slane %v11438_v28, %v5834_v1  ;;  %v7855_v1 = vld [vmem:[%s11568_s4 + $0x188] sm:$0xff]  }
 0x803   :  { %v5855_v5 = vrot.slane %v11438_v28, %v5854_v33  ;;  %v7863_v33 = vld [vmem:[%s11568_s4 + $0x1a8] sm:$0xff]  }
 0x805   :  { %7375 = vmatpush3.bf16.msra.mxu0 %v7825_v37  ;;  %v7836_v37 = vld [vmem:[%s11568_s4 + $0xd0] sm:$0xff]  }
 0x806   :  { %7382 = vmatprep.subr.bf16.mxu0 %v7828_v21 }
 0x8a3   :  { %v5941_v25 = vpop.f32.mrb[104].mxu0 }
 0x8a4   :  { %v5942_v43 = vadd.f32 %v5941_v25, %v5827_v24  ;;  %v5943_v57 = vpop.f32.mrb[105].mxu0 }
 0x8a5   :  { %v5944_v40 = vadd.f32 %v5943_v57, %v5831_v2  ;;  %v5945_v3 = vpop.f32.mrb[106].mxu0  ;;  %v7841_v57 = vld [vmem:[%s11568_s4 + $0x98] sm:$0xff]  }
 0x8a6   :  { %v6071_v47 = vadd.f32 3.0, %v5942_v43  ;;  %v5946_v23 = vpop.f32.mrb[107].mxu0 }
 0x8a7   :  { %v6072_v35 = vadd.f32 3.0, %v5944_v40 }
 0x8a8   :  { %v6079_v0 = vmax.f32 %v6071_v47, 0.0  ;;  %v7844_v47 = vld [vmem:[%s11568_s4 + $0xe0] sm:$0xff]  }
 0x8a9   :  { %v6080_v41 = vmax.f32 %v6072_v35, 0.0 }
 0x8aa   :  { %v6087_v22 = vmin.f32 %v6079_v0, 6.0 }
 0x8ab   :  { %v6088_v8 = vmin.f32 %v6080_v41, 6.0  ;;  %v5982_v42 = vpop.f32.mrb[108].mxu0  ;;  %v7845_v41 = vld [vmem:[%s11568_s4 + $0xa0] sm:$0xff]  }
 0x8ac   :  { %v6095_v13 = vmul.f32 %v6087_v22, %v5942_v43  ;;  %v5984_v11 = vpop.f32.mrb[109].mxu0  ;;  %v5983_v59 = vadd.f32 %v5982_v42, %v5835_v7 }
 0x8ad   :  { %v6096_v63 = vmul.f32 %v6088_v8, %v5944_v40  ;;  %v5985_v39 = vadd.f32 %v5984_v11, %v5839_v38  ;;  %v5986_v50 = vpop.f32.mrb[110].mxu0  ;;  %v7846_v8 = vld [vmem:[%s11568_s4 + $0xe8] sm:$0xff]  }
 0x8ae   :  { %v6103_v56 = vmul.f32 0.16666667, %v6095_v13  ;;  %v5987_v55 = vpop.f32.mrb[111].mxu0  ;;  %v6073_v40 = vadd.f32 3.0, %v5983_v59  ;;  %v7847_v13 = vld [vmem:[%s11568_s4 + $0xa8] sm:$0xff]  }
 0x8af   :  { %v6104_v62 = vmul.f32 0.16666667, %v6096_v63  ;;  %v6074_v29 = vadd.f32 3.0, %v5985_v39  ;;  %v7851_v55 = vld [vmem:[%s11568_s4 + $0xb8] sm:$0xff]  }
 0x8b0   :  { %v6111_v15 = vpack.c.bf16 %v6103_v56, %v6103_v56  ;;  %v6081_v38 = vmax.f32 %v6073_v40, 0.0 }
 0x8b1   :  { %v6112_v60 = vpack.c.bf16 %v6104_v62, %v6104_v62  ;;  %v6082_v6 = vmax.f32 %v6074_v29, 0.0  ;;  %v7852_v29 = vld [vmem:[%s11568_s4 + $0x1c0] sm:$0xff]  }
 0x8b2   :  { %v6089_v11 = vmin.f32 %v6081_v38, 6.0 }
 0x8b3   :  { %v6090_v10 = vmin.f32 %v6082_v6, 6.0  ;;  %v6023_v12 = vpop.f32.mrb[112].mxu0  ;;  %6663 = vmatprep.mubr.bf16.mxu0 %v6112_v60  ;;  %v7853_v60 = vld [vmem:[%s11568_s4 + $0x180] sm:$0xff]  }
 0x8b4   :  { %v6024_v32 = vadd.f32 %v6023_v12, %v5843_v30  ;;  %v6025_v19 = vpop.f32.mrb[113].mxu0  ;;  %6664 = vmatmul.mubr.bf16.vlgmr.msra.gmra.mrb[120].mxu0 %v6111_v15  ;;  %v6097_v50 = vmul.f32 %v6089_v11, %v5983_v59 }
 0x8b5   :  { %v6098_v46 = vmul.f32 %v6090_v10, %v5985_v39  ;;  %v6026_v26 = vadd.f32 %v6025_v19, %v5847_v18  ;;  %7383 = vmatpush3.bf16.msra.mxu0 %v7829_v4  ;;  %v6027_v61 = vpop.f32.mrb[114].mxu0  ;;  %v7849_v39 = vld [vmem:[%s11568_s4 + $0xb0] sm:$0xff]   ;;  %v5850_v18 = vsub.s32 6, %v12151_v14  ;;  %v7854_v4 = vld [vmem:[%s11568_s4 + $0x1c8] sm:$0xff]  }
 0x8b6   :  { %v6075_v34 = vadd.f32 3.0, %v6024_v32  ;;  %v6028_v31 = vpop.f32.mrb[115].mxu0  ;;  %7384 = vmatprep.subr.bf16.mxu0 %v7832_v44  ;;  %v6105_v62 = vmul.f32 0.16666667, %v6097_v50  ;;  %v7856_v14 = vld [vmem:[%s11568_s4 + $0x1d0] sm:$0xff]  }
 0x8b7   :  { %v6106_v21 = vmul.f32 0.16666667, %v6098_v46  ;;  %v6076_v16 = vadd.f32 3.0, %v6026_v26  ;;  %v5851_v44 = vrot.slane %v11438_v28, %v5850_v18  ;;  %v7857_v10 = vld [vmem:[%s11568_s4 + $0x190] sm:$0xff]   ;;  %v7859_v28 = vld [vmem:[%s11568_s4 + $0x198] sm:$0xff]   ;;  %v7860_v46 = vld [vmem:[%s11568_s4 + $0x1e0] sm:$0xff]  }
 0x8b8   :  { %v6083_v58 = vmax.f32 %v6075_v34, 0.0  ;;  %v6113_v6 = vpack.c.bf16 %v6105_v62, %v6105_v62  ;;  %v7864_v34 = vld [vmem:[%s11568_s4 + $0x1f0] sm:$0xff]  }
 0x8b9   :  { %v6114_v36 = vpack.c.bf16 %v6106_v21, %v6106_v21  ;;  %v6084_v20 = vmax.f32 %v6076_v16, 0.0  ;;  %7385 = vmatpush3.bf16.msra.mxu0 %v7833_v45  ;;  %v7862_v45 = vld [vmem:[%s11568_s4 + $0x1e8] sm:$0xff]   ;;  %v7865_v31 = vld [vmem:[%s11568_s4 + $0x1b0] sm:$0xff]   ;;  %v7866_v21 = vld [vmem:[%s11568_s4 + $0x1f8] sm:$0xff]  }
 0x8ba   :  { %v6091_v54 = vmin.f32 %v6083_v58, 6.0  ;;  %7386 = vmatprep.subr.bf16.mxu0 %v7836_v37  ;;  %v7867_v16 = vld [vmem:[%s11568_s4 + $0x1b8] sm:$0xff]  }
 0x8bb   :  { %v6092_v49 = vmin.f32 %v6084_v20, 6.0  ;;  %v6064_v51 = vpop.f32.mrb[116].mxu0  ;;  %6703 = vmatprep.mubr.bf16.mxu0 %v6114_v36 }
 0x8bc   :  { %v6099_v9 = vmul.f32 %v6091_v54, %v6024_v32  ;;  %v6066_v24 = vpop.f32.mrb[117].mxu0  ;;  %v6065_v12 = vadd.f32 %v6064_v51, %v5851_v44  ;;  %v7858_v32 = vld [vmem:[%s11568_s4 + $0x1d8] sm:$0xff]  }
 0x8bd   :  { %v6100_v2 = vmul.f32 %v6092_v49, %v6026_v26  ;;  %v6067_v25 = vadd.f32 %v6066_v24, %v5855_v5  ;;  %7387 = vmatpush3.bf16.msra.mxu0 %v7837_v48  ;;  %v6068_v43 = vpop.f32.mrb[118].mxu0  ;;  %v7861_v26 = vld [vmem:[%s11568_s4 + $0x1a0] sm:$0xff]   ;;  %s7910_s4 = smov [#allocation5]  }
 0x8be   :  { %v6107_v3 = vmul.f32 0.16666667, %v6099_v9  ;;  %v6069_v53 = vpop.f32.mrb[119].mxu0  ;;  %7388 = vmatprep.subr.bf16.mxu0 %v7840_v52  ;;  %v6077_v19 = vadd.f32 3.0, %v6065_v12  ;;  %s6799_s12 = sshll.u32 %s7910_s4, 4  ;;  %s6800_s12 = int_to_ptr.vmem [resolvable:$true] %s6799_s12 }
 0x8bf   :  { %v6108_v23 = vmul.f32 0.16666667, %v6100_v2  ;;  %v6078_v35 = vadd.f32 3.0, %v6067_v25  ;;  %v5813_v2 = vld [vmem:[%s11566_s2 + $0x6] ss:$0 sm:$0xff]  ;;  %s7873_s2 = scalar_lea.vmem %s6800_s12, 32  ;;  %p7878_p1 = scmp.lt.s32.totalorder %s6800_s12, %s6800_s12 }
 0x8c0   :  { %v6115_v22 = vpack.c.bf16 %v6107_v3, %v6107_v3  ;;  %v6085_v61 = vmax.f32 %v6077_v19, 0.0  ;;  %p7874_p0 = scmp.ne.s32.totalorder %s6800_s12, %s7873_s2  ;;  %p7879_p2 = scmp.lt.s32.totalorder %s7873_s2, %s7873_s2 }
 0x8c1   :  { %v6116_v0 = vpack.c.bf16 %v6108_v23, %v6108_v23  ;;  %7389 = vmatpush3.bf16.msra.mxu0 %v7841_v57  ;;  %v6086_v42 = vmax.f32 %v6078_v35, 0.0 }
 0x8c2   :  { %7390 = vmatprep.subr.bf16.mxu0 %v7844_v47  ;;  %v6093_v7 = vmin.f32 %v6085_v61, 6.0  ;;  %p7880_p3 = por %p7879_p2, %p7878_p1 }
 0x8c3   :  { %6743 = vmatprep.mubr.bf16.mxu1 %v6116_v0  ;;  %v6094_v63 = vmin.f32 %v6086_v42, 6.0 }
 0x8c4   :  { %6744 = vmatmul.mubr.bf16.vlgmr.msra.gmra.mrb[160].mxu1 %v6115_v22  ;;  %v6101_v37 = vmul.f32 %v6093_v7, %v6065_v12  ;;  %p7881_p4 = pnand %p7880_p3, %p7874_p0 }
 0x8c5   :  { %7391 = vmatpush3.bf16.msra.mxu0 %v7845_v41  ;;  %v6102_v56 = vmul.f32 %v6094_v63, %v6067_v25 }
 0x8c6   :  { %7392 = vmatprep.subr.bf16.mxu0 %v7846_v8  ;;  %v6109_v58 = vmul.f32 0.16666667, %v6101_v37 }
 0x8c7   :  { %v6110_v30 = vmul.f32 0.16666667, %v6102_v56 }
 0x8c8   :  { %v6117_v36 = vpack.c.bf16 %v6109_v58, %v6109_v58 }
 0x8c9   :  { %7393 = vmatpush3.bf16.msra.mxu0 %v7847_v13  ;;  %v6118_v15 = vpack.c.bf16 %v6110_v30, %v6110_v30 }
 0x8ca   :  { %7394 = vmatprep.subr.bf16.mxu0 %v7848_v17 }
 0x8cd   :  { %7395 = vmatpush3.bf16.msra.mxu0 %v7849_v39 }
 0x8ce   :  { %7396 = vmatprep.subr.bf16.mxu0 %v7850_v27 }
 0x8d1   :  { %7397 = vmatpush3.bf16.msra.mxu0 %v7851_v55 }
 0x8d2   :  { %7426 = vmatprep.subr.bf16.mxu0 %v7852_v29 }
 0x8d4   :  { %6704 = vmatmul.mubr.bf16.vlgmr.msra.gmra.mrb[124].mxu0 %v6113_v6 }
 0x8d5   :  { %7427 = vmatpush3.bf16.msra.mxu0 %v7853_v60  ;;  %6783 = vmatprep.mubr.bf16.mxu0 %v6118_v15 }
 0x8d6   :  { %7428 = vmatprep.subr.bf16.mxu0 %v7854_v4 }
 0x8d9   :  { %7429 = vmatpush3.bf16.msra.mxu0 %v7855_v1 }
 0x8da   :  { %7430 = vmatprep.subr.bf16.mxu0 %v7856_v14 }
 0x8dd   :  { %7431 = vmatpush3.bf16.msra.mxu0 %v7857_v10 }
 0x8de   :  { %7432 = vmatprep.subr.bf16.mxu0 %v7858_v32 }
 0x8e1   :  { %7433 = vmatpush3.bf16.msra.mxu0 %v7859_v28 }
 0x8e2   :  { %7434 = vmatprep.subr.bf16.mxu0 %v7860_v46 }
 0x8e5   :  { %7435 = vmatpush3.bf16.msra.mxu0 %v7861_v26 }
 0x8e6   :  { %7436 = vmatprep.subr.bf16.mxu0 %v7862_v45 }
 0x8e9   :  { %7437 = vmatpush3.bf16.msra.mxu0 %v7863_v33 }
 0x8ea   :  { %7438 = vmatprep.subr.bf16.mxu0 %v7864_v34 }
 0x8ed   :  { %7439 = vmatpush3.bf16.msra.mxu0 %v7865_v31 }
 0x8ee   :  { %7440 = vmatprep.subr.bf16.mxu0 %v7866_v21 }
 0x8f1   :  { %7441 = vmatpush3.bf16.msra.mxu0 %v7867_v16 }
 0x8f4   :  { %6784 = vmatmul.mubr.bf16.vlgmr.msra.gmra.mrb[128].mxu0 %v6117_v36 }
 0x987   :  { %v7376_v20 = vpop.f32.mrb[120].mxu0 }
 0x988   :  { %v7377_v5 = vpop.f32.mrb[121].mxu0 }
 0x989   :  { %v7378_v48 = vadd.f32 %v7377_v5, %v7376_v20  ;;  %v7379_v59 = vpop.f32.mrb[122].mxu0 }
 0x98a   :  { %v7380_v54 = vpop.f32.mrb[123].mxu0 }
 0x98b   :  { %v6666_v57 = vadd.f32 %v7378_v48, %v5813_v2 }
 0x997   :  { %v7420_v52 = vpop.f32.mrb[160].mxu1 }
 0x998   :  { %v7421_v49 = vpop.f32.mrb[161].mxu1 }
 0x999   :  { %v7422_v51 = vadd.f32 %v7421_v49, %v7420_v52  ;;  %v7423_v9 = vpop.f32.mrb[162].mxu1 }
 0x99a   :  { %v7424_v24 = vpop.f32.mrb[163].mxu1 }
 0x9a7   :  { %v7398_v25 = vpop.f32.mrb[124].mxu0 }
 0x9a8   :  { %v7399_v43 = vpop.f32.mrb[125].mxu0 }
 0x9a9   :  { %v7400_v40 = vadd.f32 %v7399_v43, %v7398_v25  ;;  %v7401_v3 = vpop.f32.mrb[126].mxu0 }
 0x9aa   :  { %v7402_v53 = vpop.f32.mrb[127].mxu0 }
 0x9ab   :  { %v6706_v47 = vadd.f32 %v7400_v40, %v6666_v57 }
 0x9ad   :  { %v6746_v23 = vadd.f32 %v7422_v51, %v6706_v47 }
 0x9c7   :  { %v7442_v35 = vpop.f32.mrb[128].mxu0 }
 0x9c8   :  { %v7443_v0 = vpop.f32.mrb[129].mxu0 }
 0x9c9   :  { %v7444_v41 = vadd.f32 %v7443_v0, %v7442_v35  ;;  %v7445_v38 = vpop.f32.mrb[130].mxu0 }
 0x9ca   :  { %v7446_v22 = vpop.f32.mrb[131].mxu0 }
 0x9cb   :  { %v6786_v8 = vadd.f32 %v7444_v41, %v6746_v23 }
 0x9cd   :  { %6792 = vst.msk [vmem:[#allocation5] sm:$0x3] %vm6791_vm12, %v6786_v8 }
 0x9ce   :  { %7884 = shalt.err (!%p7881_p4)
}
 0x9cf   :  { %s7885_s15 = scalar_lea.hbm %s11569_s5, 32 }
 0x9d0   :  { %p7886_p5 = scmp.ne.s32.totalorder %s11569_s5, %s7885_s15  ;;  %p7889_p6 = scmp.lt.u32.totalorder %s7885_s15, %s11569_s5 }
 0x9d2   :  { %p7891_p7 = pnand %p7889_p6, %p7886_p5 }
 0x9d4   :  { %7894 = shalt.err (!%p7891_p7)
}
 0x9d5   :  { %6802 = dma.vmem_to_hbm [thread:$0]  %s6800_s12, 32, %s11569_s5, [#allocation6]  }
 0x9d6   :  { %7895 = dma.done.wait [#allocation6], 32  }
 0x9d7   :  { %7896 = vsyncadd [#allocation6], 4294967264 }
 0x9d8   :  { %6806 = vsyncpa [#allocation6], 1 }

</bundles_post_ra>
